<compile_context>
chip_gen: v6e
topology: v6e:2x2x1
jax: 0.10.0
libtpu: 0.0.40
codegen_flags: <defaults>
</compile_context>

<pallas_src>
import jax
import jax.numpy as jnp
from jax import lax
from jax.experimental import pallas as pl
from jax.experimental.pallas import tpu as pltpu

BN_EPS = 1e-5
LEAKY_SLOPE = 0.2


def _leaky(x):
    return jnp.where(x >= 0.0, x, LEAKY_SLOPE * x)


# ----------------------------------------------------------------------------
# Fused whole-network kernel (one image per grid step)
# ----------------------------------------------------------------------------
def _disc_kernel(p1_ref, w1_ref, b1_ref, w2_ref, b2_ref, w3_ref, b3_ref,
                 wfc_ref, bfc_ref, o_ref, buf2, buf3):
    """Width-folded activation layout:
         a layer input of spatial (H, W), C channels, fold F = W/8 is stored as
         buf[(slab q,) 1 + row, 8 + j, :] = x[row, F*j + q, :]
       with zero pad rows above/below and zero pad columns on the left, so the
       3x3/stride-2/pad-1 taps become static slices (sublane shift 0/-1, aligned
       channel slabs)."""
    f32, bf16 = jnp.float32, jnp.bfloat16

    # Zero scratch so the padding rows/cols read as zeros (cheap: ~0.85 MB of stores).
    buf2[...] = jnp.zeros_like(buf2)
    buf3[...] = jnp.zeros_like(buf3)

    # ---- conv1 + BN + LeakyReLU: (64,64,1) -> (32,32,64), width folded by 4 ------
    p1 = p1_ref[0]                                        # (4, 256, 9) bf16 patches
    for p in range(4):                                    # four width slabs
        a = jnp.dot(p1[p], w1_ref[...], preferred_element_type=f32)   # (256, 64)
        a = _leaky(a + b1_ref[...])
        buf2[p, 1:33, 8:16, :] = a.reshape(32, 8, 64)

    # ---- conv2 + BN + LeakyReLU: (32,32,64) -> (16,16,128), width folded by 2 ----
    rows2 = []
    for q in range(4):
        v = buf2[q].reshape(17, 2, 16, 64)                # even / odd padded rows
        e, o = v[:, 0], v[:, 1]
        rows2.append((e[0:16], o[0:16], e[1:17]))         # kh = 0, 1, 2
    for p in range(2):                                    # output width slabs
        acc = jnp.zeros((128, 128), f32)
        for kh in range(3):
            for kw in range(3):
                col = 2 * p + kw - 1
                dj, q = (-1, 3) if col < 0 else (0, col)
                tap = rows2[q][kh][:, 8 + dj:16 + dj, :]              # (16, 8, 64)
                acc = acc + jnp.dot(tap.reshape(128, 64).astype(bf16),
                                    w2_ref[kh * 3 + kw],
                                    preferred_element_type=f32)
        y = _leaky(acc + b2_ref[...])                     # (128, 128)
        buf3[1:17, 8:16, p * 128:(p + 1) * 128] = y.reshape(16, 8, 128)

    # ---- conv3 + BN + LeakyReLU: (16,16,128) -> (8,8,256), plain NHWC ------------
    v3 = buf3[...].reshape(9, 2, 16, 256)
    e3, o3 = v3[:, 0], v3[:, 1]
    rows3 = (e3[0:8], o3[0:8], e3[1:9])                   # kh = 0, 1, 2
    acc3 = jnp.zeros((64, 256), f32)
    for kh in range(3):
        for kw in range(3):
            col = kw - 1
            dj, q = (-1, 1) if col < 0 else (0, col)
            tap = rows3[kh][:, 8 + dj:16 + dj, q * 128:(q + 1) * 128]  # (8, 8, 128)
            acc3 = acc3 + jnp.dot(tap.reshape(64, 128).astype(bf16),
                                  w3_ref[kh * 3 + kw],
                                  preferred_element_type=f32)
    y3 = _leaky(acc3 + b3_ref[...])                       # (64, 256) = (h*8 + w, c)

    # ---- Linear(8*8*256 -> 1) + sigmoid: VPU multiply + full reduce ---------------
    prod = y3 * wfc_ref[...]                              # (64, 256)
    z = jnp.sum(jnp.sum(prod, axis=0, keepdims=True), axis=1, keepdims=True)
    z = z + bfc_ref[...]                                  # (1, 1) logit
    t = jnp.exp(-jnp.abs(z))                              # numerically stable sigmoid
    sig = jnp.where(z >= 0.0, 1.0 / (1.0 + t), t / (1.0 + t))
    o_ref[...] = jnp.broadcast_to(sig.reshape(1, 1, 1), (1, 1, 128)).astype(o_ref.dtype)


# ----------------------------------------------------------------------------
# Host-side glue: conv1 patches (on the raw input only) + parameter folding
# ----------------------------------------------------------------------------
def conv1_patches(x):
    """x: (N, 64, 64) -> (N, 4, 256, 9) bf16 with
       [n, p, ho*8 + j, kh*3 + kw] = padded_x[n, 2*ho + kh - 1, 2*(4*j + p) + kw - 1]."""
    n = x.shape[0]
    xp = jnp.pad(x, ((0, 0), (1, 1), (1, 1)))             # (N, 66, 66)
    taps = [lax.slice(xp, (0, kh, kw), (n, kh + 63, kw + 63), (1, 2, 2))
            for kh in range(3) for kw in range(3)]         # each (N, 32, 32)
    stk = jnp.stack(taps, axis=-1)                         # (N, 32, 32, 9) [n,ho,wo,t]
    stk = stk.reshape(n, 32, 8, 4, 9)                      # wo = 4*j + p
    return jnp.transpose(stk, (0, 3, 1, 2, 4)).reshape(n, 4, 256, 9).astype(jnp.bfloat16)


def init_params(key):
    """Deterministic synthetic parameters in PyTorch layouts."""
    block = [1, 64, 128, 256]
    keys = jax.random.split(key, 6 * 3 + 2)
    conv_layers = []
    k = 0
    for cin, cout in zip(block[:-1], block[1:]):
        w = 0.05 * jax.random.normal(keys[k], (cout, cin, 3, 3), jnp.float32); k += 1
        b = 0.05 * jax.random.normal(keys[k], (cout,), jnp.float32); k += 1
        gamma = 1.0 + 0.1 * jax.random.normal(keys[k], (cout,), jnp.float32); k += 1
        beta = 0.1 * jax.random.normal(keys[k], (cout,), jnp.float32); k += 1
        mean = 0.1 * jax.random.normal(keys[k], (cout,), jnp.float32); k += 1
        var = jax.random.uniform(keys[k], (cout,), jnp.float32, 0.5, 1.5); k += 1
        conv_layers.append((w, b, gamma, beta, mean, var))
    wfc = 0.01 * jax.random.normal(keys[k], (1, 8 * 8 * 256), jnp.float32); k += 1
    bfc = 0.01 * jax.random.normal(keys[k], (1,), jnp.float32); k += 1
    return {"conv": conv_layers, "fc": (wfc, bfc)}


def prepare_params(params):
    """Fold conv bias + BN into (bf16 weight, f32 shift); pre-reshape FC weight."""
    def fold_bn(b, g, be, m, v):
        s = g / jnp.sqrt(v + BN_EPS)
        return s, s * (b - m) + be

    w1, b1, g1, be1, m1, v1 = params["conv"][0]
    s1, sh1 = fold_bn(b1, g1, be1, m1, v1)
    w1p = (w1.reshape(64, 9).T * s1[None, :]).astype(jnp.bfloat16)     # (9, 64)
    b1p = sh1[None, :].astype(jnp.float32)                             # (1, 64)

    def pack(layer):
        w, b, g, be, m, v = layer
        cout, cin = w.shape[0], w.shape[1]
        s, sh = fold_bn(b, g, be, m, v)
        wp = jnp.transpose(w, (2, 3, 1, 0)).reshape(9, cin, cout) * s[None, None, :]
        return wp.astype(jnp.bfloat16), sh[None, :].astype(jnp.float32)

    w2p, b2p = pack(params["conv"][1])                                 # (9,64,128), (1,128)
    w3p, b3p = pack(params["conv"][2])                                 # (9,128,256), (1,256)

    wfc, bfc = params["fc"]
    # PyTorch flattens NCHW: feature index = c*64 + h*8 + w  -> reorder to (h*8+w, c)
    wfc_p = jnp.transpose(wfc.reshape(256, 8, 8), (1, 2, 0)).reshape(64, 256)
    return (w1p, b1p, w2p, b2p, w3p, b3p,
            wfc_p.astype(jnp.float32), bfc.reshape(1, 1).astype(jnp.float32))


# ----------------------------------------------------------------------------
# Forward pass (single pallas_call)
# ----------------------------------------------------------------------------
@jax.jit
def discriminator_forward(x_nchw, prep):
    w1, b1, w2, b2, w3, b3, wfc, bfc = prep
    x = x_nchw.astype(jnp.float32)
    n = x.shape[0]
    assert x.shape[1:] == (1, 64, 64), "Discriminator expects (N, 1, 64, 64) input"
    patches = conv1_patches(x[:, 0, :, :])                # (N, 4, 256, 9) bf16

    out = pl.pallas_call(
        _disc_kernel,
        out_shape=jax.ShapeDtypeStruct((n, 1, 128), jnp.float32),
        grid_spec=pltpu.PrefetchScalarGridSpec(
            num_scalar_prefetch=0,
            grid=(n,),
            in_specs=[
                pl.BlockSpec((1, 4, 256, 9), lambda i: (i, 0, 0, 0)),   # conv1 patches
                pl.BlockSpec((9, 64), lambda i: (0, 0)),                # conv1 weight
                pl.BlockSpec((1, 64), lambda i: (0, 0)),                # conv1 shift
                pl.BlockSpec((9, 64, 128), lambda i: (0, 0, 0)),        # conv2 weight
                pl.BlockSpec((1, 128), lambda i: (0, 0)),               # conv2 shift
                pl.BlockSpec((9, 128, 256), lambda i: (0, 0, 0)),       # conv3 weight
                pl.BlockSpec((1, 256), lambda i: (0, 0)),               # conv3 shift
                pl.BlockSpec((64, 256), lambda i: (0, 0)),              # fc weight (8,8,256)
                pl.BlockSpec((1, 1), lambda i: (0, 0)),                 # fc bias
            ],
            out_specs=pl.BlockSpec((1, 1, 128), lambda i: (i, 0, 0)),
            scratch_shapes=[
                pltpu.VMEM((4, 34, 16, 64), jnp.float32),   # conv1 output (folded, padded)
                pltpu.VMEM((18, 16, 256), jnp.float32),     # conv2 output (folded, padded)
            ],
        ),
        compiler_params=pltpu.CompilerParams(dimension_semantics=("parallel",)),
    )(patches, w1, b1, w2, b2, w3, b3, wfc, bfc)
    return out[:, 0, :1]                                   # (N, 1)


# ----------------------------------------------------------------------------
# Pure-JAX reference (for correctness check)
# ----------------------------------------------------------------------------
def reference_forward(x_nchw, params):
    x = x_nchw.astype(jnp.float32)
    for (w, b, gamma, beta, mean, var) in params["conv"]:
        x = jax.lax.conv_general_dilated(
            x, w, (2, 2), ((1, 1), (1, 1)),
            dimension_numbers=("NCHW", "OIHW", "NCHW"))
        x = x + b[None, :, None, None]
        x = ((x - mean[None, :, None, None])
             / jnp.sqrt(var[None, :, None, None] + BN_EPS)
             * gamma[None, :, None, None] + beta[None, :, None, None])
        x = jnp.where(x >= 0.0, x, LEAKY_SLOPE * x)
    feat = x.reshape(x.shape[0], -1)
    wfc, bfc = params["fc"]
    return jax.nn.sigmoid(feat @ wfc.T + bfc)


if __name__ == "__main__":
    key = jax.random.PRNGKey(0)
    pkey, xkey = jax.random.split(key)
    params = init_params(pkey)
    prep = prepare_params(params)

    # Smallest shape consistent with the module: fc expects 8*8*256 features,
    # i.e. 64x64 single-channel input (three stride-2 convs: 64 -> 32 -> 16 -> 8).
    x = jax.random.normal(xkey, (2, 1, 64, 64), jnp.float32)

    out = jax.block_until_ready(discriminator_forward(x, prep))
    ref = jax.block_until_ready(reference_forward(x, params))

    assert out.shape == (2, 1)
    assert bool(jnp.all(jnp.isfinite(out)))
    assert jnp.allclose(out, ref, atol=2e-2, rtol=2e-2), (out, ref)

    print("KERNEL_OK")
</pallas_src>

<mosaic_0001>
module attributes {stable_mosaic.version = 11 : i64} {
  func.func @_disc_kernel(%arg0: i32, %arg1: memref<1x4x256x9xbf16, #tpu.memory_space<vmem>>, %arg2: memref<9x64xbf16, #tpu.memory_space<vmem>>, %arg3: memref<1x64xf32, #tpu.memory_space<vmem>>, %arg4: memref<9x64x128xbf16, #tpu.memory_space<vmem>>, %arg5: memref<1x128xf32, #tpu.memory_space<vmem>>, %arg6: memref<9x128x256xbf16, #tpu.memory_space<vmem>>, %arg7: memref<1x256xf32, #tpu.memory_space<vmem>>, %arg8: memref<64x256xf32, #tpu.memory_space<vmem>>, %arg9: memref<1x1xf32, #tpu.memory_space<vmem>>, %arg10: memref<1x1x128xf32, #tpu.memory_space<vmem>>, %arg11: memref<4x34x16x64xf32, #tpu.memory_space<vmem>>, %arg12: memref<18x16x256xf32, #tpu.memory_space<vmem>>) attributes {dimension_semantics = [#tpu.dimension_semantics<parallel>], iteration_bounds = array<i64: 2>, scalar_prefetch = 0 : i64, scratch_operands = 2 : i64, tpu.core_type = #tpu.core_type<tc>, window_params = [{transform_indices = @transform_0, window_bounds = array<i64: 1, 4, 256, 9>}, {pipeline_mode = #tpu.pipeline_mode<synchronous>, transform_indices = @transform_1, window_bounds = array<i64: 9, 64>}, {pipeline_mode = #tpu.pipeline_mode<synchronous>, transform_indices = @transform_2, window_bounds = array<i64: 1, 64>}, {pipeline_mode = #tpu.pipeline_mode<synchronous>, transform_indices = @transform_3, window_bounds = array<i64: 9, 64, 128>}, {pipeline_mode = #tpu.pipeline_mode<synchronous>, transform_indices = @transform_4, window_bounds = array<i64: 1, 128>}, {pipeline_mode = #tpu.pipeline_mode<synchronous>, transform_indices = @transform_5, window_bounds = array<i64: 9, 128, 256>}, {pipeline_mode = #tpu.pipeline_mode<synchronous>, transform_indices = @transform_6, window_bounds = array<i64: 1, 256>}, {pipeline_mode = #tpu.pipeline_mode<synchronous>, transform_indices = @transform_7, window_bounds = array<i64: 64, 256>}, {pipeline_mode = #tpu.pipeline_mode<synchronous>, transform_indices = @transform_8, window_bounds = array<i64: 1, 1>}, {transform_indices = @transform_9, window_bounds = array<i64: 1, 1, 128>}]} {
    %cst = arith.constant 0.000000e+00 : f32
    %0 = vector.broadcast %cst : f32 to vector<4x34x16x64xf32>
    %c0 = arith.constant 0 : index
    %c0_0 = arith.constant 0 : index
    %c0_1 = arith.constant 0 : index
    %c0_2 = arith.constant 0 : index
    %1 = vector.load %arg11[%c0, %c0_0, %c0_1, %c0_2] : memref<4x34x16x64xf32, #tpu.memory_space<vmem>>, vector<4x34x16x64xf32>
    tpu.vector_store %arg11[%c0, %c0_0, %c0_1, %c0_2], %0 {strides = array<i32>} : memref<4x34x16x64xf32, #tpu.memory_space<vmem>>, vector<4x34x16x64xf32>,
    %cst_3 = arith.constant 0.000000e+00 : f32
    %2 = vector.broadcast %cst_3 : f32 to vector<18x16x256xf32>
    %c0_4 = arith.constant 0 : index
    %c0_5 = arith.constant 0 : index
    %c0_6 = arith.constant 0 : index
    %3 = vector.load %arg12[%c0_4, %c0_5, %c0_6] : memref<18x16x256xf32, #tpu.memory_space<vmem>>, vector<18x16x256xf32>
    tpu.vector_store %arg12[%c0_4, %c0_5, %c0_6], %2 {strides = array<i32>} : memref<18x16x256xf32, #tpu.memory_space<vmem>>, vector<18x16x256xf32>,
    %c0_7 = arith.constant 0 : index
    %c0_8 = arith.constant 0 : index
    %c0_9 = arith.constant 0 : index
    %c0_10 = arith.constant 0 : index
    %4 = vector.load %arg1[%c0_7, %c0_8, %c0_9, %c0_10] : memref<1x4x256x9xbf16, #tpu.memory_space<vmem>>, vector<1x4x256x9xbf16>
    %5 = vector.shape_cast %4 : vector<1x4x256x9xbf16> to vector<4x256x9xbf16>
    %6 = vector.extract_strided_slice %5 {offsets = [0, 0, 0], sizes = [1, 256, 9], strides = [1, 1, 1]} : vector<4x256x9xbf16> to vector<1x256x9xbf16>
    %7 = vector.shape_cast %6 : vector<1x256x9xbf16> to vector<256x9xbf16>
    %c0_11 = arith.constant 0 : index
    %c0_12 = arith.constant 0 : index
    %8 = vector.load %arg2[%c0_11, %c0_12] : memref<9x64xbf16, #tpu.memory_space<vmem>>, vector<9x64xbf16>
    %cst_13 = arith.constant dense<0.000000e+00> : vector<256x64xf32>
    %9 = tpu.matmul %7, %8, %cst_13 {dimension_numbers = #tpu.dot_dimension_numbers<[1], [0], [0], [1], [0, 0, 1, 1], [], []>} : vector<256x9xbf16>, vector<9x64xbf16>, vector<256x64xf32> -> vector<256x64xf32>
    %c0_14 = arith.constant 0 : index
    %c0_15 = arith.constant 0 : index
    %10 = vector.load %arg3[%c0_14, %c0_15] : memref<1x64xf32, #tpu.memory_space<vmem>>, vector<1x64xf32>
    %11 = vector.broadcast %10 : vector<1x64xf32> to vector<256x64xf32>
    %12 = arith.addf %9, %11 : vector<256x64xf32>
    %cst_16 = arith.constant 0.000000e+00 : f32
    %13 = vector.broadcast %cst_16 : f32 to vector<256x64xf32>
    %14 = arith.cmpf oge, %12, %13 : vector<256x64xf32>
    %cst_17 = arith.constant 2.000000e-01 : f32
    %15 = vector.broadcast %cst_17 : f32 to vector<256x64xf32>
    %16 = arith.mulf %15, %12 : vector<256x64xf32>
    %17 = arith.select %14, %12, %16 : vector<256x64xi1>, vector<256x64xf32>
    %18 = vector.shape_cast %17 : vector<256x64xf32> to vector<32x8x64xf32>
    %c0_18 = arith.constant 0 : index
    %c1 = arith.constant 1 : index
    %c8 = arith.constant 8 : index
    %c0_19 = arith.constant 0 : index
    %19 = vector.load %arg11[%c0_18, %c1, %c8, %c0_19] : memref<4x34x16x64xf32, #tpu.memory_space<vmem>>, vector<1x32x8x64xf32>
    %20 = vector.shape_cast %19 : vector<1x32x8x64xf32> to vector<32x8x64xf32>
    %21 = vector.shape_cast %18 : vector<32x8x64xf32> to vector<1x32x8x64xf32>
    tpu.vector_store %arg11[%c0_18, %c1, %c8, %c0_19], %21 {strides = array<i32>} : memref<4x34x16x64xf32, #tpu.memory_space<vmem>>, vector<1x32x8x64xf32>,
    %22 = vector.extract_strided_slice %5 {offsets = [1, 0, 0], sizes = [1, 256, 9], strides = [1, 1, 1]} : vector<4x256x9xbf16> to vector<1x256x9xbf16>
    %23 = vector.shape_cast %22 : vector<1x256x9xbf16> to vector<256x9xbf16>
    %c0_20 = arith.constant 0 : index
    %c0_21 = arith.constant 0 : index
    %24 = vector.load %arg2[%c0_20, %c0_21] : memref<9x64xbf16, #tpu.memory_space<vmem>>, vector<9x64xbf16>
    %cst_22 = arith.constant dense<0.000000e+00> : vector<256x64xf32>
    %25 = tpu.matmul %23, %24, %cst_22 {dimension_numbers = #tpu.dot_dimension_numbers<[1], [0], [0], [1], [0, 0, 1, 1], [], []>} : vector<256x9xbf16>, vector<9x64xbf16>, vector<256x64xf32> -> vector<256x64xf32>
    %c0_23 = arith.constant 0 : index
    %c0_24 = arith.constant 0 : index
    %26 = vector.load %arg3[%c0_23, %c0_24] : memref<1x64xf32, #tpu.memory_space<vmem>>, vector<1x64xf32>
    %27 = vector.broadcast %26 : vector<1x64xf32> to vector<256x64xf32>
    %28 = arith.addf %25, %27 : vector<256x64xf32>
    %cst_25 = arith.constant 0.000000e+00 : f32
    %29 = vector.broadcast %cst_25 : f32 to vector<256x64xf32>
    %30 = arith.cmpf oge, %28, %29 : vector<256x64xf32>
    %cst_26 = arith.constant 2.000000e-01 : f32
    %31 = vector.broadcast %cst_26 : f32 to vector<256x64xf32>
    %32 = arith.mulf %31, %28 : vector<256x64xf32>
    %33 = arith.select %30, %28, %32 : vector<256x64xi1>, vector<256x64xf32>
    %34 = vector.shape_cast %33 : vector<256x64xf32> to vector<32x8x64xf32>
    %c1_27 = arith.constant 1 : index
    %c1_28 = arith.constant 1 : index
    %c8_29 = arith.constant 8 : index
    %c0_30 = arith.constant 0 : index
    %35 = vector.load %arg11[%c1_27, %c1_28, %c8_29, %c0_30] : memref<4x34x16x64xf32, #tpu.memory_space<vmem>>, vector<1x32x8x64xf32>
    %36 = vector.shape_cast %35 : vector<1x32x8x64xf32> to vector<32x8x64xf32>
    %37 = vector.shape_cast %34 : vector<32x8x64xf32> to vector<1x32x8x64xf32>
    tpu.vector_store %arg11[%c1_27, %c1_28, %c8_29, %c0_30], %37 {strides = array<i32>} : memref<4x34x16x64xf32, #tpu.memory_space<vmem>>, vector<1x32x8x64xf32>,
    %38 = vector.extract_strided_slice %5 {offsets = [2, 0, 0], sizes = [1, 256, 9], strides = [1, 1, 1]} : vector<4x256x9xbf16> to vector<1x256x9xbf16>
    %39 = vector.shape_cast %38 : vector<1x256x9xbf16> to vector<256x9xbf16>
    %c0_31 = arith.constant 0 : index
    %c0_32 = arith.constant 0 : index
    %40 = vector.load %arg2[%c0_31, %c0_32] : memref<9x64xbf16, #tpu.memory_space<vmem>>, vector<9x64xbf16>
    %cst_33 = arith.constant dense<0.000000e+00> : vector<256x64xf32>
    %41 = tpu.matmul %39, %40, %cst_33 {dimension_numbers = #tpu.dot_dimension_numbers<[1], [0], [0], [1], [0, 0, 1, 1], [], []>} : vector<256x9xbf16>, vector<9x64xbf16>, vector<256x64xf32> -> vector<256x64xf32>
    %c0_34 = arith.constant 0 : index
    %c0_35 = arith.constant 0 : index
    %42 = vector.load %arg3[%c0_34, %c0_35] : memref<1x64xf32, #tpu.memory_space<vmem>>, vector<1x64xf32>
    %43 = vector.broadcast %42 : vector<1x64xf32> to vector<256x64xf32>
    %44 = arith.addf %41, %43 : vector<256x64xf32>
    %cst_36 = arith.constant 0.000000e+00 : f32
    %45 = vector.broadcast %cst_36 : f32 to vector<256x64xf32>
    %46 = arith.cmpf oge, %44, %45 : vector<256x64xf32>
    %cst_37 = arith.constant 2.000000e-01 : f32
    %47 = vector.broadcast %cst_37 : f32 to vector<256x64xf32>
    %48 = arith.mulf %47, %44 : vector<256x64xf32>
    %49 = arith.select %46, %44, %48 : vector<256x64xi1>, vector<256x64xf32>
    %50 = vector.shape_cast %49 : vector<256x64xf32> to vector<32x8x64xf32>
    %c2 = arith.constant 2 : index
    %c1_38 = arith.constant 1 : index
    %c8_39 = arith.constant 8 : index
    %c0_40 = arith.constant 0 : index
    %51 = vector.load %arg11[%c2, %c1_38, %c8_39, %c0_40] : memref<4x34x16x64xf32, #tpu.memory_space<vmem>>, vector<1x32x8x64xf32>
    %52 = vector.shape_cast %51 : vector<1x32x8x64xf32> to vector<32x8x64xf32>
    %53 = vector.shape_cast %50 : vector<32x8x64xf32> to vector<1x32x8x64xf32>
    tpu.vector_store %arg11[%c2, %c1_38, %c8_39, %c0_40], %53 {strides = array<i32>} : memref<4x34x16x64xf32, #tpu.memory_space<vmem>>, vector<1x32x8x64xf32>,
    %54 = vector.extract_strided_slice %5 {offsets = [3, 0, 0], sizes = [1, 256, 9], strides = [1, 1, 1]} : vector<4x256x9xbf16> to vector<1x256x9xbf16>
    %55 = vector.shape_cast %54 : vector<1x256x9xbf16> to vector<256x9xbf16>
    %c0_41 = arith.constant 0 : index
    %c0_42 = arith.constant 0 : index
    %56 = vector.load %arg2[%c0_41, %c0_42] : memref<9x64xbf16, #tpu.memory_space<vmem>>, vector<9x64xbf16>
    %cst_43 = arith.constant dense<0.000000e+00> : vector<256x64xf32>
    %57 = tpu.matmul %55, %56, %cst_43 {dimension_numbers = #tpu.dot_dimension_numbers<[1], [0], [0], [1], [0, 0, 1, 1], [], []>} : vector<256x9xbf16>, vector<9x64xbf16>, vector<256x64xf32> -> vector<256x64xf32>
    %c0_44 = arith.constant 0 : index
    %c0_45 = arith.constant 0 : index
    %58 = vector.load %arg3[%c0_44, %c0_45] : memref<1x64xf32, #tpu.memory_space<vmem>>, vector<1x64xf32>
    %59 = vector.broadcast %58 : vector<1x64xf32> to vector<256x64xf32>
    %60 = arith.addf %57, %59 : vector<256x64xf32>
    %cst_46 = arith.constant 0.000000e+00 : f32
    %61 = vector.broadcast %cst_46 : f32 to vector<256x64xf32>
    %62 = arith.cmpf oge, %60, %61 : vector<256x64xf32>
    %cst_47 = arith.constant 2.000000e-01 : f32
    %63 = vector.broadcast %cst_47 : f32 to vector<256x64xf32>
    %64 = arith.mulf %63, %60 : vector<256x64xf32>
    %65 = arith.select %62, %60, %64 : vector<256x64xi1>, vector<256x64xf32>
    %66 = vector.shape_cast %65 : vector<256x64xf32> to vector<32x8x64xf32>
    %c3 = arith.constant 3 : index
    %c1_48 = arith.constant 1 : index
    %c8_49 = arith.constant 8 : index
    %c0_50 = arith.constant 0 : index
    %67 = vector.load %arg11[%c3, %c1_48, %c8_49, %c0_50] : memref<4x34x16x64xf32, #tpu.memory_space<vmem>>, vector<1x32x8x64xf32>
    %68 = vector.shape_cast %67 : vector<1x32x8x64xf32> to vector<32x8x64xf32>
    %69 = vector.shape_cast %66 : vector<32x8x64xf32> to vector<1x32x8x64xf32>
    tpu.vector_store %arg11[%c3, %c1_48, %c8_49, %c0_50], %69 {strides = array<i32>} : memref<4x34x16x64xf32, #tpu.memory_space<vmem>>, vector<1x32x8x64xf32>,
    %c0_51 = arith.constant 0 : index
    %c0_52 = arith.constant 0 : index
    %c0_53 = arith.constant 0 : index
    %c0_54 = arith.constant 0 : index
    %70 = vector.load %arg11[%c0_51, %c0_52, %c0_53, %c0_54] : memref<4x34x16x64xf32, #tpu.memory_space<vmem>>, vector<1x34x16x64xf32>
    %71 = vector.shape_cast %70 : vector<1x34x16x64xf32> to vector<34x16x64xf32>
    %72 = vector.shape_cast %71 : vector<34x16x64xf32> to vector<17x2x16x64xf32>
    %73 = vector.extract_strided_slice %72 {offsets = [0, 0, 0, 0], sizes = [17, 1, 16, 64], strides = [1, 1, 1, 1]} : vector<17x2x16x64xf32> to vector<17x1x16x64xf32>
    %74 = vector.shape_cast %73 : vector<17x1x16x64xf32> to vector<17x16x64xf32>
    %75 = vector.extract_strided_slice %72 {offsets = [0, 1, 0, 0], sizes = [17, 1, 16, 64], strides = [1, 1, 1, 1]} : vector<17x2x16x64xf32> to vector<17x1x16x64xf32>
    %76 = vector.shape_cast %75 : vector<17x1x16x64xf32> to vector<17x16x64xf32>
    %77 = vector.extract_strided_slice %74 {offsets = [0, 0, 0], sizes = [16, 16, 64], strides = [1, 1, 1]} : vector<17x16x64xf32> to vector<16x16x64xf32>
    %78 = vector.extract_strided_slice %76 {offsets = [0, 0, 0], sizes = [16, 16, 64], strides = [1, 1, 1]} : vector<17x16x64xf32> to vector<16x16x64xf32>
    %79 = vector.extract_strided_slice %74 {offsets = [1, 0, 0], sizes = [16, 16, 64], strides = [1, 1, 1]} : vector<17x16x64xf32> to vector<16x16x64xf32>
    %c1_55 = arith.constant 1 : index
    %c0_56 = arith.constant 0 : index
    %c0_57 = arith.constant 0 : index
    %c0_58 = arith.constant 0 : index
    %80 = vector.load %arg11[%c1_55, %c0_56, %c0_57, %c0_58] : memref<4x34x16x64xf32, #tpu.memory_space<vmem>>, vector<1x34x16x64xf32>
    %81 = vector.shape_cast %80 : vector<1x34x16x64xf32> to vector<34x16x64xf32>
    %82 = vector.shape_cast %81 : vector<34x16x64xf32> to vector<17x2x16x64xf32>
    %83 = vector.extract_strided_slice %82 {offsets = [0, 0, 0, 0], sizes = [17, 1, 16, 64], strides = [1, 1, 1, 1]} : vector<17x2x16x64xf32> to vector<17x1x16x64xf32>
    %84 = vector.shape_cast %83 : vector<17x1x16x64xf32> to vector<17x16x64xf32>
    %85 = vector.extract_strided_slice %82 {offsets = [0, 1, 0, 0], sizes = [17, 1, 16, 64], strides = [1, 1, 1, 1]} : vector<17x2x16x64xf32> to vector<17x1x16x64xf32>
    %86 = vector.shape_cast %85 : vector<17x1x16x64xf32> to vector<17x16x64xf32>
    %87 = vector.extract_strided_slice %84 {offsets = [0, 0, 0], sizes = [16, 16, 64], strides = [1, 1, 1]} : vector<17x16x64xf32> to vector<16x16x64xf32>
    %88 = vector.extract_strided_slice %86 {offsets = [0, 0, 0], sizes = [16, 16, 64], strides = [1, 1, 1]} : vector<17x16x64xf32> to vector<16x16x64xf32>
    %89 = vector.extract_strided_slice %84 {offsets = [1, 0, 0], sizes = [16, 16, 64], strides = [1, 1, 1]} : vector<17x16x64xf32> to vector<16x16x64xf32>
    %c2_59 = arith.constant 2 : index
    %c0_60 = arith.constant 0 : index
    %c0_61 = arith.constant 0 : index
    %c0_62 = arith.constant 0 : index
    %90 = vector.load %arg11[%c2_59, %c0_60, %c0_61, %c0_62] : memref<4x34x16x64xf32, #tpu.memory_space<vmem>>, vector<1x34x16x64xf32>
    %91 = vector.shape_cast %90 : vector<1x34x16x64xf32> to vector<34x16x64xf32>
    %92 = vector.shape_cast %91 : vector<34x16x64xf32> to vector<17x2x16x64xf32>
    %93 = vector.extract_strided_slice %92 {offsets = [0, 0, 0, 0], sizes = [17, 1, 16, 64], strides = [1, 1, 1, 1]} : vector<17x2x16x64xf32> to vector<17x1x16x64xf32>
    %94 = vector.shape_cast %93 : vector<17x1x16x64xf32> to vector<17x16x64xf32>
    %95 = vector.extract_strided_slice %92 {offsets = [0, 1, 0, 0], sizes = [17, 1, 16, 64], strides = [1, 1, 1, 1]} : vector<17x2x16x64xf32> to vector<17x1x16x64xf32>
    %96 = vector.shape_cast %95 : vector<17x1x16x64xf32> to vector<17x16x64xf32>
    %97 = vector.extract_strided_slice %94 {offsets = [0, 0, 0], sizes = [16, 16, 64], strides = [1, 1, 1]} : vector<17x16x64xf32> to vector<16x16x64xf32>
    %98 = vector.extract_strided_slice %96 {offsets = [0, 0, 0], sizes = [16, 16, 64], strides = [1, 1, 1]} : vector<17x16x64xf32> to vector<16x16x64xf32>
    %99 = vector.extract_strided_slice %94 {offsets = [1, 0, 0], sizes = [16, 16, 64], strides = [1, 1, 1]} : vector<17x16x64xf32> to vector<16x16x64xf32>
    %c3_63 = arith.constant 3 : index
    %c0_64 = arith.constant 0 : index
    %c0_65 = arith.constant 0 : index
    %c0_66 = arith.constant 0 : index
    %100 = vector.load %arg11[%c3_63, %c0_64, %c0_65, %c0_66] : memref<4x34x16x64xf32, #tpu.memory_space<vmem>>, vector<1x34x16x64xf32>
    %101 = vector.shape_cast %100 : vector<1x34x16x64xf32> to vector<34x16x64xf32>
    %102 = vector.shape_cast %101 : vector<34x16x64xf32> to vector<17x2x16x64xf32>
    %103 = vector.extract_strided_slice %102 {offsets = [0, 0, 0, 0], sizes = [17, 1, 16, 64], strides = [1, 1, 1, 1]} : vector<17x2x16x64xf32> to vector<17x1x16x64xf32>
    %104 = vector.shape_cast %103 : vector<17x1x16x64xf32> to vector<17x16x64xf32>
    %105 = vector.extract_strided_slice %102 {offsets = [0, 1, 0, 0], sizes = [17, 1, 16, 64], strides = [1, 1, 1, 1]} : vector<17x2x16x64xf32> to vector<17x1x16x64xf32>
    %106 = vector.shape_cast %105 : vector<17x1x16x64xf32> to vector<17x16x64xf32>
    %107 = vector.extract_strided_slice %104 {offsets = [0, 0, 0], sizes = [16, 16, 64], strides = [1, 1, 1]} : vector<17x16x64xf32> to vector<16x16x64xf32>
    %108 = vector.extract_strided_slice %106 {offsets = [0, 0, 0], sizes = [16, 16, 64], strides = [1, 1, 1]} : vector<17x16x64xf32> to vector<16x16x64xf32>
    %109 = vector.extract_strided_slice %104 {offsets = [1, 0, 0], sizes = [16, 16, 64], strides = [1, 1, 1]} : vector<17x16x64xf32> to vector<16x16x64xf32>
    %cst_67 = arith.constant 0.000000e+00 : f32
    %110 = vector.broadcast %cst_67 : f32 to vector<128x128xf32>
    %111 = vector.extract_strided_slice %107 {offsets = [0, 7, 0], sizes = [16, 8, 64], strides = [1, 1, 1]} : vector<16x16x64xf32> to vector<16x8x64xf32>
    %112 = vector.shape_cast %111 : vector<16x8x64xf32> to vector<128x64xf32>
    %113 = arith.truncf %112 : vector<128x64xf32> to vector<128x64xbf16>
    %c0_68 = arith.constant 0 : index
    %c0_69 = arith.constant 0 : index
    %c0_70 = arith.constant 0 : index
    %114 = vector.load %arg4[%c0_68, %c0_69, %c0_70] : memref<9x64x128xbf16, #tpu.memory_space<vmem>>, vector<1x64x128xbf16>
    %115 = vector.shape_cast %114 : vector<1x64x128xbf16> to vector<64x128xbf16>
    %cst_71 = arith.constant dense<0.000000e+00> : vector<128x128xf32>
    %116 = tpu.matmul %113, %115, %cst_71 {dimension_numbers = #tpu.dot_dimension_numbers<[1], [0], [0], [1], [0, 0, 1, 1], [], []>} : vector<128x64xbf16>, vector<64x128xbf16>, vector<128x128xf32> -> vector<128x128xf32>
    %117 = arith.addf %110, %116 : vector<128x128xf32>
    %118 = vector.extract_strided_slice %77 {offsets = [0, 8, 0], sizes = [16, 8, 64], strides = [1, 1, 1]} : vector<16x16x64xf32> to vector<16x8x64xf32>
    %119 = vector.shape_cast %118 : vector<16x8x64xf32> to vector<128x64xf32>
    %120 = arith.truncf %119 : vector<128x64xf32> to vector<128x64xbf16>
    %c1_72 = arith.constant 1 : index
    %c0_73 = arith.constant 0 : index
    %c0_74 = arith.constant 0 : index
    %121 = vector.load %arg4[%c1_72, %c0_73, %c0_74] : memref<9x64x128xbf16, #tpu.memory_space<vmem>>, vector<1x64x128xbf16>
    %122 = vector.shape_cast %121 : vector<1x64x128xbf16> to vector<64x128xbf16>
    %cst_75 = arith.constant dense<0.000000e+00> : vector<128x128xf32>
    %123 = tpu.matmul %120, %122, %cst_75 {dimension_numbers = #tpu.dot_dimension_numbers<[1], [0], [0], [1], [0, 0, 1, 1], [], []>} : vector<128x64xbf16>, vector<64x128xbf16>, vector<128x128xf32> -> vector<128x128xf32>
    %124 = arith.addf %117, %123 : vector<128x128xf32>
    %125 = vector.extract_strided_slice %87 {offsets = [0, 8, 0], sizes = [16, 8, 64], strides = [1, 1, 1]} : vector<16x16x64xf32> to vector<16x8x64xf32>
    %126 = vector.shape_cast %125 : vector<16x8x64xf32> to vector<128x64xf32>
    %127 = arith.truncf %126 : vector<128x64xf32> to vector<128x64xbf16>
    %c2_76 = arith.constant 2 : index
    %c0_77 = arith.constant 0 : index
    %c0_78 = arith.constant 0 : index
    %128 = vector.load %arg4[%c2_76, %c0_77, %c0_78] : memref<9x64x128xbf16, #tpu.memory_space<vmem>>, vector<1x64x128xbf16>
    %129 = vector.shape_cast %128 : vector<1x64x128xbf16> to vector<64x128xbf16>
    %cst_79 = arith.constant dense<0.000000e+00> : vector<128x128xf32>
    %130 = tpu.matmul %127, %129, %cst_79 {dimension_numbers = #tpu.dot_dimension_numbers<[1], [0], [0], [1], [0, 0, 1, 1], [], []>} : vector<128x64xbf16>, vector<64x128xbf16>, vector<128x128xf32> -> vector<128x128xf32>
    %131 = arith.addf %124, %130 : vector<128x128xf32>
    %132 = vector.extract_strided_slice %108 {offsets = [0, 7, 0], sizes = [16, 8, 64], strides = [1, 1, 1]} : vector<16x16x64xf32> to vector<16x8x64xf32>
    %133 = vector.shape_cast %132 : vector<16x8x64xf32> to vector<128x64xf32>
    %134 = arith.truncf %133 : vector<128x64xf32> to vector<128x64xbf16>
    %c3_80 = arith.constant 3 : index
    %c0_81 = arith.constant 0 : index
    %c0_82 = arith.constant 0 : index
    %135 = vector.load %arg4[%c3_80, %c0_81, %c0_82] : memref<9x64x128xbf16, #tpu.memory_space<vmem>>, vector<1x64x128xbf16>
    %136 = vector.shape_cast %135 : vector<1x64x128xbf16> to vector<64x128xbf16>
    %cst_83 = arith.constant dense<0.000000e+00> : vector<128x128xf32>
    %137 = tpu.matmul %134, %136, %cst_83 {dimension_numbers = #tpu.dot_dimension_numbers<[1], [0], [0], [1], [0, 0, 1, 1], [], []>} : vector<128x64xbf16>, vector<64x128xbf16>, vector<128x128xf32> -> vector<128x128xf32>
    %138 = arith.addf %131, %137 : vector<128x128xf32>
    %139 = vector.extract_strided_slice %78 {offsets = [0, 8, 0], sizes = [16, 8, 64], strides = [1, 1, 1]} : vector<16x16x64xf32> to vector<16x8x64xf32>
    %140 = vector.shape_cast %139 : vector<16x8x64xf32> to vector<128x64xf32>
    %141 = arith.truncf %140 : vector<128x64xf32> to vector<128x64xbf16>
    %c4 = arith.constant 4 : index
    %c0_84 = arith.constant 0 : index
    %c0_85 = arith.constant 0 : index
    %142 = vector.load %arg4[%c4, %c0_84, %c0_85] : memref<9x64x128xbf16, #tpu.memory_space<vmem>>, vector<1x64x128xbf16>
    %143 = vector.shape_cast %142 : vector<1x64x128xbf16> to vector<64x128xbf16>
    %cst_86 = arith.constant dense<0.000000e+00> : vector<128x128xf32>
    %144 = tpu.matmul %141, %143, %cst_86 {dimension_numbers = #tpu.dot_dimension_numbers<[1], [0], [0], [1], [0, 0, 1, 1], [], []>} : vector<128x64xbf16>, vector<64x128xbf16>, vector<128x128xf32> -> vector<128x128xf32>
    %145 = arith.addf %138, %144 : vector<128x128xf32>
    %146 = vector.extract_strided_slice %88 {offsets = [0, 8, 0], sizes = [16, 8, 64], strides = [1, 1, 1]} : vector<16x16x64xf32> to vector<16x8x64xf32>
    %147 = vector.shape_cast %146 : vector<16x8x64xf32> to vector<128x64xf32>
    %148 = arith.truncf %147 : vector<128x64xf32> to vector<128x64xbf16>
    %c5 = arith.constant 5 : index
    %c0_87 = arith.constant 0 : index
    %c0_88 = arith.constant 0 : index
    %149 = vector.load %arg4[%c5, %c0_87, %c0_88] : memref<9x64x128xbf16, #tpu.memory_space<vmem>>, vector<1x64x128xbf16>
    %150 = vector.shape_cast %149 : vector<1x64x128xbf16> to vector<64x128xbf16>
    %cst_89 = arith.constant dense<0.000000e+00> : vector<128x128xf32>
    %151 = tpu.matmul %148, %150, %cst_89 {dimension_numbers = #tpu.dot_dimension_numbers<[1], [0], [0], [1], [0, 0, 1, 1], [], []>} : vector<128x64xbf16>, vector<64x128xbf16>, vector<128x128xf32> -> vector<128x128xf32>
    %152 = arith.addf %145, %151 : vector<128x128xf32>
    %153 = vector.extract_strided_slice %109 {offsets = [0, 7, 0], sizes = [16, 8, 64], strides = [1, 1, 1]} : vector<16x16x64xf32> to vector<16x8x64xf32>
    %154 = vector.shape_cast %153 : vector<16x8x64xf32> to vector<128x64xf32>
    %155 = arith.truncf %154 : vector<128x64xf32> to vector<128x64xbf16>
    %c6 = arith.constant 6 : index
    %c0_90 = arith.constant 0 : index
    %c0_91 = arith.constant 0 : index
    %156 = vector.load %arg4[%c6, %c0_90, %c0_91] : memref<9x64x128xbf16, #tpu.memory_space<vmem>>, vector<1x64x128xbf16>
    %157 = vector.shape_cast %156 : vector<1x64x128xbf16> to vector<64x128xbf16>
    %cst_92 = arith.constant dense<0.000000e+00> : vector<128x128xf32>
    %158 = tpu.matmul %155, %157, %cst_92 {dimension_numbers = #tpu.dot_dimension_numbers<[1], [0], [0], [1], [0, 0, 1, 1], [], []>} : vector<128x64xbf16>, vector<64x128xbf16>, vector<128x128xf32> -> vector<128x128xf32>
    %159 = arith.addf %152, %158 : vector<128x128xf32>
    %160 = vector.extract_strided_slice %79 {offsets = [0, 8, 0], sizes = [16, 8, 64], strides = [1, 1, 1]} : vector<16x16x64xf32> to vector<16x8x64xf32>
    %161 = vector.shape_cast %160 : vector<16x8x64xf32> to vector<128x64xf32>
    %162 = arith.truncf %161 : vector<128x64xf32> to vector<128x64xbf16>
    %c7 = arith.constant 7 : index
    %c0_93 = arith.constant 0 : index
    %c0_94 = arith.constant 0 : index
    %163 = vector.load %arg4[%c7, %c0_93, %c0_94] : memref<9x64x128xbf16, #tpu.memory_space<vmem>>, vector<1x64x128xbf16>
    %164 = vector.shape_cast %163 : vector<1x64x128xbf16> to vector<64x128xbf16>
    %cst_95 = arith.constant dense<0.000000e+00> : vector<128x128xf32>
    %165 = tpu.matmul %162, %164, %cst_95 {dimension_numbers = #tpu.dot_dimension_numbers<[1], [0], [0], [1], [0, 0, 1, 1], [], []>} : vector<128x64xbf16>, vector<64x128xbf16>, vector<128x128xf32> -> vector<128x128xf32>
    %166 = arith.addf %159, %165 : vector<128x128xf32>
    %167 = vector.extract_strided_slice %89 {offsets = [0, 8, 0], sizes = [16, 8, 64], strides = [1, 1, 1]} : vector<16x16x64xf32> to vector<16x8x64xf32>
    %168 = vector.shape_cast %167 : vector<16x8x64xf32> to vector<128x64xf32>
    %169 = arith.truncf %168 : vector<128x64xf32> to vector<128x64xbf16>
    %c8_96 = arith.constant 8 : index
    %c0_97 = arith.constant 0 : index
    %c0_98 = arith.constant 0 : index
    %170 = vector.load %arg4[%c8_96, %c0_97, %c0_98] : memref<9x64x128xbf16, #tpu.memory_space<vmem>>, vector<1x64x128xbf16>
    %171 = vector.shape_cast %170 : vector<1x64x128xbf16> to vector<64x128xbf16>
    %cst_99 = arith.constant dense<0.000000e+00> : vector<128x128xf32>
    %172 = tpu.matmul %169, %171, %cst_99 {dimension_numbers = #tpu.dot_dimension_numbers<[1], [0], [0], [1], [0, 0, 1, 1], [], []>} : vector<128x64xbf16>, vector<64x128xbf16>, vector<128x128xf32> -> vector<128x128xf32>
    %173 = arith.addf %166, %172 : vector<128x128xf32>
    %c0_100 = arith.constant 0 : index
    %c0_101 = arith.constant 0 : index
    %174 = vector.load %arg5[%c0_100, %c0_101] : memref<1x128xf32, #tpu.memory_space<vmem>>, vector<1x128xf32>
    %175 = vector.broadcast %174 : vector<1x128xf32> to vector<128x128xf32>
    %176 = arith.addf %173, %175 : vector<128x128xf32>
    %cst_102 = arith.constant 0.000000e+00 : f32
    %177 = vector.broadcast %cst_102 : f32 to vector<128x128xf32>
    %178 = arith.cmpf oge, %176, %177 : vector<128x128xf32>
    %cst_103 = arith.constant 2.000000e-01 : f32
    %179 = vector.broadcast %cst_103 : f32 to vector<128x128xf32>
    %180 = arith.mulf %179, %176 : vector<128x128xf32>
    %181 = arith.select %178, %176, %180 : vector<128x128xi1>, vector<128x128xf32>
    %182 = vector.shape_cast %181 : vector<128x128xf32> to vector<16x8x128xf32>
    %c1_104 = arith.constant 1 : index
    %c8_105 = arith.constant 8 : index
    %c0_106 = arith.constant 0 : index
    %183 = vector.load %arg12[%c1_104, %c8_105, %c0_106] : memref<18x16x256xf32, #tpu.memory_space<vmem>>, vector<16x8x128xf32>
    tpu.vector_store %arg12[%c1_104, %c8_105, %c0_106], %182 {strides = array<i32>} : memref<18x16x256xf32, #tpu.memory_space<vmem>>, vector<16x8x128xf32>,
    %cst_107 = arith.constant 0.000000e+00 : f32
    %184 = vector.broadcast %cst_107 : f32 to vector<128x128xf32>
    %185 = vector.extract_strided_slice %87 {offsets = [0, 8, 0], sizes = [16, 8, 64], strides = [1, 1, 1]} : vector<16x16x64xf32> to vector<16x8x64xf32>
    %186 = vector.shape_cast %185 : vector<16x8x64xf32> to vector<128x64xf32>
    %187 = arith.truncf %186 : vector<128x64xf32> to vector<128x64xbf16>
    %c0_108 = arith.constant 0 : index
    %c0_109 = arith.constant 0 : index
    %c0_110 = arith.constant 0 : index
    %188 = vector.load %arg4[%c0_108, %c0_109, %c0_110] : memref<9x64x128xbf16, #tpu.memory_space<vmem>>, vector<1x64x128xbf16>
    %189 = vector.shape_cast %188 : vector<1x64x128xbf16> to vector<64x128xbf16>
    %cst_111 = arith.constant dense<0.000000e+00> : vector<128x128xf32>
    %190 = tpu.matmul %187, %189, %cst_111 {dimension_numbers = #tpu.dot_dimension_numbers<[1], [0], [0], [1], [0, 0, 1, 1], [], []>} : vector<128x64xbf16>, vector<64x128xbf16>, vector<128x128xf32> -> vector<128x128xf32>
    %191 = arith.addf %184, %190 : vector<128x128xf32>
    %192 = vector.extract_strided_slice %97 {offsets = [0, 8, 0], sizes = [16, 8, 64], strides = [1, 1, 1]} : vector<16x16x64xf32> to vector<16x8x64xf32>
    %193 = vector.shape_cast %192 : vector<16x8x64xf32> to vector<128x64xf32>
    %194 = arith.truncf %193 : vector<128x64xf32> to vector<128x64xbf16>
    %c1_112 = arith.constant 1 : index
    %c0_113 = arith.constant 0 : index
    %c0_114 = arith.constant 0 : index
    %195 = vector.load %arg4[%c1_112, %c0_113, %c0_114] : memref<9x64x128xbf16, #tpu.memory_space<vmem>>, vector<1x64x128xbf16>
    %196 = vector.shape_cast %195 : vector<1x64x128xbf16> to vector<64x128xbf16>
    %cst_115 = arith.constant dense<0.000000e+00> : vector<128x128xf32>
    %197 = tpu.matmul %194, %196, %cst_115 {dimension_numbers = #tpu.dot_dimension_numbers<[1], [0], [0], [1], [0, 0, 1, 1], [], []>} : vector<128x64xbf16>, vector<64x128xbf16>, vector<128x128xf32> -> vector<128x128xf32>
    %198 = arith.addf %191, %197 : vector<128x128xf32>
    %199 = vector.extract_strided_slice %107 {offsets = [0, 8, 0], sizes = [16, 8, 64], strides = [1, 1, 1]} : vector<16x16x64xf32> to vector<16x8x64xf32>
    %200 = vector.shape_cast %199 : vector<16x8x64xf32> to vector<128x64xf32>
    %201 = arith.truncf %200 : vector<128x64xf32> to vector<128x64xbf16>
    %c2_116 = arith.constant 2 : index
    %c0_117 = arith.constant 0 : index
    %c0_118 = arith.constant 0 : index
    %202 = vector.load %arg4[%c2_116, %c0_117, %c0_118] : memref<9x64x128xbf16, #tpu.memory_space<vmem>>, vector<1x64x128xbf16>
    %203 = vector.shape_cast %202 : vector<1x64x128xbf16> to vector<64x128xbf16>
    %cst_119 = arith.constant dense<0.000000e+00> : vector<128x128xf32>
    %204 = tpu.matmul %201, %203, %cst_119 {dimension_numbers = #tpu.dot_dimension_numbers<[1], [0], [0], [1], [0, 0, 1, 1], [], []>} : vector<128x64xbf16>, vector<64x128xbf16>, vector<128x128xf32> -> vector<128x128xf32>
    %205 = arith.addf %198, %204 : vector<128x128xf32>
    %206 = vector.extract_strided_slice %88 {offsets = [0, 8, 0], sizes = [16, 8, 64], strides = [1, 1, 1]} : vector<16x16x64xf32> to vector<16x8x64xf32>
    %207 = vector.shape_cast %206 : vector<16x8x64xf32> to vector<128x64xf32>
    %208 = arith.truncf %207 : vector<128x64xf32> to vector<128x64xbf16>
    %c3_120 = arith.constant 3 : index
    %c0_121 = arith.constant 0 : index
    %c0_122 = arith.constant 0 : index
    %209 = vector.load %arg4[%c3_120, %c0_121, %c0_122] : memref<9x64x128xbf16, #tpu.memory_space<vmem>>, vector<1x64x128xbf16>
    %210 = vector.shape_cast %209 : vector<1x64x128xbf16> to vector<64x128xbf16>
    %cst_123 = arith.constant dense<0.000000e+00> : vector<128x128xf32>
    %211 = tpu.matmul %208, %210, %cst_123 {dimension_numbers = #tpu.dot_dimension_numbers<[1], [0], [0], [1], [0, 0, 1, 1], [], []>} : vector<128x64xbf16>, vector<64x128xbf16>, vector<128x128xf32> -> vector<128x128xf32>
    %212 = arith.addf %205, %211 : vector<128x128xf32>
    %213 = vector.extract_strided_slice %98 {offsets = [0, 8, 0], sizes = [16, 8, 64], strides = [1, 1, 1]} : vector<16x16x64xf32> to vector<16x8x64xf32>
    %214 = vector.shape_cast %213 : vector<16x8x64xf32> to vector<128x64xf32>
    %215 = arith.truncf %214 : vector<128x64xf32> to vector<128x64xbf16>
    %c4_124 = arith.constant 4 : index
    %c0_125 = arith.constant 0 : index
    %c0_126 = arith.constant 0 : index
    %216 = vector.load %arg4[%c4_124, %c0_125, %c0_126] : memref<9x64x128xbf16, #tpu.memory_space<vmem>>, vector<1x64x128xbf16>
    %217 = vector.shape_cast %216 : vector<1x64x128xbf16> to vector<64x128xbf16>
    %cst_127 = arith.constant dense<0.000000e+00> : vector<128x128xf32>
    %218 = tpu.matmul %215, %217, %cst_127 {dimension_numbers = #tpu.dot_dimension_numbers<[1], [0], [0], [1], [0, 0, 1, 1], [], []>} : vector<128x64xbf16>, vector<64x128xbf16>, vector<128x128xf32> -> vector<128x128xf32>
    %219 = arith.addf %212, %218 : vector<128x128xf32>
    %220 = vector.extract_strided_slice %108 {offsets = [0, 8, 0], sizes = [16, 8, 64], strides = [1, 1, 1]} : vector<16x16x64xf32> to vector<16x8x64xf32>
    %221 = vector.shape_cast %220 : vector<16x8x64xf32> to vector<128x64xf32>
    %222 = arith.truncf %221 : vector<128x64xf32> to vector<128x64xbf16>
    %c5_128 = arith.constant 5 : index
    %c0_129 = arith.constant 0 : index
    %c0_130 = arith.constant 0 : index
    %223 = vector.load %arg4[%c5_128, %c0_129, %c0_130] : memref<9x64x128xbf16, #tpu.memory_space<vmem>>, vector<1x64x128xbf16>
    %224 = vector.shape_cast %223 : vector<1x64x128xbf16> to vector<64x128xbf16>
    %cst_131 = arith.constant dense<0.000000e+00> : vector<128x128xf32>
    %225 = tpu.matmul %222, %224, %cst_131 {dimension_numbers = #tpu.dot_dimension_numbers<[1], [0], [0], [1], [0, 0, 1, 1], [], []>} : vector<128x64xbf16>, vector<64x128xbf16>, vector<128x128xf32> -> vector<128x128xf32>
    %226 = arith.addf %219, %225 : vector<128x128xf32>
    %227 = vector.extract_strided_slice %89 {offsets = [0, 8, 0], sizes = [16, 8, 64], strides = [1, 1, 1]} : vector<16x16x64xf32> to vector<16x8x64xf32>
    %228 = vector.shape_cast %227 : vector<16x8x64xf32> to vector<128x64xf32>
    %229 = arith.truncf %228 : vector<128x64xf32> to vector<128x64xbf16>
    %c6_132 = arith.constant 6 : index
    %c0_133 = arith.constant 0 : index
    %c0_134 = arith.constant 0 : index
    %230 = vector.load %arg4[%c6_132, %c0_133, %c0_134] : memref<9x64x128xbf16, #tpu.memory_space<vmem>>, vector<1x64x128xbf16>
    %231 = vector.shape_cast %230 : vector<1x64x128xbf16> to vector<64x128xbf16>
    %cst_135 = arith.constant dense<0.000000e+00> : vector<128x128xf32>
    %232 = tpu.matmul %229, %231, %cst_135 {dimension_numbers = #tpu.dot_dimension_numbers<[1], [0], [0], [1], [0, 0, 1, 1], [], []>} : vector<128x64xbf16>, vector<64x128xbf16>, vector<128x128xf32> -> vector<128x128xf32>
    %233 = arith.addf %226, %232 : vector<128x128xf32>
    %234 = vector.extract_strided_slice %99 {offsets = [0, 8, 0], sizes = [16, 8, 64], strides = [1, 1, 1]} : vector<16x16x64xf32> to vector<16x8x64xf32>
    %235 = vector.shape_cast %234 : vector<16x8x64xf32> to vector<128x64xf32>
    %236 = arith.truncf %235 : vector<128x64xf32> to vector<128x64xbf16>
    %c7_136 = arith.constant 7 : index
    %c0_137 = arith.constant 0 : index
    %c0_138 = arith.constant 0 : index
    %237 = vector.load %arg4[%c7_136, %c0_137, %c0_138] : memref<9x64x128xbf16, #tpu.memory_space<vmem>>, vector<1x64x128xbf16>
    %238 = vector.shape_cast %237 : vector<1x64x128xbf16> to vector<64x128xbf16>
    %cst_139 = arith.constant dense<0.000000e+00> : vector<128x128xf32>
    %239 = tpu.matmul %236, %238, %cst_139 {dimension_numbers = #tpu.dot_dimension_numbers<[1], [0], [0], [1], [0, 0, 1, 1], [], []>} : vector<128x64xbf16>, vector<64x128xbf16>, vector<128x128xf32> -> vector<128x128xf32>
    %240 = arith.addf %233, %239 : vector<128x128xf32>
    %241 = vector.extract_strided_slice %109 {offsets = [0, 8, 0], sizes = [16, 8, 64], strides = [1, 1, 1]} : vector<16x16x64xf32> to vector<16x8x64xf32>
    %242 = vector.shape_cast %241 : vector<16x8x64xf32> to vector<128x64xf32>
    %243 = arith.truncf %242 : vector<128x64xf32> to vector<128x64xbf16>
    %c8_140 = arith.constant 8 : index
    %c0_141 = arith.constant 0 : index
    %c0_142 = arith.constant 0 : index
    %244 = vector.load %arg4[%c8_140, %c0_141, %c0_142] : memref<9x64x128xbf16, #tpu.memory_space<vmem>>, vector<1x64x128xbf16>
    %245 = vector.shape_cast %244 : vector<1x64x128xbf16> to vector<64x128xbf16>
    %cst_143 = arith.constant dense<0.000000e+00> : vector<128x128xf32>
    %246 = tpu.matmul %243, %245, %cst_143 {dimension_numbers = #tpu.dot_dimension_numbers<[1], [0], [0], [1], [0, 0, 1, 1], [], []>} : vector<128x64xbf16>, vector<64x128xbf16>, vector<128x128xf32> -> vector<128x128xf32>
    %247 = arith.addf %240, %246 : vector<128x128xf32>
    %c0_144 = arith.constant 0 : index
    %c0_145 = arith.constant 0 : index
    %248 = vector.load %arg5[%c0_144, %c0_145] : memref<1x128xf32, #tpu.memory_space<vmem>>, vector<1x128xf32>
    %249 = vector.broadcast %248 : vector<1x128xf32> to vector<128x128xf32>
    %250 = arith.addf %247, %249 : vector<128x128xf32>
    %cst_146 = arith.constant 0.000000e+00 : f32
    %251 = vector.broadcast %cst_146 : f32 to vector<128x128xf32>
    %252 = arith.cmpf oge, %250, %251 : vector<128x128xf32>
    %cst_147 = arith.constant 2.000000e-01 : f32
    %253 = vector.broadcast %cst_147 : f32 to vector<128x128xf32>
    %254 = arith.mulf %253, %250 : vector<128x128xf32>
    %255 = arith.select %252, %250, %254 : vector<128x128xi1>, vector<128x128xf32>
    %256 = vector.shape_cast %255 : vector<128x128xf32> to vector<16x8x128xf32>
    %c1_148 = arith.constant 1 : index
    %c8_149 = arith.constant 8 : index
    %c128 = arith.constant 128 : index
    %257 = vector.load %arg12[%c1_148, %c8_149, %c128] : memref<18x16x256xf32, #tpu.memory_space<vmem>>, vector<16x8x128xf32>
    tpu.vector_store %arg12[%c1_148, %c8_149, %c128], %256 {strides = array<i32>} : memref<18x16x256xf32, #tpu.memory_space<vmem>>, vector<16x8x128xf32>,
    %c0_150 = arith.constant 0 : index
    %c0_151 = arith.constant 0 : index
    %c0_152 = arith.constant 0 : index
    %258 = vector.load %arg12[%c0_150, %c0_151, %c0_152] : memref<18x16x256xf32, #tpu.memory_space<vmem>>, vector<18x16x256xf32>
    %259 = vector.shape_cast %258 : vector<18x16x256xf32> to vector<9x2x16x256xf32>
    %260 = vector.extract_strided_slice %259 {offsets = [0, 0, 0, 0], sizes = [9, 1, 16, 256], strides = [1, 1, 1, 1]} : vector<9x2x16x256xf32> to vector<9x1x16x256xf32>
    %261 = vector.shape_cast %260 : vector<9x1x16x256xf32> to vector<9x16x256xf32>
    %262 = vector.extract_strided_slice %259 {offsets = [0, 1, 0, 0], sizes = [9, 1, 16, 256], strides = [1, 1, 1, 1]} : vector<9x2x16x256xf32> to vector<9x1x16x256xf32>
    %263 = vector.shape_cast %262 : vector<9x1x16x256xf32> to vector<9x16x256xf32>
    %264 = vector.extract_strided_slice %261 {offsets = [0, 0, 0], sizes = [8, 16, 256], strides = [1, 1, 1]} : vector<9x16x256xf32> to vector<8x16x256xf32>
    %265 = vector.extract_strided_slice %263 {offsets = [0, 0, 0], sizes = [8, 16, 256], strides = [1, 1, 1]} : vector<9x16x256xf32> to vector<8x16x256xf32>
    %266 = vector.extract_strided_slice %261 {offsets = [1, 0, 0], sizes = [8, 16, 256], strides = [1, 1, 1]} : vector<9x16x256xf32> to vector<8x16x256xf32>
    %cst_153 = arith.constant 0.000000e+00 : f32
    %267 = vector.broadcast %cst_153 : f32 to vector<64x256xf32>
    %268 = vector.extract_strided_slice %264 {offsets = [0, 7, 128], sizes = [8, 8, 128], strides = [1, 1, 1]} : vector<8x16x256xf32> to vector<8x8x128xf32>
    %269 = vector.shape_cast %268 : vector<8x8x128xf32> to vector<64x128xf32>
    %270 = arith.truncf %269 : vector<64x128xf32> to vector<64x128xbf16>
    %c0_154 = arith.constant 0 : index
    %c0_155 = arith.constant 0 : index
    %c0_156 = arith.constant 0 : index
    %271 = vector.load %arg6[%c0_154, %c0_155, %c0_156] : memref<9x128x256xbf16, #tpu.memory_space<vmem>>, vector<1x128x256xbf16>
    %272 = vector.shape_cast %271 : vector<1x128x256xbf16> to vector<128x256xbf16>
    %cst_157 = arith.constant dense<0.000000e+00> : vector<64x256xf32>
    %273 = tpu.matmul %270, %272, %cst_157 {dimension_numbers = #tpu.dot_dimension_numbers<[1], [0], [0], [1], [0, 0, 1, 1], [], []>} : vector<64x128xbf16>, vector<128x256xbf16>, vector<64x256xf32> -> vector<64x256xf32>
    %274 = arith.addf %267, %273 : vector<64x256xf32>
    %275 = vector.extract_strided_slice %264 {offsets = [0, 8, 0], sizes = [8, 8, 128], strides = [1, 1, 1]} : vector<8x16x256xf32> to vector<8x8x128xf32>
    %276 = vector.shape_cast %275 : vector<8x8x128xf32> to vector<64x128xf32>
    %277 = arith.truncf %276 : vector<64x128xf32> to vector<64x128xbf16>
    %c1_158 = arith.constant 1 : index
    %c0_159 = arith.constant 0 : index
    %c0_160 = arith.constant 0 : index
    %278 = vector.load %arg6[%c1_158, %c0_159, %c0_160] : memref<9x128x256xbf16, #tpu.memory_space<vmem>>, vector<1x128x256xbf16>
    %279 = vector.shape_cast %278 : vector<1x128x256xbf16> to vector<128x256xbf16>
    %cst_161 = arith.constant dense<0.000000e+00> : vector<64x256xf32>
    %280 = tpu.matmul %277, %279, %cst_161 {dimension_numbers = #tpu.dot_dimension_numbers<[1], [0], [0], [1], [0, 0, 1, 1], [], []>} : vector<64x128xbf16>, vector<128x256xbf16>, vector<64x256xf32> -> vector<64x256xf32>
    %281 = arith.addf %274, %280 : vector<64x256xf32>
    %282 = vector.extract_strided_slice %264 {offsets = [0, 8, 128], sizes = [8, 8, 128], strides = [1, 1, 1]} : vector<8x16x256xf32> to vector<8x8x128xf32>
    %283 = vector.shape_cast %282 : vector<8x8x128xf32> to vector<64x128xf32>
    %284 = arith.truncf %283 : vector<64x128xf32> to vector<64x128xbf16>
    %c2_162 = arith.constant 2 : index
    %c0_163 = arith.constant 0 : index
    %c0_164 = arith.constant 0 : index
    %285 = vector.load %arg6[%c2_162, %c0_163, %c0_164] : memref<9x128x256xbf16, #tpu.memory_space<vmem>>, vector<1x128x256xbf16>
    %286 = vector.shape_cast %285 : vector<1x128x256xbf16> to vector<128x256xbf16>
    %cst_165 = arith.constant dense<0.000000e+00> : vector<64x256xf32>
    %287 = tpu.matmul %284, %286, %cst_165 {dimension_numbers = #tpu.dot_dimension_numbers<[1], [0], [0], [1], [0, 0, 1, 1], [], []>} : vector<64x128xbf16>, vector<128x256xbf16>, vector<64x256xf32> -> vector<64x256xf32>
    %288 = arith.addf %281, %287 : vector<64x256xf32>
    %289 = vector.extract_strided_slice %265 {offsets = [0, 7, 128], sizes = [8, 8, 128], strides = [1, 1, 1]} : vector<8x16x256xf32> to vector<8x8x128xf32>
    %290 = vector.shape_cast %289 : vector<8x8x128xf32> to vector<64x128xf32>
    %291 = arith.truncf %290 : vector<64x128xf32> to vector<64x128xbf16>
    %c3_166 = arith.constant 3 : index
    %c0_167 = arith.constant 0 : index
    %c0_168 = arith.constant 0 : index
    %292 = vector.load %arg6[%c3_166, %c0_167, %c0_168] : memref<9x128x256xbf16, #tpu.memory_space<vmem>>, vector<1x128x256xbf16>
    %293 = vector.shape_cast %292 : vector<1x128x256xbf16> to vector<128x256xbf16>
    %cst_169 = arith.constant dense<0.000000e+00> : vector<64x256xf32>
    %294 = tpu.matmul %291, %293, %cst_169 {dimension_numbers = #tpu.dot_dimension_numbers<[1], [0], [0], [1], [0, 0, 1, 1], [], []>} : vector<64x128xbf16>, vector<128x256xbf16>, vector<64x256xf32> -> vector<64x256xf32>
    %295 = arith.addf %288, %294 : vector<64x256xf32>
    %296 = vector.extract_strided_slice %265 {offsets = [0, 8, 0], sizes = [8, 8, 128], strides = [1, 1, 1]} : vector<8x16x256xf32> to vector<8x8x128xf32>
    %297 = vector.shape_cast %296 : vector<8x8x128xf32> to vector<64x128xf32>
    %298 = arith.truncf %297 : vector<64x128xf32> to vector<64x128xbf16>
    %c4_170 = arith.constant 4 : index
    %c0_171 = arith.constant 0 : index
    %c0_172 = arith.constant 0 : index
    %299 = vector.load %arg6[%c4_170, %c0_171, %c0_172] : memref<9x128x256xbf16, #tpu.memory_space<vmem>>, vector<1x128x256xbf16>
    %300 = vector.shape_cast %299 : vector<1x128x256xbf16> to vector<128x256xbf16>
    %cst_173 = arith.constant dense<0.000000e+00> : vector<64x256xf32>
    %301 = tpu.matmul %298, %300, %cst_173 {dimension_numbers = #tpu.dot_dimension_numbers<[1], [0], [0], [1], [0, 0, 1, 1], [], []>} : vector<64x128xbf16>, vector<128x256xbf16>, vector<64x256xf32> -> vector<64x256xf32>
    %302 = arith.addf %295, %301 : vector<64x256xf32>
    %303 = vector.extract_strided_slice %265 {offsets = [0, 8, 128], sizes = [8, 8, 128], strides = [1, 1, 1]} : vector<8x16x256xf32> to vector<8x8x128xf32>
    %304 = vector.shape_cast %303 : vector<8x8x128xf32> to vector<64x128xf32>
    %305 = arith.truncf %304 : vector<64x128xf32> to vector<64x128xbf16>
    %c5_174 = arith.constant 5 : index
    %c0_175 = arith.constant 0 : index
    %c0_176 = arith.constant 0 : index
    %306 = vector.load %arg6[%c5_174, %c0_175, %c0_176] : memref<9x128x256xbf16, #tpu.memory_space<vmem>>, vector<1x128x256xbf16>
    %307 = vector.shape_cast %306 : vector<1x128x256xbf16> to vector<128x256xbf16>
    %cst_177 = arith.constant dense<0.000000e+00> : vector<64x256xf32>
    %308 = tpu.matmul %305, %307, %cst_177 {dimension_numbers = #tpu.dot_dimension_numbers<[1], [0], [0], [1], [0, 0, 1, 1], [], []>} : vector<64x128xbf16>, vector<128x256xbf16>, vector<64x256xf32> -> vector<64x256xf32>
    %309 = arith.addf %302, %308 : vector<64x256xf32>
    %310 = vector.extract_strided_slice %266 {offsets = [0, 7, 128], sizes = [8, 8, 128], strides = [1, 1, 1]} : vector<8x16x256xf32> to vector<8x8x128xf32>
    %311 = vector.shape_cast %310 : vector<8x8x128xf32> to vector<64x128xf32>
    %312 = arith.truncf %311 : vector<64x128xf32> to vector<64x128xbf16>
    %c6_178 = arith.constant 6 : index
    %c0_179 = arith.constant 0 : index
    %c0_180 = arith.constant 0 : index
    %313 = vector.load %arg6[%c6_178, %c0_179, %c0_180] : memref<9x128x256xbf16, #tpu.memory_space<vmem>>, vector<1x128x256xbf16>
    %314 = vector.shape_cast %313 : vector<1x128x256xbf16> to vector<128x256xbf16>
    %cst_181 = arith.constant dense<0.000000e+00> : vector<64x256xf32>
    %315 = tpu.matmul %312, %314, %cst_181 {dimension_numbers = #tpu.dot_dimension_numbers<[1], [0], [0], [1], [0, 0, 1, 1], [], []>} : vector<64x128xbf16>, vector<128x256xbf16>, vector<64x256xf32> -> vector<64x256xf32>
    %316 = arith.addf %309, %315 : vector<64x256xf32>
    %317 = vector.extract_strided_slice %266 {offsets = [0, 8, 0], sizes = [8, 8, 128], strides = [1, 1, 1]} : vector<8x16x256xf32> to vector<8x8x128xf32>
    %318 = vector.shape_cast %317 : vector<8x8x128xf32> to vector<64x128xf32>
    %319 = arith.truncf %318 : vector<64x128xf32> to vector<64x128xbf16>
    %c7_182 = arith.constant 7 : index
    %c0_183 = arith.constant 0 : index
    %c0_184 = arith.constant 0 : index
    %320 = vector.load %arg6[%c7_182, %c0_183, %c0_184] : memref<9x128x256xbf16, #tpu.memory_space<vmem>>, vector<1x128x256xbf16>
    %321 = vector.shape_cast %320 : vector<1x128x256xbf16> to vector<128x256xbf16>
    %cst_185 = arith.constant dense<0.000000e+00> : vector<64x256xf32>
    %322 = tpu.matmul %319, %321, %cst_185 {dimension_numbers = #tpu.dot_dimension_numbers<[1], [0], [0], [1], [0, 0, 1, 1], [], []>} : vector<64x128xbf16>, vector<128x256xbf16>, vector<64x256xf32> -> vector<64x256xf32>
    %323 = arith.addf %316, %322 : vector<64x256xf32>
    %324 = vector.extract_strided_slice %266 {offsets = [0, 8, 128], sizes = [8, 8, 128], strides = [1, 1, 1]} : vector<8x16x256xf32> to vector<8x8x128xf32>
    %325 = vector.shape_cast %324 : vector<8x8x128xf32> to vector<64x128xf32>
    %326 = arith.truncf %325 : vector<64x128xf32> to vector<64x128xbf16>
    %c8_186 = arith.constant 8 : index
    %c0_187 = arith.constant 0 : index
    %c0_188 = arith.constant 0 : index
    %327 = vector.load %arg6[%c8_186, %c0_187, %c0_188] : memref<9x128x256xbf16, #tpu.memory_space<vmem>>, vector<1x128x256xbf16>
    %328 = vector.shape_cast %327 : vector<1x128x256xbf16> to vector<128x256xbf16>
    %cst_189 = arith.constant dense<0.000000e+00> : vector<64x256xf32>
    %329 = tpu.matmul %326, %328, %cst_189 {dimension_numbers = #tpu.dot_dimension_numbers<[1], [0], [0], [1], [0, 0, 1, 1], [], []>} : vector<64x128xbf16>, vector<128x256xbf16>, vector<64x256xf32> -> vector<64x256xf32>
    %330 = arith.addf %323, %329 : vector<64x256xf32>
    %c0_190 = arith.constant 0 : index
    %c0_191 = arith.constant 0 : index
    %331 = vector.load %arg7[%c0_190, %c0_191] : memref<1x256xf32, #tpu.memory_space<vmem>>, vector<1x256xf32>
    %332 = vector.broadcast %331 : vector<1x256xf32> to vector<64x256xf32>
    %333 = arith.addf %330, %332 : vector<64x256xf32>
    %cst_192 = arith.constant 0.000000e+00 : f32
    %334 = vector.broadcast %cst_192 : f32 to vector<64x256xf32>
    %335 = arith.cmpf oge, %333, %334 : vector<64x256xf32>
    %cst_193 = arith.constant 2.000000e-01 : f32
    %336 = vector.broadcast %cst_193 : f32 to vector<64x256xf32>
    %337 = arith.mulf %336, %333 : vector<64x256xf32>
    %338 = arith.select %335, %333, %337 : vector<64x256xi1>, vector<64x256xf32>
    %c0_194 = arith.constant 0 : index
    %c0_195 = arith.constant 0 : index
    %339 = vector.load %arg8[%c0_194, %c0_195] : memref<64x256xf32, #tpu.memory_space<vmem>>, vector<64x256xf32>
    %340 = arith.mulf %338, %339 : vector<64x256xf32>
    %cst_196 = arith.constant dense<0.000000e+00> : vector<256xf32>
    %341 = vector.multi_reduction <add>, %340, %cst_196 [0] : vector<64x256xf32> to vector<256xf32>
    %342 = vector.shape_cast %341 : vector<256xf32> to vector<1x256xf32>
    %cst_197 = arith.constant dense<0.000000e+00> : vector<1xf32>
    %343 = vector.multi_reduction <add>, %342, %cst_197 [1] : vector<1x256xf32> to vector<1xf32>
    %344 = vector.shape_cast %343 : vector<1xf32> to vector<1x1xf32>
    %c0_198 = arith.constant 0 : index
    %c0_199 = arith.constant 0 : index
    %345 = vector.load %arg9[%c0_198, %c0_199] : memref<1x1xf32, #tpu.memory_space<vmem>>, vector<1x1xf32>
    %346 = arith.addf %344, %345 : vector<1x1xf32>
    %347 = math.absf %346 : vector<1x1xf32>
    %cst_200 = arith.constant 0.000000e+00 : f32
    %348 = vector.broadcast %cst_200 : f32 to vector<1x1xf32>
    %349 = arith.subf %348, %347 : vector<1x1xf32>
    %350 = math.exp %349 : vector<1x1xf32>
    %cst_201 = arith.constant 0.000000e+00 : f32
    %351 = vector.broadcast %cst_201 : f32 to vector<1x1xf32>
    %352 = arith.cmpf oge, %346, %351 : vector<1x1xf32>
    %cst_202 = arith.constant 1.000000e+00 : f32
    %353 = vector.broadcast %cst_202 : f32 to vector<1x1xf32>
    %354 = arith.addf %353, %350 : vector<1x1xf32>
    %cst_203 = arith.constant 1.000000e+00 : f32
    %355 = vector.broadcast %cst_203 : f32 to vector<1x1xf32>
    %356 = arith.divf %355, %354 : vector<1x1xf32>
    %cst_204 = arith.constant 1.000000e+00 : f32
    %357 = vector.broadcast %cst_204 : f32 to vector<1x1xf32>
    %358 = arith.addf %357, %350 : vector<1x1xf32>
    %359 = arith.divf %350, %358 : vector<1x1xf32>
    %360 = arith.select %352, %356, %359 : vector<1x1xi1>, vector<1x1xf32>
    %361 = vector.shape_cast %360 : vector<1x1xf32> to vector<1x1x1xf32>
    %362 = vector.shape_cast %361 : vector<1x1x1xf32> to vector<1x1x1xf32>
    %363 = vector.broadcast %362 : vector<1x1x1xf32> to vector<1x1x128xf32>
    %c0_205 = arith.constant 0 : index
    %c0_206 = arith.constant 0 : index
    %c0_207 = arith.constant 0 : index
    %364 = vector.load %arg10[%c0_205, %c0_206, %c0_207] : memref<1x1x128xf32, #tpu.memory_space<vmem>>, vector<1x1x128xf32>
    tpu.vector_store %arg10[%c0_205, %c0_206, %c0_207], %363 {strides = array<i32>} : memref<1x1x128xf32, #tpu.memory_space<vmem>>, vector<1x1x128xf32>,
    return
  }
  func.func @transform_0(%arg0: i32) -> (i32, i32, i32, i32) {
    %c0_i32 = arith.constant 0 : i32
    %c0_i32_0 = arith.constant 0 : i32
    %c0_i32_1 = arith.constant 0 : i32
    %c0_i32_2 = arith.constant 0 : i32
    return %arg0, %c0_i32, %c0_i32_0, %c0_i32_1 : i32, i32, i32, i32
  }
  func.func @transform_1(%arg0: i32) -> (i32, i32) {
    %c0_i32 = arith.constant 0 : i32
    %c0_i32_0 = arith.constant 0 : i32
    %c0_i32_1 = arith.constant 0 : i32
    return %c0_i32, %c0_i32_0 : i32, i32
  }
  func.func @transform_2(%arg0: i32) -> (i32, i32) {
    %c0_i32 = arith.constant 0 : i32
    %c0_i32_0 = arith.constant 0 : i32
    %c0_i32_1 = arith.constant 0 : i32
    return %c0_i32, %c0_i32_0 : i32, i32
  }
  func.func @transform_3(%arg0: i32) -> (i32, i32, i32) {
    %c0_i32 = arith.constant 0 : i32
    %c0_i32_0 = arith.constant 0 : i32
    %c0_i32_1 = arith.constant 0 : i32
    %c0_i32_2 = arith.constant 0 : i32
    return %c0_i32, %c0_i32_0, %c0_i32_1 : i32, i32, i32
  }
  func.func @transform_4(%arg0: i32) -> (i32, i32) {
    %c0_i32 = arith.constant 0 : i32
    %c0_i32_0 = arith.constant 0 : i32
    %c0_i32_1 = arith.constant 0 : i32
    return %c0_i32, %c0_i32_0 : i32, i32
  }
  func.func @transform_5(%arg0: i32) -> (i32, i32, i32) {
    %c0_i32 = arith.constant 0 : i32
    %c0_i32_0 = arith.constant 0 : i32
    %c0_i32_1 = arith.constant 0 : i32
    %c0_i32_2 = arith.constant 0 : i32
    return %c0_i32, %c0_i32_0, %c0_i32_1 : i32, i32, i32
  }
  func.func @transform_6(%arg0: i32) -> (i32, i32) {
    %c0_i32 = arith.constant 0 : i32
    %c0_i32_0 = arith.constant 0 : i32
    %c0_i32_1 = arith.constant 0 : i32
    return %c0_i32, %c0_i32_0 : i32, i32
  }
  func.func @transform_7(%arg0: i32) -> (i32, i32) {
    %c0_i32 = arith.constant 0 : i32
    %c0_i32_0 = arith.constant 0 : i32
    %c0_i32_1 = arith.constant 0 : i32
    return %c0_i32, %c0_i32_0 : i32, i32
  }
  func.func @transform_8(%arg0: i32) -> (i32, i32) {
    %c0_i32 = arith.constant 0 : i32
    %c0_i32_0 = arith.constant 0 : i32
    %c0_i32_1 = arith.constant 0 : i32
    return %c0_i32, %c0_i32_0 : i32, i32
  }
  func.func @transform_9(%arg0: i32) -> (i32, i32, i32) {
    %c0_i32 = arith.constant 0 : i32
    %c0_i32_0 = arith.constant 0 : i32
    %c0_i32_1 = arith.constant 0 : i32
    return %arg0, %c0_i32, %c0_i32_0 : i32, i32, i32
  }
}

</mosaic_0001>

<bundles_post_ra>
// kernel: discriminator_forward.1
= control target key start
LH: loop header
LB: loop body
LE: loop exit
PB: predicated region body
PF: predicated region fallthrough
CT: control target
= control target key end

     0   :  { %s10237_s11 = smov 0   ;;  %s13904_s0 = inlined_call_operand.vmem [shape: bf16[2,4,256,9], index: 0, kind: input, shape index: {}]   ;;  %s13905_s1 = inlined_call_operand.vmem [shape: bf16[9,64], index: 1, kind: input, shape index: {}]   ;;  %s13906_s2 = inlined_call_operand.vmem [shape: f32[1,64], index: 2, kind: input, shape index: {}]   ;;  %s13907_s3 = inlined_call_operand.vmem [shape: bf16[9,64,128], index: 3, kind: input, shape index: {}]   ;;  %s13908_s4 = inlined_call_operand.vmem [shape: f32[1,128], index: 4, kind: input, shape index: {}]   ;;  %s13909_s5 = inlined_call_operand.vmem [shape: bf16[9,128,256], index: 5, kind: input, shape index: {}]   ;;  %s13910_s6 = inlined_call_operand.vmem [shape: f32[1,256], index: 6, kind: input, shape index: {}]   ;;  %s13911_s7 = inlined_call_operand.vmem [shape: f32[64,256], index: 7, kind: input, shape index: {}]   ;;  %s13912_s8 = inlined_call_operand.<no memory space> [shape: f32[1,1], index: 8, kind: input, shape index: {}]   ;;  %s13913_s9 = inlined_call_operand.vmem [shape: f32[2,1,128], index: 9, kind: output, shape index: {}]  }
   0x1   :  { %v14_v0 = vstv %s13912_s8 }
   0x2   :  { %15 = vst [vmem:[#allocation4] sm:$0x1] %v14_v0 }
   0x3 LB: > { %s8162_s12 = sadd.s32 4294967295, %s10179_s11   ;;  %p8166_p0 = scmp.ge.s32.totalorder %s10179_s11, 1  ;;  %s10179_s11 = sphi %s10237_s11, %s21_s11  }
   0x4   : > { %p289_p1 = scmp.lt.s32.totalorder %s10179_s11, 3 }
   0x6   : > { %p290_p2 = pnand %p8166_p0, %p289_p1 }
   0x8   : > { %293 = sbr.rel (%p290_p2) target bundleno = 1481 (0x5c9), region = 56 }
   0xd   : > { %v9792_v1 = vld [vmem:[%s13905_s1] sm:$0x1f]   ;;  %vm948_vm0 = vcmask 1043456   ;;  %vm949_vm1 = vcmask 1044480   ;;  %p323_p3 = scmp.lt.s32.totalorder %s8162_s12, 1  ;;  %vm899_vm2 = vcmask 72704  }
   0xe   : > { %v10181_v2 = vmov 65535   ;;  %v9795_v5 = vld [vmem:[%s13905_s1] sm:$0x1f]   ;;  %vm332_vm3 = vcmask 523264   ;;  %v13914_v21 = vmov 0.0  }
   0xf   : > { %v950_v3 = vsel %vm948_vm0, 4294967295, %v10181_v2  ;;  %s14181_s12 = smov (!%p323_p3, %s8162_s12), 1  ;;  %v9804_v7 = vld [vmem:[%s13905_s1] sm:$0x1f]   ;;  %340 = vst.msk [vmem:[#allocation2 + $0x38] sm:$0xff] %vm332_vm3, %v13914_v21  ;;  %334 = vst.msk [vmem:[#allocation2 + $0x8] sm:$0xff] %vm332_vm3, %v13914_v21 }
  0x10   : > { %v10248_v4 = vsel %vm949_vm1, %v950_v3, 0  ;;  %s8925_s18 = sshll.u32 %s14181_s12, 9  ;;  %336 = vst.msk [vmem:[#allocation2 + $0x18] sm:$0xff] %vm332_vm3, %v13914_v21  ;;  %338 = vst.msk [vmem:[#allocation2 + $0x28] sm:$0xff] %vm332_vm3, %v13914_v21  ;;  %v9843_v37 = vld [vmem:[%s13905_s1] sm:$0x1f]   ;;  %s330_s24 = scalar_lea.vmem %s13913_s9, %s14181_s12 }
  0x11   : > { %v953_v6 = vand.u32 %v9792_v1, %v10248_v4  ;;  %v1388_v8 = vand.u32 %v9795_v5, %v10248_v4  ;;  %s10264_s21 = scalar_lea.vmem %s13904_s0, %s8925_s18  ;;  %v10273_v13 = vand.u32 %v9804_v7, %v10248_v4  ;;  %342 = vst.msk [vmem:[#allocation2 + $0x48] sm:$0xff] %vm332_vm3, %v13914_v21  ;;  %344 = vst.msk [vmem:[#allocation2 + $0x58] sm:$0xff] %vm332_vm3, %v13914_v21  ;;  %v9858_v1 = vld [vmem:[%s13907_s3 + $0x38] sm:$0xff]   ;;  %v9859_v3 = vld [vmem:[%s13907_s3 + $0x30] sm:$0xff]  }
  0x12   : > { %v9793_v9 = vld [vmem:[%s10264_s21] sm:$0xff]   ;;  %v9796_v11 = vld [vmem:[%s10264_s21 + $0x8] sm:$0xff]   ;;  %v9798_v14 = vld [vmem:[%s10264_s21 + $0x10] sm:$0xff]   ;;  %346 = vst.msk [vmem:[#allocation2 + $0x68] sm:$0xff] %vm332_vm3, %v13914_v21  ;;  %v1823_v40 = vand.u32 %v9843_v37, %v10248_v4 }
  0x13   : > { %9778 = vmatprep.subr.bf16.mxu1 %v953_v6  ;;  %9210 = vmatprep.subr.bf16.mxu0 %v953_v6  ;;  %v9794_v10 = vld [vmem:[%s10264_s21 + $0x60] sm:$0xff]   ;;  %v9797_v12 = vld [vmem:[%s10264_s21 + $0x68] sm:$0xff]   ;;  %v9799_v15 = vld [vmem:[%s10264_s21 + $0x70] sm:$0xff]   ;;  %348 = vst.msk [vmem:[#allocation2 + $0x78] sm:$0xff] %vm332_vm3, %v13914_v21 }
  0x14   : > { %9779 = vmatpush3.bf16.msra.mxu1 %v953_v6  ;;  %9211 = vmatpush3.bf16.msra.mxu0 %v953_v6  ;;  %v9800_v16 = vld [vmem:[%s10264_s21 + $0x18] sm:$0xff]   ;;  %v9802_v18 = vld [vmem:[%s10264_s21 + $0x20] sm:$0xff]   ;;  %v10291_v20 = vld [vmem:[%s10264_s21 + $0x28] sm:$0xff]   ;;  %350 = vst.msk [vmem:[#allocation2 + $0x88] sm:$0xff] %vm332_vm3, %v13914_v21 }
  0x15   : > { %9244 = vmatprep.subr.bf16.mxu1 %v1388_v8  ;;  %9212 = vmatprep.mubr.msk.bf16.mxu0 %vm899_vm2, %v9793_v9  ;;  %v9801_v17 = vld [vmem:[%s10264_s21 + $0x78] sm:$0xff]   ;;  %v9803_v19 = vld [vmem:[%s10264_s21 + $0x80] sm:$0xff]   ;;  %352 = vst.msk [vmem:[#allocation2 + $0x98] sm:$0xff] %vm332_vm3, %v13914_v21  ;;  %354 = vst.msk [vmem:[#allocation2 + $0xa8] sm:$0xff] %vm332_vm3, %v13914_v21 }
  0x16   : > { %9236 = vmatprep.mubr.msk.bf16.mxu1 %vm899_vm2, %v9794_v10  ;;  %356 = vst.msk [vmem:[#allocation2 + $0xb8] sm:$0xff] %vm332_vm3, %v13914_v21  ;;  %358 = vst.msk [vmem:[#allocation2 + $0xc8] sm:$0xff] %vm332_vm3, %v13914_v21  ;;  %v9806_v22 = vld [vmem:[%s10264_s21 + $0x88] sm:$0xff]   ;;  %v9807_v23 = vld [vmem:[%s10264_s21 + $0x30] sm:$0xff]   ;;  %9278 = vmatprep.subr.bf16.mxu0 %v1823_v40 }
  0x17   : > { %9213 = vmatmul.mubr.msk.bf16.vlgmr.msra.gmra.mxu0 %vm899_vm2, %v9796_v11  ;;  %9237 = vmatmul.mubr.msk.bf16.vlgmr.msra.gmra.mxu1 %vm899_vm2, %v9797_v12  ;;  %360 = vst.msk [vmem:[#allocation2 + $0xd8] sm:$0xff] %vm332_vm3, %v13914_v21  ;;  %362 = vst.msk [vmem:[#allocation2 + $0xe8] sm:$0xff] %vm332_vm3, %v13914_v21  ;;  %v9808_v24 = vld [vmem:[%s10264_s21 + $0x90] sm:$0xff]   ;;  %v9809_v25 = vld [vmem:[%s10264_s21 + $0x38] sm:$0xff]  }
  0x18   : > { %9245 = vmatpush3.bf16.msra.mxu1 %v1388_v8  ;;  %9216 = vmatprep.mubr.msk.bf16.mxu0 %vm899_vm2, %v9798_v14  ;;  %364 = vst.msk [vmem:[#allocation2 + $0xf8] sm:$0xff] %vm332_vm3, %v13914_v21  ;;  %366 = vst.msk [vmem:[#allocation2 + $0x108] sm:$0xff] %vm332_vm3, %v13914_v21  ;;  %v9810_v26 = vld [vmem:[%s10264_s21 + $0x98] sm:$0xff]   ;;  %v9811_v27 = vld [vmem:[%s10264_s21 + $0x40] sm:$0xff]  }
  0x19   : > { %9240 = vmatprep.mubr.msk.bf16.mxu1 %vm899_vm2, %v9799_v15  ;;  %9312 = vmatprep.subr.bf16.mxu1 %v10273_v13  ;;  %368 = vst.msk [vmem:[#allocation2 + $0x118] sm:$0xff] %vm332_vm3, %v13914_v21  ;;  %370 = vst.msk [vmem:[#allocation2 + $0x128] sm:$0xff] %vm332_vm3, %v13914_v21  ;;  %v9812_v28 = vld [vmem:[%s10264_s21 + $0xa0] sm:$0xff]   ;;  %v9813_v29 = vld [vmem:[%s10264_s21 + $0x48] sm:$0xff]  }
  0x1a   : > { %372 = vst.msk [vmem:[#allocation2 + $0x138] sm:$0xff] %vm332_vm3, %v13914_v21  ;;  %374 = vst.msk [vmem:[#allocation2 + $0x148] sm:$0xff] %vm332_vm3, %v13914_v21  ;;  %v9814_v30 = vld [vmem:[%s10264_s21 + $0xa8] sm:$0xff]   ;;  %v9815_v31 = vld [vmem:[%s10264_s21 + $0x50] sm:$0xff]   ;;  %9279 = vmatpush3.bf16.msra.mxu0 %v1823_v40 }
  0x1b   : > { %376 = vst.msk [vmem:[#allocation2 + $0x158] sm:$0xff] %vm332_vm3, %v13914_v21  ;;  %378 = vst.msk [vmem:[#allocation2 + $0x168] sm:$0xff] %vm332_vm3, %v13914_v21  ;;  %v9816_v32 = vld [vmem:[%s10264_s21 + $0xb0] sm:$0xff]   ;;  %v9817_v33 = vld [vmem:[%s10264_s21 + $0x58] sm:$0xff]   ;;  %9346 = vmatprep.subr.bf16.mxu0 %v9858_v1 }
  0x1c   : > { %380 = vst.msk [vmem:[#allocation2 + $0x178] sm:$0xff] %vm332_vm3, %v13914_v21  ;;  %382 = vst.msk [vmem:[#allocation2 + $0x188] sm:$0xff] %vm332_vm3, %v13914_v21  ;;  %v9818_v34 = vld [vmem:[%s10264_s21 + $0xb8] sm:$0xff]   ;;  %v9819_v35 = vld [vmem:[%s10264_s21 + $0xc0] sm:$0xff]  }
  0x1d   : > { %384 = vst.msk [vmem:[#allocation2 + $0x198] sm:$0xff] %vm332_vm3, %v13914_v21  ;;  %386 = vst.msk [vmem:[#allocation2 + $0x1a8] sm:$0xff] %vm332_vm3, %v13914_v21  ;;  %v9820_v36 = vld [vmem:[%s10264_s21 + $0xc8] sm:$0xff]   ;;  %v9844_v38 = vld [vmem:[%s10264_s21 + $0x100] sm:$0xff]  }
  0x1e   : > { %388 = vst.msk [vmem:[#allocation2 + $0x1b8] sm:$0xff] %vm332_vm3, %v13914_v21  ;;  %390 = vst.msk [vmem:[#allocation2 + $0x1c8] sm:$0xff] %vm332_vm3, %v13914_v21  ;;  %v9821_v39 = vld [vmem:[%s10264_s21 + $0xd0] sm:$0xff]   ;;  %v9845_v41 = vld [vmem:[%s10264_s21 + $0x108] sm:$0xff]  }
  0x1f   : > { %9217 = vmatmul.mubr.msk.bf16.gmra.mxu0 %vm899_vm2, %v9800_v16  ;;  %9241 = vmatmul.mubr.msk.bf16.gmra.mxu1 %vm899_vm2, %v9801_v17  ;;  %392 = vst.msk [vmem:[#allocation2 + $0x1d8] sm:$0xff] %vm332_vm3, %v13914_v21  ;;  %394 = vst.msk [vmem:[#allocation2 + $0x1e8] sm:$0xff] %vm332_vm3, %v13914_v21  ;;  %v9846_v42 = vld [vmem:[%s10264_s21 + $0x110] sm:$0xff]   ;;  %v9822_v43 = vld [vmem:[%s10264_s21 + $0xd8] sm:$0xff]  }
  0x20   : > { %9220 = vmatprep.mubr.msk.bf16.mxu0 %vm899_vm2, %v9802_v18  ;;  %9246 = vmatprep.mubr.msk.bf16.mxu1 %vm899_vm2, %v9803_v19  ;;  %396 = vst.msk [vmem:[#allocation2 + $0x1f8] sm:$0xff] %vm332_vm3, %v13914_v21  ;;  %398 = vst.msk [vmem:[#allocation2 + $0x208] sm:$0xff] %vm332_vm3, %v13914_v21  ;;  %v9823_v44 = vld [vmem:[%s10264_s21 + $0xe0] sm:$0xff]   ;;  %v9847_v45 = vld [vmem:[%s10264_s21 + $0x118] sm:$0xff]  }
  0x21   : > { %402 = vst.msk [vmem:[#allocation2 + $0x228] sm:$0xff] %vm332_vm3, %v13914_v21  ;;  %404 = vst.msk [vmem:[#allocation2 + $0x238] sm:$0xff] %vm332_vm3, %v13914_v21  ;;  %v9848_v46 = vld [vmem:[%s10264_s21 + $0x120] sm:$0xff]   ;;  %v9824_v47 = vld [vmem:[%s10264_s21 + $0xe8] sm:$0xff]  }
  0x22   : > { %406 = vst.msk [vmem:[#allocation2 + $0x248] sm:$0xff] %vm332_vm3, %v13914_v21  ;;  %408 = vst.msk [vmem:[#allocation2 + $0x258] sm:$0xff] %vm332_vm3, %v13914_v21  ;;  %v9825_v48 = vld [vmem:[%s10264_s21 + $0xf0] sm:$0xff]   ;;  %v9849_v49 = vld [vmem:[%s10264_s21 + $0x128] sm:$0xff]  }
  0x23   : > { %410 = vst.msk [vmem:[#allocation2 + $0x268] sm:$0xff] %vm332_vm3, %v13914_v21  ;;  %412 = vst.msk [vmem:[#allocation2 + $0x278] sm:$0xff] %vm332_vm3, %v13914_v21  ;;  %v9826_v50 = vld [vmem:[%s10264_s21 + $0xf8] sm:$0xff]   ;;  %v9850_v51 = vld [vmem:[%s10264_s21 + $0x130] sm:$0xff]  }
  0x24   : > { %414 = vst.msk [vmem:[#allocation2 + $0x288] sm:$0xff] %vm332_vm3, %v13914_v21  ;;  %416 = vst.msk [vmem:[#allocation2 + $0x298] sm:$0xff] %vm332_vm3, %v13914_v21  ;;  %v9827_v52 = vld [vmem:[%s10264_s21 + $0x180] sm:$0xff]   ;;  %v9851_v53 = vld [vmem:[%s10264_s21 + $0x138] sm:$0xff]  }
  0x25   : > { %418 = vst.msk [vmem:[#allocation2 + $0x2a8] sm:$0xff] %vm332_vm3, %v13914_v21  ;;  %420 = vst.msk [vmem:[#allocation2 + $0x2b8] sm:$0xff] %vm332_vm3, %v13914_v21  ;;  %v9828_v54 = vld [vmem:[%s10264_s21 + $0x188] sm:$0xff]   ;;  %v9852_v55 = vld [vmem:[%s10264_s21 + $0x140] sm:$0xff]  }
  0x26   : > { %422 = vst.msk [vmem:[#allocation2 + $0x2c8] sm:$0xff] %vm332_vm3, %v13914_v21  ;;  %424 = vst.msk [vmem:[#allocation2 + $0x2d8] sm:$0xff] %vm332_vm3, %v13914_v21  ;;  %v9829_v56 = vld [vmem:[%s10264_s21 + $0x190] sm:$0xff]   ;;  %v9853_v57 = vld [vmem:[%s10264_s21 + $0x148] sm:$0xff]  }
  0x27   : > { %426 = vst.msk [vmem:[#allocation2 + $0x2e8] sm:$0xff] %vm332_vm3, %v13914_v21  ;;  %428 = vst.msk [vmem:[#allocation2 + $0x2f8] sm:$0xff] %vm332_vm3, %v13914_v21  ;;  %9221 = vmatmul.mubr.msk.bf16.gmra.mxu0 %vm899_vm2, %v10291_v20  ;;  %9247 = vmatmul.mubr.msk.bf16.vlgmr.msra.gmra.mxu1 %vm899_vm2, %v9806_v22  ;;  %v9830_v58 = vld [vmem:[%s10264_s21 + $0x198] sm:$0xff]   ;;  %v9854_v59 = vld [vmem:[%s10264_s21 + $0x150] sm:$0xff]  }
  0x28   : > { %430 = vst.msk [vmem:[#allocation2 + $0x308] sm:$0xff] %vm332_vm3, %v13914_v21  ;;  %432 = vst.msk [vmem:[#allocation2 + $0x318] sm:$0xff] %vm332_vm3, %v13914_v21  ;;  %9224 = vmatprep.mubr.msk.bf16.mxu0 %vm899_vm2, %v9807_v23  ;;  %9313 = vmatpush3.bf16.msra.mxu1 %v10273_v13  ;;  %v9831_v60 = vld [vmem:[%s10264_s21 + $0x1a0] sm:$0xff]   ;;  %v9855_v61 = vld [vmem:[%s10264_s21 + $0x158] sm:$0xff]  }
  0x29   : > { %434 = vst.msk [vmem:[#allocation2 + $0x328] sm:$0xff] %vm332_vm3, %v13914_v21  ;;  %436 = vst.msk [vmem:[#allocation2 + $0x338] sm:$0xff] %vm332_vm3, %v13914_v21  ;;  %9250 = vmatprep.mubr.msk.bf16.mxu1 %vm899_vm2, %v9808_v24  ;;  %v9832_v62 = vld [vmem:[%s10264_s21 + $0x1a8] sm:$0xff]   ;;  %v9856_v63 = vld [vmem:[%s10264_s21 + $0x160] sm:$0xff]  }
  0x2a   : > { %438 = vst.msk [vmem:[#allocation2 + $0x348] sm:$0xff] %vm332_vm3, %v13914_v21  ;;  %440 = vst.msk [vmem:[#allocation2 + $0x358] sm:$0xff] %vm332_vm3, %v13914_v21  ;;  %v9833_v0 = vld [vmem:[%s10264_s21 + $0x1b0] sm:$0xff]   ;;  %v9857_v2 = vld [vmem:[%s10264_s21 + $0x168] sm:$0xff]  }
  0x2b   : > { %442 = vst.msk [vmem:[#allocation2 + $0x368] sm:$0xff] %vm332_vm3, %v13914_v21  ;;  %444 = vst.msk [vmem:[#allocation2 + $0x378] sm:$0xff] %vm332_vm3, %v13914_v21  ;;  %v9834_v4 = vld [vmem:[%s10264_s21 + $0x1b8] sm:$0xff]   ;;  %v9860_v5 = vld [vmem:[%s10264_s21 + $0x170] sm:$0xff]  }
  0x2c   : > { %446 = vst.msk [vmem:[#allocation2 + $0x388] sm:$0xff] %vm332_vm3, %v13914_v21  ;;  %448 = vst.msk [vmem:[#allocation2 + $0x398] sm:$0xff] %vm332_vm3, %v13914_v21  ;;  %v9835_v6 = vld [vmem:[%s10264_s21 + $0x1c0] sm:$0xff]   ;;  %v9862_v7 = vld [vmem:[%s13907_s3 + $0x28] sm:$0xff]  }
  0x2d   : > { %450 = vst.msk [vmem:[#allocation2 + $0x3a8] sm:$0xff] %vm332_vm3, %v13914_v21  ;;  %452 = vst.msk [vmem:[#allocation2 + $0x3b8] sm:$0xff] %vm332_vm3, %v13914_v21  ;;  %v9861_v8 = vld [vmem:[%s10264_s21 + $0x178] sm:$0xff]   ;;  %v9863_v9 = vld [vmem:[%s13907_s3 + $0x20] sm:$0xff]  }
  0x2e   : > { %454 = vst.msk [vmem:[#allocation2 + $0x3c8] sm:$0xff] %vm332_vm3, %v13914_v21  ;;  %456 = vst.msk [vmem:[#allocation2 + $0x3d8] sm:$0xff] %vm332_vm3, %v13914_v21  ;;  %v9836_v10 = vld [vmem:[%s10264_s21 + $0x1c8] sm:$0xff]   ;;  %v9837_v11 = vld [vmem:[%s10264_s21 + $0x1d0] sm:$0xff]  }
  0x2f   : > { %458 = vst.msk [vmem:[#allocation2 + $0x3e8] sm:$0xff] %vm332_vm3, %v13914_v21  ;;  %460 = vst.msk [vmem:[#allocation2 + $0x3f8] sm:$0xff] %vm332_vm3, %v13914_v21  ;;  %9225 = vmatmul.mubr.msk.bf16.gmra.mxu0 %vm899_vm2, %v9809_v25  ;;  %9251 = vmatmul.mubr.msk.bf16.gmra.mxu1 %vm899_vm2, %v9810_v26  ;;  %v9838_v12 = vld [vmem:[%s10264_s21 + $0x1d8] sm:$0xff]   ;;  %v9839_v13 = vld [vmem:[%s10264_s21 + $0x1e0] sm:$0xff]  }
  0x30   : > { %462 = vst.msk [vmem:[#allocation2 + $0x408] sm:$0xff] %vm332_vm3, %v13914_v21  ;;  %464 = vst.msk [vmem:[#allocation2 + $0x418] sm:$0xff] %vm332_vm3, %v13914_v21  ;;  %9228 = vmatprep.mubr.msk.bf16.mxu0 %vm899_vm2, %v9811_v27  ;;  %9254 = vmatprep.mubr.msk.bf16.mxu1 %vm899_vm2, %v9812_v28  ;;  %v9840_v14 = vld [vmem:[%s10264_s21 + $0x1e8] sm:$0xff]   ;;  %v9841_v15 = vld [vmem:[%s10264_s21 + $0x1f0] sm:$0xff]  }
  0x31   : > { %466 = vst.msk [vmem:[#allocation2 + $0x428] sm:$0xff] %vm332_vm3, %v13914_v21  ;;  %470 = vst.msk [vmem:[#allocation2 + $0x448] sm:$0xff] %vm332_vm3, %v13914_v21  ;;  %v10748_v16 = vld [vmem:[%s13907_s3 + $0x58] sm:$0xff]   ;;  %v9869_v19 = vld [vmem:[%s13907_s3 + $0x10] sm:$0xff]  }
  0x32   : > { %472 = vst.msk [vmem:[#allocation2 + $0x458] sm:$0xff] %vm332_vm3, %v13914_v21  ;;  %474 = vst.msk [vmem:[#allocation2 + $0x468] sm:$0xff] %vm332_vm3, %v13914_v21  ;;  %v9842_v17 = vld [vmem:[%s10264_s21 + $0x1f8] sm:$0xff]   ;;  %v9873_v20 = vld [vmem:[%s13907_s3 + $0x8] sm:$0xff]  }
  0x33   : > { %476 = vst.msk [vmem:[#allocation2 + $0x478] sm:$0xff] %vm332_vm3, %v13914_v21  ;;  %478 = vst.msk [vmem:[#allocation2 + $0x488] sm:$0xff] %vm332_vm3, %v13914_v21  ;;  %v9867_v18 = vld [vmem:[%s13907_s3 + $0x18] sm:$0xff]   ;;  %v9875_v22 = vld [vmem:[%s13907_s3] sm:$0xff]  }
  0x34   : > { %480 = vst.msk [vmem:[#allocation2 + $0x498] sm:$0xff] %vm332_vm3, %v13914_v21  ;;  %482 = vst.msk [vmem:[#allocation2 + $0x4a8] sm:$0xff] %vm332_vm3, %v13914_v21  ;;  %9370 = vmatprep.subr.bf16.mxu1 %v9867_v18  ;;  %v10769_v23 = vld [vmem:[%s13906_s2] ss:$0 sm:$0xff] }
  0x35   : > { %484 = vst.msk [vmem:[#allocation2 + $0x4b8] sm:$0xff] %vm332_vm3, %v13914_v21  ;;  %486 = vst.msk [vmem:[#allocation2 + $0x4c8] sm:$0xff] %vm332_vm3, %v13914_v21 }
  0x36   : > { %488 = vst.msk [vmem:[#allocation2 + $0x4d8] sm:$0xff] %vm332_vm3, %v13914_v21  ;;  %490 = vst.msk [vmem:[#allocation2 + $0x4e8] sm:$0xff] %vm332_vm3, %v13914_v21 }
  0x37   : > { %492 = vst.msk [vmem:[#allocation2 + $0x4f8] sm:$0xff] %vm332_vm3, %v13914_v21  ;;  %494 = vst.msk [vmem:[#allocation2 + $0x508] sm:$0xff] %vm332_vm3, %v13914_v21  ;;  %9229 = vmatmul.mubr.msk.bf16.gmra.mxu0 %vm899_vm2, %v9813_v29  ;;  %9255 = vmatmul.mubr.msk.bf16.gmra.mxu1 %vm899_vm2, %v9814_v30 }
  0x38   : > { %496 = vst.msk [vmem:[#allocation2 + $0x518] sm:$0xff] %vm332_vm3, %v13914_v21  ;;  %498 = vst.msk [vmem:[#allocation2 + $0x528] sm:$0xff] %vm332_vm3, %v13914_v21  ;;  %9232 = vmatprep.mubr.msk.bf16.mxu0 %vm899_vm2, %v9815_v31  ;;  %9258 = vmatprep.mubr.msk.bf16.mxu1 %vm899_vm2, %v9816_v32 }
  0x39   : > { %500 = vst.msk [vmem:[#allocation2 + $0x538] sm:$0xff] %vm332_vm3, %v13914_v21  ;;  %502 = vst.msk [vmem:[#allocation2 + $0x548] sm:$0xff] %vm332_vm3, %v13914_v21 }
  0x3a   : > { %504 = vst.msk [vmem:[#allocation2 + $0x558] sm:$0xff] %vm332_vm3, %v13914_v21  ;;  %506 = vst.msk [vmem:[#allocation2 + $0x568] sm:$0xff] %vm332_vm3, %v13914_v21 }
  0x3b   : > { %508 = vst.msk [vmem:[#allocation2 + $0x578] sm:$0xff] %vm332_vm3, %v13914_v21  ;;  %510 = vst.msk [vmem:[#allocation2 + $0x588] sm:$0xff] %vm332_vm3, %v13914_v21 }
  0x3c   : > { %512 = vst.msk [vmem:[#allocation2 + $0x598] sm:$0xff] %vm332_vm3, %v13914_v21  ;;  %514 = vst.msk [vmem:[#allocation2 + $0x5a8] sm:$0xff] %vm332_vm3, %v13914_v21 }
  0x3d   : > { %516 = vst.msk [vmem:[#allocation2 + $0x5b8] sm:$0xff] %vm332_vm3, %v13914_v21  ;;  %518 = vst.msk [vmem:[#allocation2 + $0x5c8] sm:$0xff] %vm332_vm3, %v13914_v21 }
  0x3e   : > { %520 = vst.msk [vmem:[#allocation2 + $0x5d8] sm:$0xff] %vm332_vm3, %v13914_v21  ;;  %522 = vst.msk [vmem:[#allocation2 + $0x5e8] sm:$0xff] %vm332_vm3, %v13914_v21 }
  0x3f   : > { %524 = vst.msk [vmem:[#allocation2 + $0x5f8] sm:$0xff] %vm332_vm3, %v13914_v21  ;;  %526 = vst.msk [vmem:[#allocation2 + $0x608] sm:$0xff] %vm332_vm3, %v13914_v21  ;;  %9233 = vmatmul.mubr.msk.bf16.gmra.mxu0 %vm899_vm2, %v9817_v33  ;;  %9259 = vmatmul.mubr.msk.bf16.gmra.mxu1 %vm899_vm2, %v9818_v34 }
  0x40   : > { %528 = vst.msk [vmem:[#allocation2 + $0x618] sm:$0xff] %vm332_vm3, %v13914_v21  ;;  %530 = vst.msk [vmem:[#allocation2 + $0x628] sm:$0xff] %vm332_vm3, %v13914_v21  ;;  %9262 = vmatprep.mubr.msk.bf16.mxu1 %vm899_vm2, %v9819_v35  ;;  %9280 = vmatprep.mubr.msk.bf16.mxu0 %vm899_vm2, %v9844_v38 }
  0x41   : > { %532 = vst.msk [vmem:[#allocation2 + $0x638] sm:$0xff] %vm332_vm3, %v13914_v21  ;;  %534 = vst.msk [vmem:[#allocation2 + $0x648] sm:$0xff] %vm332_vm3, %v13914_v21 }
  0x42   : > { %537 = vst.msk [vmem:[#allocation2 + $0x660] sm:$0xff] %vm332_vm3, %v13914_v21  ;;  %538 = vst.msk [vmem:[#allocation2 + $0x668] sm:$0xff] %vm332_vm3, %v13914_v21 }
  0x43   : > { %539 = vst.msk [vmem:[#allocation2 + $0x670] sm:$0xff] %vm332_vm3, %v13914_v21  ;;  %540 = vst.msk [vmem:[#allocation2 + $0x678] sm:$0xff] %vm332_vm3, %v13914_v21 }
  0x44   : > { %541 = vst.msk [vmem:[#allocation2 + $0x680] sm:$0xff] %vm332_vm3, %v13914_v21  ;;  %542 = vst.msk [vmem:[#allocation2 + $0x688] sm:$0xff] %vm332_vm3, %v13914_v21 }
  0x45   : > { %543 = vst.msk [vmem:[#allocation2 + $0x690] sm:$0xff] %vm332_vm3, %v13914_v21  ;;  %544 = vst.msk [vmem:[#allocation2 + $0x698] sm:$0xff] %vm332_vm3, %v13914_v21 }
  0x46   : > { %545 = vst.msk [vmem:[#allocation2 + $0x6a0] sm:$0xff] %vm332_vm3, %v13914_v21  ;;  %546 = vst.msk [vmem:[#allocation2 + $0x6a8] sm:$0xff] %vm332_vm3, %v13914_v21 }
  0x47   : > { %547 = vst.msk [vmem:[#allocation2 + $0x6b0] sm:$0xff] %vm332_vm3, %v13914_v21  ;;  %548 = vst.msk [vmem:[#allocation2 + $0x6b8] sm:$0xff] %vm332_vm3, %v13914_v21  ;;  %9263 = vmatmul.mubr.msk.bf16.gmra.mxu1 %vm899_vm2, %v9820_v36  ;;  %9281 = vmatmul.mubr.msk.bf16.vlgmr.msra.gmra.mxu0 %vm899_vm2, %v9845_v41 }
  0x48   : > { %549 = vst.msk [vmem:[#allocation2 + $0x6c0] sm:$0xff] %vm332_vm3, %v13914_v21  ;;  %550 = vst.msk [vmem:[#allocation2 + $0x6c8] sm:$0xff] %vm332_vm3, %v13914_v21  ;;  %9266 = vmatprep.mubr.msk.bf16.mxu1 %vm899_vm2, %v9821_v39  ;;  %9284 = vmatprep.mubr.msk.bf16.mxu0 %vm899_vm2, %v9846_v42 }
  0x49   : > { %551 = vst.msk [vmem:[#allocation2 + $0x6d0] sm:$0xff] %vm332_vm3, %v13914_v21  ;;  %552 = vst.msk [vmem:[#allocation2 + $0x6d8] sm:$0xff] %vm332_vm3, %v13914_v21  ;;  %9347 = vmatpush3.bf16.msra.mxu0 %v9858_v1 }
  0x4a   : > { %553 = vst.msk [vmem:[#allocation2 + $0x6e0] sm:$0xff] %vm332_vm3, %v13914_v21  ;;  %554 = vst.msk [vmem:[#allocation2 + $0x6e8] sm:$0xff] %vm332_vm3, %v13914_v21  ;;  %9348 = vmatprep.subr.bf16.mxu0 %v9859_v3 }
  0x4b   : > { %555 = vst.msk [vmem:[#allocation2 + $0x6f0] sm:$0xff] %vm332_vm3, %v13914_v21  ;;  %556 = vst.msk [vmem:[#allocation2 + $0x6f8] sm:$0xff] %vm332_vm3, %v13914_v21 }
  0x4c   : > { %557 = vst.msk [vmem:[#allocation2 + $0x700] sm:$0xff] %vm332_vm3, %v13914_v21  ;;  %558 = vst.msk [vmem:[#allocation2 + $0x708] sm:$0xff] %vm332_vm3, %v13914_v21 }
  0x4d   : > { %559 = vst.msk [vmem:[#allocation2 + $0x710] sm:$0xff] %vm332_vm3, %v13914_v21  ;;  %560 = vst.msk [vmem:[#allocation2 + $0x718] sm:$0xff] %vm332_vm3, %v13914_v21  ;;  %9349 = vmatpush3.bf16.msra.mxu0 %v9859_v3 }
  0x4e   : > { %561 = vst.msk [vmem:[#allocation2 + $0x720] sm:$0xff] %vm332_vm3, %v13914_v21  ;;  %562 = vst.msk [vmem:[#allocation2 + $0x728] sm:$0xff] %vm332_vm3, %v13914_v21  ;;  %9350 = vmatprep.subr.bf16.mxu0 %v9862_v7 }
  0x4f   : > { %563 = vst.msk [vmem:[#allocation2 + $0x730] sm:$0xff] %vm332_vm3, %v13914_v21  ;;  %564 = vst.msk [vmem:[#allocation2 + $0x738] sm:$0xff] %vm332_vm3, %v13914_v21  ;;  %9267 = vmatmul.mubr.msk.bf16.gmra.mxu1 %vm899_vm2, %v9822_v43  ;;  %9285 = vmatmul.mubr.msk.bf16.gmra.mxu0 %vm899_vm2, %v9847_v45 }
  0x50   : > { %565 = vst.msk [vmem:[#allocation2 + $0x740] sm:$0xff] %vm332_vm3, %v13914_v21  ;;  %566 = vst.msk [vmem:[#allocation2 + $0x748] sm:$0xff] %vm332_vm3, %v13914_v21  ;;  %9270 = vmatprep.mubr.msk.bf16.mxu1 %vm899_vm2, %v9823_v44  ;;  %9288 = vmatprep.mubr.msk.bf16.mxu0 %vm899_vm2, %v9848_v46 }
  0x51   : > { %567 = vst.msk [vmem:[#allocation2 + $0x750] sm:$0xff] %vm332_vm3, %v13914_v21  ;;  %568 = vst.msk [vmem:[#allocation2 + $0x758] sm:$0xff] %vm332_vm3, %v13914_v21  ;;  %9351 = vmatpush3.bf16.msra.mxu0 %v9862_v7 }
  0x52   : > { %569 = vst.msk [vmem:[#allocation2 + $0x760] sm:$0xff] %vm332_vm3, %v13914_v21  ;;  %570 = vst.msk [vmem:[#allocation2 + $0x768] sm:$0xff] %vm332_vm3, %v13914_v21  ;;  %9352 = vmatprep.subr.bf16.mxu0 %v9863_v9 }
  0x53   : > { %571 = vst.msk [vmem:[#allocation2 + $0x770] sm:$0xff] %vm332_vm3, %v13914_v21  ;;  %572 = vst.msk [vmem:[#allocation2 + $0x778] sm:$0xff] %vm332_vm3, %v13914_v21 }
  0x54   : > { %573 = vst.msk [vmem:[#allocation2 + $0x780] sm:$0xff] %vm332_vm3, %v13914_v21  ;;  %574 = vst.msk [vmem:[#allocation2 + $0x788] sm:$0xff] %vm332_vm3, %v13914_v21 }
  0x55   : > { %575 = vst.msk [vmem:[#allocation2 + $0x790] sm:$0xff] %vm332_vm3, %v13914_v21  ;;  %576 = vst.msk [vmem:[#allocation2 + $0x798] sm:$0xff] %vm332_vm3, %v13914_v21  ;;  %9353 = vmatpush3.bf16.msra.mxu0 %v9863_v9 }
  0x56   : > { %577 = vst.msk [vmem:[#allocation2 + $0x7a0] sm:$0xff] %vm332_vm3, %v13914_v21  ;;  %578 = vst.msk [vmem:[#allocation2 + $0x7a8] sm:$0xff] %vm332_vm3, %v13914_v21  ;;  %9394 = vmatprep.subr.bf16.mxu0 %v10748_v16 }
  0x57   : > { %579 = vst.msk [vmem:[#allocation2 + $0x7b0] sm:$0xff] %vm332_vm3, %v13914_v21  ;;  %580 = vst.msk [vmem:[#allocation2 + $0x7b8] sm:$0xff] %vm332_vm3, %v13914_v21  ;;  %9271 = vmatmul.mubr.msk.bf16.gmra.mxu1 %vm899_vm2, %v9824_v47  ;;  %9289 = vmatmul.mubr.msk.bf16.gmra.mxu0 %vm899_vm2, %v9849_v49 }
  0x58   : > { %581 = vst.msk [vmem:[#allocation2 + $0x7c0] sm:$0xff] %vm332_vm3, %v13914_v21  ;;  %582 = vst.msk [vmem:[#allocation2 + $0x7c8] sm:$0xff] %vm332_vm3, %v13914_v21  ;;  %9274 = vmatprep.mubr.msk.bf16.mxu1 %vm899_vm2, %v9825_v48  ;;  %9292 = vmatprep.mubr.msk.bf16.mxu0 %vm899_vm2, %v9850_v51 }
  0x59   : > { %583 = vst.msk [vmem:[#allocation2 + $0x7d0] sm:$0xff] %vm332_vm3, %v13914_v21  ;;  %584 = vst.msk [vmem:[#allocation2 + $0x7d8] sm:$0xff] %vm332_vm3, %v13914_v21 }
  0x5a   : > { %585 = vst.msk [vmem:[#allocation2 + $0x7e0] sm:$0xff] %vm332_vm3, %v13914_v21  ;;  %586 = vst.msk [vmem:[#allocation2 + $0x7e8] sm:$0xff] %vm332_vm3, %v13914_v21 }
  0x5b   : > { %587 = vst.msk [vmem:[#allocation2 + $0x7f0] sm:$0xff] %vm332_vm3, %v13914_v21  ;;  %588 = vst.msk [vmem:[#allocation2 + $0x7f8] sm:$0xff] %vm332_vm3, %v13914_v21 }
  0x5c   : > { %589 = vst.msk [vmem:[#allocation2 + $0x800] sm:$0xff] %vm332_vm3, %v13914_v21  ;;  %590 = vst.msk [vmem:[#allocation2 + $0x808] sm:$0xff] %vm332_vm3, %v13914_v21 }
  0x5d   : > { %591 = vst.msk [vmem:[#allocation2 + $0x810] sm:$0xff] %vm332_vm3, %v13914_v21  ;;  %592 = vst.msk [vmem:[#allocation2 + $0x818] sm:$0xff] %vm332_vm3, %v13914_v21 }
  0x5e   : > { %593 = vst.msk [vmem:[#allocation2 + $0x820] sm:$0xff] %vm332_vm3, %v13914_v21  ;;  %594 = vst.msk [vmem:[#allocation2 + $0x828] sm:$0xff] %vm332_vm3, %v13914_v21 }
  0x5f   : > { %595 = vst.msk [vmem:[#allocation2 + $0x830] sm:$0xff] %vm332_vm3, %v13914_v21  ;;  %596 = vst.msk [vmem:[#allocation2 + $0x838] sm:$0xff] %vm332_vm3, %v13914_v21  ;;  %9275 = vmatmul.mubr.msk.bf16.gmra.mxu1 %vm899_vm2, %v9826_v50  ;;  %9293 = vmatmul.mubr.msk.bf16.gmra.mxu0 %vm899_vm2, %v9851_v53 }
  0x60   : > { %597 = vst.msk [vmem:[#allocation2 + $0x840] sm:$0xff] %vm332_vm3, %v13914_v21  ;;  %598 = vst.msk [vmem:[#allocation2 + $0x848] sm:$0xff] %vm332_vm3, %v13914_v21  ;;  %9314 = vmatprep.mubr.msk.bf16.mxu1 %vm899_vm2, %v9827_v52  ;;  %9296 = vmatprep.mubr.msk.bf16.mxu0 %vm899_vm2, %v9852_v55 }
  0x61   : > { %599 = vst.msk [vmem:[#allocation2 + $0x850] sm:$0xff] %vm332_vm3, %v13914_v21  ;;  %600 = vst.msk [vmem:[#allocation2 + $0x858] sm:$0xff] %vm332_vm3, %v13914_v21 }
  0x62   : > { %601 = vst.msk [vmem:[#allocation2 + $0x860] sm:$0xff] %vm332_vm3, %v13914_v21  ;;  %602 = vst.msk [vmem:[#allocation2 + $0x868] sm:$0xff] %vm332_vm3, %v13914_v21 }
  0x67   : > { %9315 = vmatmul.mubr.msk.bf16.vlgmr.msra.gmra.mxu1 %vm899_vm2, %v9828_v54  ;;  %9297 = vmatmul.mubr.msk.bf16.gmra.mxu0 %vm899_vm2, %v9853_v57 }
  0x68   : > { %9318 = vmatprep.mubr.msk.bf16.mxu1 %vm899_vm2, %v9829_v56  ;;  %9300 = vmatprep.mubr.msk.bf16.mxu0 %vm899_vm2, %v9854_v59 }
  0x69   : > { %9371 = vmatpush3.bf16.msra.mxu1 %v9867_v18 }
  0x6a   : > { %9372 = vmatprep.subr.bf16.mxu1 %v9869_v19 }
  0x6d   : > { %9373 = vmatpush3.bf16.msra.mxu1 %v9869_v19 }
  0x6e   : > { %9374 = vmatprep.subr.bf16.mxu1 %v9873_v20 }
  0x6f   : > { %9319 = vmatmul.mubr.msk.bf16.gmra.mxu1 %vm899_vm2, %v9830_v58  ;;  %9301 = vmatmul.mubr.msk.bf16.gmra.mxu0 %vm899_vm2, %v9855_v61 }
  0x70   : > { %9322 = vmatprep.mubr.msk.bf16.mxu1 %vm899_vm2, %v9831_v60  ;;  %9304 = vmatprep.mubr.msk.bf16.mxu0 %vm899_vm2, %v9856_v63 }
  0x71   : > { %9375 = vmatpush3.bf16.msra.mxu1 %v9873_v20 }
  0x72   : > { %9376 = vmatprep.subr.bf16.mxu1 %v9875_v22 }
  0x75   : > { %9377 = vmatpush3.bf16.msra.mxu1 %v9875_v22 }
  0x77   : > { %9323 = vmatmul.mubr.msk.bf16.gmra.mxu1 %vm899_vm2, %v9832_v62  ;;  %9305 = vmatmul.mubr.msk.bf16.gmra.mxu0 %vm899_vm2, %v9857_v2 }
  0x78   : > { %9326 = vmatprep.mubr.msk.bf16.mxu1 %vm899_vm2, %v9833_v0  ;;  %9308 = vmatprep.mubr.msk.bf16.mxu0 %vm899_vm2, %v9860_v5 }
  0x7f   : > { %9327 = vmatmul.mubr.msk.bf16.gmra.mxu1 %vm899_vm2, %v9834_v4  ;;  %9309 = vmatmul.mubr.msk.bf16.gmra.mxu0 %vm899_vm2, %v9861_v8 }
  0x80   : > { %9330 = vmatprep.mubr.msk.bf16.mxu1 %vm899_vm2, %v9835_v6 }
  0x87   : > { %9331 = vmatmul.mubr.msk.bf16.gmra.mxu1 %vm899_vm2, %v9836_v10 }
  0x88   : > { %9334 = vmatprep.mubr.msk.bf16.mxu1 %vm899_vm2, %v9837_v11 }
  0x8f   : > { %9335 = vmatmul.mubr.msk.bf16.gmra.mxu1 %vm899_vm2, %v9838_v12 }
  0x90   : > { %9338 = vmatprep.mubr.msk.bf16.mxu1 %vm899_vm2, %v9839_v13 }
  0x97   : > { %9339 = vmatmul.mubr.msk.bf16.gmra.mxu1 %vm899_vm2, %v9840_v14 }
  0x98   : > { %9342 = vmatprep.mubr.msk.bf16.mxu1 %vm899_vm2, %v9841_v15  ;;  %v9879_v15 = vld [vmem:[%s13907_s3 + $0x78] sm:$0xff]  }
  0x99   : > { %9418 = vmatprep.subr.bf16.mxu1 %v9879_v15 }
  0x9f   : > { %9343 = vmatmul.mubr.msk.bf16.gmra.mxu1 %vm899_vm2, %v9842_v17 }
  0xd7   : > { %v9214_v24 = vpop.f32.mrf.mxu0  ;;  %v9238_v26 = vpop.f32.mrf.mxu1 }
  0xd8   : > { %v998_v25 = vadd.f32 %v9214_v24, %v10769_v23  ;;  %v1094_v27 = vadd.f32 %v9238_v26, %v10769_v23 }
  0xd9   : > { %v989_v28 = vpop.f32.mrf.mxu0  ;;  %v1085_v31 = vpop.f32.mrf.mxu1 }
  0xda   : > { %vm1118_vm4 = vcmp.ge.f32.partialorder %v998_v25, 0.0  ;;  %v1150_v29 = vmul.f32 0.2, %v998_v25  ;;  %v990_v30 = vadd.f32 %v10769_v23, %v989_v28  ;;  %vm1142_vm5 = vcmp.ge.f32.partialorder %v1094_v27, 0.0 }
  0xdb   : > { %v1174_v32 = vmul.f32 0.2, %v1094_v27  ;;  %v1086_v33 = vadd.f32 %v10769_v23, %v1085_v31  ;;  %v9215_v34 = vpop.f32.mrf.mxu0  ;;  %v9239_v38 = vpop.f32.mrf.mxu1 }
  0xdc   : > { %v1182_v35 = vsel %vm1118_vm4, %v998_v25, %v1150_v29  ;;  %vm1116_vm6 = vcmp.ge.f32.partialorder %v990_v30, 0.0  ;;  %v1148_v36 = vmul.f32 0.2, %v990_v30  ;;  %v1001_v37 = vadd.f32 %v9215_v34, %v10769_v23 }
  0xdd   : > { %1215 = vst.msk [vmem:[#allocation2 + $0x38] sm:$0xff] %vm332_vm3, %v1182_v35  ;;  %v1206_v39 = vsel %vm1142_vm5, %v1094_v27, %v1174_v32  ;;  %vm1140_vm7 = vcmp.ge.f32.partialorder %v1086_v33, 0.0  ;;  %v1172_v40 = vmul.f32 0.2, %v1086_v33  ;;  %v1097_v41 = vadd.f32 %v9239_v38, %v10769_v23  ;;  %v992_v42 = vpop.f32.mrf.mxu0  ;;  %v1088_v46 = vpop.f32.mrf.mxu1 }
  0xde   : > { %1239 = vst.msk [vmem:[#allocation2 + $0x1b8] sm:$0xff] %vm332_vm3, %v1206_v39  ;;  %v1180_v43 = vsel %vm1116_vm6, %v990_v30, %v1148_v36  ;;  %vm1119_vm8 = vcmp.ge.f32.partialorder %v1001_v37, 0.0  ;;  %v1151_v44 = vmul.f32 0.2, %v1001_v37  ;;  %v993_v45 = vadd.f32 %v10769_v23, %v992_v42 }
  0xdf   : > { %1213 = vst.msk [vmem:[#allocation2 + $0x18] sm:$0xff] %vm332_vm3, %v1180_v43  ;;  %v1204_v47 = vsel %vm1140_vm7, %v1086_v33, %v1172_v40  ;;  %vm1143_vm9 = vcmp.ge.f32.partialorder %v1097_v41, 0.0  ;;  %v1175_v48 = vmul.f32 0.2, %v1097_v41  ;;  %v1089_v49 = vadd.f32 %v10769_v23, %v1088_v46  ;;  %v9218_v50 = vpop.f32.mrf.mxu0  ;;  %v9242_v54 = vpop.f32.mrf.mxu1 }
  0xe0   : > { %1237 = vst.msk [vmem:[#allocation2 + $0x198] sm:$0xff] %vm332_vm3, %v1204_v47  ;;  %v1183_v51 = vsel %vm1119_vm8, %v1001_v37, %v1151_v44  ;;  %vm1117_vm10 = vcmp.ge.f32.partialorder %v993_v45, 0.0  ;;  %v1149_v52 = vmul.f32 0.2, %v993_v45  ;;  %v1014_v53 = vadd.f32 %v9218_v50, %v10769_v23 }
  0xe1   : > { %1216 = vst.msk [vmem:[#allocation2 + $0x48] sm:$0xff] %vm332_vm3, %v1183_v51  ;;  %v1207_v55 = vsel %vm1143_vm9, %v1097_v41, %v1175_v48  ;;  %vm1141_vm11 = vcmp.ge.f32.partialorder %v1089_v49, 0.0  ;;  %v1173_v56 = vmul.f32 0.2, %v1089_v49  ;;  %v1110_v57 = vadd.f32 %v9242_v54, %v10769_v23  ;;  %v1005_v58 = vpop.f32.mrf.mxu0  ;;  %v1101_v62 = vpop.f32.mrf.mxu1 }
  0xe2   : > { %1240 = vst.msk [vmem:[#allocation2 + $0x1c8] sm:$0xff] %vm332_vm3, %v1207_v55  ;;  %v1181_v59 = vsel %vm1117_vm10, %v993_v45, %v1149_v52  ;;  %vm1122_vm12 = vcmp.ge.f32.partialorder %v1014_v53, 0.0  ;;  %v1154_v60 = vmul.f32 0.2, %v1014_v53  ;;  %v1006_v61 = vadd.f32 %v10769_v23, %v1005_v58 }
  0xe3   : > { %1214 = vst.msk [vmem:[#allocation2 + $0x28] sm:$0xff] %vm332_vm3, %v1181_v59  ;;  %v1205_v63 = vsel %vm1141_vm11, %v1089_v49, %v1173_v56  ;;  %vm1146_vm13 = vcmp.ge.f32.partialorder %v1110_v57, 0.0  ;;  %v1178_v0 = vmul.f32 0.2, %v1110_v57  ;;  %v1102_v1 = vadd.f32 %v10769_v23, %v1101_v62  ;;  %v9219_v2 = vpop.f32.mrf.mxu0  ;;  %v9243_v6 = vpop.f32.mrf.mxu1 }
  0xe4   : > { %1238 = vst.msk [vmem:[#allocation2 + $0x1a8] sm:$0xff] %vm332_vm3, %v1205_v63  ;;  %v1186_v3 = vsel %vm1122_vm12, %v1014_v53, %v1154_v60  ;;  %vm1120_vm14 = vcmp.ge.f32.partialorder %v1006_v61, 0.0  ;;  %v1152_v4 = vmul.f32 0.2, %v1006_v61  ;;  %v1017_v5 = vadd.f32 %v9219_v2, %v10769_v23 }
  0xe5   : > { %1219 = vst.msk [vmem:[#allocation2 + $0x78] sm:$0xff] %vm332_vm3, %v1186_v3  ;;  %v1210_v7 = vsel %vm1146_vm13, %v1110_v57, %v1178_v0  ;;  %vm1144_vm15 = vcmp.ge.f32.partialorder %v1102_v1, 0.0  ;;  %v1176_v8 = vmul.f32 0.2, %v1102_v1  ;;  %v1113_v9 = vadd.f32 %v9243_v6, %v10769_v23  ;;  %v1008_v10 = vpop.f32.mrf.mxu0  ;;  %v1104_v14 = vpop.f32.mrf.mxu1 }
  0xe6   : > { %1243 = vst.msk [vmem:[#allocation2 + $0x1f8] sm:$0xff] %vm332_vm3, %v1210_v7  ;;  %v1184_v11 = vsel %vm1120_vm14, %v1006_v61, %v1152_v4  ;;  %vm1123_vm0 = vcmp.ge.f32.partialorder %v1017_v5, 0.0  ;;  %v1155_v12 = vmul.f32 0.2, %v1017_v5  ;;  %v1009_v13 = vadd.f32 %v10769_v23, %v1008_v10 }
  0xe7   : > { %1217 = vst.msk [vmem:[#allocation2 + $0x58] sm:$0xff] %vm332_vm3, %v1184_v11  ;;  %v1208_v17 = vsel %vm1144_vm15, %v1102_v1, %v1176_v8  ;;  %vm1147_vm1 = vcmp.ge.f32.partialorder %v1113_v9, 0.0  ;;  %v1179_v18 = vmul.f32 0.2, %v1113_v9  ;;  %v1105_v19 = vadd.f32 %v10769_v23, %v1104_v14  ;;  %v9222_v20 = vpop.f32.mrf.mxu0  ;;  %v9248_v26 = vpop.f32.mrf.mxu1 }
  0xe8   : > { %1241 = vst.msk [vmem:[#allocation2 + $0x1d8] sm:$0xff] %vm332_vm3, %v1208_v17  ;;  %v1187_v22 = vsel %vm1123_vm0, %v1017_v5, %v1155_v12  ;;  %vm1121_vm2 = vcmp.ge.f32.partialorder %v1009_v13, 0.0  ;;  %v1153_v24 = vmul.f32 0.2, %v1009_v13  ;;  %v1030_v25 = vadd.f32 %v9222_v20, %v10769_v23 }
  0xe9   : > { %1220 = vst.msk [vmem:[#allocation2 + $0x88] sm:$0xff] %vm332_vm3, %v1187_v22  ;;  %v1211_v27 = vsel %vm1147_vm1, %v1113_v9, %v1179_v18  ;;  %vm1145_vm4 = vcmp.ge.f32.partialorder %v1105_v19, 0.0  ;;  %v1177_v28 = vmul.f32 0.2, %v1105_v19  ;;  %v1433_v29 = vadd.f32 %v9248_v26, %v10769_v23  ;;  %v1021_v30 = vpop.f32.mrf.mxu0  ;;  %v1424_v34 = vpop.f32.mrf.mxu1 }
  0xea   : > { %1244 = vst.msk [vmem:[#allocation2 + $0x208] sm:$0xff] %vm332_vm3, %v1211_v27  ;;  %v1185_v31 = vsel %vm1121_vm2, %v1009_v13, %v1153_v24  ;;  %vm1126_vm5 = vcmp.ge.f32.partialorder %v1030_v25, 0.0  ;;  %v1158_v32 = vmul.f32 0.2, %v1030_v25  ;;  %v1022_v33 = vadd.f32 %v10769_v23, %v1021_v30 }
  0xeb   : > { %1218 = vst.msk [vmem:[#allocation2 + $0x68] sm:$0xff] %vm332_vm3, %v1185_v31  ;;  %v1209_v35 = vsel %vm1145_vm4, %v1105_v19, %v1177_v28  ;;  %vm1553_vm6 = vcmp.ge.f32.partialorder %v1433_v29, 0.0  ;;  %v1585_v36 = vmul.f32 0.2, %v1433_v29  ;;  %v1425_v37 = vadd.f32 %v10769_v23, %v1424_v34  ;;  %v9223_v38 = vpop.f32.mrf.mxu0  ;;  %v9249_v42 = vpop.f32.mrf.mxu1 }
  0xec   : > { %1242 = vst.msk [vmem:[#allocation2 + $0x1e8] sm:$0xff] %vm332_vm3, %v1209_v35  ;;  %v1190_v39 = vsel %vm1126_vm5, %v1030_v25, %v1158_v32  ;;  %vm1124_vm7 = vcmp.ge.f32.partialorder %v1022_v33, 0.0  ;;  %v1156_v40 = vmul.f32 0.2, %v1022_v33  ;;  %v1033_v41 = vadd.f32 %v9223_v38, %v10769_v23 }
  0xed   : > { %1223 = vst.msk [vmem:[#allocation2 + $0xb8] sm:$0xff] %vm332_vm3, %v1190_v39  ;;  %v1617_v43 = vsel %vm1553_vm6, %v1433_v29, %v1585_v36  ;;  %vm1551_vm8 = vcmp.ge.f32.partialorder %v1425_v37, 0.0  ;;  %v1583_v44 = vmul.f32 0.2, %v1425_v37  ;;  %v1436_v45 = vadd.f32 %v9249_v42, %v10769_v23  ;;  %v1024_v46 = vpop.f32.mrf.mxu0  ;;  %v1427_v50 = vpop.f32.mrf.mxu1 }
  0xee   : > { %1650 = vst.msk [vmem:[#allocation2 + $0x258] sm:$0xff] %vm332_vm3, %v1617_v43  ;;  %v1188_v47 = vsel %vm1124_vm7, %v1022_v33, %v1156_v40  ;;  %vm1127_vm9 = vcmp.ge.f32.partialorder %v1033_v41, 0.0  ;;  %v1159_v48 = vmul.f32 0.2, %v1033_v41  ;;  %v1025_v49 = vadd.f32 %v10769_v23, %v1024_v46 }
  0xef   : > { %1221 = vst.msk [vmem:[#allocation2 + $0x98] sm:$0xff] %vm332_vm3, %v1188_v47  ;;  %v1615_v51 = vsel %vm1551_vm8, %v1425_v37, %v1583_v44  ;;  %vm1554_vm10 = vcmp.ge.f32.partialorder %v1436_v45, 0.0  ;;  %v1586_v52 = vmul.f32 0.2, %v1436_v45  ;;  %v1428_v53 = vadd.f32 %v10769_v23, %v1427_v50  ;;  %v9226_v54 = vpop.f32.mrf.mxu0  ;;  %v9252_v58 = vpop.f32.mrf.mxu1 }
  0xf0   : > { %1648 = vst.msk [vmem:[#allocation2 + $0x238] sm:$0xff] %vm332_vm3, %v1615_v51  ;;  %v1191_v55 = vsel %vm1127_vm9, %v1033_v41, %v1159_v48  ;;  %vm1125_vm11 = vcmp.ge.f32.partialorder %v1025_v49, 0.0  ;;  %v1157_v56 = vmul.f32 0.2, %v1025_v49  ;;  %v1046_v57 = vadd.f32 %v9226_v54, %v10769_v23 }
  0xf1   : > { %1224 = vst.msk [vmem:[#allocation2 + $0xc8] sm:$0xff] %vm332_vm3, %v1191_v55  ;;  %v1618_v59 = vsel %vm1554_vm10, %v1436_v45, %v1586_v52  ;;  %vm1552_vm12 = vcmp.ge.f32.partialorder %v1428_v53, 0.0  ;;  %v1584_v60 = vmul.f32 0.2, %v1428_v53  ;;  %v1449_v61 = vadd.f32 %v9252_v58, %v10769_v23  ;;  %v1037_v62 = vpop.f32.mrf.mxu0  ;;  %v1440_v2 = vpop.f32.mrf.mxu1 }
  0xf2   : > { %1651 = vst.msk [vmem:[#allocation2 + $0x268] sm:$0xff] %vm332_vm3, %v1618_v59  ;;  %v1189_v63 = vsel %vm1125_vm11, %v1025_v49, %v1157_v56  ;;  %vm1130_vm13 = vcmp.ge.f32.partialorder %v1046_v57, 0.0  ;;  %v1162_v0 = vmul.f32 0.2, %v1046_v57  ;;  %v1038_v1 = vadd.f32 %v10769_v23, %v1037_v62 }
  0xf3   : > { %1222 = vst.msk [vmem:[#allocation2 + $0xa8] sm:$0xff] %vm332_vm3, %v1189_v63  ;;  %v1616_v3 = vsel %vm1552_vm12, %v1428_v53, %v1584_v60  ;;  %vm1557_vm14 = vcmp.ge.f32.partialorder %v1449_v61, 0.0  ;;  %v1589_v4 = vmul.f32 0.2, %v1449_v61  ;;  %v1441_v5 = vadd.f32 %v10769_v23, %v1440_v2  ;;  %v9227_v6 = vpop.f32.mrf.mxu0  ;;  %v9253_v10 = vpop.f32.mrf.mxu1 }
  0xf4   : > { %1649 = vst.msk [vmem:[#allocation2 + $0x248] sm:$0xff] %vm332_vm3, %v1616_v3  ;;  %v1194_v7 = vsel %vm1130_vm13, %v1046_v57, %v1162_v0  ;;  %vm1128_vm15 = vcmp.ge.f32.partialorder %v1038_v1, 0.0  ;;  %v1160_v8 = vmul.f32 0.2, %v1038_v1  ;;  %v1049_v9 = vadd.f32 %v9227_v6, %v10769_v23 }
  0xf5   : > { %1227 = vst.msk [vmem:[#allocation2 + $0xf8] sm:$0xff] %vm332_vm3, %v1194_v7  ;;  %v1621_v11 = vsel %vm1557_vm14, %v1449_v61, %v1589_v4  ;;  %vm1555_vm0 = vcmp.ge.f32.partialorder %v1441_v5, 0.0  ;;  %v1587_v12 = vmul.f32 0.2, %v1441_v5  ;;  %v1452_v13 = vadd.f32 %v9253_v10, %v10769_v23  ;;  %v1040_v14 = vpop.f32.mrf.mxu0  ;;  %v1443_v19 = vpop.f32.mrf.mxu1  ;;  %v2550_v10 = vld [vmem:[#allocation2 + $0x8] sm:$0xff] }
  0xf6   : > { %1654 = vst.msk [vmem:[#allocation2 + $0x298] sm:$0xff] %vm332_vm3, %v1621_v11  ;;  %v1192_v15 = vsel %vm1128_vm15, %v1038_v1, %v1160_v8  ;;  %vm1131_vm1 = vcmp.ge.f32.partialorder %v1049_v9, 0.0  ;;  %v1163_v17 = vmul.f32 0.2, %v1049_v9  ;;  %v1041_v18 = vadd.f32 %v10769_v23, %v1040_v14  ;;  %v2552_v11 = vld [vmem:[#allocation2 + $0x28] sm:$0xff] }
  0xf7   : > { %1225 = vst.msk [vmem:[#allocation2 + $0xd8] sm:$0xff] %vm332_vm3, %v1192_v15  ;;  %v1619_v20 = vsel %vm1555_vm0, %v1441_v5, %v1587_v12  ;;  %vm1558_vm2 = vcmp.ge.f32.partialorder %v1452_v13, 0.0  ;;  %v1590_v22 = vmul.f32 0.2, %v1452_v13  ;;  %v1444_v24 = vadd.f32 %v10769_v23, %v1443_v19  ;;  %v9230_v25 = vpop.f32.mrf.mxu0  ;;  %v9256_v29 = vpop.f32.mrf.mxu1 }
  0xf8   : > { %1652 = vst.msk [vmem:[#allocation2 + $0x278] sm:$0xff] %vm332_vm3, %v1619_v20  ;;  %v1195_v26 = vsel %vm1131_vm1, %v1049_v9, %v1163_v17  ;;  %vm1129_vm4 = vcmp.ge.f32.partialorder %v1041_v18, 0.0  ;;  %v1161_v27 = vmul.f32 0.2, %v1041_v18  ;;  %v1062_v28 = vadd.f32 %v9230_v25, %v10769_v23  ;;  %v2554_v17 = vld [vmem:[#allocation2 + $0x48] sm:$0xff] }
  0xf9   : > { %1228 = vst.msk [vmem:[#allocation2 + $0x108] sm:$0xff] %vm332_vm3, %v1195_v26  ;;  %v1622_v30 = vsel %vm1558_vm2, %v1452_v13, %v1590_v22  ;;  %vm1556_vm5 = vcmp.ge.f32.partialorder %v1444_v24, 0.0  ;;  %v1588_v31 = vmul.f32 0.2, %v1444_v24  ;;  %v1465_v32 = vadd.f32 %v9256_v29, %v10769_v23  ;;  %v1053_v33 = vpop.f32.mrf.mxu0  ;;  %v1456_v37 = vpop.f32.mrf.mxu1  ;;  %v10863_v25 = vld [vmem:[#allocation2 + $0x88] sm:$0xff] }
  0xfa   : > { %1655 = vst.msk [vmem:[#allocation2 + $0x2a8] sm:$0xff] %vm332_vm3, %v1622_v30  ;;  %v1193_v34 = vsel %vm1129_vm4, %v1041_v18, %v1161_v27  ;;  %vm1134_vm6 = vcmp.ge.f32.partialorder %v1062_v28, 0.0  ;;  %v1166_v35 = vmul.f32 0.2, %v1062_v28  ;;  %v1054_v36 = vadd.f32 %v10769_v23, %v1053_v33  ;;  %13966 = vst [vmem:[#allocation6_spill] sm:$0xff] %v10863_v25  ;;  %v2560_v26 = vld [vmem:[#allocation2 + $0xa8] sm:$0xff] }
  0xfb   : > { %1226 = vst.msk [vmem:[#allocation2 + $0xe8] sm:$0xff] %vm332_vm3, %v1193_v34  ;;  %v1620_v38 = vsel %vm1556_vm5, %v1444_v24, %v1588_v31  ;;  %vm1561_vm7 = vcmp.ge.f32.partialorder %v1465_v32, 0.0  ;;  %v1593_v39 = vmul.f32 0.2, %v1465_v32  ;;  %v1457_v40 = vadd.f32 %v10769_v23, %v1456_v37  ;;  %v9231_v41 = vpop.f32.mrf.mxu0  ;;  %v9257_v45 = vpop.f32.mrf.mxu1  ;;  %v10861_v24 = vld [vmem:[#allocation2 + $0x68] sm:$0xff] }
  0xfc   : > { %1653 = vst.msk [vmem:[#allocation2 + $0x288] sm:$0xff] %vm332_vm3, %v1620_v38  ;;  %v1198_v42 = vsel %vm1134_vm6, %v1062_v28, %v1166_v35  ;;  %vm1132_vm8 = vcmp.ge.f32.partialorder %v1054_v36, 0.0  ;;  %v1164_v43 = vmul.f32 0.2, %v1054_v36  ;;  %v1065_v44 = vadd.f32 %v9231_v41, %v10769_v23  ;;  %13965 = vst [vmem:[#allocation5_spill] sm:$0xff] %v10861_v24 }
  0xfd   : > { %1231 = vst.msk [vmem:[#allocation2 + $0x138] sm:$0xff] %vm332_vm3, %v1198_v42  ;;  %v1625_v46 = vsel %vm1561_vm7, %v1465_v32, %v1593_v39  ;;  %vm1559_vm9 = vcmp.ge.f32.partialorder %v1457_v40, 0.0  ;;  %v1591_v47 = vmul.f32 0.2, %v1457_v40  ;;  %v1468_v48 = vadd.f32 %v9257_v45, %v10769_v23  ;;  %v1056_v49 = vpop.f32.mrf.mxu0  ;;  %v1459_v53 = vpop.f32.mrf.mxu1  ;;  %v9865_v39 = vld [vmem:[%s13907_s3 + $0x50] sm:$0xff]  }
  0xfe   : > { %1658 = vst.msk [vmem:[#allocation2 + $0x2d8] sm:$0xff] %vm332_vm3, %v1625_v46  ;;  %v1196_v50 = vsel %vm1132_vm8, %v1054_v36, %v1164_v43  ;;  %vm1135_vm10 = vcmp.ge.f32.partialorder %v1065_v44, 0.0  ;;  %v1167_v51 = vmul.f32 0.2, %v1065_v44  ;;  %v1057_v52 = vadd.f32 %v10769_v23, %v1056_v49  ;;  %v2562_v46 = vld [vmem:[#allocation2 + $0xc8] sm:$0xff] }
  0xff   : > { %1229 = vst.msk [vmem:[#allocation2 + $0x118] sm:$0xff] %vm332_vm3, %v1196_v50  ;;  %v1623_v54 = vsel %vm1559_vm9, %v1457_v40, %v1591_v47  ;;  %vm1562_vm11 = vcmp.ge.f32.partialorder %v1468_v48, 0.0  ;;  %v1594_v55 = vmul.f32 0.2, %v1468_v48  ;;  %v1460_v56 = vadd.f32 %v10769_v23, %v1459_v53  ;;  %v9234_v57 = vpop.f32.mrf.mxu0  ;;  %v9260_v61 = vpop.f32.mrf.mxu1 }
 0x100   : > { %1656 = vst.msk [vmem:[#allocation2 + $0x2b8] sm:$0xff] %vm332_vm3, %v1623_v54  ;;  %v1199_v58 = vsel %vm1135_vm10, %v1065_v44, %v1167_v51  ;;  %vm1133_vm12 = vcmp.ge.f32.partialorder %v1057_v52, 0.0  ;;  %v1165_v59 = vmul.f32 0.2, %v1057_v52  ;;  %v1078_v60 = vadd.f32 %v9234_v57, %v10769_v23  ;;  %v10886_v51 = vld [vmem:[#allocation2 + $0x108] sm:$0xff] }
 0x101   : > { %1232 = vst.msk [vmem:[#allocation2 + $0x148] sm:$0xff] %vm332_vm3, %v1199_v58  ;;  %v1626_v62 = vsel %vm1562_vm11, %v1468_v48, %v1594_v55  ;;  %vm1560_vm13 = vcmp.ge.f32.partialorder %v1460_v56, 0.0  ;;  %v1592_v63 = vmul.f32 0.2, %v1460_v56  ;;  %v1481_v0 = vadd.f32 %v9260_v61, %v10769_v23  ;;  %v1069_v1 = vpop.f32.mrf.mxu0  ;;  %v1472_v5 = vpop.f32.mrf.mxu1  ;;  %13968 = vst [vmem:[#allocation8_spill] sm:$0xff] %v10886_v51  ;;  %v9866_v57 = vld [vmem:[%s13907_s3 + $0x48] sm:$0xff]  }
 0x102   : > { %1659 = vst.msk [vmem:[#allocation2 + $0x2e8] sm:$0xff] %vm332_vm3, %v1626_v62  ;;  %v1197_v2 = vsel %vm1133_vm12, %v1057_v52, %v1165_v59  ;;  %vm1138_vm14 = vcmp.ge.f32.partialorder %v1078_v60, 0.0  ;;  %v1170_v3 = vmul.f32 0.2, %v1078_v60  ;;  %v1070_v4 = vadd.f32 %v10769_v23, %v1069_v1  ;;  %v10884_v50 = vld [vmem:[#allocation2 + $0xe8] sm:$0xff] }
 0x103   : > { %1230 = vst.msk [vmem:[#allocation2 + $0x128] sm:$0xff] %vm332_vm3, %v1197_v2  ;;  %v1624_v6 = vsel %vm1560_vm13, %v1460_v56, %v1592_v63  ;;  %vm1565_vm15 = vcmp.ge.f32.partialorder %v1481_v0, 0.0  ;;  %v1597_v7 = vmul.f32 0.2, %v1481_v0  ;;  %v1473_v8 = vadd.f32 %v10769_v23, %v1472_v5  ;;  %v9235_v9 = vpop.f32.mrf.mxu0  ;;  %v9261_v15 = vpop.f32.mrf.mxu1  ;;  %13967 = vst [vmem:[#allocation7_spill] sm:$0xff] %v10884_v50 }
 0x104   : > { %1657 = vst.msk [vmem:[#allocation2 + $0x2c8] sm:$0xff] %vm332_vm3, %v1624_v6  ;;  %v1202_v12 = vsel %vm1138_vm14, %v1078_v60, %v1170_v3  ;;  %vm1136_vm0 = vcmp.ge.f32.partialorder %v1070_v4, 0.0  ;;  %v1168_v13 = vmul.f32 0.2, %v1070_v4  ;;  %v1081_v14 = vadd.f32 %v9235_v9, %v10769_v23  ;;  %v10901_v60 = vld [vmem:[#allocation2 + $0x288] sm:$0xff] }
 0x105   : > { %1235 = vst.msk [vmem:[#allocation2 + $0x178] sm:$0xff] %vm332_vm3, %v1202_v12  ;;  %v1629_v18 = vsel %vm1565_vm15, %v1481_v0, %v1597_v7  ;;  %vm1563_vm1 = vcmp.ge.f32.partialorder %v1473_v8, 0.0  ;;  %v1595_v19 = vmul.f32 0.2, %v1473_v8  ;;  %v1484_v20 = vadd.f32 %v9261_v15, %v10769_v23  ;;  %v1072_v22 = vpop.f32.mrf.mxu0  ;;  %v1475_v30 = vpop.f32.mrf.mxu1  ;;  %v9868_v7 = vld [vmem:[%s13907_s3 + $0x40] sm:$0xff]  }
 0x106   : > { %1662 = vst.msk [vmem:[#allocation2 + $0x318] sm:$0xff] %vm332_vm3, %v1629_v18  ;;  %v1200_v27 = vsel %vm1136_vm0, %v1070_v4, %v1168_v13  ;;  %vm1139_vm2 = vcmp.ge.f32.partialorder %v1081_v14, 0.0  ;;  %v1171_v28 = vmul.f32 0.2, %v1081_v14  ;;  %v2831_v29 = vpack.c.bf16 %v2552_v11, %v2550_v10  ;;  %v10909_v4 = vld [vmem:[#allocation2 + $0x2a8] sm:$0xff] }
 0x107   : > { %1233 = vst.msk [vmem:[#allocation2 + $0x158] sm:$0xff] %vm332_vm3, %v1200_v27  ;;  %v1627_v31 = vsel %vm1563_vm1, %v1473_v8, %v1595_v19  ;;  %vm1566_vm4 = vcmp.ge.f32.partialorder %v1484_v20, 0.0  ;;  %v1598_v32 = vmul.f32 0.2, %v1484_v20  ;;  %v1073_v33 = vadd.f32 %v10769_v23, %v1072_v22  ;;  %v9264_v37 = vpop.f32.mrf.mxu1  ;;  %v10889_v53 = vpop.f32.mrf.mxu0 }
 0x108   : > { %1660 = vst.msk [vmem:[#allocation2 + $0x2f8] sm:$0xff] %vm332_vm3, %v1627_v31  ;;  %v1203_v34 = vsel %vm1139_vm2, %v1081_v14, %v1171_v28  ;;  %9354 = vmatprep.mubr.msk.bf16.mxu0 %vm332_vm3, %v2831_v29  ;;  %v1476_v35 = vadd.f32 %v10769_v23, %v1475_v30  ;;  %v2832_v36 = vpack.c.bf16 %v10861_v24, %v2554_v17  ;;  %v2570_v18 = vld [vmem:[#allocation2 + $0x148] sm:$0xff]  ;;  %v10940_v28 = vld [vmem:[%s13907_s3 + $0x98] sm:$0xff]  }
 0x109   : > { %v2833_v38 = vpack.c.bf16 %v2560_v26, %v10863_v25  ;;  %1236 = vst.msk [vmem:[#allocation2 + $0x188] sm:$0xff] %vm332_vm3, %v1203_v34  ;;  %v1630_v40 = vsel %vm1566_vm4, %v1484_v20, %v1598_v32  ;;  %vm1137_vm5 = vcmp.ge.f32.partialorder %v1073_v33, 0.0  ;;  %v1169_v41 = vmul.f32 0.2, %v1073_v33  ;;  %v1488_v44 = vpop.f32.mrf.mxu1  ;;  %v10903_v61 = vpop.f32.mrf.mxu0 }
 0x10a   : > { %v1497_v42 = vadd.f32 %v9264_v37, %v10769_v23  ;;  %1663 = vst.msk [vmem:[#allocation2 + $0x328] sm:$0xff] %vm332_vm3, %v1630_v40  ;;  %vm1564_vm6 = vcmp.ge.f32.partialorder %v1476_v35, 0.0  ;;  %v1596_v43 = vmul.f32 0.2, %v1476_v35  ;;  %9355 = vmatmul.mubr.msk.bf16.vlgmr.msra.gmra.mxu0 %vm332_vm3, %v2832_v36  ;;  %v1489_v49 = vadd.f32 %v10769_v23, %v1488_v44  ;;  %v2568_v52 = vld [vmem:[#allocation2 + $0x128] sm:$0xff] }
 0x10b   : > { %v1201_v47 = vsel %vm1137_vm5, %v1073_v33, %v1169_v41  ;;  %9358 = vmatprep.mubr.msk.bf16.mxu0 %vm332_vm3, %v2833_v38  ;;  %9395 = vmatpush3.bf16.msra.mxu0 %v10748_v16  ;;  %v9265_v55 = vpop.f32.mrf.mxu1  ;;  %v2834_v63 = vpack.c.bf16 %v10884_v50, %v2562_v46  ;;  %v2835_v0 = vpack.c.bf16 %v2568_v52, %v10886_v51  ;;  %v10911_v5 = vpop.f32.mrf.mxu0  ;;  %v2576_v40 = vld [vmem:[#allocation2 + $0x1a8] sm:$0xff]  ;;  %v11237_v50 = vld [vmem:[#allocation2 + $0x1f8] sm:$0xff]  ;;  %v11261_v51 = vld [vmem:[#allocation2 + $0x7c0] sm:$0xff] }
 0x10c   : > { %vm1569_vm7 = vcmp.ge.f32.partialorder %v1497_v42, 0.0  ;;  %v1601_v48 = vmul.f32 0.2, %v1497_v42  ;;  %1234 = vst.msk [vmem:[#allocation2 + $0x168] sm:$0xff] %vm332_vm3, %v1201_v47  ;;  %v1628_v54 = vsel %vm1564_vm6, %v1476_v35, %v1596_v43  ;;  %9396 = vmatprep.subr.bf16.mxu0 %v9865_v39  ;;  %vm1567_vm8 = vcmp.ge.f32.partialorder %v1489_v49, 0.0 }
 0x10d   : > { %1661 = vst.msk [vmem:[#allocation2 + $0x308] sm:$0xff] %vm332_vm3, %v1628_v54  ;;  %v1599_v16 = vmul.f32 0.2, %v1489_v49  ;;  %v1500_v59 = vadd.f32 %v9265_v55, %v10769_v23  ;;  %v1491_v62 = vpop.f32.mrf.mxu1  ;;  %v10919_v8 = vpack.c.bf16 %v10909_v4, %v10901_v60  ;;  %v10922_v12 = vpop.f32.mrf.mxu0  ;;  %v2580_v55 = vld [vmem:[#allocation2 + $0x1e8] sm:$0xff] }
 0x10e   : > { %v1633_v58 = vsel %vm1569_vm7, %v1497_v42, %v1601_v48  ;;  %v1492_v3 = vadd.f32 %v10769_v23, %v1491_v62 }
 0x10f   : > { %1666 = vst.msk [vmem:[#allocation2 + $0x358] sm:$0xff] %vm332_vm3, %v1633_v58  ;;  %v1631_v1 = vsel %vm1567_vm8, %v1489_v49, %v1599_v16  ;;  %vm1570_vm9 = vcmp.ge.f32.partialorder %v1500_v59, 0.0  ;;  %v1602_v2 = vmul.f32 0.2, %v1500_v59  ;;  %9397 = vmatpush3.bf16.msra.mxu0 %v9865_v39  ;;  %v9268_v6 = vpop.f32.mrf.mxu1  ;;  %13969 = vst [vmem:[#allocation9_spill] sm:$0xff] %v10919_v8  ;;  %v10942_v29 = vpop.f32.mrf.mxu0  ;;  %v2584_v16 = vld [vmem:[#allocation2 + $0x228] sm:$0xff] }
 0x110   : > { %1664 = vst.msk [vmem:[#allocation2 + $0x338] sm:$0xff] %vm332_vm3, %v1631_v1  ;;  %9398 = vmatprep.subr.bf16.mxu0 %v9866_v57  ;;  %vm1568_vm10 = vcmp.ge.f32.partialorder %v1492_v3, 0.0  ;;  %v1600_v10 = vmul.f32 0.2, %v1492_v3  ;;  %v1513_v11 = vadd.f32 %v9268_v6, %v10769_v23  ;;  %v10930_v20 = vld [vmem:[#allocation2 + $0x188] sm:$0xff] }
 0x111   : > { %v1634_v9 = vsel %vm1570_vm9, %v1500_v59, %v1602_v2  ;;  %v1504_v13 = vpop.f32.mrf.mxu1  ;;  %13971 = vst [vmem:[#allocation11_spill] sm:$0xff] %v10930_v20  ;;  %v10945_v33 = vld [vmem:[#allocation2 + $0x328] sm:$0xff]  ;;  %v2837_v41 = vpack.c.bf16 %v2576_v40, %v10930_v20  ;;  %v10957_v43 = vpop.f32.mrf.mxu0 }
 0x112   : > { %1667 = vst.msk [vmem:[#allocation2 + $0x368] sm:$0xff] %vm332_vm3, %v1634_v9  ;;  %9359 = vmatmul.mubr.msk.bf16.gmra.mxu0 %vm332_vm3, %v2834_v63  ;;  %v1632_v14 = vsel %vm1568_vm10, %v1492_v3, %v1600_v10  ;;  %vm1573_vm11 = vcmp.ge.f32.partialorder %v1513_v11, 0.0  ;;  %v1605_v15 = vmul.f32 0.2, %v1513_v11  ;;  %v1505_v17 = vadd.f32 %v10769_v23, %v1504_v13  ;;  %v2578_v1 = vld [vmem:[#allocation2 + $0x1c8] sm:$0xff] }
 0x113   : > { %9362 = vmatprep.mubr.msk.bf16.mxu0 %vm332_vm3, %v2835_v0  ;;  %v10928_v19 = vld [vmem:[#allocation2 + $0x168] sm:$0xff]  ;;  %9399 = vmatpush3.bf16.msra.mxu0 %v9866_v57  ;;  %1665 = vst.msk [vmem:[#allocation2 + $0x348] sm:$0xff] %vm332_vm3, %v1632_v14  ;;  %v9269_v22 = vpop.f32.mrf.mxu1  ;;  %v10965_v59 = vpop.f32.mrf.mxu0  ;;  %v10975_v14 = vld [vmem:[%s13906_s2] ss:$0 sm:$0xff] }
 0x114   : > { %13970 = vst [vmem:[#allocation10_spill] sm:$0xff] %v10928_v19  ;;  %9400 = vmatprep.subr.bf16.mxu0 %v9868_v7  ;;  %v10935_v27 = vld [vmem:[#allocation2 + $0x308] sm:$0xff]  ;;  %v1637_v30 = vsel %vm1573_vm11, %v1513_v11, %v1605_v15  ;;  %vm1571_vm12 = vcmp.ge.f32.partialorder %v1505_v17, 0.0  ;;  %v1603_v31 = vmul.f32 0.2, %v1505_v17  ;;  %v1516_v32 = vadd.f32 %v9269_v22, %v10769_v23 }
 0x115   : > { %1670 = vst.msk [vmem:[#allocation2 + $0x398] sm:$0xff] %vm332_vm3, %v1637_v30  ;;  %v1507_v34 = vpop.f32.mrf.mxu1  ;;  %v2836_v35 = vpack.c.bf16 %v10928_v19, %v2570_v18  ;;  %v10951_v36 = vpack.c.bf16 %v10945_v33, %v10935_v27  ;;  %v2586_v57 = vld [vmem:[#allocation2 + $0x248] sm:$0xff]  ;;  %v1868_v22 = vadd.f32 %v10889_v53, %v10975_v14  ;;  %v11231_v19 = vld [vmem:[#allocation2 + $0x760] sm:$0xff] }
 0x116   : > { %v1635_v37 = vsel %vm1571_vm12, %v1505_v17, %v1603_v31  ;;  %vm1574_vm13 = vcmp.ge.f32.partialorder %v1516_v32, 0.0  ;;  %v1606_v38 = vmul.f32 0.2, %v1516_v32  ;;  %v1508_v39 = vadd.f32 %v10769_v23, %v1507_v34  ;;  %v2588_v2 = vld [vmem:[#allocation2 + $0x268] sm:$0xff] }
 0x117   : > { %13972 = vst [vmem:[#allocation12_spill] sm:$0xff] %v10951_v36  ;;  %9401 = vmatpush3.bf16.msra.mxu0 %v9868_v7  ;;  %1668 = vst.msk [vmem:[#allocation2 + $0x378] sm:$0xff] %vm332_vm3, %v1635_v37  ;;  %v9272_v42 = vpop.f32.mrf.mxu1  ;;  %v2594_v3 = vld [vmem:[#allocation2 + $0x2c8] sm:$0xff]  ;;  %v2838_v7 = vpack.c.bf16 %v2580_v55, %v2578_v1  ;;  %v10969_v9 = vpack.c.bf16 %v2588_v2, %v2586_v57  ;;  %v10980_v17 = vpack.c.bf16 %v2586_v57, %v2584_v16 }
 0x118   : > { %9442 = vmatprep.subr.bf16.mxu0 %v10940_v28  ;;  %v1638_v44 = vsel %vm1574_vm13, %v1516_v32, %v1606_v38  ;;  %vm1572_vm14 = vcmp.ge.f32.partialorder %v1508_v39, 0.0  ;;  %v1604_v46 = vmul.f32 0.2, %v1508_v39  ;;  %v1529_v47 = vadd.f32 %v9272_v42, %v10769_v23  ;;  %v10977_v15 = vld [vmem:[#allocation2 + $0x2e8] sm:$0xff]  ;;  %v10989_v32 = vpop.f32.mrf.mxu0 }
 0x119   : > { %1671 = vst.msk [vmem:[#allocation2 + $0x3a8] sm:$0xff] %vm332_vm3, %v1638_v44  ;;  %v1520_v48 = vpop.f32.mrf.mxu1  ;;  %13973 = vst [vmem:[#allocation13_spill] sm:$0xff] %v10980_v17  ;;  %v10985_v30 = vpack.c.bf16 %v10977_v15, %v2594_v3  ;;  %v1860_v31 = vadd.f32 %v10975_v14, %v10903_v61  ;;  %vm1988_vm4 = vcmp.ge.f32.partialorder %v1868_v22, 0.0  ;;  %v2020_v53 = vmul.f32 0.2, %v1868_v22 }
 0x11a   : > { %9363 = vmatmul.mubr.msk.bf16.gmra.mxu0 %vm332_vm3, %v2836_v35  ;;  %v1636_v49 = vsel %vm1572_vm14, %v1508_v39, %v1604_v46  ;;  %vm1577_vm15 = vcmp.ge.f32.partialorder %v1529_v47, 0.0  ;;  %v1609_v52 = vmul.f32 0.2, %v1529_v47  ;;  %v1521_v54 = vadd.f32 %v10769_v23, %v1520_v48 }
 0x11b   : > { %9366 = vmatprep.mubr.msk.bf16.mxu0 %vm332_vm3, %v2837_v41  ;;  %1669 = vst.msk [vmem:[#allocation2 + $0x388] sm:$0xff] %vm332_vm3, %v1636_v49  ;;  %v9273_v58 = vpop.f32.mrf.mxu1  ;;  %13974 = vst [vmem:[#allocation14_spill] sm:$0xff] %v10985_v30  ;;  %vm1986_vm5 = vcmp.ge.f32.partialorder %v1860_v31, 0.0  ;;  %v2018_v39 = vmul.f32 0.2, %v1860_v31  ;;  %v2052_v48 = vsel %vm1988_vm4, %v1868_v22, %v2020_v53  ;;  %v11013_v16 = vpack.c.bf16 %v10901_v60, %v2588_v2 }
 0x11c   : > { %v1641_v62 = vsel %vm1577_vm15, %v1529_v47, %v1609_v52  ;;  %vm1575_vm0 = vcmp.ge.f32.partialorder %v1521_v54, 0.0  ;;  %v1607_v63 = vmul.f32 0.2, %v1521_v54  ;;  %v1532_v0 = vadd.f32 %v9273_v58, %v10769_v23  ;;  %v11006_v52 = vpop.f32.mrf.mxu0  ;;  %2085 = vst.msk [vmem:[#allocation2 + $0x478] sm:$0xff] %vm332_vm3, %v2052_v48 }
 0x11d   : > { %1674 = vst.msk [vmem:[#allocation2 + $0x3d8] sm:$0xff] %vm332_vm3, %v1641_v62  ;;  %v1523_v6 = vpop.f32.mrf.mxu1  ;;  %v2050_v49 = vsel %vm1986_vm5, %v1860_v31, %v2018_v39  ;;  %13976 = vst [vmem:[#allocation16_spill] sm:$0xff] %v11013_v16  ;;  %v1871_v62 = vadd.f32 %v10911_v5, %v10975_v14  ;;  %v1863_v5 = vadd.f32 %v10975_v14, %v10922_v12  ;;  %vm2750_vm5 = vcmask 1040384  }
 0x11e   : > { %v1639_v10 = vsel %vm1575_vm0, %v1521_v54, %v1607_v63  ;;  %vm1578_vm1 = vcmp.ge.f32.partialorder %v1532_v0, 0.0  ;;  %v1610_v11 = vmul.f32 0.2, %v1532_v0  ;;  %v1524_v13 = vadd.f32 %v10769_v23, %v1523_v6  ;;  %2083 = vst.msk [vmem:[#allocation2 + $0x458] sm:$0xff] %vm332_vm3, %v2050_v49  ;;  %v11027_v2 = vpop.f32.mrf.mxu0 }
 0x11f   : > { %1672 = vst.msk [vmem:[#allocation2 + $0x3b8] sm:$0xff] %vm332_vm3, %v1639_v10  ;;  %v9276_v18 = vpop.f32.mrf.mxu1  ;;  %v11020_v6 = vpack.c.bf16 %v2594_v3, %v10909_v4  ;;  %v9871_v10 = vld [vmem:[%s13907_s3 + $0x90] sm:$0xff]   ;;  %vm1989_vm9 = vcmp.ge.f32.partialorder %v1871_v62, 0.0  ;;  %v2021_v60 = vmul.f32 0.2, %v1871_v62  ;;  %vm1987_vm11 = vcmp.ge.f32.partialorder %v1863_v5, 0.0 }
 0x120   : > { %v1642_v34 = vsel %vm1578_vm1, %v1532_v0, %v1610_v11  ;;  %vm1576_vm2 = vcmp.ge.f32.partialorder %v1524_v13, 0.0  ;;  %v1608_v35 = vmul.f32 0.2, %v1524_v13  ;;  %v1545_v37 = vadd.f32 %v9276_v18, %v10769_v23  ;;  %v10999_v44 = vld [vmem:[#allocation2 + $0x3a8] sm:$0xff]  ;;  %v11044_v39 = vpop.f32.mrf.mxu0 }
 0x121   : > { %1675 = vst.msk [vmem:[#allocation2 + $0x3e8] sm:$0xff] %vm332_vm3, %v1642_v34  ;;  %v1536_v38 = vpop.f32.mrf.mxu1  ;;  %13977 = vst [vmem:[#allocation17_spill] sm:$0xff] %v11020_v6  ;;  %v2053_v3 = vsel %vm1989_vm9, %v1871_v62, %v2021_v60  ;;  %v2019_v18 = vmul.f32 0.2, %v1863_v5  ;;  %v1884_v22 = vadd.f32 %v10942_v29, %v10975_v14  ;;  %v9872_v29 = vld [vmem:[%s13907_s3 + $0x88] sm:$0xff]   ;;  %v11053_v48 = vpack.c.bf16 %v10935_v27, %v10977_v15 }
 0x122   : > { %9367 = vmatmul.mubr.msk.bf16.gmra.mxu0 %vm332_vm3, %v2838_v7  ;;  %v1640_v40 = vsel %vm1576_vm2, %v1524_v13, %v1608_v35  ;;  %vm1581_vm6 = vcmp.ge.f32.partialorder %v1545_v37, 0.0  ;;  %v1613_v61 = vmul.f32 0.2, %v1545_v37  ;;  %v1537_v41 = vadd.f32 %v10769_v23, %v1536_v38  ;;  %v10997_v42 = vld [vmem:[#allocation2 + $0x388] sm:$0xff]  ;;  %2086 = vst.msk [vmem:[#allocation2 + $0x488] sm:$0xff] %vm332_vm3, %v2053_v3 }
 0x123   : > { %9402 = vmatprep.mubr.msk.bf16.mxu0 %vm332_vm3, %v10980_v17  ;;  %1673 = vst.msk [vmem:[#allocation2 + $0x3c8] sm:$0xff] %vm332_vm3, %v1640_v40  ;;  %v9277_v46 = vpop.f32.mrf.mxu1  ;;  %v11004_v47 = vpack.c.bf16 %v10999_v44, %v10997_v42  ;;  %v2602_v35 = vld [vmem:[#allocation2 + $0x348] sm:$0xff]  ;;  %v2051_v38 = vsel %vm1987_vm11, %v1863_v5, %v2019_v18  ;;  %vm1992_vm13 = vcmp.ge.f32.partialorder %v1884_v22, 0.0  ;;  %v2024_v53 = vmul.f32 0.2, %v1884_v22  ;;  %13978 = vst [vmem:[#allocation18_spill] sm:$0xff] %v11053_v48 }
 0x124   : > { %v1645_v54 = vsel %vm1581_vm6, %v1545_v37, %v1613_v61  ;;  %vm1579_vm7 = vcmp.ge.f32.partialorder %v1537_v41, 0.0  ;;  %v1611_v55 = vmul.f32 0.2, %v1537_v41  ;;  %v1548_v57 = vadd.f32 %v9277_v46, %v10769_v23  ;;  %2084 = vst.msk [vmem:[#allocation2 + $0x468] sm:$0xff] %vm332_vm3, %v2051_v38  ;;  %v2653_v5 = vld [vmem:[#allocation2 + $0x668] sm:$0xff] }
 0x125   : > { %13975 = vst [vmem:[#allocation15_spill] sm:$0xff] %v11004_v47  ;;  %1678 = vst.msk [vmem:[#allocation2 + $0x418] sm:$0xff] %vm332_vm3, %v1645_v54  ;;  %v1539_v58 = vpop.f32.mrf.mxu1  ;;  %v2056_v49 = vsel %vm1992_vm13, %v1884_v22, %v2024_v53  ;;  %v11064_v27 = vpack.c.bf16 %v2602_v35, %v10945_v33  ;;  %v11074_v33 = vld [vmem:[#allocation2 + $0x660] sm:$0xff]  ;;  %v11275_v25 = vadd.f32 %v11044_v39, %v10975_v14  ;;  %v9878_v39 = vld [vmem:[%s13907_s3 + $0xc8] sm:$0xff]  }
 0x126   : > { %v1643_v63 = vsel %vm1579_vm7, %v1537_v41, %v1611_v55  ;;  %vm1582_vm8 = vcmp.ge.f32.partialorder %v1548_v57, 0.0  ;;  %v1614_v0 = vmul.f32 0.2, %v1548_v57  ;;  %v1540_v1 = vadd.f32 %v10769_v23, %v1539_v58  ;;  %v11047_v41 = vld [vmem:[#allocation2 + $0x368] sm:$0xff]  ;;  %2089 = vst.msk [vmem:[#allocation2 + $0x4b8] sm:$0xff] %vm332_vm3, %v2056_v49  ;;  %v11082_v22 = vld [vmem:[#allocation2 + $0x680] sm:$0xff] }
 0x127   : > { %1676 = vst.msk [vmem:[#allocation2 + $0x3f8] sm:$0xff] %vm332_vm3, %v1643_v63  ;;  %v9316_v7 = vpop.f32.mrf.mxu1  ;;  %v11056_v54 = vpack.c.bf16 %v11047_v41, %v2602_v35  ;;  %v1876_v55 = vadd.f32 %v10975_v14, %v10957_v43  ;;  %13980 = vst [vmem:[#allocation20_spill] sm:$0xff] %v11064_v27  ;;  %v9874_v63 = vld [vmem:[%s13907_s3 + $0x80] sm:$0xff]   ;;  %v11090_v35 = vld [vmem:[%s13907_s3 + $0xd8] sm:$0xff]   ;;  %v1879_v49 = vadd.f32 %v10975_v14, %v10989_v32 }
 0x128   : > { %v1646_v11 = vsel %vm1582_vm8, %v1548_v57, %v1614_v0  ;;  %vm1580_vm10 = vcmp.ge.f32.partialorder %v1540_v1, 0.0  ;;  %v1612_v23 = vmul.f32 0.2, %v1540_v1  ;;  %v2303_v13 = vadd.f32 %v9316_v7, %v10975_v14  ;;  %v11421_v47 = vld [vmem:[#allocation2 + $0x730] sm:$0xff] }
 0x129   : > { %1679 = vst.msk [vmem:[#allocation2 + $0x428] sm:$0xff] %vm332_vm3, %v1646_v11  ;;  %v2294_v4 = vpop.f32.mrf.mxu1  ;;  %13979 = vst [vmem:[#allocation19_spill] sm:$0xff] %v11056_v54  ;;  %vm1990_vm0 = vcmp.ge.f32.partialorder %v1876_v55, 0.0  ;;  %v2022_v43 = vmul.f32 0.2, %v1876_v55  ;;  %v1887_v0 = vadd.f32 %v10965_v59, %v10975_v14  ;;  %vm1991_vm8 = vcmp.ge.f32.partialorder %v1879_v49, 0.0 }
 0x12a   : > { %9403 = vmatmul.mubr.msk.bf16.vlgmr.msra.gmra.mxu0 %vm332_vm3, %v11013_v16  ;;  %v1644_v12 = vsel %vm1580_vm10, %v1540_v1, %v1612_v23  ;;  %vm2423_vm12 = vcmp.ge.f32.partialorder %v2303_v13, 0.0  ;;  %v2455_v31 = vmul.f32 0.2, %v2303_v13  ;;  %v2295_v34 = vadd.f32 %v10975_v14, %v2294_v4  ;;  %v11071_v1 = vpop.f32.mrf.mxu0  ;;  %v2610_v18 = vld [vmem:[#allocation2 + $0x3c8] sm:$0xff] }
 0x12b   : > { %9406 = vmatprep.mubr.msk.bf16.mxu0 %vm332_vm3, %v11020_v6  ;;  %9443 = vmatpush3.bf16.msra.mxu0 %v10940_v28  ;;  %1677 = vst.msk [vmem:[#allocation2 + $0x408] sm:$0xff] %vm332_vm3, %v1644_v12  ;;  %v9317_v37 = vpop.f32.mrf.mxu1  ;;  %v2054_v23 = vsel %vm1990_vm0, %v1876_v55, %v2022_v43  ;;  %vm1993_vm2 = vcmp.ge.f32.partialorder %v1887_v0, 0.0  ;;  %v1900_v55 = vadd.f32 %v11006_v52, %v10975_v14  ;;  %v11110_v43 = vld [vmem:[#allocation2 + $0x6a0] sm:$0xff]  ;;  %v11337_v6 = vld [vmem:[#allocation2 + $0x670] sm:$0xff] }
 0x12c   : > { %9444 = vmatprep.subr.bf16.mxu0 %v9871_v10  ;;  %v2487_v40 = vsel %vm2423_vm12, %v2303_v13, %v2455_v31  ;;  %vm2421_vm14 = vcmp.ge.f32.partialorder %v2295_v34, 0.0  ;;  %v2453_v61 = vmul.f32 0.2, %v2295_v34  ;;  %v2306_v28 = vadd.f32 %v9317_v37, %v10975_v14  ;;  %2087 = vst.msk [vmem:[#allocation2 + $0x498] sm:$0xff] %vm332_vm3, %v2054_v23 }
 0x12d   : > { %2520 = vst.msk [vmem:[#allocation2 + $0x698] sm:$0xff] %vm332_vm3, %v2487_v40  ;;  %v2297_v46 = vpop.f32.mrf.mxu1  ;;  %v2025_v13 = vmul.f32 0.2, %v1887_v0  ;;  %v2751_v31 = vrot.slane %v11074_v33, 7  ;;  %v11118_v32 = vpack.c.bf16 %v2610_v18, %v10999_v44  ;;  %vm1996_vm10 = vcmp.ge.f32.partialorder %v1900_v55, 0.0 }
 0x12e   : > { %v2485_v57 = vsel %vm2421_vm14, %v2295_v34, %v2453_v61  ;;  %vm2424_vm15 = vcmp.ge.f32.partialorder %v2306_v28, 0.0  ;;  %v2456_v58 = vmul.f32 0.2, %v2306_v28  ;;  %v2298_v62 = vadd.f32 %v10975_v14, %v2297_v46  ;;  %v11097_v61 = vld [vmem:[#allocation2 + $0x3e8] sm:$0xff] }
 0x12f   : > { %9445 = vmatpush3.bf16.msra.mxu0 %v9871_v10  ;;  %2518 = vst.msk [vmem:[#allocation2 + $0x678] sm:$0xff] %vm332_vm3, %v2485_v57  ;;  %v9320_v15 = vpop.f32.mrf.mxu1  ;;  %v2752_v34 = vrot.slane %v2653_v5, 7  ;;  %v2057_v37 = vsel %vm1993_vm2, %v1887_v0, %v2025_v13  ;;  %v2754_v46 = vrot.slane %v11082_v22, 7  ;;  %v11107_v57 = vpack.c.bf16 %v11097_v61, %v2610_v18  ;;  %13983 = vst [vmem:[#allocation23_spill] sm:$0xff] %v11118_v32  ;;  %v11124_v5 = vld [vmem:[#allocation2 + $0x6c0] sm:$0xff]  ;;  %v2553_v18 = vld [vmem:[#allocation2 + $0x38] sm:$0xff] }
 0x130   : > { %9446 = vmatprep.subr.bf16.mxu0 %v9872_v29  ;;  %v2488_v7 = vsel %vm2424_vm15, %v2306_v28, %v2456_v58  ;;  %vm2422_vm1 = vcmp.ge.f32.partialorder %v2298_v62, 0.0  ;;  %v2454_v10 = vmul.f32 0.2, %v2298_v62  ;;  %v2319_v60 = vadd.f32 %v9320_v15, %v10975_v14  ;;  %2090 = vst.msk [vmem:[#allocation2 + $0x4c8] sm:$0xff] %vm332_vm3, %v2057_v37  ;;  %v11139_v37 = vld [vmem:[#allocation2 + $0x700] sm:$0xff] }
 0x131   : > { %2521 = vst.msk [vmem:[#allocation2 + $0x6a8] sm:$0xff] %vm332_vm3, %v2488_v7  ;;  %v2310_v11 = vpop.f32.mrf.mxu1  ;;  %13981 = vst [vmem:[#allocation21_spill] sm:$0xff] %v11107_v57  ;;  %v11115_v0 = vpack.c.bf16 %v10997_v42, %v11047_v41  ;;  %v2023_v7 = vmul.f32 0.2, %v1879_v49  ;;  %v2753_v44 = vsel %vm2750_vm5, %v2751_v31, %v2752_v34  ;;  %v2757_v41 = vrot.slane %v11110_v43, 7  ;;  %v11212_v34 = vld [vmem:[#allocation2 + $0x1b8] sm:$0xff] }
 0x132   : > { %9407 = vmatmul.mubr.msk.bf16.gmra.mxu0 %vm332_vm3, %v11053_v48  ;;  %v2486_v59 = vsel %vm2422_vm1, %v2298_v62, %v2454_v10  ;;  %vm2427_vm4 = vcmp.ge.f32.partialorder %v2319_v60, 0.0  ;;  %v2459_v4 = vmul.f32 0.2, %v2319_v60  ;;  %v2311_v3 = vadd.f32 %v10975_v14, %v2310_v11  ;;  %v11126_v11 = vld [vmem:[#allocation2 + $0x6e0] sm:$0xff] }
 0x133   : > { %9410 = vmatprep.mubr.msk.bf16.mxu0 %vm332_vm3, %v11064_v27  ;;  %9447 = vmatpush3.bf16.msra.mxu0 %v9872_v29  ;;  %2519 = vst.msk [vmem:[#allocation2 + $0x688] sm:$0xff] %vm332_vm3, %v2486_v59  ;;  %v9321_v12 = vpop.f32.mrf.mxu1  ;;  %v11093_v29 = vpop.f32.mrf.mxu0  ;;  %13982 = vst [vmem:[#allocation22_spill] sm:$0xff] %v11115_v0  ;;  %v2055_v23 = vsel %vm1991_vm8, %v1879_v49, %v2023_v7  ;;  %vm1997_vm8 = vcmp.ge.f32.partialorder %v11275_v25, 0.0  ;;  %v11318_v48 = vld [vmem:[#allocation2 + $0x840] sm:$0xff]  ;;  %v11354_v16 = vadd.f32 %v10975_v14, %v11071_v1 }
 0x134   : > { %9448 = vmatprep.subr.bf16.mxu0 %v9874_v63  ;;  %v2491_v38 = vsel %vm2427_vm4, %v2319_v60, %v2459_v4  ;;  %vm2425_vm6 = vcmp.ge.f32.partialorder %v2311_v3, 0.0  ;;  %v2457_v53 = vmul.f32 0.2, %v2311_v3  ;;  %v2322_v40 = vadd.f32 %v9321_v12, %v10975_v14  ;;  %2088 = vst.msk [vmem:[#allocation2 + $0x4a8] sm:$0xff] %vm332_vm3, %v2055_v23  ;;  %v11418_v57 = vld [vmem:[#allocation2 + $0x698] sm:$0xff] }
 0x135   : > { %2524 = vst.msk [vmem:[#allocation2 + $0x6d8] sm:$0xff] %vm332_vm3, %v2491_v38  ;;  %v2313_v28 = vpop.f32.mrf.mxu1  ;;  %v11121_v10 = vpop.f32.mrf.mxu0  ;;  %v11216_v38 = vld [vmem:[#allocation2 + $0x1d8] sm:$0xff]  ;;  %13995 = vst [vmem:[#allocation26_spill] sm:$0xff] %v11418_v57 }
 0x136   : > { %v2489_v58 = vsel %vm2425_vm6, %v2311_v3, %v2457_v53  ;;  %vm2428_vm7 = vcmp.ge.f32.partialorder %v2322_v40, 0.0  ;;  %v2460_v62 = vmul.f32 0.2, %v2322_v40  ;;  %v2314_v15 = vadd.f32 %v10975_v14, %v2313_v28  ;;  %v2551_v3 = vld [vmem:[#allocation2 + $0x18] sm:$0xff] }
 0x137   : > { %9449 = vmatpush3.bf16.msra.mxu0 %v9874_v63  ;;  %2522 = vst.msk [vmem:[#allocation2 + $0x6b8] sm:$0xff] %vm332_vm3, %v2489_v58  ;;  %v9324_v52 = vpop.f32.mrf.mxu1  ;;  %v2028_v53 = vmul.f32 0.2, %v1900_v55 }
 0x138   : > { %9490 = vmatprep.subr.bf16.mxu0 %v11090_v35  ;;  %v2492_v60 = vsel %vm2428_vm7, %v2322_v40, %v2460_v62  ;;  %vm2426_vm9 = vcmp.ge.f32.partialorder %v2314_v15, 0.0  ;;  %v2458_v63 = vmul.f32 0.2, %v2314_v15  ;;  %v2335_v33 = vadd.f32 %v9324_v52, %v10975_v14  ;;  %v11142_v40 = vpop.f32.mrf.mxu0  ;;  %v2614_v62 = vld [vmem:[#allocation2 + $0x408] sm:$0xff]  ;;  %v11147_v52 = vld [vmem:[#allocation2 + $0x78] sm:$0xff] }
 0x139   : > { %2525 = vst.msk [vmem:[#allocation2 + $0x6e8] sm:$0xff] %vm332_vm3, %v2492_v60  ;;  %v2326_v42 = vpop.f32.mrf.mxu1  ;;  %v3590_v60 = vpack.c.bf16 %v2553_v18, %v2551_v3  ;;  %v11171_v3 = vld [vmem:[#allocation2 + $0xd8] sm:$0xff] }
 0x13a   : > { %9411 = vmatmul.mubr.msk.bf16.gmra.mxu0 %vm332_vm3, %v11115_v0  ;;  %v2490_v13 = vsel %vm2426_vm9, %v2314_v15, %v2458_v63  ;;  %vm2431_vm11 = vcmp.ge.f32.partialorder %v2335_v33, 0.0  ;;  %v2463_v59 = vmul.f32 0.2, %v2335_v33  ;;  %v2327_v4 = vadd.f32 %v10975_v14, %v2326_v42  ;;  %v2657_v22 = vld [vmem:[#allocation2 + $0x688] sm:$0xff]  ;;  %v11145_v15 = vld [vmem:[#allocation2 + $0x58] sm:$0xff] }
 0x13b   : > { %9414 = vmatprep.mubr.msk.bf16.mxu0 %vm332_vm3, %v11118_v32  ;;  %2523 = vst.msk [vmem:[#allocation2 + $0x6c8] sm:$0xff] %vm332_vm3, %v2490_v13  ;;  %v9325_v12 = vpop.f32.mrf.mxu1  ;;  %v2755_v31 = vrot.slane %v2657_v22, 7  ;;  %v2060_v42 = vsel %vm1996_vm10, %v1900_v55, %v2028_v53  ;;  %v2661_v22 = vld [vmem:[#allocation2 + $0x6a8] sm:$0xff]  ;;  %v11173_v18 = vld [vmem:[#allocation2 + $0xf8] sm:$0xff] }
 0x13c   : > { %v2495_v28 = vsel %vm2431_vm11, %v2335_v33, %v2463_v59  ;;  %vm2429_vm12 = vcmp.ge.f32.partialorder %v2327_v4, 0.0  ;;  %v2461_v49 = vmul.f32 0.2, %v2327_v4  ;;  %v2338_v58 = vadd.f32 %v9325_v12, %v10975_v14  ;;  %v11159_v12 = vld [vmem:[#allocation2 + $0x98] sm:$0xff]  ;;  %2093 = vst.msk [vmem:[#allocation2 + $0x4f8] sm:$0xff] %vm332_vm3, %v2060_v42 }
 0x13d   : > { %2528 = vst.msk [vmem:[#allocation2 + $0x718] sm:$0xff] %vm332_vm3, %v2495_v28  ;;  %v2329_v7 = vpop.f32.mrf.mxu1  ;;  %v11151_v63 = vsel %vm2750_vm5, %v2754_v46, %v2755_v31  ;;  %v11156_v33 = vadd.f32 %v10975_v14, %v11027_v2  ;;  %v11161_v28 = vld [vmem:[#allocation2 + $0xb8] sm:$0xff]  ;;  %v11166_v46 = vpack.c.bf16 %v2614_v62, %v11097_v61  ;;  %v2758_v26 = vrot.slane %v2661_v22, 7 }
 0x13e   : > { %v2493_v23 = vsel %vm2429_vm12, %v2327_v4, %v2461_v49  ;;  %vm2432_vm13 = vcmp.ge.f32.partialorder %v2338_v58, 0.0  ;;  %v2464_v13 = vmul.f32 0.2, %v2338_v58  ;;  %v2330_v59 = vadd.f32 %v10975_v14, %v2329_v7  ;;  %v11176_v53 = vld [vmem:[#allocation2 + $0x138] sm:$0xff]  ;;  %v11178_v49 = vpop.f32.mrf.mxu0 }
 0x13f   : > { %2526 = vst.msk [vmem:[#allocation2 + $0x6f8] sm:$0xff] %vm332_vm3, %v2493_v23  ;;  %13984 = vst [vmem:[#allocation24_spill] sm:$0xff] %v11166_v46  ;;  %v9328_v55 = vpop.f32.mrf.mxu1  ;;  %v2815_v2 = vpack.c.bf16 %v11151_v63, %v2753_v44  ;;  %v11182_v44 = vld [vmem:[#allocation2 + $0x118] sm:$0xff]  ;;  %vm1994_vm15 = vcmp.ge.f32.partialorder %v11156_v33, 0.0 }
 0x140   : > { %v2496_v7 = vsel %vm2432_vm13, %v2338_v58, %v2464_v13  ;;  %vm2430_vm14 = vcmp.ge.f32.partialorder %v2330_v59, 0.0  ;;  %v2462_v61 = vmul.f32 0.2, %v2330_v59  ;;  %v2351_v62 = vadd.f32 %v9328_v55, %v10975_v14  ;;  %v11184_v42 = vld [vmem:[#allocation2 + $0x158] sm:$0xff] }
 0x141   : > { %v11186_v23 = vld [vmem:[#allocation2 + $0x178] sm:$0xff]  ;;  %2529 = vst.msk [vmem:[#allocation2 + $0x728] sm:$0xff] %vm332_vm3, %v2496_v7  ;;  %9378 = vmatprep.mubr.msk.bf16.mxu1 %vm332_vm3, %v2815_v2  ;;  %v2342_v21 = vpop.f32.mrf.mxu1  ;;  %v2026_v13 = vmul.f32 0.2, %v11156_v33  ;;  %vm1995_vm13 = vcmp.ge.f32.partialorder %v11354_v16, 0.0 }
 0x142   : > { %9415 = vmatmul.mubr.msk.bf16.gmra.mxu0 %vm332_vm3, %v11166_v46  ;;  %v2494_v55 = vsel %vm2430_vm14, %v2330_v59, %v2462_v61  ;;  %vm2435_vm0 = vcmp.ge.f32.partialorder %v2351_v62, 0.0  ;;  %v2467_v56 = vmul.f32 0.2, %v2351_v62  ;;  %v2343_v7 = vadd.f32 %v10975_v14, %v2342_v21  ;;  %v2665_v45 = vld [vmem:[#allocation2 + $0x6c8] sm:$0xff]  ;;  %v11198_v31 = vld [vmem:[#allocation2 + $0x198] sm:$0xff]  ;;  %v11207_v59 = vld [vmem:[#allocation2 + $0x720] sm:$0xff]  ;;  %v11209_v61 = vpop.f32.mrf.mxu0 }
 0x143   : > { %9450 = vmatprep.mubr.msk.bf16.mxu0 %vm332_vm3, %v3590_v60  ;;  %2527 = vst.msk [vmem:[#allocation2 + $0x708] sm:$0xff] %vm332_vm3, %v2494_v55  ;;  %v9329_v22 = vpop.f32.mrf.mxu1  ;;  %v2761_v2 = vrot.slane %v2665_v45, 7  ;;  %v11214_v45 = vld [vmem:[#allocation2 + $0x740] sm:$0xff]  ;;  %v11222_v60 = vsel %vm2750_vm5, %v2757_v41, %v2758_v26  ;;  %v2669_v41 = vld [vmem:[#allocation2 + $0x6e8] sm:$0xff]  ;;  %v13993_v1 = vrot.slane %v11207_v59, 7 }
 0x144   : > { %v2499_v21 = vsel %vm2435_vm0, %v2351_v62, %v2467_v56  ;;  %vm2433_vm1 = vcmp.ge.f32.partialorder %v2343_v7, 0.0  ;;  %v2465_v4 = vmul.f32 0.2, %v2343_v7  ;;  %v2354_v55 = vadd.f32 %v9329_v22, %v10975_v14  ;;  %v11263_v46 = vld [vmem:[#allocation2 + $0x7e0] sm:$0xff] }
 0x145   : > { %2532 = vst.msk [vmem:[#allocation2 + $0x758] sm:$0xff] %vm332_vm3, %v2499_v21  ;;  %v2345_v58 = vpop.f32.mrf.mxu1  ;;  %v13985_v56 = vrot.slane %v11124_v5, 7  ;;  %v2058_v21 = vsel %vm1994_vm15, %v11156_v33, %v2026_v13  ;;  %v11239_v5 = vld [vmem:[#allocation2 + $0x780] sm:$0xff]  ;;  %v13986_v13 = vpack.c.bf16 %v11147_v52, %v11145_v15  ;;  %v13987_v15 = vpack.c.bf16 %v11161_v28, %v11159_v12 }
 0x146   : > { %v2497_v20 = vsel %vm2433_vm1, %v2343_v7, %v2465_v4  ;;  %vm2436_vm2 = vcmp.ge.f32.partialorder %v2354_v55, 0.0  ;;  %v2468_v43 = vmul.f32 0.2, %v2354_v55  ;;  %v2346_v26 = vadd.f32 %v10975_v14, %v2345_v58  ;;  %2091 = vst.msk [vmem:[#allocation2 + $0x4d8] sm:$0xff] %vm332_vm3, %v2058_v21  ;;  %v9877_v58 = vld [vmem:[%s13907_s3 + $0xd0] sm:$0xff]   ;;  %v11259_v4 = vld [vmem:[#allocation2 + $0x7a0] sm:$0xff] }
 0x147   : > { %v11227_v62 = vsel %vm2750_vm5, %v13985_v56, %v2761_v2  ;;  %2530 = vst.msk [vmem:[#allocation2 + $0x738] sm:$0xff] %vm332_vm3, %v2497_v20  ;;  %v9332_v2 = vpop.f32.mrf.mxu1  ;;  %v9881_v7 = vld [vmem:[%s13907_s3 + $0x70] sm:$0xff]   ;;  %v11255_v20 = vpop.f32.mrf.mxu0  ;;  %v11302_v12 = vld [vmem:[#allocation2 + $0x820] sm:$0xff] }
 0x148   : > { %v2816_v56 = vpack.c.bf16 %v11227_v62, %v11222_v60  ;;  %v2500_v21 = vsel %vm2436_vm2, %v2354_v55, %v2468_v43  ;;  %vm2434_vm4 = vcmp.ge.f32.partialorder %v2346_v26, 0.0  ;;  %v2466_v22 = vmul.f32 0.2, %v2346_v26 }
 0x149   : > { %v2367_v33 = vadd.f32 %v9332_v2, %v10975_v14  ;;  %2533 = vst.msk [vmem:[#allocation2 + $0x768] sm:$0xff] %vm332_vm3, %v2500_v21  ;;  %v2358_v55 = vpop.f32.mrf.mxu1  ;;  %v2764_v43 = vrot.slane %v2669_v41, 7  ;;  %v13988_v2 = vrot.slane %v11126_v11, 7  ;;  %v11320_v11 = vld [vmem:[#allocation2 + $0x860] sm:$0xff] }
 0x14a   : > { %9451 = vmatmul.mubr.msk.bf16.vlgmr.msra.gmra.mxu0 %vm332_vm3, %v13986_v13  ;;  %9379 = vmatmul.mubr.msk.bf16.vlgmr.msra.gmra.mxu1 %vm332_vm3, %v2816_v56  ;;  %v2498_v32 = vsel %vm2434_vm4, %v2346_v26, %v2466_v22  ;;  %v2359_v0 = vadd.f32 %v10975_v14, %v2358_v55  ;;  %v2673_v52 = vld [vmem:[#allocation2 + $0x708] sm:$0xff]  ;;  %v10152_v22 = vld [vmem:[%s13907_s3 + $0x78] sm:$0xff]   ;;  %v11296_v26 = vpop.f32.mrf.mxu0 }
 0x14b   : > { %vm2439_vm6 = vcmp.ge.f32.partialorder %v2367_v33, 0.0  ;;  %v2471_v21 = vmul.f32 0.2, %v2367_v33  ;;  %9454 = vmatprep.mubr.msk.bf16.mxu0 %vm332_vm3, %v13987_v15  ;;  %9491 = vmatpush3.bf16.msra.mxu0 %v11090_v35  ;;  %2531 = vst.msk [vmem:[#allocation2 + $0x748] sm:$0xff] %vm332_vm3, %v2498_v32  ;;  %v9333_v41 = vpop.f32.mrf.mxu1  ;;  %v2767_v56 = vrot.slane %v2673_v52, 7  ;;  %v9882_v35 = vld [vmem:[%s13907_s3 + $0x68] sm:$0xff]   ;;  %v11308_v32 = vsel %vm2750_vm5, %v13988_v2, %v2764_v43 }
 0x14c   : > { %9492 = vmatprep.subr.bf16.mxu0 %v9877_v58  ;;  %9419 = vmatpush3.bf16.msra.mxu1 %v10152_v22  ;;  %vm2437_vm7 = vcmp.ge.f32.partialorder %v2359_v0, 0.0  ;;  %v2469_v55 = vmul.f32 0.2, %v2359_v0  ;;  %v2370_v15 = vadd.f32 %v9333_v41, %v10975_v14  ;;  %v2677_v52 = vld [vmem:[#allocation2 + $0x728] sm:$0xff]  ;;  %v11300_v22 = vld [vmem:[#allocation2 + $0x800] sm:$0xff] }
 0x14d   : > { %v2503_v13 = vsel %vm2439_vm6, %v2367_v33, %v2471_v21  ;;  %9420 = vmatprep.subr.bf16.mxu1 %v9881_v7  ;;  %v2361_v28 = vpop.f32.mrf.mxu1  ;;  %v13989_v33 = vrot.slane %v11139_v37, 7  ;;  %v2029_v41 = vmul.f32 0.2, %v11275_v25  ;;  %v2770_v2 = vrot.slane %v2677_v52, 7  ;;  %v9884_v52 = vld [vmem:[%s13907_s3 + $0x60] sm:$0xff]  }
 0x14e   : > { %2536 = vst.msk [vmem:[#allocation2 + $0x798] sm:$0xff] %vm332_vm3, %v2503_v13  ;;  %v2501_v24 = vsel %vm2437_vm7, %v2359_v0, %v2469_v55  ;;  %vm2440_vm9 = vcmp.ge.f32.partialorder %v2370_v15, 0.0  ;;  %v2472_v27 = vmul.f32 0.2, %v2370_v15  ;;  %v2362_v13 = vadd.f32 %v10975_v14, %v2361_v28  ;;  %v9880_v0 = vld [vmem:[%s13907_s3 + $0xc0] sm:$0xff]   ;;  %v11330_v28 = vpop.f32.mrf.mxu0 }
 0x14f   : > { %v11313_v21 = vsel %vm2750_vm5, %v13989_v33, %v2767_v56  ;;  %9493 = vmatpush3.bf16.msra.mxu0 %v9877_v58  ;;  %2534 = vst.msk [vmem:[#allocation2 + $0x778] sm:$0xff] %vm332_vm3, %v2501_v24  ;;  %v9336_v37 = vpop.f32.mrf.mxu1  ;;  %v13990_v58 = vpack.c.bf16 %v11173_v18, %v11171_v3  ;;  %v2061_v56 = vsel %vm1997_vm8, %v11275_v25, %v2029_v41 }
 0x150   : > { %v2817_v43 = vpack.c.bf16 %v11313_v21, %v11308_v32  ;;  %9494 = vmatprep.subr.bf16.mxu0 %v9878_v39  ;;  %9421 = vmatpush3.bf16.msra.mxu1 %v9881_v7  ;;  %v2504_v55 = vsel %vm2440_vm9, %v2370_v15, %v2472_v27  ;;  %vm2438_vm10 = vcmp.ge.f32.partialorder %v2362_v13, 0.0  ;;  %v2470_v24 = vmul.f32 0.2, %v2362_v13  ;;  %v11339_v7 = vld [vmem:[#allocation2 + $0x690] sm:$0xff]  ;;  %2094 = vst.msk [vmem:[#allocation2 + $0x508] sm:$0xff] %vm332_vm3, %v2061_v56  ;;  %v11404_v17 = vld [vmem:[#allocation2 + $0x768] sm:$0xff] }
 0x151   : > { %v2383_v33 = vadd.f32 %v9336_v37, %v10975_v14  ;;  %9422 = vmatprep.subr.bf16.mxu1 %v9882_v35  ;;  %2537 = vst.msk [vmem:[#allocation2 + $0x7a8] sm:$0xff] %vm332_vm3, %v2504_v55  ;;  %v2374_v27 = vpop.f32.mrf.mxu1  ;;  %v11368_v41 = vsel %vm2750_vm5, %v13993_v1, %v2770_v2  ;;  %v11378_v56 = vld [vmem:[#allocation2 + $0x6d0] sm:$0xff]  ;;  %v13994_v37 = vrot.slane %v11214_v45, 7 }
 0x152   : > { %9455 = vmatmul.mubr.msk.bf16.gmra.mxu0 %vm332_vm3, %v13990_v58  ;;  %9382 = vmatprep.mubr.msk.bf16.mxu1 %vm332_vm3, %v2817_v43  ;;  %v2502_v55 = vsel %vm2438_vm10, %v2362_v13, %v2470_v24  ;;  %v2375_v18 = vadd.f32 %v10975_v14, %v2374_v27  ;;  %v13991_v43 = vpack.c.bf16 %v11176_v53, %v11182_v44  ;;  %v11361_v58 = vld [vmem:[#allocation2 + $0x748] sm:$0xff]  ;;  %v11374_v53 = vld [vmem:[%s13907_s3 + $0x118] sm:$0xff]   ;;  %v11380_v24 = vpop.f32.mrf.mxu0 }
 0x153   : > { %vm2443_vm11 = vcmp.ge.f32.partialorder %v2383_v33, 0.0  ;;  %v2475_v3 = vmul.f32 0.2, %v2383_v33  ;;  %13992 = vst [vmem:[#allocation25_spill] sm:$0xff] %v11361_v58  ;;  %9495 = vmatpush3.bf16.msra.mxu0 %v9878_v39  ;;  %2535 = vst.msk [vmem:[#allocation2 + $0x788] sm:$0xff] %vm332_vm3, %v2502_v55  ;;  %v9337_v25 = vpop.f32.mrf.mxu1  ;;  %v2773_v13 = vrot.slane %v11361_v58, 7 }
 0x154   : > { %9458 = vmatprep.mubr.msk.bf16.mxu0 %vm332_vm3, %v13991_v43  ;;  %9496 = vmatprep.subr.bf16.mxu0 %v9880_v0  ;;  %vm2441_vm12 = vcmp.ge.f32.partialorder %v2375_v18, 0.0  ;;  %v2473_v2 = vmul.f32 0.2, %v2375_v18  ;;  %v2386_v27 = vadd.f32 %v9337_v25, %v10975_v14  ;;  %v11389_v55 = vld [vmem:[#allocation2 + $0x6b0] sm:$0xff]  ;;  %v1916_v25 = vadd.f32 %v11093_v29, %v10975_v14 }
 0x155   : > { %9423 = vmatpush3.bf16.msra.mxu1 %v9882_v35  ;;  %v2507_v59 = vsel %vm2443_vm11, %v2383_v33, %v2475_v3  ;;  %v11387_v35 = vld [vmem:[%s13907_s3 + $0xb8] sm:$0xff]   ;;  %v11391_v43 = vld [vmem:[#allocation2 + $0x6f0] sm:$0xff]  ;;  %v2377_v1 = vpop.f32.mrf.mxu1  ;;  %v11397_v33 = vsel %vm2750_vm5, %v13994_v37, %v2773_v13  ;;  %v2027_v3 = vmul.f32 0.2, %v11354_v16  ;;  %v13999_v29 = vrot.slane %v11231_v19, 7 }
 0x156   : > { %9424 = vmatprep.subr.bf16.mxu1 %v9884_v52  ;;  %2540 = vst.msk [vmem:[#allocation2 + $0x7d8] sm:$0xff] %vm332_vm3, %v2507_v59  ;;  %v2505_v15 = vsel %vm2441_vm12, %v2375_v18, %v2473_v2  ;;  %vm2444_vm14 = vcmp.ge.f32.partialorder %v2386_v27, 0.0  ;;  %v2476_v44 = vmul.f32 0.2, %v2386_v27  ;;  %v2378_v39 = vadd.f32 %v10975_v14, %v2377_v1  ;;  %v11406_v59 = vld [vmem:[#allocation2 + $0x710] sm:$0xff]  ;;  %v11415_v2 = vpop.f32.mrf.mxu0 }
 0x157   : > { %9497 = vmatpush3.bf16.msra.mxu0 %v9880_v0  ;;  %2538 = vst.msk [vmem:[#allocation2 + $0x7b8] sm:$0xff] %vm332_vm3, %v2505_v15  ;;  %v9340_v45 = vpop.f32.mrf.mxu1  ;;  %v2818_v37 = vpack.c.bf16 %v11397_v33, %v11368_v41  ;;  %v2059_v13 = vsel %vm1995_vm13, %v11354_v16, %v2027_v3  ;;  %vm2000_vm0 = vcmp.ge.f32.partialorder %v1916_v25, 0.0  ;;  %v14000_v3 = vrot.slane %v11239_v5, 7 }
 0x158   : > { %9538 = vmatprep.subr.bf16.mxu0 %v11374_v53  ;;  %v2508_v0 = vsel %vm2444_vm14, %v2386_v27, %v2476_v44  ;;  %vm2442_vm15 = vcmp.ge.f32.partialorder %v2378_v39, 0.0  ;;  %v2474_v1 = vmul.f32 0.2, %v2378_v39  ;;  %v2399_v15 = vadd.f32 %v9340_v45, %v10975_v14  ;;  %2092 = vst.msk [vmem:[#allocation2 + $0x4e8] sm:$0xff] %vm332_vm3, %v2059_v13  ;;  %v11449_v45 = vld [vmem:[#allocation2 + $0x678] sm:$0xff]  ;;  %v11451_v13 = vld [vmem:[#allocation2 + $0x750] sm:$0xff] }
 0x159   : > { %9425 = vmatpush3.bf16.msra.mxu1 %v9884_v52  ;;  %2541 = vst.msk [vmem:[#allocation2 + $0x7e8] sm:$0xff] %vm332_vm3, %v2508_v0  ;;  %v13996_v52 = vpack.c.bf16 %v11186_v23, %v11184_v42  ;;  %v2390_v44 = vpop.f32.mrf.mxu1  ;;  %v2776_v27 = vrot.slane %v11404_v17, 7  ;;  %v13997_v0 = vpack.c.bf16 %v11212_v34, %v11198_v31  ;;  %v2032_v34 = vmul.f32 0.2, %v1916_v25  ;;  %v11446_v31 = vpop.f32.mrf.mxu0  ;;  %v11468_v58 = vld [vmem:[#allocation2 + $0x7a8] sm:$0xff] }
 0x15a   : > { %9466 = vmatprep.subr.bf16.mxu1 %v11387_v35  ;;  %9383 = vmatmul.mubr.msk.bf16.gmra.mxu1 %vm332_vm3, %v2818_v37  ;;  %v2506_v18 = vsel %vm2442_vm15, %v2378_v39, %v2474_v1  ;;  %vm2447_vm1 = vcmp.ge.f32.partialorder %v2399_v15, 0.0  ;;  %v2479_v42 = vmul.f32 0.2, %v2399_v15  ;;  %v2391_v23 = vadd.f32 %v10975_v14, %v2390_v44  ;;  %v11439_v37 = vld [vmem:[#allocation2 + $0x788] sm:$0xff] }
 0x15b   : > { %9459 = vmatmul.mubr.msk.bf16.gmra.mxu0 %vm332_vm3, %v13996_v52  ;;  %13998 = vst [vmem:[#allocation27_spill] sm:$0xff] %v11439_v37  ;;  %2539 = vst.msk [vmem:[#allocation2 + $0x7c8] sm:$0xff] %vm332_vm3, %v2506_v18  ;;  %v9341_v52 = vpop.f32.mrf.mxu1  ;;  %v2779_v16 = vrot.slane %v11439_v37, 7  ;;  %v3352_v39 = vrot.slane %v11418_v57, 7  ;;  %v11457_v57 = vsel %vm2750_vm5, %v13999_v29, %v2776_v27  ;;  %v3952_v19 = vpack.c.bf16 %v11222_v60, %v11151_v63  ;;  %v11478_v27 = vpop.f32.mrf.mxu0 }
 0x15c   : > { %9462 = vmatprep.mubr.msk.bf16.mxu0 %vm332_vm3, %v13997_v0  ;;  %v2511_v1 = vsel %vm2447_vm1, %v2399_v15, %v2479_v42  ;;  %vm2445_vm2 = vcmp.ge.f32.partialorder %v2391_v23, 0.0  ;;  %v2477_v0 = vmul.f32 0.2, %v2391_v23  ;;  %v2402_v44 = vadd.f32 %v9341_v52, %v10975_v14 }
 0x15d   : > { %2544 = vst.msk [vmem:[#allocation2 + $0x818] sm:$0xff] %vm332_vm3, %v2511_v1  ;;  %v2393_v18 = vpop.f32.mrf.mxu1  ;;  %v11462_v15 = vsel %vm2750_vm5, %v14000_v3, %v2779_v16  ;;  %v2064_v42 = vsel %vm2000_vm0, %v1916_v25, %v2032_v34  ;;  %v1908_v52 = vadd.f32 %v10975_v14, %v11121_v10  ;;  %v3349_v10 = vrot.slane %v11449_v45, 7  ;;  %v11481_v34 = vld [vmem:[#allocation2 + $0x6b8] sm:$0xff] }
 0x15e   : > { %v2509_v54 = vsel %vm2445_vm2, %v2391_v23, %v2477_v0  ;;  %vm2448_vm4 = vcmp.ge.f32.partialorder %v2402_v44, 0.0  ;;  %v2480_v36 = vmul.f32 0.2, %v2402_v44  ;;  %v2394_v1 = vadd.f32 %v10975_v14, %v2393_v18  ;;  %2097 = vst.msk [vmem:[#allocation2 + $0x538] sm:$0xff] %vm332_vm3, %v2064_v42 }
 0x15f   : > { %2542 = vst.msk [vmem:[#allocation2 + $0x7f8] sm:$0xff] %vm332_vm3, %v2509_v54  ;;  %v9344_v5 = vpop.f32.mrf.mxu1  ;;  %v2819_v25 = vpack.c.bf16 %v11462_v15, %v11457_v57  ;;  %v14001_v54 = vpack.c.bf16 %v11237_v50, %v11216_v38  ;;  %v2782_v60 = vrot.slane %v11468_v58, 7  ;;  %vm1998_vm7 = vcmp.ge.f32.partialorder %v1908_v52, 0.0 }
 0x160   : > { %v2512_v23 = vsel %vm2448_vm4, %v2402_v44, %v2480_v36  ;;  %vm2446_vm6 = vcmp.ge.f32.partialorder %v2394_v1, 0.0  ;;  %v2478_v16 = vmul.f32 0.2, %v2394_v1  ;;  %v2415_v3 = vadd.f32 %v9344_v5, %v10975_v14  ;;  %v11499_v5 = vld [vmem:[#allocation2 + $0x6d8] sm:$0xff] }
 0x161   : > { %2545 = vst.msk [vmem:[#allocation2 + $0x828] sm:$0xff] %vm332_vm3, %v2512_v23  ;;  %9386 = vmatprep.mubr.msk.bf16.mxu1 %vm332_vm3, %v2819_v25  ;;  %v2406_v63 = vpop.f32.mrf.mxu1  ;;  %v14002_v36 = vrot.slane %v11339_v7, 7  ;;  %v2030_v44 = vmul.f32 0.2, %v1908_v52 }
 0x162   : > { %v2510_v18 = vsel %vm2446_vm6, %v2394_v1, %v2478_v16  ;;  %vm2451_vm8 = vcmp.ge.f32.partialorder %v2415_v3, 0.0  ;;  %v2483_v42 = vmul.f32 0.2, %v2415_v3  ;;  %v2407_v50 = vadd.f32 %v10975_v14, %v2406_v63  ;;  %v11497_v38 = vld [vmem:[#allocation2 + $0x7c8] sm:$0xff]  ;;  %v11509_v16 = vpop.f32.mrf.mxu0 }
 0x163   : > { %9463 = vmatmul.mubr.msk.bf16.gmra.mxu0 %vm332_vm3, %v14001_v54  ;;  %v11493_v0 = vsel %vm2750_vm5, %v14002_v36, %v3352_v39  ;;  %2543 = vst.msk [vmem:[#allocation2 + $0x808] sm:$0xff] %vm332_vm3, %v2510_v18  ;;  %v9345_v25 = vpop.f32.mrf.mxu1  ;;  %v2785_v7 = vrot.slane %v11497_v38, 7  ;;  %v14003_v39 = vrot.slane %v11337_v6, 7  ;;  %v3355_v1 = vrot.slane %v11481_v34, 7 }
 0x164   : > { %9498 = vmatprep.mubr.msk.bf16.mxu0 %vm332_vm3, %v3952_v19  ;;  %v2062_v19 = vsel %vm1998_vm7, %v1908_v52, %v2030_v44  ;;  %v2515_v54 = vsel %vm2451_vm8, %v2415_v3, %v2483_v42  ;;  %vm2449_vm9 = vcmp.ge.f32.partialorder %v2407_v50, 0.0  ;;  %v2481_v63 = vmul.f32 0.2, %v2407_v50 }
 0x165   : > { %v11506_v23 = vsel %vm2750_vm5, %v14003_v39, %v3349_v10  ;;  %v2418_v36 = vadd.f32 %v9345_v25, %v10975_v14  ;;  %2095 = vst.msk [vmem:[#allocation2 + $0x518] sm:$0xff] %vm332_vm3, %v2062_v19  ;;  %2548 = vst.msk [vmem:[#allocation2 + $0x858] sm:$0xff] %vm332_vm3, %v2515_v54  ;;  %v2409_v18 = vpop.f32.mrf.mxu1  ;;  %v14004_v6 = vrot.slane %v11259_v4, 7  ;;  %v14005_v39 = vrot.slane %v11261_v51, 7  ;;  %v11528_v54 = vld [vmem:[#allocation2 + $0x7e8] sm:$0xff]  ;;  %v11530_v4 = vld [vmem:[#allocation2 + $0x770] sm:$0xff] }
 0x166   : > { %v3358_v3 = vrot.slane %v11499_v5, 7  ;;  %v1919_v44 = vadd.f32 %v11142_v40, %v10975_v14  ;;  %v2513_v42 = vsel %vm2449_vm9, %v2407_v50, %v2481_v63  ;;  %v2410_v19 = vadd.f32 %v10975_v14, %v2409_v18  ;;  %v9885_v50 = vld [vmem:[%s13907_s3 + $0x110] sm:$0xff]   ;;  %v11547_v63 = vld [vmem:[#allocation2 + $0x6f8] sm:$0xff] }
 0x167   : > { %v11517_v10 = vsel %vm2750_vm5, %v14004_v6, %v2782_v60  ;;  %v11522_v52 = vsel %vm2750_vm5, %v14005_v39, %v2785_v7  ;;  %vm2452_vm10 = vcmp.ge.f32.partialorder %v2418_v36, 0.0  ;;  %v2484_v25 = vmul.f32 0.2, %v2418_v36  ;;  %2546 = vst.msk [vmem:[#allocation2 + $0x838] sm:$0xff] %vm332_vm3, %v2513_v42 }
 0x168   : > { %v3953_v51 = vpack.c.bf16 %v11308_v32, %v11227_v62  ;;  %v3954_v60 = vpack.c.bf16 %v11368_v41, %v11313_v21  ;;  %v2820_v40 = vpack.c.bf16 %v11522_v52, %v11517_v10  ;;  %v14006_v14 = vrot.slane %v11389_v55, 7  ;;  %v11549_v62 = vpop.f32.mrf.mxu0  ;;  %v11557_v55 = vld [vmem:[#allocation2 + $0x718] sm:$0xff] }
 0x169   : > { %v2516_v32 = vsel %vm2452_vm10, %v2418_v36, %v2484_v25  ;;  %vm2450_vm11 = vcmp.ge.f32.partialorder %v2410_v19, 0.0  ;;  %v2482_v18 = vmul.f32 0.2, %v2410_v19  ;;  %vm2001_vm12 = vcmp.ge.f32.partialorder %v1919_v44, 0.0 }
 0x16a   : > { %v11545_v7 = vsel %vm2750_vm5, %v14006_v14, %v3355_v1  ;;  %2549 = vst.msk [vmem:[#allocation2 + $0x868] sm:$0xff] %vm332_vm3, %v2516_v32  ;;  %9387 = vmatmul.mubr.msk.bf16.gmra.mxu1 %vm332_vm3, %v2820_v40  ;;  %v2788_v21 = vrot.slane %v11528_v54, 7  ;;  %v3412_v41 = vpack.c.bf16 %v11493_v0, %v11506_v23  ;;  %v2033_v6 = vmul.f32 0.2, %v1919_v44  ;;  %v11561_v39 = vld [vmem:[#allocation2 + $0x808] sm:$0xff]  ;;  %v11587_v32 = vpop.f32.mrf.mxu0 }
 0x16b   : > { %9499 = vmatmul.mubr.msk.bf16.vlgmr.msra.gmra.mxu0 %vm332_vm3, %v3953_v51  ;;  %v2514_v36 = vsel %vm2450_vm11, %v2410_v19, %v2482_v18  ;;  %v14007_v42 = vrot.slane %v11378_v56, 7  ;;  %v3361_v51 = vrot.slane %v11547_v63, 7  ;;  %v11573_v40 = vld [vmem:[%s13906_s2] ss:$0 sm:$0xff]  ;;  %v3364_v18 = vrot.slane %v11557_v55, 7 }
 0x16c   : > { %9502 = vmatprep.mubr.msk.bf16.mxu0 %vm332_vm3, %v3954_v60  ;;  %9539 = vmatpush3.bf16.msra.mxu0 %v11374_v53  ;;  %v1911_v19 = vadd.f32 %v11573_v40, %v11178_v49  ;;  %2547 = vst.msk [vmem:[#allocation2 + $0x848] sm:$0xff] %vm332_vm3, %v2514_v36  ;;  %v2791_v60 = vrot.slane %v11561_v39, 7  ;;  %v9886_v53 = vld [vmem:[%s13907_s3 + $0x108] sm:$0xff]   ;;  %v1932_v14 = vadd.f32 %v11573_v40, %v11209_v61  ;;  %v14008_v1 = vrot.slane %v11263_v46, 7  ;;  %v11612_v46 = vld [vmem:[#allocation2 + $0x758] sm:$0xff] }
 0x16d   : > { %v11567_v25 = vsel %vm2750_vm5, %v14007_v42, %v3358_v3  ;;  %9540 = vmatprep.subr.bf16.mxu0 %v9885_v50  ;;  %v2065_v3 = vsel %vm2001_vm12, %v1919_v44, %v2033_v6  ;;  %v11589_v49 = vld [vmem:[#allocation2 + $0x828] sm:$0xff]  ;;  %v1924_v42 = vadd.f32 %v11573_v40, %v11255_v20  ;;  %v14009_v61 = vrot.slane %v11300_v22, 7 }
 0x16e   : > { %2098 = vst.msk [vmem:[#allocation2 + $0x548] sm:$0xff] %vm332_vm3, %v2065_v3  ;;  %vm1999_vm13 = vcmp.ge.f32.partialorder %v1911_v19, 0.0  ;;  %v2031_v36 = vmul.f32 0.2, %v1911_v19  ;;  %v11598_v44 = vsel %vm2750_vm5, %v14008_v1, %v2788_v21  ;;  %vm2004_vm14 = vcmp.ge.f32.partialorder %v1932_v14, 0.0 }
 0x16f   : > { %v11603_v6 = vsel %vm2750_vm5, %v14009_v61, %v2791_v60  ;;  %v2036_v29 = vmul.f32 0.2, %v1932_v14  ;;  %v14010_v56 = vrot.slane %v11391_v43, 7  ;;  %vm2002_vm15 = vcmp.ge.f32.partialorder %v1924_v42, 0.0  ;;  %v9888_v60 = vld [vmem:[%s13907_s3 + $0x100] sm:$0xff]   ;;  %v11655_v61 = vld [vmem:[#allocation2 + $0x738] sm:$0xff] }
 0x170   : > { %v2821_v3 = vpack.c.bf16 %v11603_v6, %v11598_v44  ;;  %9541 = vmatpush3.bf16.msra.mxu0 %v9885_v50  ;;  %v2063_v21 = vsel %vm1999_vm13, %v1911_v19, %v2031_v36  ;;  %v3955_v22 = vpack.c.bf16 %v11457_v57, %v11397_v33  ;;  %v2794_v1 = vrot.slane %v11589_v49, 7 }
 0x171   : > { %v11610_v20 = vsel %vm2750_vm5, %v14010_v56, %v3361_v51  ;;  %9542 = vmatprep.subr.bf16.mxu0 %v9886_v53  ;;  %2096 = vst.msk [vmem:[#allocation2 + $0x528] sm:$0xff] %vm332_vm3, %v2063_v21  ;;  %v2068_v43 = vsel %vm2004_vm14, %v1932_v14, %v2036_v29  ;;  %v2034_v50 = vmul.f32 0.2, %v1924_v42  ;;  %v11621_v51 = vpop.f32.mrf.mxu0  ;;  %v3956_v19 = vpack.c.bf16 %v11517_v10, %v11462_v15  ;;  %v11646_v36 = vld [vmem:[#allocation2 + $0x868] sm:$0xff] }
 0x172   : > { %9390 = vmatprep.mubr.msk.bf16.mxu1 %vm332_vm3, %v2821_v3  ;;  %2101 = vst.msk [vmem:[#allocation2 + $0x578] sm:$0xff] %vm332_vm3, %v2068_v43  ;;  %v1935_v57 = vadd.f32 %v11573_v40, %v11296_v26  ;;  %v1927_v33 = vadd.f32 %v11573_v40, %v11330_v28  ;;  %v1948_v56 = vadd.f32 %v11573_v40, %v11380_v24  ;;  %v14011_v29 = vrot.slane %v11406_v59, 7 }
 0x173   : > { %9503 = vmatmul.mubr.msk.bf16.gmra.mxu0 %vm332_vm3, %v3955_v22  ;;  %v3370_v15 = vrot.slane %v11612_v46, 7  ;;  %v2066_v10 = vsel %vm2002_vm15, %v1924_v42, %v2034_v50  ;;  %v1940_v26 = vadd.f32 %v11573_v40, %v11415_v2  ;;  %v11644_v28 = vld [vmem:[#allocation2 + $0x848] sm:$0xff]  ;;  %14012 = vst [vmem:[#allocation28_spill] sm:$0xff] %v11646_v36  ;;  %v9310_v21 = vpop.f32.mrf.mxu0 }
 0x174   : > { %v11637_v14 = vsel %vm2750_vm5, %v14011_v29, %v3364_v18  ;;  %9506 = vmatprep.mubr.msk.bf16.mxu0 %vm332_vm3, %v3956_v19  ;;  %9543 = vmatpush3.bf16.msra.mxu0 %v9886_v53  ;;  %2099 = vst.msk [vmem:[#allocation2 + $0x558] sm:$0xff] %vm332_vm3, %v2066_v10  ;;  %vm2005_vm0 = vcmp.ge.f32.partialorder %v1935_v57, 0.0  ;;  %v2037_v59 = vmul.f32 0.2, %v1935_v57  ;;  %vm2003_vm1 = vcmp.ge.f32.partialorder %v1927_v33, 0.0  ;;  %v11660_v53 = vld [vmem:[%s13907_s3 + $0x18] sm:$0xff]  }
 0x175   : > { %v3414_v24 = vpack.c.bf16 %v11637_v14, %v11610_v20  ;;  %v14013_v18 = vrot.slane %v11302_v12, 7  ;;  %v2797_v2 = vrot.slane %v11644_v28, 7  ;;  %9544 = vmatprep.subr.bf16.mxu0 %v9888_v60  ;;  %v2035_v3 = vmul.f32 0.2, %v1927_v33  ;;  %v11747_v20 = vld [vmem:[#allocation2 + $0x7f8] sm:$0xff] }
 0x176   : > { %vm2008_vm2 = vcmp.ge.f32.partialorder %v1948_v56, 0.0  ;;  %v2069_v22 = vsel %vm2005_vm0, %v1935_v57, %v2037_v59  ;;  %v2040_v43 = vmul.f32 0.2, %v1948_v56  ;;  %vm2006_vm4 = vcmp.ge.f32.partialorder %v1940_v26, 0.0  ;;  %v11749_v14 = vld [vmem:[#allocation2 + $0x838] sm:$0xff] }
 0x177   : > { %v2795_v42 = vsel %vm2750_vm5, %v14013_v18, %v2794_v1  ;;  %v2038_v50 = vmul.f32 0.2, %v1940_v26  ;;  %v14014_v12 = vrot.slane %v11318_v48, 7  ;;  %v3949_v19 = vrot.slane %v11646_v36, 7  ;;  %2102 = vst.msk [vmem:[#allocation2 + $0x588] sm:$0xff] %vm332_vm3, %v2069_v22 }
 0x178   : > { %v2067_v29 = vsel %vm2003_vm1, %v1927_v33, %v2035_v3  ;;  %v1951_v10 = vadd.f32 %v11573_v40, %v11446_v31  ;;  %9545 = vmatpush3.bf16.msra.mxu0 %v9888_v60  ;;  %v3367_v57 = vrot.slane %v11655_v61, 7  ;;  %v2072_v48 = vsel %vm2008_vm2, %v1948_v56, %v2040_v43  ;;  %v1971_v33 = vpop.f32.mrf.mxu0 }
 0x179   : > { %v11665_v1 = vsel %vm2750_vm5, %v14014_v12, %v2797_v2  ;;  %2100 = vst.msk [vmem:[#allocation2 + $0x568] sm:$0xff] %vm332_vm3, %v2067_v29  ;;  %v2070_v59 = vsel %vm2006_vm4, %v1940_v26, %v2038_v50  ;;  %v3957_v2 = vpack.c.bf16 %v11598_v44, %v11522_v52  ;;  %9586 = vmatprep.subr.bf16.mxu0 %v11660_v53  ;;  %2105 = vst.msk [vmem:[#allocation2 + $0x5b8] sm:$0xff] %vm332_vm3, %v2072_v48  ;;  %v11705_v12 = vld [vmem:[#allocation2 + $0x778] sm:$0xff] }
 0x17a   : > { %v2822_v18 = vpack.c.bf16 %v11665_v1, %v2795_v42  ;;  %2103 = vst.msk [vmem:[#allocation2 + $0x598] sm:$0xff] %vm332_vm3, %v2070_v59  ;;  %vm2009_vm6 = vcmp.ge.f32.partialorder %v1951_v10, 0.0  ;;  %v2041_v31 = vmul.f32 0.2, %v1951_v10  ;;  %v1943_v60 = vadd.f32 %v11573_v40, %v11478_v27  ;;  %v9311_v0 = vpop.f32.mrf.mxu0  ;;  %v11707_v29 = vld [vmem:[#allocation2 + $0x798] sm:$0xff] }
 0x17b   : > { %v3958_v3 = vpack.c.bf16 %v2795_v42, %v11603_v6  ;;  %v1964_v56 = vadd.f32 %v11573_v40, %v11509_v16  ;;  %v1956_v52 = vadd.f32 %v11573_v40, %v11549_v62  ;;  %v1967_v44 = vadd.f32 %v11573_v40, %v11587_v32  ;;  %9507 = vmatmul.mubr.msk.bf16.gmra.mxu0 %vm332_vm3, %v3957_v2  ;;  %v9889_v2 = vld [vmem:[%s13907_s3 + $0xb0] sm:$0xff]  }
 0x17c   : > { %9391 = vmatmul.mubr.msk.bf16.gmra.mxu1 %vm332_vm3, %v2822_v18  ;;  %v14015_v26 = vrot.slane %v11320_v11, 7  ;;  %v2073_v6 = vsel %vm2009_vm6, %v1951_v10, %v2041_v31  ;;  %vm2007_vm7 = vcmp.ge.f32.partialorder %v1943_v60, 0.0  ;;  %v2039_v16 = vmul.f32 0.2, %v1943_v60 }
 0x17d   : > { %9426 = vmatprep.mubr.msk.bf16.mxu1 %vm332_vm3, %v3412_v41  ;;  %9510 = vmatprep.mubr.msk.bf16.mxu0 %vm332_vm3, %v3958_v3  ;;  %2106 = vst.msk [vmem:[#allocation2 + $0x5c8] sm:$0xff] %vm332_vm3, %v2073_v6  ;;  %vm2012_vm8 = vcmp.ge.f32.partialorder %v1964_v56, 0.0  ;;  %v2044_v62 = vmul.f32 0.2, %v1964_v56  ;;  %vm2010_vm9 = vcmp.ge.f32.partialorder %v1956_v52, 0.0  ;;  %vm2013_vm10 = vcmp.ge.f32.partialorder %v1967_v44, 0.0 }
 0x17e   : > { %v3950_v27 = vsel %vm2750_vm5, %v14015_v26, %v3949_v19  ;;  %v2042_v32 = vmul.f32 0.2, %v1956_v52  ;;  %v2071_v42 = vsel %vm2007_vm7, %v1943_v60, %v2039_v16  ;;  %v2045_v11 = vmul.f32 0.2, %v1967_v44  ;;  %v2690_v19 = vld [vmem:[#allocation2 + $0x790] sm:$0xff] }
 0x17f   : > { %v1959_v22 = vadd.f32 %v11573_v40, %v11621_v51  ;;  %2104 = vst.msk [vmem:[#allocation2 + $0x5a8] sm:$0xff] %vm332_vm3, %v2071_v42  ;;  %v2076_v23 = vsel %vm2012_vm8, %v1964_v56, %v2044_v62  ;;  %v1980_v43 = vadd.f32 %v11573_v40, %v9310_v21  ;;  %v1972_v50 = vadd.f32 %v11573_v40, %v1971_v33  ;;  %v1974_v33 = vpop.f32.mrf.mxu0  ;;  %v2694_v6 = vld [vmem:[#allocation2 + $0x7b0] sm:$0xff]  ;;  %v11745_v62 = vld [vmem:[#allocation2 + $0x7b8] sm:$0xff] }
 0x180   : > { %v2074_v41 = vsel %vm2010_vm9, %v1956_v52, %v2042_v32  ;;  %2109 = vst.msk [vmem:[#allocation2 + $0x5f8] sm:$0xff] %vm332_vm3, %v2076_v23  ;;  %v2077_v10 = vsel %vm2013_vm10, %v1967_v44, %v2045_v11  ;;  %v1983_v18 = vadd.f32 %v11573_v40, %v9311_v0  ;;  %v3959_v59 = vpack.c.bf16 %v3950_v27, %v11665_v1 }
 0x181   : > { %2107 = vst.msk [vmem:[#allocation2 + $0x5d8] sm:$0xff] %vm332_vm3, %v2074_v41  ;;  %vm2011_vm11 = vcmp.ge.f32.partialorder %v1959_v22, 0.0  ;;  %v2043_v51 = vmul.f32 0.2, %v1959_v22  ;;  %2110 = vst.msk [vmem:[#allocation2 + $0x608] sm:$0xff] %vm332_vm3, %v2077_v10  ;;  %vm2016_vm12 = vcmp.ge.f32.partialorder %v1980_v43, 0.0  ;;  %v14016_v3 = vpack.c.bf16 %v11567_v25, %v11545_v7 }
 0x182   : > { %v2048_v21 = vmul.f32 0.2, %v1980_v43  ;;  %vm2014_vm13 = vcmp.ge.f32.partialorder %v1972_v50, 0.0  ;;  %v2046_v48 = vmul.f32 0.2, %v1972_v50  ;;  %vm2017_vm14 = vcmp.ge.f32.partialorder %v1983_v18, 0.0 }
 0x183   : > { %v2075_v31 = vsel %vm2011_vm11, %v1959_v22, %v2043_v51  ;;  %v2049_v60 = vmul.f32 0.2, %v1983_v18  ;;  %v3373_v56 = vrot.slane %v11705_v12, 7  ;;  %v1975_v1 = vadd.f32 %v11573_v40, %v1974_v33  ;;  %9511 = vmatmul.mubr.msk.bf16.gmra.mxu0 %vm332_vm3, %v3959_v59  ;;  %v9890_v40 = vld [vmem:[%s13907_s3 + $0xa8] sm:$0xff]   ;;  %v2702_v22 = vld [vmem:[#allocation2 + $0x7f0] sm:$0xff] }
 0x184   : > { %9427 = vmatmul.mubr.msk.bf16.vlgmr.msra.gmra.mxu1 %vm332_vm3, %v14016_v3  ;;  %2108 = vst.msk [vmem:[#allocation2 + $0x5e8] sm:$0xff] %vm332_vm3, %v2075_v31  ;;  %v2080_v52 = vsel %vm2016_vm12, %v1980_v43, %v2048_v21  ;;  %v2078_v44 = vsel %vm2014_vm13, %v1972_v50, %v2046_v48  ;;  %v3375_v26 = vrot.slane %v2690_v19, 7  ;;  %v3376_v27 = vrot.slane %v11707_v29, 7  ;;  %9546 = vmatprep.mubr.msk.bf16.mxu0 %vm332_vm3, %v10969_v9  ;;  %v11762_v43 = vld [vmem:[#allocation2 + $0x7d8] sm:$0xff]  ;;  %v2706_v51 = vld [vmem:[#allocation2 + $0x810] sm:$0xff]  ;;  %v9892_v31 = vld [vmem:[%s13907_s3 + $0xa0] sm:$0xff]  }
 0x185   : > { %9467 = vmatpush3.bf16.msra.mxu1 %v11387_v35  ;;  %2113 = vst.msk [vmem:[#allocation2 + $0x638] sm:$0xff] %vm332_vm3, %v2080_v52  ;;  %2111 = vst.msk [vmem:[#allocation2 + $0x618] sm:$0xff] %vm332_vm3, %v2078_v44  ;;  %v2081_v7 = vsel %vm2017_vm14, %v1983_v18, %v2049_v60  ;;  %9430 = vmatprep.mubr.msk.bf16.mxu1 %vm332_vm3, %v3414_v24  ;;  %v14017_v35 = vrot.slane %v11421_v47, 7  ;;  %vm2015_vm15 = vcmp.ge.f32.partialorder %v1975_v1, 0.0  ;;  %v2047_v16 = vmul.f32 0.2, %v1975_v1 }
 0x186   : > { %2114 = vst.msk [vmem:[#allocation2 + $0x648] sm:$0xff] %vm332_vm3, %v2081_v7  ;;  %9468 = vmatprep.subr.bf16.mxu1 %v9889_v2  ;;  %v14018_v24 = vrot.slane %v11451_v13, 7  ;;  %v14019_v32 = vrot.slane %v11530_v4, 7  ;;  %v3378_v11 = vrot.slane %v2694_v6, 7  ;;  %v3377_v41 = vsel %vm2750_vm5, %v3375_v26, %v3376_v27  ;;  %v11764_v50 = vld [vmem:[#allocation2 + $0x818] sm:$0xff]  ;;  %v9893_v33 = vld [vmem:[%s13907_s3 + $0x10] sm:$0xff]  }
 0x187   : > { %v3368_v25 = vsel %vm2750_vm5, %v14017_v35, %v3367_v57  ;;  %v2079_v0 = vsel %vm2015_vm15, %v1975_v1, %v2047_v16  ;;  %v11766_v19 = vld [vmem:[#allocation2 + $0x858] sm:$0xff]  ;;  %v3379_v10 = vrot.slane %v11745_v62, 7  ;;  %v3385_v60 = vrot.slane %v11747_v20, 7  ;;  %v9914_v21 = vld [vmem:[%s13907_s3 + $0x48] sm:$0xff]   ;;  %v9916_v47 = vld [vmem:[%s13907_s3 + $0x40] sm:$0xff]  }
 0x188   : > { %v3371_v57 = vsel %vm2750_vm5, %v14018_v24, %v3370_v15  ;;  %v3374_v42 = vsel %vm2750_vm5, %v14019_v32, %v3373_v56  ;;  %2112 = vst.msk [vmem:[#allocation2 + $0x628] sm:$0xff] %vm332_vm3, %v2079_v0  ;;  %v2698_v15 = vld [vmem:[#allocation2 + $0x7d0] sm:$0xff]  ;;  %v3382_v1 = vrot.slane %v11762_v43, 7  ;;  %v3387_v26 = vrot.slane %v2706_v51, 7  ;;  %v9895_v24 = vld [vmem:[%s13907_s3 + $0xf8] sm:$0xff]   ;;  %v12037_v18 = vld [vmem:[#allocation2 + $0x548] sm:$0xff] }
 0x189   : > { %v3415_v23 = vpack.c.bf16 %v3371_v57, %v3368_v25  ;;  %9469 = vmatpush3.bf16.msra.mxu1 %v9889_v2  ;;  %v3416_v59 = vpack.c.bf16 %v3377_v41, %v3374_v42  ;;  %v3384_v2 = vrot.slane %v2702_v22, 7  ;;  %v3381_v44 = vrot.slane %v2698_v15, 7  ;;  %v2714_v41 = vld [vmem:[#allocation2 + $0x850] sm:$0xff]  ;;  %v2611_v32 = vld [vmem:[#allocation2 + $0x3d8] sm:$0xff]  ;;  %v12039_v4 = vld [vmem:[#allocation2 + $0x568] sm:$0xff] }
 0x18a   : > { %9470 = vmatprep.subr.bf16.mxu1 %v9890_v40  ;;  %v3380_v6 = vsel %vm2750_vm5, %v3378_v11, %v3379_v10  ;;  %v3388_v7 = vrot.slane %v11764_v50, 7  ;;  %v2710_v11 = vld [vmem:[#allocation2 + $0x830] sm:$0xff]  ;;  %v3391_v51 = vrot.slane %v11749_v14, 7  ;;  %v14036_v25 = vld [vmem:[#allocation24_spill] sm:$0xff]  ;;  %v4586_v13 = vpack.c.bf16 %v12039_v4, %v12037_v18  ;;  %v12068_v35 = vld [vmem:[#allocation2 + $0x588] sm:$0xff] }
 0x18b   : > { %9547 = vmatmul.mubr.msk.bf16.vlgmr.msra.gmra.mxu0 %vm332_vm3, %v10919_v8  ;;  %v3386_v42 = vsel %vm2750_vm5, %v3384_v2, %v3385_v60  ;;  %v3383_v22 = vsel %vm2750_vm5, %v3381_v44, %v3382_v1  ;;  %v3390_v10 = vrot.slane %v2710_v11, 7  ;;  %v14021_v2 = vld [vmem:[#allocation12_spill] sm:$0xff]  ;;  %v3393_v60 = vrot.slane %v2714_v41, 7  ;;  %v14022_v44 = vld [vmem:[#allocation19_spill] sm:$0xff] }
 0x18c   : > { %9431 = vmatmul.mubr.msk.bf16.gmra.mxu1 %vm332_vm3, %v3415_v23  ;;  %9550 = vmatprep.mubr.msk.bf16.mxu0 %vm332_vm3, %v10985_v30  ;;  %v3417_v0 = vpack.c.bf16 %v3383_v22, %v3380_v6  ;;  %v3389_v23 = vsel %vm2750_vm5, %v3387_v26, %v3388_v7  ;;  %v2585_v1 = vld [vmem:[#allocation2 + $0x238] sm:$0xff]  ;;  %v14049_v8 = vpack.c.bf16 %v11764_v50, %v11747_v20  ;;  %v12153_v20 = vld [vmem:[#allocation2 + $0x6e8] sm:$0xff] }
 0x18d   : > { %9434 = vmatprep.mubr.msk.bf16.mxu1 %vm332_vm3, %v3416_v59  ;;  %9471 = vmatpush3.bf16.msra.mxu1 %v9890_v40  ;;  %v3418_v15 = vpack.c.bf16 %v3389_v23, %v3386_v42  ;;  %v9896_v59 = vld [vmem:[%s13907_s3] sm:$0xff]   ;;  %v9899_v26 = vld [vmem:[%s13907_s3 + $0x78] sm:$0xff]   ;;  %v10156_v40 = vld [vmem:[#allocation2 + $0x48] sm:$0xff] }
 0x18e   : > { %9587 = vmatpush3.bf16.msra.mxu0 %v11660_v53  ;;  %9472 = vmatprep.subr.bf16.mxu1 %v9892_v31  ;;  %v9894_v53 = vld [vmem:[%s13907_s3 + $0x8] sm:$0xff]   ;;  %v2587_v42 = vld [vmem:[#allocation2 + $0x258] sm:$0xff] }
 0x18f   : > { %9588 = vmatprep.subr.bf16.mxu0 %v9893_v33  ;;  %v11840_v11 = vpack.c.bf16 %v2587_v42, %v2585_v1  ;;  %v14023_v22 = vld [vmem:[#allocation15_spill] sm:$0xff]  ;;  %v14026_v1 = vld [vmem:[#allocation13_spill] sm:$0xff] }
 0x190   : > { %v2591_v23 = vld [vmem:[#allocation2 + $0x298] sm:$0xff]  ;;  %v12155_v50 = vld [vmem:[#allocation2 + $0x708] sm:$0xff] }
 0x191   : > { %9473 = vmatpush3.bf16.msra.mxu1 %v9892_v31  ;;  %v3394_v31 = vrot.slane %v11766_v19, 7  ;;  %v2593_v41 = vld [vmem:[#allocation2 + $0x2b8] sm:$0xff] }
 0x192   : > { %9589 = vmatpush3.bf16.msra.mxu0 %v9893_v33  ;;  %9514 = vmatprep.subr.bf16.mxu1 %v9895_v24  ;;  %v3392_v33 = vsel %vm2750_vm5, %v3390_v10, %v3391_v51  ;;  %v10154_v51 = vld [vmem:[#allocation2 + $0x408] sm:$0xff]  ;;  %v2601_v42 = vld [vmem:[#allocation2 + $0x338] sm:$0xff] }
 0x193   : > { %9590 = vmatprep.subr.bf16.mxu0 %v9894_v53  ;;  %9551 = vmatmul.mubr.msk.bf16.gmra.mxu0 %vm332_vm3, %v14021_v2  ;;  %v3395_v6 = vsel %vm2750_vm5, %v3393_v60, %v3394_v31  ;;  %v2595_v60 = vld [vmem:[#allocation2 + $0x2d8] sm:$0xff]  ;;  %v9897_v31 = vld [vmem:[%s13907_s3 + $0xf0] sm:$0xff]   ;;  %v12109_v2 = vld [vmem:[#allocation2 + $0x628] sm:$0xff] }
 0x194   : > { %9435 = vmatmul.mubr.msk.bf16.gmra.mxu1 %vm332_vm3, %v3417_v0  ;;  %9554 = vmatprep.mubr.msk.bf16.mxu0 %vm332_vm3, %v14022_v44  ;;  %v3419_v7 = vpack.c.bf16 %v3395_v6, %v3392_v33  ;;  %v2589_v0 = vld [vmem:[#allocation2 + $0x278] sm:$0xff]  ;;  %v11858_v33 = vpack.c.bf16 %v2595_v60, %v2593_v41  ;;  %v9898_v6 = vld [vmem:[%s13907_s3 + $0xe8] sm:$0xff]   ;;  %v14046_v44 = vpack.c.bf16 %v11612_v46, %v11655_v61 }
 0x195   : > { %9438 = vmatprep.mubr.msk.bf16.mxu1 %vm332_vm3, %v3418_v15  ;;  %v2616_v15 = vld [vmem:[#allocation2 + $0x428] sm:$0xff]  ;;  %v11849_v10 = vpack.c.bf16 %v2591_v23, %v2589_v0  ;;  %v2599_v0 = vld [vmem:[#allocation2 + $0x318] sm:$0xff] }
 0x196   : > { %9591 = vmatpush3.bf16.msra.mxu0 %v9894_v53  ;;  %v14024_v53 = vld [vmem:[#allocation21_spill] sm:$0xff]  ;;  %v2603_v41 = vld [vmem:[#allocation2 + $0x358] sm:$0xff] }
 0x197   : > { %9592 = vmatprep.subr.bf16.mxu0 %v9896_v59  ;;  %v14027_v60 = vld [vmem:[#allocation16_spill] sm:$0xff] }
 0x198   : > { %v9934_v46 = vld [vmem:[%s13909_s5 + $0xf4] ss:$8 sps:$4 sm:$0xff]  }
 0x19a   : > { %9593 = vmatpush3.bf16.msra.mxu0 %v9896_v59  ;;  %v11851_v59 = vpack.c.bf16 %v2616_v15, %v10154_v51  ;;  %v9900_v15 = vld [vmem:[%s13907_s3 + $0xe0] sm:$0xff]   ;;  %v9901_v51 = vld [vmem:[%s13907_s3 + $0x70] sm:$0xff]  }
 0x19b   : > { %9634 = vmatprep.subr.bf16.mxu0 %v9899_v26  ;;  %9555 = vmatmul.mubr.msk.bf16.gmra.mxu0 %vm332_vm3, %v14023_v22 }
 0x19c   : > { %9439 = vmatmul.mubr.msk.bf16.gmra.mxu1 %vm332_vm3, %v3419_v7  ;;  %9558 = vmatprep.mubr.msk.bf16.mxu0 %vm332_vm3, %v14024_v53  ;;  %14025 = vst [vmem:[#allocation29_spill] sm:$0xff] %v11851_v59  ;;  %v2597_v7 = vld [vmem:[#allocation2 + $0x2f8] sm:$0xff]  ;;  %v9920_v53 = vld [vmem:[%s13907_s3 + $0xe0] sm:$0xff]  }
 0x19d   : > { %9474 = vmatprep.mubr.msk.bf16.mxu1 %vm332_vm3, %v11840_v11  ;;  %v11869_v23 = vpack.c.bf16 %v2599_v0, %v2597_v7  ;;  %v9903_v7 = vld [vmem:[%s13907_s3 + $0x38] sm:$0xff]   ;;  %v9902_v0 = vld [vmem:[%s13907_s3 + $0x68] sm:$0xff]  }
 0x1a3   : > { %9559 = vmatmul.mubr.msk.bf16.gmra.mxu0 %vm332_vm3, %v11851_v59  ;;  %v12075_v59 = vld [vmem:[#allocation2 + $0x5c8] sm:$0xff] }
 0x1a4   : > { %9475 = vmatmul.mubr.msk.bf16.vlgmr.msra.gmra.mxu1 %vm332_vm3, %v11849_v10  ;;  %9594 = vmatprep.mubr.msk.bf16.mxu0 %vm332_vm3, %v14026_v1  ;;  %v2605_v1 = vld [vmem:[#allocation2 + $0x378] sm:$0xff] }
 0x1a5   : > { %9515 = vmatpush3.bf16.msra.mxu1 %v9895_v24  ;;  %9478 = vmatprep.mubr.msk.bf16.mxu1 %vm332_vm3, %v11858_v33  ;;  %v11871_v24 = vpack.c.bf16 %v2603_v41, %v2601_v42  ;;  %v2609_v42 = vld [vmem:[#allocation2 + $0x3b8] sm:$0xff] }
 0x1a6   : > { %9516 = vmatprep.subr.bf16.mxu1 %v9897_v31  ;;  %v2607_v41 = vld [vmem:[#allocation2 + $0x398] sm:$0xff] }
 0x1a9   : > { %9517 = vmatpush3.bf16.msra.mxu1 %v9897_v31  ;;  %v14028_v31 = vld [vmem:[#allocation17_spill] sm:$0xff] }
 0x1aa   : > { %9518 = vmatprep.subr.bf16.mxu1 %v9898_v6  ;;  %14051 = vst [vmem:[#allocation17_spill] sm:$0xff] %v12153_v20 }
 0x1ab   : > { %9595 = vmatmul.mubr.msk.bf16.vlgmr.msra.gmra.mxu0 %vm332_vm3, %v14027_v60  ;;  %v11893_v60 = vpack.c.bf16 %v2607_v41, %v2605_v1  ;;  %v14030_v1 = vld [vmem:[#allocation20_spill] sm:$0xff]  ;;  %v10155_v41 = vld [vmem:[#allocation2 + $0x28] sm:$0xff] }
 0x1ac   : > { %9479 = vmatmul.mubr.msk.bf16.gmra.mxu1 %vm332_vm3, %v11869_v23  ;;  %9598 = vmatprep.mubr.msk.bf16.mxu0 %vm332_vm3, %v14028_v31  ;;  %v11895_v31 = vpack.c.bf16 %v2611_v32, %v2609_v42  ;;  %v2613_v32 = vld [vmem:[#allocation2 + $0x3f8] sm:$0xff]  ;;  %v4130_v57 = vpack.c.bf16 %v10156_v40, %v10155_v41  ;;  %v10158_v41 = vld [vmem:[#allocation2 + $0xc8] sm:$0xff] }
 0x1ad   : > { %9482 = vmatprep.mubr.msk.bf16.mxu1 %vm332_vm3, %v11871_v24  ;;  %9519 = vmatpush3.bf16.msra.mxu1 %v9898_v6  ;;  %v14029_v6 = vld [vmem:[#allocation18_spill] sm:$0xff] }
 0x1ae   : > { %9635 = vmatpush3.bf16.msra.mxu0 %v9899_v26  ;;  %9520 = vmatprep.subr.bf16.mxu1 %v9900_v15  ;;  %v9904_v26 = vld [vmem:[%s13907_s3 + $0x60] sm:$0xff]   ;;  %14052 = vst [vmem:[#allocation18_spill] sm:$0xff] %v12155_v50 }
 0x1af   : > { %9636 = vmatprep.subr.bf16.mxu0 %v9901_v51 }
 0x1b1   : > { %9521 = vmatpush3.bf16.msra.mxu1 %v9900_v15  ;;  %v9907_v15 = vld [vmem:[%s13907_s3 + $0xb8] sm:$0xff]  }
 0x1b2   : > { %9637 = vmatpush3.bf16.msra.mxu0 %v9901_v51  ;;  %9562 = vmatprep.subr.bf16.mxu1 %v9903_v7  ;;  %v2615_v51 = vld [vmem:[#allocation2 + $0x418] sm:$0xff] }
 0x1b3   : > { %9638 = vmatprep.subr.bf16.mxu0 %v9902_v0  ;;  %9599 = vmatmul.mubr.msk.bf16.gmra.mxu0 %vm332_vm3, %v14029_v6  ;;  %v11911_v42 = vpack.c.bf16 %v2615_v51, %v2613_v32  ;;  %v14031_v6 = vld [vmem:[#allocation22_spill] sm:$0xff]  ;;  %v14034_v51 = vld [vmem:[#allocation5_spill] sm:$0xff] }
 0x1b4   : > { %9483 = vmatmul.mubr.msk.bf16.gmra.mxu1 %vm332_vm3, %v11893_v60  ;;  %9602 = vmatprep.mubr.msk.bf16.mxu0 %vm332_vm3, %v14030_v1  ;;  %v9905_v1 = vld [vmem:[%s13907_s3 + $0x30] sm:$0xff]  }
 0x1b5   : > { %9486 = vmatprep.mubr.msk.bf16.mxu1 %vm332_vm3, %v11895_v31  ;;  %v14033_v32 = vld [vmem:[#allocation6_spill] sm:$0xff] }
 0x1b6   : > { %9639 = vmatpush3.bf16.msra.mxu0 %v9902_v0  ;;  %v14032_v0 = vld [vmem:[#allocation23_spill] sm:$0xff]  ;;  %v14035_v40 = vpack.c.bf16 %v14033_v32, %v14034_v51 }
 0x1b7   : > { %9640 = vmatprep.subr.bf16.mxu0 %v9904_v26  ;;  %v14038_v51 = vld [vmem:[#allocation7_spill] sm:$0xff] }
 0x1ba   : > { %9641 = vmatpush3.bf16.msra.mxu0 %v9904_v26  ;;  %v10157_v26 = vld [vmem:[#allocation2 + $0xa8] sm:$0xff] }
 0x1bb   : > { %9682 = vmatprep.subr.bf16.mxu0 %v9907_v15  ;;  %9603 = vmatmul.mubr.msk.bf16.gmra.mxu0 %vm332_vm3, %v14031_v6  ;;  %v4132_v16 = vpack.c.bf16 %v10158_v41, %v10157_v26  ;;  %v10159_v6 = vld [vmem:[#allocation2 + $0x128] sm:$0xff]  ;;  %v9911_v26 = vld [vmem:[%s13907_s3 + $0x58] sm:$0xff]  }
 0x1bc   : > { %9487 = vmatmul.mubr.msk.bf16.gmra.mxu1 %vm332_vm3, %v11911_v42  ;;  %9606 = vmatprep.mubr.msk.bf16.mxu0 %vm332_vm3, %v14032_v0  ;;  %v10160_v0 = vld [vmem:[#allocation2 + $0x148] sm:$0xff] }
 0x1bd   : > { %9522 = vmatprep.mubr.msk.bf16.mxu1 %vm332_vm3, %v4130_v57  ;;  %v9906_v57 = vld [vmem:[%s13907_s3 + $0x28] sm:$0xff]   ;;  %v4134_v32 = vpack.c.bf16 %v10160_v0, %v10159_v6 }
 0x1be   : > { %v9910_v41 = vld [vmem:[%s13907_s3 + $0xa8] sm:$0xff]  }
 0x1c3   : > { %9607 = vmatmul.mubr.msk.bf16.gmra.mxu0 %vm332_vm3, %v14036_v25  ;;  %v9908_v25 = vld [vmem:[%s13907_s3 + $0x20] sm:$0xff]  }
 0x1c4   : > { %9523 = vmatmul.mubr.msk.bf16.vlgmr.msra.gmra.mxu1 %vm332_vm3, %v14035_v40  ;;  %9642 = vmatprep.mubr.msk.bf16.mxu0 %vm332_vm3, %v11840_v11 }
 0x1c5   : > { %9563 = vmatpush3.bf16.msra.mxu1 %v9903_v7  ;;  %9526 = vmatprep.mubr.msk.bf16.mxu1 %vm332_vm3, %v4132_v16  ;;  %v14037_v7 = vld [vmem:[#allocation8_spill] sm:$0xff]  ;;  %v9909_v16 = vld [vmem:[%s13907_s3 + $0xb0] sm:$0xff]  }
 0x1c6   : > { %9564 = vmatprep.subr.bf16.mxu1 %v9905_v1  ;;  %v14039_v40 = vpack.c.bf16 %v14037_v7, %v14038_v51  ;;  %v9912_v51 = vld [vmem:[%s13907_s3 + $0xa0] sm:$0xff]  }
 0x1c9   : > { %9565 = vmatpush3.bf16.msra.mxu1 %v9905_v1 }
 0x1ca   : > { %9566 = vmatprep.subr.bf16.mxu1 %v9906_v57  ;;  %v11945_v11 = vpop.f32.mrf.mxu0 }
 0x1cb   : > { %9643 = vmatmul.mubr.msk.bf16.vlgmr.msra.gmra.mxu0 %vm332_vm3, %v11849_v10 }
 0x1cc   : > { %9527 = vmatmul.mubr.msk.bf16.gmra.mxu1 %vm332_vm3, %v14039_v40  ;;  %9646 = vmatprep.mubr.msk.bf16.mxu0 %vm332_vm3, %v11858_v33  ;;  %v11952_v1 = vpop.f32.mrf.mxu0  ;;  %v10161_v33 = vld [vmem:[#allocation2 + $0x1a8] sm:$0xff] }
 0x1cd   : > { %9530 = vmatprep.mubr.msk.bf16.mxu1 %vm332_vm3, %v4134_v32  ;;  %9567 = vmatpush3.bf16.msra.mxu1 %v9906_v57  ;;  %v10162_v57 = vld [vmem:[#allocation2 + $0x1c8] sm:$0xff] }
 0x1ce   : > { %9683 = vmatpush3.bf16.msra.mxu0 %v9907_v15  ;;  %9568 = vmatprep.subr.bf16.mxu1 %v9908_v25  ;;  %v11960_v10 = vpop.f32.mrf.mxu0  ;;  %v4136_v0 = vpack.c.bf16 %v10162_v57, %v10161_v33  ;;  %v14040_v15 = vld [vmem:[#allocation11_spill] sm:$0xff]  ;;  %v14041_v32 = vld [vmem:[#allocation10_spill] sm:$0xff] }
 0x1cf   : > { %9684 = vmatprep.subr.bf16.mxu0 %v9909_v16  ;;  %v14042_v7 = vpack.c.bf16 %v14040_v15, %v14041_v32  ;;  %v11980_v33 = vld [vmem:[#allocation2 + $0x468] sm:$0xff]  ;;  %v9915_v57 = vld [vmem:[%s13907_s3 + $0xf8] sm:$0xff]  }
 0x1d0   : > { %v11962_v6 = vpop.f32.mrf.mxu0  ;;  %v2582_v15 = vld [vmem:[#allocation2 + $0x208] sm:$0xff] }
 0x1d1   : > { %9569 = vmatpush3.bf16.msra.mxu1 %v9908_v25 }
 0x1d2   : > { %9685 = vmatpush3.bf16.msra.mxu0 %v9909_v16  ;;  %9610 = vmatprep.subr.bf16.mxu1 %v9911_v26  ;;  %v11971_v40 = vpop.f32.mrf.mxu0  ;;  %v2618_v16 = vld [vmem:[#allocation2 + $0x448] sm:$0xff] }
 0x1d3   : > { %9686 = vmatprep.subr.bf16.mxu0 %v9910_v41  ;;  %9647 = vmatmul.mubr.msk.bf16.gmra.mxu0 %vm332_vm3, %v11869_v23  ;;  %v10163_v23 = vld [vmem:[#allocation2 + $0x1e8] sm:$0xff] }
 0x1d4   : > { %9531 = vmatmul.mubr.msk.bf16.gmra.mxu1 %vm332_vm3, %v14042_v7  ;;  %9650 = vmatprep.mubr.msk.bf16.mxu0 %vm332_vm3, %v11871_v24  ;;  %v11978_v25 = vpop.f32.mrf.mxu0  ;;  %v4137_v7 = vpack.c.bf16 %v2582_v15, %v10163_v23  ;;  %v4582_v24 = vpack.c.bf16 %v11980_v33, %v2618_v16  ;;  %v12000_v15 = vld [vmem:[#allocation2 + $0x488] sm:$0xff] }
 0x1d5   : > { %9534 = vmatprep.mubr.msk.bf16.mxu1 %vm332_vm3, %v4136_v0  ;;  %v12002_v23 = vld [vmem:[#allocation2 + $0x4a8] sm:$0xff] }
 0x1d6   : > { %9687 = vmatpush3.bf16.msra.mxu0 %v9910_v41  ;;  %v11985_v32 = vpop.f32.mrf.mxu0  ;;  %v12006_v16 = vld [vmem:[#allocation2 + $0x4c8] sm:$0xff] }
 0x1d7   : > { %9688 = vmatprep.subr.bf16.mxu0 %v9912_v51 }
 0x1d8   : > { %v11987_v0 = vpop.f32.mrf.mxu0 }
 0x1da   : > { %9689 = vmatpush3.bf16.msra.mxu0 %v9912_v51  ;;  %v11991_v41 = vpop.f32.mrf.mxu0 }
 0x1db   : > { %9730 = vmatprep.subr.bf16.mxu0 %v9915_v57  ;;  %9651 = vmatmul.mubr.msk.bf16.gmra.mxu0 %vm332_vm3, %v11893_v60  ;;  %v4583_v60 = vpack.c.bf16 %v12002_v23, %v12000_v15 }
 0x1dc   : > { %9535 = vmatmul.mubr.msk.bf16.gmra.mxu1 %vm332_vm3, %v4137_v7  ;;  %9654 = vmatprep.mubr.msk.bf16.mxu0 %vm332_vm3, %v11895_v31  ;;  %v11998_v27 = vpop.f32.mrf.mxu0  ;;  %v12008_v7 = vld [vmem:[#allocation2 + $0x4e8] sm:$0xff]  ;;  %v9913_v31 = vld [vmem:[%s13907_s3 + $0x50] sm:$0xff]  }
 0x1dd   : > { %9570 = vmatprep.mubr.msk.bf16.mxu1 %vm332_vm3, %v4582_v24  ;;  %v14043_v24 = vld [vmem:[#allocation26_spill] sm:$0xff]  ;;  %v4584_v3 = vpack.c.bf16 %v12008_v7, %v12006_v16 }
 0x1de   : > { %v12004_v51 = vpop.f32.mrf.mxu0  ;;  %v5363_v56 = vpack.c.bf16 %v14043_v24, %v11449_v45  ;;  %v12035_v24 = vld [vmem:[#allocation2 + $0x528] sm:$0xff] }
 0x1e0   : > { %v12012_v52 = vpop.f32.mrf.mxu0 }
 0x1e2   : > { %v12022_v48 = vpop.f32.mrf.mxu0 }
 0x1e3   : > { %9655 = vmatmul.mubr.msk.bf16.gmra.mxu0 %vm332_vm3, %v11911_v42 }
 0x1e4   : > { %9571 = vmatmul.mubr.msk.bf16.vlgmr.msra.gmra.mxu1 %vm332_vm3, %v4583_v60  ;;  %9690 = vmatprep.mubr.msk.bf16.mxu0 %vm332_vm3, %v5363_v56  ;;  %v12031_v45 = vpop.f32.mrf.mxu0  ;;  %v12033_v60 = vld [vmem:[#allocation2 + $0x508] sm:$0xff] }
 0x1e5   : > { %9611 = vmatpush3.bf16.msra.mxu1 %v9911_v26  ;;  %9574 = vmatprep.mubr.msk.bf16.mxu1 %vm332_vm3, %v4584_v3  ;;  %v4585_v3 = vpack.c.bf16 %v12035_v24, %v12033_v60  ;;  %v5364_v26 = vpack.c.bf16 %v11499_v5, %v11481_v34  ;;  %v14045_v34 = vpack.c.bf16 %v11557_v55, %v11547_v63  ;;  %v9918_v63 = vld [vmem:[%s13907_s3 + $0xe8] sm:$0xff]  }
 0x1e6   : > { %9612 = vmatprep.subr.bf16.mxu1 %v9913_v31  ;;  %v12041_v42 = vpop.f32.mrf.mxu0 }
 0x1e8   : > { %v12045_v56 = vpop.f32.mrf.mxu0 }
 0x1e9   : > { %9613 = vmatpush3.bf16.msra.mxu1 %v9913_v31  ;;  %14044 = vst [vmem:[#allocation13_spill] sm:$0xff] %v12045_v56  ;;  %v9917_v31 = vld [vmem:[%s13907_s3 + $0xf0] sm:$0xff]  }
 0x1ea   : > { %9614 = vmatprep.subr.bf16.mxu1 %v9914_v21  ;;  %v12058_v36 = vpop.f32.mrf.mxu0 }
 0x1eb   : > { %9691 = vmatmul.mubr.msk.bf16.vlgmr.msra.gmra.mxu0 %vm332_vm3, %v5364_v26  ;;  %v9919_v26 = vld [vmem:[%s13907_s3 + $0x98] sm:$0xff]  }
 0x1ec   : > { %9575 = vmatmul.mubr.msk.bf16.gmra.mxu1 %vm332_vm3, %v4585_v3  ;;  %9694 = vmatprep.mubr.msk.bf16.mxu0 %vm332_vm3, %v14045_v34  ;;  %v12066_v5 = vpop.f32.mrf.mxu0  ;;  %v12070_v3 = vld [vmem:[#allocation2 + $0x5a8] sm:$0xff] }
 0x1ed   : > { %9578 = vmatprep.mubr.msk.bf16.mxu1 %vm332_vm3, %v4586_v13  ;;  %9615 = vmatpush3.bf16.msra.mxu1 %v9914_v21  ;;  %v12077_v13 = vld [vmem:[#allocation2 + $0x5e8] sm:$0xff]  ;;  %v4587_v21 = vpack.c.bf16 %v12070_v3, %v12068_v35 }
 0x1ee   : > { %9731 = vmatpush3.bf16.msra.mxu0 %v9915_v57  ;;  %9616 = vmatprep.subr.bf16.mxu1 %v9916_v47  ;;  %v12082_v55 = vpop.f32.mrf.mxu0  ;;  %v4588_v34 = vpack.c.bf16 %v12077_v13, %v12075_v59 }
 0x1ef   : > { %9732 = vmatprep.subr.bf16.mxu0 %v9917_v31 }
 0x1f0   : > { %v12086_v57 = vpop.f32.mrf.mxu0 }
 0x1f1   : > { %9617 = vmatpush3.bf16.msra.mxu1 %v9916_v47  ;;  %v14047_v47 = vpack.c.bf16 %v11707_v29, %v11705_v12  ;;  %v10164_v29 = vld [vmem:[#allocation2 + $0x668] sm:$0xff] }
 0x1f2   : > { %9733 = vmatpush3.bf16.msra.mxu0 %v9917_v31  ;;  %9658 = vmatprep.subr.bf16.mxu1 %v9919_v26  ;;  %v12094_v22 = vpop.f32.mrf.mxu0 }
 0x1f3   : > { %9734 = vmatprep.subr.bf16.mxu0 %v9918_v63  ;;  %9695 = vmatmul.mubr.msk.bf16.gmra.mxu0 %vm332_vm3, %v14046_v44  ;;  %v12120_v44 = vld [vmem:[#allocation2 + $0x688] sm:$0xff] }
 0x1f4   : > { %9579 = vmatmul.mubr.msk.bf16.gmra.mxu1 %vm332_vm3, %v4587_v21  ;;  %9698 = vmatprep.mubr.msk.bf16.mxu0 %vm332_vm3, %v14047_v47  ;;  %v12105_v31 = vpop.f32.mrf.mxu0  ;;  %v12107_v21 = vld [vmem:[#allocation2 + $0x608] sm:$0xff]  ;;  %v14048_v47 = vpack.c.bf16 %v11762_v43, %v11745_v62 }
 0x1f5   : > { %9582 = vmatprep.mubr.msk.bf16.mxu1 %vm332_vm3, %v4588_v34  ;;  %v4589_v61 = vpack.c.bf16 %v12109_v2, %v12107_v21  ;;  %v4864_v34 = vpack.c.bf16 %v12120_v44, %v10164_v29  ;;  %v9921_v29 = vld [vmem:[%s13907_s3 + $0x90] sm:$0xff]  }
 0x1f6   : > { %9735 = vmatpush3.bf16.msra.mxu0 %v9918_v63  ;;  %v12111_v30 = vpop.f32.mrf.mxu0 }
 0x1f7   : > { %9736 = vmatprep.subr.bf16.mxu0 %v9920_v53 }
 0x1f8   : > { %v12118_v12 = vpop.f32.mrf.mxu0 }
 0x1fa   : > { %9737 = vmatpush3.bf16.msra.mxu0 %v9920_v53  ;;  %v12124_v63 = vpop.f32.mrf.mxu0 }
 0x1fb   : > { %6346 = vmatprep.subr.bf16.mxu0 %v9934_v46  ;;  %9699 = vmatmul.mubr.msk.bf16.gmra.mxu0 %vm332_vm3, %v14048_v47  ;;  %v12141_v46 = vld [vmem:[#allocation2 + $0x6c8] sm:$0xff] }
 0x1fc   : > { %9583 = vmatmul.mubr.msk.bf16.gmra.mxu1 %vm332_vm3, %v4589_v61  ;;  %9702 = vmatprep.mubr.msk.bf16.mxu0 %vm332_vm3, %v14049_v8  ;;  %v12135_v56 = vpop.f32.mrf.mxu0  ;;  %v12139_v61 = vld [vmem:[#allocation2 + $0x6a8] sm:$0xff]  ;;  %14050 = vst [vmem:[#allocation16_spill] sm:$0xff] %v12141_v46  ;;  %v5685_v8 = vpack.c.bf16 %v12000_v15, %v11980_v33 }
 0x1fd   : > { %9618 = vmatprep.mubr.msk.bf16.mxu1 %vm332_vm3, %v4864_v34  ;;  %v4865_v62 = vpack.c.bf16 %v12141_v46, %v12139_v61  ;;  %v4866_v34 = vpack.c.bf16 %v12155_v50, %v12153_v20  ;;  %v14053_v46 = vpack.c.bf16 %v11766_v19, %v11749_v14  ;;  %v9922_v33 = vld [vmem:[%s13907_s3 + $0x88] sm:$0xff]   ;;  %v12207_v20 = vld [vmem:[%s13907_s3 + $0xd8] sm:$0xff]  }
 0x1fe   : > { %v12137_v53 = vpop.f32.mrf.mxu0  ;;  %v12174_v50 = vld [vmem:[#allocation2 + $0x728] sm:$0xff] }
 0x1ff   : > { %14054 = vst [vmem:[#allocation20_spill] sm:$0xff] %v12174_v50  ;;  %v10171_v14 = vld [vmem:[#allocation2 + $0x748] sm:$0xff] }
 0x200   : > { %v12145_v43 = vpop.f32.mrf.mxu0  ;;  %v4867_v19 = vpack.c.bf16 %v10171_v14, %v12174_v50  ;;  %v9937_v14 = vld [vmem:[%s13909_s5 + $0xe4] ss:$8 sps:$4 sm:$0xff]   ;;  %v14055_v50 = vpack.c.bf16 %v11439_v37, %v11404_v17 }
 0x202   : > { %v12159_v47 = vpop.f32.mrf.mxu0 }
 0x203   : > { %9703 = vmatmul.mubr.msk.bf16.gmra.mxu0 %vm332_vm3, %v14053_v46 }
 0x204   : > { %9619 = vmatmul.mubr.msk.bf16.vlgmr.msra.gmra.mxu1 %vm332_vm3, %v4865_v62  ;;  %9738 = vmatprep.mubr.msk.bf16.mxu0 %vm332_vm3, %v5685_v8  ;;  %v12170_v15 = vpop.f32.mrf.mxu0  ;;  %v9923_v8 = vld [vmem:[%s13907_s3 + $0x80] sm:$0xff]  }
 0x205   : > { %9659 = vmatpush3.bf16.msra.mxu1 %v9919_v26  ;;  %9622 = vmatprep.mubr.msk.bf16.mxu1 %vm332_vm3, %v4866_v34  ;;  %v5686_v26 = vpack.c.bf16 %v12006_v16, %v12002_v23  ;;  %v9932_v34 = vld [vmem:[%s13909_s5 + $0xf0] ss:$8 sps:$4 sm:$0xff]  }
 0x206   : > { %9660 = vmatprep.subr.bf16.mxu1 %v9921_v29  ;;  %v12172_v62 = vpop.f32.mrf.mxu0 }
 0x208   : > { %v12179_v46 = vpop.f32.mrf.mxu0 }
 0x209   : > { %9661 = vmatpush3.bf16.msra.mxu1 %v9921_v29  ;;  %v5687_v29 = vpack.c.bf16 %v12033_v60, %v12008_v7 }
 0x20a   : > { %9662 = vmatprep.subr.bf16.mxu1 %v9922_v33  ;;  %v12193_v23 = vpop.f32.mrf.mxu0  ;;  %v9380_v16 = vpop.f32.mrf.mxu1 }
 0x20b   : > { %9739 = vmatmul.mubr.msk.bf16.vlgmr.msra.gmra.mxu0 %vm332_vm3, %v5686_v26  ;;  %v3084_v7 = vadd.f32 %v9380_v16, %v11945_v11  ;;  %v9935_v26 = vld [vmem:[%s13909_s5 + $0xe0] ss:$8 sps:$4 sm:$0xff]   ;;  %v9940_v11 = vld [vmem:[%s13909_s5 + $0xd4] ss:$8 sps:$4 sm:$0xff]  }
 0x20c   : > { %9623 = vmatmul.mubr.msk.bf16.gmra.mxu1 %vm332_vm3, %v4867_v19  ;;  %9742 = vmatprep.mubr.msk.bf16.mxu0 %vm332_vm3, %v5687_v29  ;;  %v12202_v60 = vpop.f32.mrf.mxu0  ;;  %v3075_v19 = vpop.f32.mrf.mxu1 }
 0x20d   : > { %9626 = vmatprep.mubr.msk.bf16.mxu1 %vm332_vm3, %v14055_v50  ;;  %9663 = vmatpush3.bf16.msra.mxu1 %v9922_v33  ;;  %v3076_v50 = vadd.f32 %v3075_v19, %v11952_v1  ;;  %v12214_v29 = vadd.f32 %v12058_v36, %v3084_v7  ;;  %v5688_v1 = vpack.c.bf16 %v12037_v18, %v12035_v24  ;;  %v9943_v24 = vld [vmem:[%s13909_s5 + $0xc4] ss:$8 sps:$4 sm:$0xff]  }
 0x20e   : > { %9664 = vmatprep.subr.bf16.mxu1 %v9923_v8  ;;  %6347 = vmatpush1.bf16.msra.mxu0 %v9932_v34  ;;  %v12219_v33 = vpop.f32.mrf.mxu0  ;;  %v9381_v16 = vpop.f32.mrf.mxu1 }
 0x20f   : > { %6348 = vmatprep.subr.bf16.mxu0 %v9937_v14  ;;  %v3087_v37 = vadd.f32 %v9381_v16, %v11960_v10  ;;  %v12223_v34 = vadd.f32 %v12066_v5, %v3076_v50  ;;  %v9938_v14 = vld [vmem:[%s13909_s5 + $0xd0] ss:$8 sps:$4 sm:$0xff]   ;;  %v5689_v10 = vpack.c.bf16 %v12068_v35, %v12039_v4  ;;  %v14056_v5 = vpack.c.bf16 %v11497_v38, %v11468_v58  ;;  %v9946_v50 = vld [vmem:[%s13909_s5 + $0xb4] ss:$8 sps:$4 sm:$0xff]  }
 0x210   : > { %v12227_v19 = vpop.f32.mrf.mxu0  ;;  %v3078_v36 = vpop.f32.mrf.mxu1  ;;  %v14057_v4 = vpack.c.bf16 %v11561_v39, %v11528_v54 }
 0x211   : > { %9665 = vmatpush3.bf16.msra.mxu1 %v9923_v8  ;;  %v3079_v7 = vadd.f32 %v3078_v36, %v11962_v6  ;;  %v12241_v18 = vadd.f32 %v12082_v55, %v3087_v37  ;;  %v9941_v6 = vld [vmem:[%s13909_s5 + $0xc0] ss:$8 sps:$4 sm:$0xff]   ;;  %v2619_v55 = vld [vmem:[#allocation2 + $0x458] sm:$0xff] }
 0x212   : > { %9706 = vmatprep.subr.bf16.mxu1 %v12207_v20  ;;  %6349 = vmatpush1.bf16.msra.mxu0 %v9935_v26  ;;  %v12246_v8 = vpop.f32.mrf.mxu0  ;;  %v2621_v26 = vld [vmem:[#allocation2 + $0x478] sm:$0xff] }
 0x213   : > { %6350 = vmatprep.subr.bf16.mxu0 %v9940_v11  ;;  %9743 = vmatmul.mubr.msk.bf16.gmra.mxu0 %vm332_vm3, %v5688_v1  ;;  %v12255_v35 = vadd.f32 %v12086_v57, %v3079_v7  ;;  %v5690_v57 = vpack.c.bf16 %v12075_v59, %v12070_v3  ;;  %v5186_v1 = vpack.c.bf16 %v2621_v26, %v2619_v55  ;;  %v9944_v36 = vld [vmem:[%s13909_s5 + $0xb0] ss:$8 sps:$4 sm:$0xff]   ;;  %v9949_v59 = vld [vmem:[%s13909_s5 + $0xa4] ss:$8 sps:$4 sm:$0xff]   ;;  %v9947_v55 = vld [vmem:[%s13909_s5 + $0xa0] ss:$8 sps:$4 sm:$0xff]  }
 0x214   : > { %9627 = vmatmul.mubr.msk.bf16.gmra.mxu1 %vm332_vm3, %v14056_v5  ;;  %9746 = vmatprep.mubr.msk.bf16.mxu0 %vm332_vm3, %v5689_v10  ;;  %v12257_v37 = vpop.f32.mrf.mxu0  ;;  %v14059_v7 = vpack.c.bf16 %v11644_v28, %v11589_v49 }
 0x215   : > { %9630 = vmatprep.mubr.msk.bf16.mxu1 %vm332_vm3, %v14057_v4  ;;  %v2623_v4 = vld [vmem:[#allocation2 + $0x498] sm:$0xff] }
 0x216   : > { %6351 = vmatpush1.bf16.msra.mxu0 %v9938_v14  ;;  %v12265_v11 = vpop.f32.mrf.mxu0  ;;  %v5691_v14 = vpack.c.bf16 %v12107_v21, %v12077_v13  ;;  %v13946_v21 = vmov 0  }
 0x217   : > { %6352 = vmatprep.subr.bf16.mxu0 %v9943_v24  ;;  %9791 = vset.pattern.permute.xlu0 %v13946_v21 }
 0x218   : > { %v12269_v16 = vpop.f32.mrf.mxu0 }
 0x219   : > { %14058 = vst [vmem:[#allocation22_spill] sm:$0xff] %v12269_v16  ;;  %v9950_v16 = vld [vmem:[%s13909_s5 + $0x90] ss:$8 sps:$4 sm:$0xff]  }
 0x21a   : > { %6353 = vmatpush1.bf16.msra.mxu0 %v9941_v6  ;;  %v9384_v10 = vpop.f32.mrf.mxu1  ;;  %v2625_v6 = vld [vmem:[#allocation2 + $0x4b8] sm:$0xff] }
 0x21b   : > { %6354 = vmatprep.subr.bf16.mxu0 %v9946_v50  ;;  %v12283_v3 = vpop.f32.mrf.mxu0  ;;  %9747 = vmatmul.mubr.msk.bf16.gmra.mxu0 %vm332_vm3, %v5690_v57  ;;  %v3100_v13 = vadd.f32 %v9384_v10, %v11971_v40  ;;  %v2650_v50 = vld [vmem:[#allocation2 + $0x648] sm:$0xff]  ;;  %v9952_v40 = vld [vmem:[%s13909_s5 + $0x94] ss:$8 sps:$4 sm:$0xff]   ;;  %v5187_v21 = vpack.c.bf16 %v2625_v6, %v2623_v4 }
 0x21c   : > { %9631 = vmatmul.mubr.msk.bf16.gmra.mxu1 %vm332_vm3, %v14059_v7  ;;  %9750 = vmatprep.mubr.msk.bf16.mxu0 %vm332_vm3, %v5691_v14  ;;  %v3091_v24 = vpop.f32.mrf.mxu1  ;;  %v2627_v7 = vld [vmem:[#allocation2 + $0x4d8] sm:$0xff] }
 0x21d   : > { %9666 = vmatprep.mubr.msk.bf16.mxu1 %vm332_vm3, %v5186_v1  ;;  %v12290_v5 = vpop.f32.mrf.mxu0  ;;  %v3092_v26 = vadd.f32 %v3091_v24, %v11978_v25  ;;  %v12297_v57 = vadd.f32 %v12094_v22, %v3100_v13  ;;  %v9925_v25 = vld [vmem:[%s13907_s3 + $0xd0] sm:$0xff]   ;;  %v5692_v13 = vpack.c.bf16 %v2650_v50, %v12109_v2  ;;  %v9953_v50 = vld [vmem:[%s13909_s5 + $0x80] ss:$8 sps:$4 sm:$0xff]  }
 0x21e   : > { %6355 = vmatpush1.bf16.msra.mxu0 %v9944_v36  ;;  %v9385_v14 = vpop.f32.mrf.mxu1  ;;  %v2629_v36 = vld [vmem:[#allocation2 + $0x4f8] sm:$0xff] }
 0x21f   : > { %6356 = vmatprep.subr.bf16.mxu0 %v9949_v59  ;;  %v12302_v1 = vpop.f32.mrf.mxu0  ;;  %v3103_v10 = vadd.f32 %v9385_v14, %v11985_v32  ;;  %v12309_v22 = vadd.f32 %v12105_v31, %v3092_v26  ;;  %v5188_v4 = vpack.c.bf16 %v2629_v36, %v2627_v7  ;;  %v9955_v31 = vld [vmem:[%s13909_s5 + $0x84] ss:$8 sps:$4 sm:$0xff]   ;;  %v2633_v26 = vld [vmem:[#allocation2 + $0x538] sm:$0xff] }
 0x220   : > { %v3094_v24 = vpop.f32.mrf.mxu1  ;;  %v2637_v14 = vld [vmem:[#allocation2 + $0x578] sm:$0xff] }
 0x221   : > { %v12311_v59 = vpop.f32.mrf.mxu0  ;;  %v3095_v32 = vadd.f32 %v3094_v24, %v11987_v0  ;;  %v12320_v6 = vadd.f32 %v12111_v30, %v3103_v10  ;;  %v9926_v0 = vld [vmem:[%s13907_s3 + $0xc8] sm:$0xff]  }
 0x222   : > { %14060 = vst [vmem:[#allocation23_spill] sm:$0xff] %v12311_v59  ;;  %6357 = vmatpush1.bf16.msra.mxu0 %v9947_v55  ;;  %v2631_v55 = vld [vmem:[#allocation2 + $0x518] sm:$0xff] }
 0x223   : > { %6358 = vmatprep.subr.bf16.mxu0 %v9952_v40  ;;  %v12325_v2 = vpop.f32.mrf.mxu0  ;;  %9751 = vmatmul.mubr.msk.bf16.gmra.mxu0 %vm332_vm3, %v5692_v13  ;;  %v12334_v30 = vadd.f32 %v12118_v12, %v3095_v32  ;;  %v2635_v40 = vld [vmem:[#allocation2 + $0x558] sm:$0xff]  ;;  %v5189_v36 = vpack.c.bf16 %v2633_v26, %v2631_v55  ;;  %v9927_v12 = vld [vmem:[%s13907_s3 + $0xc0] sm:$0xff]  }
 0x224   : > { %9667 = vmatmul.mubr.msk.bf16.vlgmr.msra.gmra.mxu1 %vm332_vm3, %v5187_v21  ;;  %v9928_v32 = vld [vmem:[%s13907_s3 + $0x118] sm:$0xff]  }
 0x225   : > { %9707 = vmatpush3.bf16.msra.mxu1 %v12207_v20  ;;  %9670 = vmatprep.mubr.msk.bf16.mxu1 %vm332_vm3, %v5188_v4  ;;  %14061 = vst [vmem:[#allocation6_spill] sm:$0xff] %v12334_v30  ;;  %v12336_v21 = vpop.f32.mrf.mxu0  ;;  %v14062_v20 = vmov 0   ;;  %v2639_v55 = vld [vmem:[#allocation2 + $0x598] sm:$0xff] }
 0x226   : > { %9708 = vmatprep.subr.bf16.mxu1 %v9925_v25  ;;  %6359 = vmatpush1.bf16.msra.mxu0 %v9950_v16  ;;  %v5190_v16 = vpack.c.bf16 %v2637_v14, %v2635_v40  ;;  %v2641_v26 = vld [vmem:[#allocation2 + $0x5b8] sm:$0xff] }
 0x227   : > { %6378 = vmatprep.mubr.bf16.mxu0 %v14062_v20  ;;  %6360 = vmatprep.subr.bf16.mxu0 %v9955_v31  ;;  %v12342_v7 = vpop.f32.mrf.mxu0  ;;  %v2643_v40 = vld [vmem:[#allocation2 + $0x5d8] sm:$0xff] }
 0x228   : > { %v2645_v14 = vld [vmem:[#allocation2 + $0x5f8] sm:$0xff] }
 0x229   : > { %9709 = vmatpush3.bf16.msra.mxu1 %v9925_v25  ;;  %v12347_v10 = vpop.f32.mrf.mxu0 }
 0x22a   : > { %9710 = vmatprep.subr.bf16.mxu1 %v9926_v0  ;;  %14063 = vst [vmem:[#allocation5_spill] sm:$0xff] %v12347_v10  ;;  %6361 = vmatpush1.bf16.msra.mxu0 %v9953_v50  ;;  %v9388_v24 = vpop.f32.mrf.mxu1 }
 0x22b   : > { %v12350_v13 = vpop.f32.mrf.mxu0  ;;  %v3116_v25 = vadd.f32 %v9388_v24, %v11991_v41  ;;  %v5191_v24 = vpack.c.bf16 %v2641_v26, %v2639_v55  ;;  %v2649_v55 = vld [vmem:[#allocation2 + $0x638] sm:$0xff] }
 0x22c   : > { %9671 = vmatmul.mubr.msk.bf16.gmra.mxu1 %vm332_vm3, %v5189_v36  ;;  %v3107_v31 = vpop.f32.mrf.mxu1 }
 0x22d   : > { %9674 = vmatprep.mubr.msk.bf16.mxu1 %vm332_vm3, %v5190_v16  ;;  %9711 = vmatpush3.bf16.msra.mxu1 %v9926_v0  ;;  %v12357_v4 = vpop.f32.mrf.mxu0  ;;  %v3108_v50 = vadd.f32 %v3107_v31, %v11998_v27  ;;  %v12361_v36 = vadd.f32 %v12124_v63, %v3116_v25  ;;  %v5192_v27 = vpack.c.bf16 %v2645_v14, %v2643_v40 }
 0x22e   : > { %9712 = vmatprep.subr.bf16.mxu1 %v9927_v12  ;;  %v9389_v41 = vpop.f32.mrf.mxu1 }
 0x22f   : > { %v12363_v0 = vpop.f32.mrf.mxu0  ;;  %v3119_v16 = vadd.f32 %v9389_v41, %v12004_v51  ;;  %v12367_v10 = vadd.f32 %v12135_v56, %v3108_v50 }
 0x230   : > { %v3110_v30 = vpop.f32.mrf.mxu1 }
 0x231   : > { %9713 = vmatpush3.bf16.msra.mxu1 %v9927_v12  ;;  %v12369_v59 = vpop.f32.mrf.mxu0  ;;  %v3111_v31 = vadd.f32 %v3110_v30, %v12012_v52  ;;  %v12374_v63 = vadd.f32 %v12137_v53, %v3119_v16  ;;  %v2647_v12 = vld [vmem:[#allocation2 + $0x618] sm:$0xff] }
 0x232   : > { %9754 = vmatprep.subr.bf16.mxu1 %v9928_v32  ;;  %v5193_v50 = vpack.c.bf16 %v2649_v55, %v2647_v12 }
 0x233   : > { %v12376_v25 = vpop.f32.mrf.mxu0  ;;  %v12380_v51 = vadd.f32 %v12145_v43, %v3111_v31 }
 0x234   : > { %9675 = vmatmul.mubr.msk.bf16.gmra.mxu1 %vm332_vm3, %v5191_v24 }
 0x235   : > { %9678 = vmatprep.mubr.msk.bf16.mxu1 %vm332_vm3, %v5192_v27  ;;  %v12382_v56 = vpop.f32.mrf.mxu0 }
 0x237   : > { %v12384_v26 = vpop.f32.mrf.mxu0 }
 0x239   : > { %v12386_v52 = vpop.f32.mrf.mxu0 }
 0x23b   : > { %v12389_v53 = vpop.f32.mrf.mxu0 }
 0x23c   : > { %v9392_v30 = vpop.f32.mrf.mxu1  ;;  %9679 = vmatmul.mubr.msk.bf16.gmra.mxu1 %vm332_vm3, %v5193_v50  ;;  %v14066_v50 = vld [vmem:[#allocation13_spill] sm:$0xff] }
 0x23d   : > { %v3132_v40 = vadd.f32 %v9392_v30, %v12022_v48  ;;  %9714 = vmatprep.mubr.msk.bf16.mxu1 %vm332_vm3, %v10969_v9  ;;  %v12394_v14 = vpop.f32.mrf.mxu0  ;;  %v9929_v9 = vld [vmem:[%s13907_s3 + $0x110] sm:$0xff]  }
 0x23e   : > { %v3123_v43 = vpop.f32.mrf.mxu1 }
 0x23f   : > { %v3124_v41 = vadd.f32 %v3123_v43, %v12031_v45  ;;  %v12398_v16 = vadd.f32 %v12159_v47, %v3132_v40  ;;  %v12400_v27 = vpop.f32.mrf.mxu0  ;;  %v14067_v40 = vld [vmem:[#allocation9_spill] sm:$0xff]  ;;  %v14068_v43 = vld [vmem:[#allocation14_spill] sm:$0xff] }
 0x240   : > { %v9393_v24 = vpop.f32.mrf.mxu1  ;;  %14064 = vst [vmem:[#allocation24_spill] sm:$0xff] %v12400_v27  ;;  %v14072_v27 = vld [vmem:[#allocation15_spill] sm:$0xff] }
 0x241   : > { %v3135_v31 = vadd.f32 %v9393_v24, %v12041_v42  ;;  %v12404_v12 = vadd.f32 %v12170_v15, %v3124_v41  ;;  %v12409_v55 = vpop.f32.mrf.mxu0 }
 0x242   : > { %v3126_v48 = vpop.f32.mrf.mxu1  ;;  %14065 = vst [vmem:[#allocation8_spill] sm:$0xff] %v12409_v55 }
 0x243   : > { %v3127_v45 = vadd.f32 %v3126_v48, %v14066_v50  ;;  %v12413_v47 = vadd.f32 %v12172_v62, %v3135_v31  ;;  %v12417_v42 = vpop.f32.mrf.mxu0  ;;  %v9930_v62 = vld [vmem:[%s13907_s3 + $0x108] sm:$0xff]  }
 0x244   : > { %v9428_v30 = vpop.f32.mrf.mxu1  ;;  %9715 = vmatmul.mubr.msk.bf16.vlgmr.msra.gmra.mxu1 %vm332_vm3, %v14067_v40  ;;  %v9931_v40 = vld [vmem:[%s13907_s3 + $0x100] sm:$0xff]  }
 0x245   : > { %v3576_v15 = vadd.f32 %v9428_v30, %v12214_v29  ;;  %9755 = vmatpush3.bf16.msra.mxu1 %v9928_v32  ;;  %9718 = vmatprep.mubr.msk.bf16.mxu1 %vm332_vm3, %v14068_v43  ;;  %v12423_v41 = vadd.f32 %v12179_v46, %v3127_v45  ;;  %v12428_v31 = vpop.f32.mrf.mxu0  ;;  %v14070_v43 = vld [vmem:[#allocation12_spill] sm:$0xff] }
 0x246   : > { %v3511_v24 = vpop.f32.mrf.mxu1  ;;  %9756 = vmatprep.subr.bf16.mxu1 %v9929_v9 }
 0x247   : > { %v3574_v48 = vadd.f32 %v3511_v24, %v12223_v34  ;;  %v12432_v50 = vadd.f32 %v12193_v23, %v3576_v15  ;;  %v12434_v32 = vpop.f32.mrf.mxu0 }
 0x248   : > { %v9429_v29 = vpop.f32.mrf.mxu1 }
 0x249   : > { %v3577_v30 = vadd.f32 %v9429_v29, %v12241_v18  ;;  %9757 = vmatpush3.bf16.msra.mxu1 %v9929_v9  ;;  %v12438_v46 = vadd.f32 %v12202_v60, %v3574_v48  ;;  %v12445_v34 = vpop.f32.mrf.mxu0  ;;  %v14071_v9 = vld [vmem:[#allocation19_spill] sm:$0xff] }
 0x24a   : > { %v12440_v45 = vpop.f32.mrf.mxu1  ;;  %9758 = vmatprep.subr.bf16.mxu1 %v9930_v62  ;;  %14069 = vst [vmem:[#allocation7_spill] sm:$0xff] %v12445_v34 }
 0x24b   : > { %v12448_v23 = vadd.f32 %v12219_v33, %v3577_v30  ;;  %v12452_v18 = vpop.f32.mrf.mxu0 }
 0x24c   : > { %v9432_v15 = vpop.f32.mrf.mxu1  ;;  %9719 = vmatmul.mubr.msk.bf16.gmra.mxu1 %vm332_vm3, %v14070_v43 }
 0x24d   : > { %v3580_v60 = vadd.f32 %v9432_v15, %v12297_v57  ;;  %9722 = vmatprep.mubr.msk.bf16.mxu1 %vm332_vm3, %v14071_v9  ;;  %9759 = vmatpush3.bf16.msra.mxu1 %v9930_v62  ;;  %v12457_v48 = vpop.f32.mrf.mxu0 }
 0x24e   : > { %v3527_v24 = vpop.f32.mrf.mxu1  ;;  %9760 = vmatprep.subr.bf16.mxu1 %v9931_v40 }
 0x24f   : > { %v3578_v29 = vadd.f32 %v3527_v24, %v12309_v22  ;;  %v3758_v33 = vadd.f32 %v12246_v8, %v3580_v60  ;;  %v12461_v34 = vpop.f32.mrf.mxu0  ;;  %v14073_v60 = vld [vmem:[#allocation21_spill] sm:$0xff] }
 0x250   : > { %v9433_v30 = vpop.f32.mrf.mxu1 }
 0x251   : > { %v3581_v43 = vadd.f32 %v9433_v30, %v12320_v6  ;;  %9761 = vmatpush3.bf16.msra.mxu1 %v9931_v40  ;;  %v3756_v57 = vadd.f32 %v12257_v37, %v3578_v29  ;;  %v12467_v9 = vpop.f32.mrf.mxu0 }
 0x252   : > { %v12465_v15 = vpop.f32.mrf.mxu1 }
 0x253   : > { %v12470_v62 = vadd.f32 %v12265_v11, %v3581_v43  ;;  %v12474_v8 = vpop.f32.mrf.mxu0 }
 0x254   : > { %v9436_v55 = vpop.f32.mrf.mxu1  ;;  %9723 = vmatmul.mubr.msk.bf16.gmra.mxu1 %vm332_vm3, %v14072_v27 }
 0x255   : > { %v3584_v22 = vadd.f32 %v9436_v55, %v12361_v36  ;;  %9726 = vmatprep.mubr.msk.bf16.mxu1 %vm332_vm3, %v14073_v60  ;;  %v12479_v37 = vpop.f32.mrf.mxu0  ;;  %v5862_v55 = vpack.c.bf16 %v12139_v61, %v12120_v44 }
 0x256   : > { %v3543_v6 = vpop.f32.mrf.mxu1 }
 0x257   : > { %v3582_v40 = vadd.f32 %v3543_v6, %v12367_v10  ;;  %v3762_v24 = vadd.f32 %v12283_v3, %v3584_v22  ;;  %v12483_v29 = vpop.f32.mrf.mxu0  ;;  %v14076_v6 = vld [vmem:[#allocation29_spill] sm:$0xff] }
 0x258   : > { %v9437_v11 = vpop.f32.mrf.mxu1  ;;  %14074 = vst [vmem:[#allocation11_spill] sm:$0xff] %v12483_v29 }
 0x259   : > { %v3585_v30 = vadd.f32 %v9437_v11, %v12374_v63  ;;  %v3760_v27 = vadd.f32 %v12290_v5, %v3582_v40  ;;  %v12489_v36 = vpop.f32.mrf.mxu0 }
 0x25a   : > { %v12487_v43 = vpop.f32.mrf.mxu1  ;;  %14075 = vst [vmem:[#allocation10_spill] sm:$0xff] %v12489_v36 }
 0x25b   : > { %v12494_v60 = vadd.f32 %v12302_v1, %v3585_v30  ;;  %v12498_v3 = vpop.f32.mrf.mxu0 }
 0x25c   : > { %v9440_v10 = vpop.f32.mrf.mxu1  ;;  %9727 = vmatmul.mubr.msk.bf16.gmra.mxu1 %vm332_vm3, %v14076_v6  ;;  %14077 = vst [vmem:[#allocation26_spill] sm:$0xff] %v12498_v3  ;;  %v14079_v6 = vld [vmem:[#allocation16_spill] sm:$0xff]  ;;  %v14080_v3 = vld [vmem:[#allocation17_spill] sm:$0xff] }
 0x25d   : > { %v3588_v63 = vadd.f32 %v9440_v10, %v12398_v16  ;;  %9762 = vmatprep.mubr.msk.bf16.mxu1 %vm332_vm3, %v5862_v55  ;;  %v12502_v22 = vpop.f32.mrf.mxu0  ;;  %v5863_v36 = vpack.c.bf16 %v14080_v3, %v14079_v6  ;;  %v14081_v10 = vld [vmem:[#allocation18_spill] sm:$0xff] }
 0x25e   : > { %v3559_v5 = vpop.f32.mrf.mxu1  ;;  %14078 = vst [vmem:[#allocation13_spill] sm:$0xff] %v12502_v22  ;;  %v14082_v22 = vld [vmem:[#allocation20_spill] sm:$0xff] }
 0x25f   : > { %v3586_v40 = vadd.f32 %v3559_v5, %v12404_v12  ;;  %v3766_v44 = vadd.f32 %v12325_v2, %v3588_v63  ;;  %v12506_v1 = vpop.f32.mrf.mxu0  ;;  %v5864_v29 = vpack.c.bf16 %v14082_v22, %v14081_v10 }
 0x260   : > { %v9441_v61 = vpop.f32.mrf.mxu1 }
 0x261   : > { %v3589_v11 = vadd.f32 %v9441_v61, %v12413_v47  ;;  %v3764_v30 = vadd.f32 %v12336_v21, %v3586_v40  ;;  %v12514_v55 = vpop.f32.mrf.mxu0 }
 0x262   : > { %v12512_v16 = vpop.f32.mrf.mxu1 }
 0x263   : > { %v3767_v12 = vadd.f32 %v12342_v7, %v3589_v11  ;;  %v12520_v63 = vpop.f32.mrf.mxu0 }
 0x264   : > { %v9476_v2 = vpop.f32.mrf.mxu1  ;;  %9763 = vmatmul.mubr.msk.bf16.vlgmr.msra.gmra.mxu1 %vm332_vm3, %v5863_v36 }
 0x265   : > { %v3932_v47 = vadd.f32 %v9476_v2, %v12432_v50  ;;  %9766 = vmatprep.mubr.msk.bf16.mxu1 %vm332_vm3, %v5864_v29  ;;  %v12524_v3 = vpop.f32.mrf.mxu0  ;;  %v14085_v50 = vld [vmem:[#allocation25_spill] sm:$0xff] }
 0x266   : > { %v3867_v21 = vpop.f32.mrf.mxu1  ;;  %v14086_v10 = vpack.c.bf16 %v11404_v17, %v14085_v50 }
 0x267   : > { %v3930_v5 = vadd.f32 %v3867_v21, %v12438_v46  ;;  %v4116_v40 = vadd.f32 %v12350_v13, %v3932_v47  ;;  %v12528_v22 = vpop.f32.mrf.mxu0  ;;  %v14087_v46 = vld [vmem:[#allocation27_spill] sm:$0xff] }
 0x268   : > { %v9477_v61 = vpop.f32.mrf.mxu1  ;;  %14083 = vst [vmem:[#allocation9_spill] sm:$0xff] %v12528_v22  ;;  %v14088_v13 = vpack.c.bf16 %v11468_v58, %v14087_v46  ;;  %v14090_v58 = vpack.c.bf16 %v11528_v54, %v11497_v38 }
 0x269   : > { %v4114_v7 = vadd.f32 %v12357_v4, %v3930_v5  ;;  %v12531_v36 = vpop.f32.mrf.mxu0 }
 0x26a   : > { %v3870_v11 = vpop.f32.mrf.mxu1  ;;  %14084 = vst [vmem:[#allocation14_spill] sm:$0xff] %v12531_v36 }
 0x26b   : > { %v12537_v29 = vpop.f32.mrf.mxu0 }
 0x26c   : > { %v9480_v6 = vpop.f32.mrf.mxu1  ;;  %9767 = vmatmul.mubr.msk.bf16.gmra.mxu1 %vm332_vm3, %v14086_v10 }
 0x26d   : > { %v3936_v2 = vadd.f32 %v9480_v6, %v3758_v33  ;;  %9770 = vmatprep.mubr.msk.bf16.mxu1 %vm332_vm3, %v14088_v13  ;;  %v12543_v21 = vpop.f32.mrf.mxu0 }
 0x26e   : > { %v3883_v47 = vpop.f32.mrf.mxu1 }
 0x26f   : > { %v3934_v4 = vadd.f32 %v3883_v47, %v3756_v57  ;;  %v12546_v5 = vadd.f32 %v12376_v25, %v3936_v2  ;;  %v12548_v22 = vpop.f32.mrf.mxu0  ;;  %v14091_v25 = vpack.c.bf16 %v11589_v49, %v11561_v39  ;;  %v14093_v49 = vld [vmem:[#allocation28_spill] sm:$0xff] }
 0x270   : > { %v9481_v36 = vpop.f32.mrf.mxu1 }
 0x271   : > { %v12551_v17 = vadd.f32 %v12382_v56, %v3934_v4  ;;  %v12553_v33 = vpop.f32.mrf.mxu0 }
 0x272   : > { %v3886_v50 = vpop.f32.mrf.mxu1  ;;  %14089 = vst [vmem:[#allocation12_spill] sm:$0xff] %v12553_v33  ;;  %v14098_v33 = vld [vmem:[#allocation22_spill] sm:$0xff] }
 0x273   : > { %v12559_v10 = vpop.f32.mrf.mxu0 }
 0x274   : > { %v9484_v6 = vpop.f32.mrf.mxu1  ;;  %9771 = vmatmul.mubr.msk.bf16.gmra.mxu1 %vm332_vm3, %v14090_v58 }
 0x275   : > { %v3940_v57 = vadd.f32 %v9484_v6, %v3762_v24  ;;  %9774 = vmatprep.mubr.msk.bf16.mxu1 %vm332_vm3, %v14091_v25  ;;  %v12565_v56 = vpop.f32.mrf.mxu0  ;;  %v14094_v6 = vpack.c.bf16 %v14093_v49, %v11644_v28 }
 0x276   : > { %v3899_v2 = vpop.f32.mrf.mxu1 }
 0x277   : > { %v3938_v46 = vadd.f32 %v3899_v2, %v3760_v27  ;;  %v12568_v13 = vadd.f32 %v12389_v53, %v3940_v57  ;;  %v12572_v38 = vpop.f32.mrf.mxu0  ;;  %v3575_v2 = vadd.f32 %v12440_v45, %v12255_v35 }
 0x278   : > { %v12570_v47 = vpop.f32.mrf.mxu1 }
 0x279   : > { %v12575_v54 = vadd.f32 %v12394_v14, %v3938_v46  ;;  %v12579_v4 = vpop.f32.mrf.mxu0 }
 0x27a   : > { %v12577_v24 = vpop.f32.mrf.mxu1  ;;  %14092 = vst [vmem:[#allocation19_spill] sm:$0xff] %v12579_v4 }
 0x27b   : > { %v12585_v27 = vpop.f32.mrf.mxu0 }
 0x27c   : > { %v9488_v39 = vpop.f32.mrf.mxu1  ;;  %9775 = vmatmul.mubr.msk.bf16.gmra.mxu1 %vm332_vm3, %v14094_v6 }
 0x27d   : > { %v3944_v53 = vadd.f32 %v9488_v39, %v3766_v44  ;;  %6531 = vmatprep.mubr.bf16.mxu1 %v14062_v20  ;;  %v12588_v57 = vpop.f32.mrf.mxu0  ;;  %v3933_v39 = vadd.f32 %v9477_v61, %v12448_v23 }
 0x27e   : > { %v3915_v58 = vpop.f32.mrf.mxu1 }
 0x27f   : > { %v3942_v14 = vadd.f32 %v3915_v58, %v3764_v30  ;;  %v12591_v25 = vadd.f32 %v12417_v42, %v3944_v53  ;;  %v12595_v4 = vpop.f32.mrf.mxu0  ;;  %v3753_v42 = vadd.f32 %v12227_v19, %v3575_v2  ;;  %v4117_v19 = vadd.f32 %v12363_v0, %v3933_v39 }
 0x280   : > { %v9489_v46 = vpop.f32.mrf.mxu1 }
 0x281   : > { %v3945_v28 = vadd.f32 %v9489_v46, %v3767_v12  ;;  %v12598_v49 = vadd.f32 %v12428_v31, %v3942_v14  ;;  %v12603_v6 = vpop.f32.mrf.mxu0  ;;  %v3931_v58 = vadd.f32 %v3870_v11, %v3753_v42  ;;  %v12614_v31 = vld [vmem:[%s13908_s4] ss:$0 sm:$0xff]  ;;  %v14096_v14 = vld [vmem:[#allocation6_spill] sm:$0xff] }
 0x282   : > { %v12600_v44 = vpop.f32.mrf.mxu1  ;;  %14095 = vst [vmem:[#allocation15_spill] sm:$0xff] %v12603_v6  ;;  %v3579_v23 = vadd.f32 %v12465_v15, %v14096_v14 }
 0x283   : > { %v12606_v30 = vadd.f32 %v12434_v32, %v3945_v28  ;;  %v12609_v35 = vpop.f32.mrf.mxu0 }
 0x284   : > { %v9524_v53 = vpop.f32.mrf.mxu1  ;;  %v3757_v15 = vadd.f32 %v14098_v33, %v3579_v23 }
 0x285   : > { %v4294_v45 = vadd.f32 %v9524_v53, %v4116_v40  ;;  %v12618_v61 = vpop.f32.mrf.mxu0  ;;  %v4115_v53 = vadd.f32 %v12369_v59, %v3931_v58 }
 0x286   : > { %v4229_v12 = vpop.f32.mrf.mxu1  ;;  %14097 = vst [vmem:[#allocation21_spill] sm:$0xff] %v12618_v61 }
 0x287   : > { %v4472_v32 = vadd.f32 %v12452_v18, %v4294_v45  ;;  %v4292_v46 = vadd.f32 %v4229_v12, %v4114_v7  ;;  %v12623_v11 = vpop.f32.mrf.mxu0  ;;  %v3937_v7 = vadd.f32 %v9481_v36, %v12470_v62  ;;  %v3935_v12 = vadd.f32 %v3886_v50, %v3757_v15 }
 0x288   : > { %v9525_v2 = vpop.f32.mrf.mxu1 }
 0x289   : > { %v4495_v40 = vadd.f32 %v12614_v31, %v4472_v32  ;;  %v4470_v28 = vadd.f32 %v12457_v48, %v4292_v46  ;;  %v4295_v42 = vadd.f32 %v9525_v2, %v4117_v19  ;;  %v12629_v18 = vpop.f32.mrf.mxu0 }
 0x28a   : > { %v4232_v6 = vpop.f32.mrf.mxu1 }
 0x28b   : > { %v4527_v14 = vmul.f32 0.2, %v4495_v40  ;;  %v4493_v61 = vadd.f32 %v12614_v31, %v4470_v28  ;;  %v4473_v0 = vadd.f32 %v12461_v34, %v4295_v42  ;;  %vm4511_vm3 = vcmp.ge.f32.partialorder %v4495_v40, 0.0  ;;  %v12634_v58 = vpop.f32.mrf.mxu0 }
 0x28c   : > { %v4293_v39 = vadd.f32 %v4232_v6, %v4115_v53  ;;  %v9528_v45 = vpop.f32.mrf.mxu1  ;;  %v3583_v34 = vadd.f32 %v12487_v43, %v12380_v51  ;;  %v14101_v53 = vld [vmem:[#allocation23_spill] sm:$0xff] }
 0x28d   : > { %vm4509_vm0 = vcmp.ge.f32.partialorder %v4493_v61, 0.0  ;;  %v4525_v48 = vmul.f32 0.2, %v4493_v61  ;;  %v4496_v59 = vadd.f32 %v12614_v31, %v4473_v0  ;;  %v4298_v23 = vadd.f32 %v9528_v45, %v12546_v5  ;;  %v12644_v36 = vpop.f32.mrf.mxu0 }
 0x28e   : > { %v4471_v33 = vadd.f32 %v12467_v9, %v4293_v39  ;;  %v4245_v32 = vpop.f32.mrf.mxu1  ;;  %v12640_v46 = vsel %vm4511_vm3, %v4495_v40, %v4527_v14  ;;  %v4121_v5 = vadd.f32 %v12384_v26, %v3937_v7  ;;  %v4119_v40 = vadd.f32 %v12386_v52, %v3935_v12 }
 0x28f   : > { %14099 = vst [vmem:[#allocation29_spill] sm:$0xff] %v12640_v46  ;;  %v12642_v62 = vsel %vm4509_vm0, %v4493_v61, %v4525_v48  ;;  %v4296_v50 = vadd.f32 %v4245_v32, %v12551_v17  ;;  %v12651_v9 = vadd.f32 %v12474_v8, %v4298_v23  ;;  %v4528_v51 = vmul.f32 0.2, %v4496_v59  ;;  %v12654_v43 = vpop.f32.mrf.mxu0  ;;  %v14106_v23 = vld [vmem:[#allocation10_spill] sm:$0xff] }
 0x290   : > { %14100 = vst [vmem:[#allocation16_spill] sm:$0xff] %v12642_v62  ;;  %v4494_v19 = vadd.f32 %v12614_v31, %v4471_v33  ;;  %v9529_v2 = vpop.f32.mrf.mxu1  ;;  %vm4512_vm1 = vcmp.ge.f32.partialorder %v4496_v59, 0.0  ;;  %v3761_v15 = vadd.f32 %v14101_v53, %v3583_v34  ;;  %v3587_v26 = vadd.f32 %v12512_v16, %v12423_v41  ;;  %v9956_v33 = vld [vmem:[%s13909_s5 + $0x170] ss:$8 sps:$4 sm:$0xff]  }
 0x291   : > { %v12657_v61 = vadd.f32 %v12479_v37, %v4296_v50  ;;  %v4299_v28 = vadd.f32 %v9529_v2, %v4121_v5  ;;  %v12661_v8 = vpop.f32.mrf.mxu0  ;;  %v3941_v37 = vadd.f32 %v12570_v47, %v12494_v60  ;;  %v14103_v39 = vmov 0.0   ;;  %v14105_v41 = vld [vmem:[#allocation11_spill] sm:$0xff] }
 0x292   : > { %vm4510_vm2 = vcmp.ge.f32.partialorder %v4494_v19, 0.0  ;;  %v4526_v17 = vmul.f32 0.2, %v4494_v19  ;;  %v4248_v42 = vpop.f32.mrf.mxu1  ;;  %v3939_v52 = vadd.f32 %v12577_v24, %v3761_v15  ;;  %v12674_v48 = vsel %vm4512_vm1, %v4496_v59, %v4528_v51  ;;  %v9958_v24 = vld [vmem:[%s13909_s5 + $0x174] ss:$8 sps:$4 sm:$0xff]  }
 0x293   : > { %v4297_v14 = vadd.f32 %v4248_v42, %v4119_v40  ;;  %v12672_v12 = vpop.f32.mrf.mxu0  ;;  %14104 = vst [vmem:[#allocation18_spill] sm:$0xff] %v12674_v48  ;;  %v4477_v16 = vadd.f32 %v14105_v41, %v4299_v28  ;;  %6673 = vmatprep.subr.bf16.mxu0 %v9958_v24  ;;  %v9961_v40 = vld [vmem:[%s13909_s5 + $0x74] ss:$8 sps:$4 sm:$0xff]   ;;  %v14111_v41 = vld [vmem:[#allocation5_spill] sm:$0xff] }
 0x294   : > { %v12665_v0 = vsel %vm4510_vm2, %v4494_v19, %v4526_v17  ;;  %v9532_v7 = vpop.f32.mrf.mxu1  ;;  %v9959_v19 = vld [vmem:[%s13909_s5 + $0x70] ss:$8 sps:$4 sm:$0xff]   ;;  %6499 = vmatprep.subr.bf16.mxu1 %v9961_v40  ;;  %v9965_v24 = vld [vmem:[%s13909_s5 + $0x60] ss:$8 sps:$4 sm:$0xff]  }
 0x295   : > { %14102 = vst [vmem:[#allocation17_spill] sm:$0xff] %v12665_v0  ;;  %v6245_v45 = vpack.c.bf16 %v12665_v0, %v14103_v39  ;;  %v4475_v32 = vadd.f32 %v14106_v23, %v4297_v14  ;;  %v4302_v34 = vadd.f32 %v9532_v7, %v12568_v13  ;;  %v12687_v59 = vpop.f32.mrf.mxu0  ;;  %v14107_v13 = vld [vmem:[#allocation26_spill] sm:$0xff]  ;;  %v14109_v42 = vld [vmem:[#allocation24_spill] sm:$0xff]  ;;  %v3765_v23 = vadd.f32 %v14111_v41, %v3587_v26 }
 0x296   : > { %v4261_v60 = vpop.f32.mrf.mxu1  ;;  %v4125_v53 = vadd.f32 %v14109_v42, %v3941_v37  ;;  %v14110_v15 = vld [vmem:[#allocation8_spill] sm:$0xff]  ;;  %6500 = vmatpush1.bf16.msra.mxu1 %v9959_v19  ;;  %v9967_v26 = vld [vmem:[%s13909_s5 + $0x64] ss:$8 sps:$4 sm:$0xff]  }
 0x297   : > { %v4300_v50 = vadd.f32 %v4261_v60, %v12575_v54  ;;  %6379 = vmatmul.mubr.bf16.vlgmr.msra.gmra.mxu0 %v6245_v45  ;;  %v4498_v5 = vadd.f32 %v12614_v31, %v4475_v32  ;;  %v12695_v2 = vadd.f32 %v14107_v13, %v4302_v34  ;;  %v12701_v17 = vpop.f32.mrf.mxu0  ;;  %v14108_v54 = vld [vmem:[#allocation13_spill] sm:$0xff]  ;;  %v4123_v14 = vadd.f32 %v14110_v15, %v3939_v52  ;;  %v9968_v19 = vld [vmem:[%s13909_s5 + $0x150] ss:$8 sps:$4 sm:$0xff]  }
 0x298   : > { %v9533_v51 = vpop.f32.mrf.mxu1  ;;  %6388 = vmatprep.mubr.bf16.mxu0 %v14062_v20  ;;  %6674 = vmatpush1.bf16.msra.mxu0 %v9956_v33  ;;  %v9962_v7 = vld [vmem:[%s13909_s5 + $0x160] ss:$8 sps:$4 sm:$0xff]   ;;  %v9964_v45 = vld [vmem:[%s13909_s5 + $0x164] ss:$8 sps:$4 sm:$0xff]   ;;  %v4500_v32 = vadd.f32 %v12614_v31, %v4477_v16  ;;  %v3943_v16 = vadd.f32 %v12600_v44, %v3765_v23  ;;  %v14113_v23 = vld [vmem:[#allocation7_spill] sm:$0xff] }
 0x299   : > { %v12704_v28 = vadd.f32 %v14108_v54, %v4300_v50  ;;  %vm4514_vm4 = vcmp.ge.f32.partialorder %v4498_v5, 0.0  ;;  %v4530_v34 = vmul.f32 0.2, %v4498_v5  ;;  %v12716_v37 = vpop.f32.mrf.mxu0  ;;  %v4303_v52 = vadd.f32 %v9533_v51, %v4125_v53  ;;  %6675 = vmatprep.subr.bf16.mxu0 %v9964_v45  ;;  %6501 = vmatprep.subr.bf16.mxu1 %v9967_v26 }
 0x29a   : > { %v4264_v60 = vpop.f32.mrf.mxu1  ;;  %v4532_v54 = vmul.f32 0.2, %v4500_v32  ;;  %vm4516_vm6 = vcmp.ge.f32.partialorder %v4500_v32, 0.0  ;;  %6502 = vmatpush1.bf16.msra.mxu1 %v9965_v24 }
 0x29b   : > { %v4301_v33 = vadd.f32 %v4264_v60, %v4123_v14  ;;  %v12725_v13 = vsel %vm4514_vm4, %v4498_v5, %v4530_v34  ;;  %v12727_v40 = vpop.f32.mrf.mxu0  ;;  %v9970_v5 = vld [vmem:[%s13909_s5 + $0x154] ss:$8 sps:$4 sm:$0xff]   ;;  %v4127_v34 = vadd.f32 %v14113_v23, %v3943_v16  ;;  %v9976_v16 = vld [vmem:[%s13909_s5 + $0x144] ss:$8 sps:$4 sm:$0xff]  }
 0x29c   : > { %v9536_v50 = vpop.f32.mrf.mxu1  ;;  %14112 = vst [vmem:[#allocation20_spill] sm:$0xff] %v12725_v13  ;;  %6676 = vmatpush1.bf16.msra.mxu0 %v9962_v7  ;;  %v6246_v44 = vpack.c.bf16 %v12725_v13, %v12674_v48  ;;  %v12765_v26 = vsel %vm4516_vm6, %v4500_v32, %v4532_v54  ;;  %v9977_v32 = vld [vmem:[%s13909_s5 + $0x40] ss:$8 sps:$4 sm:$0xff]   ;;  %v9979_v54 = vld [vmem:[%s13909_s5 + $0x44] ss:$8 sps:$4 sm:$0xff]  }
 0x29d   : > { %v4479_v51 = vadd.f32 %v12514_v55, %v4301_v33  ;;  %v4306_v42 = vadd.f32 %v9536_v50, %v12591_v25  ;;  %v4481_v55 = vadd.f32 %v12506_v1, %v4303_v52  ;;  %v12741_v14 = vpop.f32.mrf.mxu0  ;;  %v9971_v25 = vld [vmem:[%s13909_s5 + $0x50] ss:$8 sps:$4 sm:$0xff]   ;;  %6677 = vmatprep.subr.bf16.mxu0 %v9970_v5  ;;  %v9973_v1 = vld [vmem:[%s13909_s5 + $0x54] ss:$8 sps:$4 sm:$0xff]   ;;  %14114 = vst [vmem:[#allocation25_spill] sm:$0xff] %v12765_v26 }
 0x29e   : > { %v4277_v53 = vpop.f32.mrf.mxu1  ;;  %6503 = vmatprep.subr.bf16.mxu1 %v9973_v1 }
 0x29f   : > { %v4502_v15 = vadd.f32 %v12614_v31, %v4479_v51  ;;  %v4304_v7 = vadd.f32 %v4277_v53, %v12598_v49  ;;  %v12748_v45 = vadd.f32 %v12520_v63, %v4306_v42  ;;  %6389 = vmatmul.mubr.bf16.gmra.mxu0 %v6246_v44  ;;  %v12754_v49 = vpop.f32.mrf.mxu0  ;;  %v9974_v63 = vld [vmem:[%s13909_s5 + $0x140] ss:$8 sps:$4 sm:$0xff]   ;;  %6504 = vmatpush1.bf16.msra.mxu1 %v9971_v25 }
 0x2a0   : > { %v9537_v41 = vpop.f32.mrf.mxu1  ;;  %6398 = vmatprep.mubr.bf16.mxu0 %v14062_v20  ;;  %6678 = vmatpush1.bf16.msra.mxu0 %v9968_v19  ;;  %v4499_v53 = vadd.f32 %v12614_v31, %v12651_v9 }
 0x2a1   : > { %vm4518_vm7 = vcmp.ge.f32.partialorder %v4502_v15, 0.0  ;;  %v4534_v60 = vmul.f32 0.2, %v4502_v15  ;;  %v12757_v52 = vadd.f32 %v12524_v3, %v4304_v7  ;;  %v4307_v33 = vadd.f32 %v9537_v41, %v12606_v30  ;;  %v12771_v50 = vpop.f32.mrf.mxu0  ;;  %v14115_v30 = vld [vmem:[#allocation9_spill] sm:$0xff]  ;;  %6679 = vmatprep.subr.bf16.mxu0 %v9976_v16  ;;  %v14117_v7 = vld [vmem:[#allocation14_spill] sm:$0xff]  ;;  %6505 = vmatprep.subr.bf16.mxu1 %v9979_v54 }
 0x2a2   : > { %v4280_v24 = vpop.f32.mrf.mxu1  ;;  %v4504_v3 = vadd.f32 %v12614_v31, %v4481_v55  ;;  %v4497_v55 = vadd.f32 %v12614_v31, %v12657_v61  ;;  %v4531_v61 = vmul.f32 0.2, %v4499_v53  ;;  %vm4515_vm10 = vcmp.ge.f32.partialorder %v4499_v53, 0.0 }
 0x2a3   : > { %v12774_v51 = vadd.f32 %v14115_v30, %v4307_v33  ;;  %v4305_v19 = vadd.f32 %v4280_v24, %v4127_v34  ;;  %v12777_v42 = vsel %vm4518_vm7, %v4502_v15, %v4534_v60  ;;  %v12791_v15 = vpop.f32.mrf.mxu0  ;;  %6506 = vmatpush1.bf16.msra.mxu1 %v9977_v32  ;;  %v4503_v54 = vadd.f32 %v12614_v31, %v12695_v2  ;;  %v9980_v2 = vld [vmem:[%s13909_s5 + $0x130] ss:$8 sps:$4 sm:$0xff]  }
 0x2a4   : > { %14116 = vst [vmem:[#allocation27_spill] sm:$0xff] %v12777_v42  ;;  %v9572_v44 = vpop.f32.mrf.mxu1  ;;  %v6247_v5 = vpack.c.bf16 %v12777_v42, %v12765_v26  ;;  %6680 = vmatpush1.bf16.msra.mxu0 %v9974_v63  ;;  %v4536_v34 = vmul.f32 0.2, %v4504_v3  ;;  %vm4520_vm8 = vcmp.ge.f32.partialorder %v4504_v3, 0.0  ;;  %v4529_v24 = vmul.f32 0.2, %v4497_v55 }
 0x2a5   : > { %v4483_v25 = vadd.f32 %v14117_v7, %v4305_v19  ;;  %v12795_v41 = vadd.f32 %v12537_v29, %v9572_v44  ;;  %v12798_v1 = vpop.f32.mrf.mxu0  ;;  %vm4513_vm11 = vcmp.ge.f32.partialorder %v4497_v55, 0.0  ;;  %v4501_v44 = vadd.f32 %v12614_v31, %v12704_v28  ;;  %v9982_v28 = vld [vmem:[%s13909_s5 + $0x134] ss:$8 sps:$4 sm:$0xff]  }
 0x2a6   : > { %v4680_v23 = vpop.f32.mrf.mxu1  ;;  %v12813_v19 = vsel %vm4520_vm8, %v4504_v3, %v4536_v34  ;;  %v12830_v3 = vsel %vm4515_vm10, %v4499_v53, %v4531_v61  ;;  %6681 = vmatprep.subr.bf16.mxu0 %v9982_v28  ;;  %vm4519_vm12 = vcmp.ge.f32.partialorder %v4503_v54, 0.0  ;;  %v4507_v28 = vadd.f32 %v12614_v31, %v12748_v45  ;;  %v9989_v45 = vld [vmem:[%s13909_s5 + $0x20] ss:$8 sps:$4 sm:$0xff]  }
 0x2a7   : > { %v4506_v9 = vadd.f32 %v12614_v31, %v4483_v25  ;;  %v12801_v60 = vadd.f32 %v12543_v21, %v4680_v23  ;;  %6399 = vmatmul.mubr.bf16.gmra.mxu0 %v6247_v5  ;;  %v12803_v16 = vpop.f32.mrf.mxu0  ;;  %14118 = vst [vmem:[#allocation28_spill] sm:$0xff] %v12813_v19  ;;  %v12828_v23 = vsel %vm4513_vm11, %v4497_v55, %v4529_v24  ;;  %14121 = vst [vmem:[#allocation23_spill] sm:$0xff] %v12830_v3 }
 0x2a8   : > { %v9573_v33 = vpop.f32.mrf.mxu1  ;;  %6408 = vmatprep.mubr.bf16.mxu0 %v14062_v20  ;;  %14120 = vst [vmem:[#allocation22_spill] sm:$0xff] %v12828_v23  ;;  %v4535_v55 = vmul.f32 0.2, %v4503_v54  ;;  %v4533_v53 = vmul.f32 0.2, %v4501_v44  ;;  %6682 = vmatpush1.bf16.msra.mxu0 %v9980_v2  ;;  %vm4517_vm13 = vcmp.ge.f32.partialorder %v4501_v44, 0.0  ;;  %v4505_v47 = vadd.f32 %v12614_v31, %v12757_v52 }
 0x2a9   : > { %vm4522_vm9 = vcmp.ge.f32.partialorder %v4506_v9, 0.0  ;;  %v4538_v63 = vmul.f32 0.2, %v4506_v9  ;;  %v12806_v29 = vadd.f32 %v12548_v22, %v9573_v33  ;;  %v12811_v21 = vpop.f32.mrf.mxu0  ;;  %vm4523_vm14 = vcmp.ge.f32.partialorder %v4507_v28, 0.0 }
 0x2aa   : > { %v12809_v30 = vpop.f32.mrf.mxu1  ;;  %v12874_v6 = vsel %vm4517_vm13, %v4501_v44, %v4533_v53  ;;  %v12876_v0 = vsel %vm4519_vm12, %v4503_v54, %v4535_v55  ;;  %v9994_v44 = vld [vmem:[%s13909_s5 + $0x114] ss:$8 sps:$4 sm:$0xff]   ;;  %v4539_v53 = vmul.f32 0.2, %v4507_v28  ;;  %vm4521_vm15 = vcmp.ge.f32.partialorder %v4505_v47, 0.0 }
 0x2ab   : > { %v12815_v32 = vsel %vm4522_vm9, %v4506_v9, %v4538_v63  ;;  %v12823_v7 = vpop.f32.mrf.mxu0  ;;  %v9983_v63 = vld [vmem:[%s13909_s5 + $0x30] ss:$8 sps:$4 sm:$0xff]   ;;  %14122 = vst [vmem:[#allocation11_spill] sm:$0xff] %v12874_v6  ;;  %14123 = vst [vmem:[#allocation10_spill] sm:$0xff] %v12876_v0  ;;  %v9997_v55 = vld [vmem:[%s13909_s5 + $0x14] ss:$8 sps:$4 sm:$0xff]  }
 0x2ac   : > { %14119 = vst [vmem:[#allocation6_spill] sm:$0xff] %v12815_v32  ;;  %v9576_v22 = vpop.f32.mrf.mxu1  ;;  %v6248_v5 = vpack.c.bf16 %v12815_v32, %v12813_v19 }
 0x2ad   : > { %v12826_v25 = vadd.f32 %v12559_v10, %v9576_v22  ;;  %v12840_v33 = vpop.f32.mrf.mxu0  ;;  %v9985_v22 = vld [vmem:[%s13909_s5 + $0x34] ss:$8 sps:$4 sm:$0xff]  }
 0x2ae   : > { %v4696_v34 = vpop.f32.mrf.mxu1  ;;  %6507 = vmatprep.subr.bf16.mxu1 %v9985_v22 }
 0x2af   : > { %v12843_v10 = vadd.f32 %v12565_v56, %v4696_v34  ;;  %6409 = vmatmul.mubr.bf16.gmra.mxu0 %v6248_v5  ;;  %v9986_v56 = vld [vmem:[%s13909_s5 + $0x120] ss:$8 sps:$4 sm:$0xff]   ;;  %v12858_v5 = vpop.f32.mrf.mxu0  ;;  %v9988_v34 = vld [vmem:[%s13909_s5 + $0x124] ss:$8 sps:$4 sm:$0xff]   ;;  %6508 = vmatpush1.bf16.msra.mxu1 %v9983_v63 }
 0x2b0   : > { %v9577_v61 = vpop.f32.mrf.mxu1  ;;  %6705 = vmatprep.mubr.bf16.mxu0 %v14062_v20  ;;  %6683 = vmatprep.subr.bf16.mxu0 %v9988_v34  ;;  %v9991_v63 = vld [vmem:[%s13909_s5 + $0x24] ss:$8 sps:$4 sm:$0xff]   ;;  %v4537_v34 = vmul.f32 0.2, %v4505_v47 }
 0x2b1   : > { %v12846_v24 = vadd.f32 %v12572_v38, %v9577_v61  ;;  %6684 = vmatpush1.bf16.msra.mxu0 %v9986_v56  ;;  %v12878_v48 = vpop.f32.mrf.mxu0  ;;  %6509 = vmatprep.subr.bf16.mxu1 %v9991_v63 }
 0x2b2   : > { %v12860_v38 = vpop.f32.mrf.mxu1  ;;  %6685 = vmatprep.subr.bf16.mxu0 %v9994_v44  ;;  %v10003_v44 = vld [vmem:[%s13909_s5 + $0x4] ss:$8 sps:$4 sm:$0xff]   ;;  %v12930_v26 = vsel %vm4521_vm15, %v4505_v47, %v4537_v34  ;;  %v10009_v47 = vld [vmem:[%s13909_s5 + $0x1f4] ss:$8 sps:$4 sm:$0xff]  }
 0x2b3   : > { %6510 = vmatpush1.bf16.msra.mxu1 %v9989_v45  ;;  %v12911_v63 = vpop.f32.mrf.mxu0  ;;  %14124 = vst [vmem:[#allocation26_spill] sm:$0xff] %v12930_v26 }
 0x2b4   : > { %v9580_v61 = vpop.f32.mrf.mxu1  ;;  %6511 = vmatprep.subr.bf16.mxu1 %v9997_v55  ;;  %v10006_v55 = vld [vmem:[%s13909_s5 + $0x274] ss:$8 sps:$4 sm:$0xff]  }
 0x2b5   : > { %v12872_v9 = vadd.f32 %v12585_v27, %v9580_v61  ;;  %v9992_v27 = vld [vmem:[%s13909_s5 + $0x110] ss:$8 sps:$4 sm:$0xff]   ;;  %v4508_v61 = vadd.f32 %v12614_v31, %v12774_v51  ;;  %v12935_v51 = vpop.f32.mrf.mxu0 }
 0x2b6   : > { %v4712_v22 = vpop.f32.mrf.mxu1  ;;  %6686 = vmatpush1.bf16.msra.mxu0 %v9992_v27  ;;  %v10001_v27 = vld [vmem:[%s13909_s5] ss:$8 sps:$4 sm:$0xff]  }
 0x2b7   : > { %v12892_v54 = vadd.f32 %v12588_v57, %v4712_v22  ;;  %v9995_v57 = vld [vmem:[%s13909_s5 + $0x10] ss:$8 sps:$4 sm:$0xff]   ;;  %v10000_v22 = vld [vmem:[%s13909_s5 + $0x104] ss:$8 sps:$4 sm:$0xff]   ;;  %vm4524_vm3 = vcmp.ge.f32.partialorder %v4508_v61, 0.0  ;;  %v12946_v19 = vpop.f32.mrf.mxu0 }
 0x2b8   : > { %v9581_v56 = vpop.f32.mrf.mxu1  ;;  %6687 = vmatprep.subr.bf16.mxu0 %v10000_v22  ;;  %6512 = vmatpush1.bf16.msra.mxu1 %v9995_v57  ;;  %v12933_v22 = vsel %vm4523_vm14, %v4507_v28, %v4539_v53  ;;  %v14126_v57 = vld [vmem:[#allocation21_spill] sm:$0xff] }
 0x2b9   : > { %v12903_v2 = vadd.f32 %v12595_v4, %v9581_v56  ;;  %v9998_v4 = vld [vmem:[%s13909_s5 + $0x100] ss:$8 sps:$4 sm:$0xff]   ;;  %v4540_v56 = vmul.f32 0.2, %v4508_v61  ;;  %14125 = vst [vmem:[#allocation13_spill] sm:$0xff] %v12933_v22  ;;  %6513 = vmatprep.subr.bf16.mxu1 %v10003_v44 }
 0x2ba   : > { %v12913_v52 = vpop.f32.mrf.mxu1  ;;  %6688 = vmatpush1.bf16.msra.mxu0 %v9998_v4 }
 0x2bb   : > { %7101 = vmatprep.subr.bf16.mxu0 %v10006_v55  ;;  %v12944_v53 = vsel %vm4524_vm3, %v4508_v61, %v4540_v56 }
 0x2bc   : > { %v9584_v45 = vpop.f32.mrf.mxu1  ;;  %6514 = vmatpush1.bf16.msra.mxu1 %v10001_v27  ;;  %14127 = vst [vmem:[#allocation24_spill] sm:$0xff] %v12944_v53 }
 0x2bd   : > { %v4858_v13 = vadd.f32 %v12609_v35, %v9584_v45  ;;  %6911 = vmatprep.subr.bf16.mxu1 %v10009_v47 }
 0x2be   : > { %v4728_v42 = vpop.f32.mrf.mxu1 }
 0x2bf   : > { %v4850_v45 = vadd.f32 %v14126_v57, %v4728_v42  ;;  %v12953_v57 = vpop.f32.mrf.mxu0 }
 0x2c0   : > { %v9585_v34 = vpop.f32.mrf.mxu1 }
 0x2c1   : > { %v4861_v28 = vadd.f32 %v12623_v11, %v9585_v34  ;;  %v12959_v34 = vpop.f32.mrf.mxu0 }
 0x2c2   : > { %v12948_v4 = vpop.f32.mrf.mxu1 }
 0x2c4   : > { %v9620_v42 = vpop.f32.mrf.mxu1 }
 0x2c5   : > { %v5027_v55 = vadd.f32 %v9620_v42, %v12795_v41  ;;  %v12965_v42 = vpop.f32.mrf.mxu0 }
 0x2c6   : > { %v4962_v35 = vpop.f32.mrf.mxu1 }
 0x2c7   : > { %v5025_v26 = vadd.f32 %v4962_v35, %v12801_v60  ;;  %v5172_v11 = vadd.f32 %v12634_v58, %v5027_v55 }
 0x2c8   : > { %v9621_v61 = vpop.f32.mrf.mxu1 }
 0x2c9   : > { %v5028_v56 = vadd.f32 %v9621_v61, %v12806_v29  ;;  %v5170_v27 = vadd.f32 %v12644_v36, %v5025_v26  ;;  %v12971_v26 = vpop.f32.mrf.mxu0 }
 0x2ca   : > { %v12961_v47 = vpop.f32.mrf.mxu1 }
 0x2cb   : > { %v5173_v44 = vadd.f32 %v12654_v43, %v5028_v56 }
 0x2cc   : > { %v9624_v32 = vpop.f32.mrf.mxu1 }
 0x2cd   : > { %v5031_v41 = vadd.f32 %v9624_v32, %v12826_v25  ;;  %v12977_v25 = vpop.f32.mrf.mxu0 }
 0x2ce   : > { %v4978_v53 = vpop.f32.mrf.mxu1 }
 0x2cf   : > { %v5029_v60 = vadd.f32 %v4978_v53, %v12843_v10  ;;  %v5176_v58 = vadd.f32 %v12672_v12, %v5031_v41  ;;  %v9704_v41 = vpop.f32.mrf.mxu0 }
 0x2d0   : > { %v9625_v35 = vpop.f32.mrf.mxu1 }
 0x2d1   : > { %v5032_v29 = vadd.f32 %v9625_v35, %v12846_v24  ;;  %v5174_v36 = vadd.f32 %v12687_v59, %v5029_v60 }
 0x2d2   : > { %v12973_v55 = vpop.f32.mrf.mxu1 }
 0x2d3   : > { %v5177_v43 = vadd.f32 %v12701_v17, %v5032_v29 }
 0x2d4   : > { %v9628_v61 = vpop.f32.mrf.mxu1 }
 0x2d5   : > { %v5035_v32 = vadd.f32 %v9628_v61, %v12872_v9  ;;  %v5509_v9 = vpop.f32.mrf.mxu0 }
 0x2d6   : > { %v4994_v56 = vpop.f32.mrf.mxu1 }
 0x2d7   : > { %v5033_v10 = vadd.f32 %v4994_v56, %v12892_v54  ;;  %v5180_v12 = vadd.f32 %v12727_v40, %v5035_v32  ;;  %v9705_v32 = vpop.f32.mrf.mxu0 }
 0x2d8   : > { %v9629_v53 = vpop.f32.mrf.mxu1 }
 0x2d9   : > { %v5036_v24 = vadd.f32 %v9629_v53, %v12903_v2  ;;  %v5178_v59 = vadd.f32 %v12741_v14, %v5033_v10  ;;  %v12991_v0 = vpop.f32.mrf.mxu0 }
 0x2da   : > { %v12983_v60 = vpop.f32.mrf.mxu1 }
 0x2db   : > { %v5181_v17 = vadd.f32 %v12754_v49, %v5036_v24 }
 0x2dc   : > { %v9632_v35 = vpop.f32.mrf.mxu1 }
 0x2dd   : > { %v5039_v29 = vadd.f32 %v9632_v35, %v4858_v13 }
 0x2de   : > { %v5010_v61 = vpop.f32.mrf.mxu1 }
 0x2df   : > { %v5037_v22 = vadd.f32 %v5010_v61, %v4850_v45  ;;  %v5184_v6 = vadd.f32 %v12791_v15, %v5039_v29 }
 0x2e0   : > { %v9633_v54 = vpop.f32.mrf.mxu1 }
 0x2e1   : > { %v5040_v56 = vadd.f32 %v9633_v54, %v4861_v28  ;;  %v5182_v40 = vadd.f32 %v12798_v1, %v5037_v22  ;;  %v12997_v28 = vpop.f32.mrf.mxu0 }
 0x2e2   : > { %v12988_v2 = vpop.f32.mrf.mxu1 }
 0x2e3   : > { %v5185_v14 = vadd.f32 %v12803_v16, %v5040_v56  ;;  %v13001_v16 = vpop.f32.mrf.mxu0 }
 0x2e4   : > { %v9668_v10 = vpop.f32.mrf.mxu1 }
 0x2e5   : > { %v5349_v53 = vadd.f32 %v9668_v10, %v5172_v11 }
 0x2e6   : > { %v5284_v49 = vpop.f32.mrf.mxu1 }
 0x2e7   : > { %v5347_v13 = vadd.f32 %v5284_v49, %v5170_v27  ;;  %v5526_v24 = vadd.f32 %v12823_v7, %v5349_v53 }
 0x2e8   : > { %v9669_v45 = vpop.f32.mrf.mxu1 }
 0x2e9   : > { %v12994_v35 = vadd.f32 %v9669_v45, %v5173_v44  ;;  %v5524_v15 = vadd.f32 %v12840_v33, %v5347_v13  ;;  %v13007_v44 = vpop.f32.mrf.mxu0 }
 0x2ea   : > { %v12999_v1 = vpop.f32.mrf.mxu1 }
 0x2eb   : > { %v13011_v49 = vpop.f32.mrf.mxu0 }
 0x2ec   : > { %v9672_v22 = vpop.f32.mrf.mxu1 }
 0x2ed   : > { %v5353_v29 = vadd.f32 %v9672_v22, %v5176_v58 }
 0x2ee   : > { %v5300_v11 = vpop.f32.mrf.mxu1 }
 0x2ef   : > { %v5351_v61 = vadd.f32 %v5300_v11, %v5174_v36  ;;  %v5530_v54 = vadd.f32 %v12911_v63, %v5353_v29 }
 0x2f0   : > { %v9673_v27 = vpop.f32.mrf.mxu1 }
 0x2f1   : > { %v13004_v56 = vadd.f32 %v9673_v27, %v5177_v43  ;;  %v5528_v7 = vadd.f32 %v12935_v51, %v5351_v61  ;;  %v13017_v43 = vpop.f32.mrf.mxu0 }
 0x2f2   : > { %v13009_v33 = vpop.f32.mrf.mxu1 }
 0x2f3   : > { %v13019_v61 = vpop.f32.mrf.mxu0 }
 0x2f4   : > { %v9676_v10 = vpop.f32.mrf.mxu1 }
 0x2f5   : > { %v5357_v53 = vadd.f32 %v9676_v10, %v5180_v12 }
 0x2f6   : > { %v5316_v58 = vpop.f32.mrf.mxu1 }
 0x2f7   : > { %v5355_v13 = vadd.f32 %v5316_v58, %v5178_v59  ;;  %v5534_v45 = vadd.f32 %v12959_v34, %v5357_v53  ;;  %v13021_v58 = vpop.f32.mrf.mxu0 }
 0x2f8   : > { %v9677_v36 = vpop.f32.mrf.mxu1 }
 0x2f9   : > { %v13014_v22 = vadd.f32 %v9677_v36, %v5181_v17  ;;  %v5532_v63 = vadd.f32 %v12965_v42, %v5355_v13  ;;  %v13023_v42 = vpop.f32.mrf.mxu0 }
 0x2fa   : > { %v5319_v51 = vpop.f32.mrf.mxu1 }
 0x2fc   : > { %v9680_v29 = vpop.f32.mrf.mxu1 }
 0x2fd   : > { %v5361_v11 = vadd.f32 %v9680_v29, %v5184_v6  ;;  %v13025_v6 = vpop.f32.mrf.mxu0 }
 0x2fe   : > { %v5332_v27 = vpop.f32.mrf.mxu1  ;;  %14128 = vst [vmem:[#allocation8_spill] sm:$0xff] %v13025_v6 }
 0x2ff   : > { %v5359_v12 = vadd.f32 %v5332_v27, %v5182_v40  ;;  %v5538_v10 = vadd.f32 %v9704_v41, %v5361_v11  ;;  %v13029_v41 = vpop.f32.mrf.mxu0 }
 0x300   : > { %v9681_v23 = vpop.f32.mrf.mxu1  ;;  %14129 = vst [vmem:[#allocation5_spill] sm:$0xff] %v13029_v41 }
 0x301   : > { %v5362_v3 = vadd.f32 %v9681_v23, %v5185_v14  ;;  %v5536_v59 = vadd.f32 %v5509_v9, %v5359_v12  ;;  %v13031_v11 = vpop.f32.mrf.mxu0 }
 0x302   : > { %v5335_v34 = vpop.f32.mrf.mxu1  ;;  %14130 = vst [vmem:[#allocation7_spill] sm:$0xff] %v13031_v11 }
 0x303   : > { %v5539_v17 = vadd.f32 %v9705_v32, %v5362_v3  ;;  %v13037_v12 = vpop.f32.mrf.mxu0 }
 0x304   : > { %v9716_v53 = vpop.f32.mrf.mxu1 }
 0x305   : > { %v5671_v36 = vadd.f32 %v9716_v53, %v5526_v24  ;;  %v13045_v41 = vpop.f32.mrf.mxu0 }
 0x306   : > { %v5606_v13 = vpop.f32.mrf.mxu1 }
 0x307   : > { %v5669_v62 = vadd.f32 %v5606_v13, %v5524_v15  ;;  %v14131_v15 = vld [vmem:[#allocation12_spill] sm:$0xff] }
 0x308   : > { %v9717_v46 = vpop.f32.mrf.mxu1  ;;  %v4805_v27 = vadd.f32 %v14131_v15, %v12809_v30  ;;  %v4853_v30 = vadd.f32 %v12629_v18, %v12948_v4 }
 0x30a   : > { %v5609_v29 = vpop.f32.mrf.mxu1 }
 0x30c   : > { %v9720_v20 = vpop.f32.mrf.mxu1 }
 0x30d   : > { %v13027_v40 = vadd.f32 %v9720_v20, %v5530_v54  ;;  %v14132_v20 = vld [vmem:[#allocation19_spill] sm:$0xff] }
 0x30e   : > { %v5622_v23 = vpop.f32.mrf.mxu1  ;;  %v4821_v54 = vadd.f32 %v14132_v20, %v12860_v38 }
 0x30f   : > { %v5673_v9 = vadd.f32 %v5622_v23, %v5528_v7  ;;  %v5026_v7 = vadd.f32 %v12961_v47, %v4805_v27  ;;  %v5038_v47 = vadd.f32 %v12988_v2, %v4853_v30  ;;  %v13056_v27 = vpop.f32.mrf.mxu0 }
 0x310   : > { %v9721_v14 = vpop.f32.mrf.mxu1  ;;  %v5030_v11 = vadd.f32 %v12973_v55, %v4821_v54 }
 0x311   : > { %v5183_v2 = vadd.f32 %v12811_v21, %v5038_v47  ;;  %v5846_v21 = vadd.f32 %v13001_v16, %v5669_v62 }
 0x312   : > { %v5625_v3 = vpop.f32.mrf.mxu1  ;;  %v5175_v20 = vadd.f32 %v12716_v37, %v5030_v11 }
 0x314   : > { %v9724_v32 = vpop.f32.mrf.mxu1  ;;  %v5352_v18 = vadd.f32 %v13009_v33, %v5175_v20  ;;  %v5360_v33 = vadd.f32 %v5335_v34, %v5183_v2 }
 0x315   : > { %v13033_v24 = vadd.f32 %v9724_v32, %v5534_v45  ;;  %v14133_v32 = vld [vmem:[#allocation15_spill] sm:$0xff] }
 0x316   : > { %v5638_v53 = vpop.f32.mrf.mxu1  ;;  %v4837_v6 = vadd.f32 %v14133_v32, %v12913_v52 }
 0x317   : > { %v13039_v13 = vadd.f32 %v5638_v53, %v5532_v63  ;;  %v5171_v63 = vadd.f32 %v12661_v8, %v5026_v7 }
 0x318   : > { %v9725_v23 = vpop.f32.mrf.mxu1  ;;  %v5034_v53 = vadd.f32 %v12983_v60, %v4837_v6  ;;  %v5527_v60 = vadd.f32 %v12858_v5, %v12994_v35  ;;  %v9753_v6 = vpop.f32.mrf.mxu0  ;;  %v5529_v5 = vadd.f32 %v12953_v57, %v5352_v18 }
 0x319   : > { %v5348_v55 = vadd.f32 %v12999_v1, %v5171_v63 }
 0x31a   : > { %v5641_v45 = vpop.f32.mrf.mxu1  ;;  %v5179_v8 = vadd.f32 %v12771_v50, %v5034_v53  ;;  %v5672_v11 = vadd.f32 %v9717_v46, %v5527_v60  ;;  %v5531_v50 = vadd.f32 %v12946_v19, %v13004_v56  ;;  %v5674_v63 = vadd.f32 %v5625_v3, %v5529_v5  ;;  %v14134_v53 = vld [vmem:[#allocation8_spill] sm:$0xff]  ;;  %v14136_v60 = vld [vmem:[#allocation7_spill] sm:$0xff] }
 0x31b   : > { %v5525_v7 = vadd.f32 %v12878_v48, %v5348_v55  ;;  %v5535_v46 = vadd.f32 %v12971_v26, %v13014_v22  ;;  %v13086_v56 = vadd.f32 %v12991_v0, %v5360_v33  ;;  %v5852_v26 = vadd.f32 %v13017_v43, %v13027_v40 }
 0x31c   : > { %v9728_v15 = vpop.f32.mrf.mxu1  ;;  %v5356_v37 = vadd.f32 %v5319_v51, %v5179_v8  ;;  %v5676_v48 = vadd.f32 %v9721_v14, %v5531_v50  ;;  %v5849_v57 = vadd.f32 %v13007_v44, %v5672_v11  ;;  %v5850_v22 = vadd.f32 %v13019_v61, %v5673_v9 }
 0x31d   : > { %v13053_v38 = vadd.f32 %v9728_v15, %v5538_v10  ;;  %v5670_v30 = vadd.f32 %v5609_v29, %v5525_v7  ;;  %v5680_v3 = vadd.f32 %v9725_v23, %v5535_v46  ;;  %v5851_v0 = vadd.f32 %v13023_v42, %v5674_v63  ;;  %v14135_v23 = vld [vmem:[#allocation5_spill] sm:$0xff] }
 0x31e   : > { %v5654_v54 = vpop.f32.mrf.mxu1  ;;  %v5533_v34 = vadd.f32 %v12977_v25, %v5356_v37  ;;  %v5853_v44 = vadd.f32 %v13021_v58, %v5676_v48  ;;  %v5856_v47 = vadd.f32 %v14134_v53, %v13033_v24  ;;  %v10004_v48 = vld [vmem:[%s13909_s5 + $0x270] ss:$8 sps:$4 sm:$0xff]   ;;  %v14137_v53 = vmov 0  }
 0x31f   : > { %v13060_v52 = vadd.f32 %v5654_v54, %v5536_v59  ;;  %v5848_v59 = vadd.f32 %v12997_v28, %v5671_v36  ;;  %v13080_v28 = vrot.slane %v14103_v39, 7  ;;  %v5847_v16 = vadd.f32 %v13011_v49, %v5670_v30 }
 0x320   : > { %v9729_v4 = vpop.f32.mrf.mxu1  ;;  %v5678_v40 = vadd.f32 %v5641_v45, %v5533_v34  ;;  %v5854_v54 = vadd.f32 %v14135_v23, %v13039_v13  ;;  %v13135_v46 = vadd.f32 %v13045_v41, %v13053_v38 }
 0x321   : > { %v5684_v10 = vadd.f32 %v9729_v4, %v5539_v17  ;;  %v5858_v23 = vadd.f32 %v13056_v27, %v13060_v52  ;;  %v13196_v52 = vld [vmem:[%s13908_s4] ss:$0 sm:$0xff] }
 0x322   : > { %v13068_v1 = vpop.f32.mrf.mxu1  ;;  %v5855_v63 = vadd.f32 %v13037_v12, %v5678_v40 }
 0x323   : > { %v13071_v32 = vadd.f32 %v9753_v6, %v5684_v10  ;;  %v13110_v10 = vadd.f32 %v14136_v60, %v5680_v3 }
 0x324   : > { %v9764_v35 = vpop.f32.mrf.mxu1 }
 0x325   : > { %v6025_v17 = vadd.f32 %v9764_v35, %v5848_v59 }
 0x326   : > { %v5960_v51 = vpop.f32.mrf.mxu1 }
 0x327   : > { %v6048_v36 = vadd.f32 %v12614_v31, %v6025_v17  ;;  %v6023_v19 = vadd.f32 %v5960_v51, %v5846_v21 }
 0x328   : > { %v9765_v62 = vpop.f32.mrf.mxu1 }
 0x329   : > { %vm6064_vm0 = vcmp.ge.f32.partialorder %v6048_v36, 0.0  ;;  %v6080_v29 = vmul.f32 0.2, %v6048_v36  ;;  %v6046_v25 = vadd.f32 %v12614_v31, %v6023_v19  ;;  %v6026_v14 = vadd.f32 %v9765_v62, %v5849_v57  ;;  %v10012_v57 = vld [vmem:[%s13909_s5 + $0x264] ss:$8 sps:$4 sm:$0xff]  }
 0x32a   : > { %v5963_v15 = vpop.f32.mrf.mxu1 }
 0x32b   : > { %v13097_v49 = vsel %vm6064_vm0, %v6048_v36, %v6080_v29  ;;  %vm6062_vm1 = vcmp.ge.f32.partialorder %v6046_v25, 0.0  ;;  %v6078_v43 = vmul.f32 0.2, %v6046_v25  ;;  %v6049_v61 = vadd.f32 %v12614_v31, %v6026_v14  ;;  %v10007_v29 = vld [vmem:[%s13909_s5 + $0x1f0] ss:$8 sps:$4 sm:$0xff]  }
 0x32c   : > { %v6782_v9 = vrot.slane %v13097_v49, 7  ;;  %v6024_v55 = vadd.f32 %v5963_v15, %v5847_v16  ;;  %v9768_v20 = vpop.f32.mrf.mxu1 }
 0x32d   : > { %v13103_v58 = vsel %vm6062_vm1, %v6046_v25, %v6078_v43  ;;  %vm6065_vm2 = vcmp.ge.f32.partialorder %v6049_v61, 0.0  ;;  %v6081_v42 = vmul.f32 0.2, %v6049_v61  ;;  %v6029_v18 = vadd.f32 %v9768_v20, %v5852_v26  ;;  %v10010_v25 = vld [vmem:[%s13909_s5 + $0x260] ss:$8 sps:$4 sm:$0xff]  }
 0x32e   : > { %v6779_v24 = vrot.slane %v13103_v58, 7  ;;  %v7190_v4 = vpack.c.bf16 %v13097_v49, %v13103_v58  ;;  %v6047_v8 = vadd.f32 %v12614_v31, %v6024_v55  ;;  %v5976_v45 = vpop.f32.mrf.mxu1  ;;  %v13114_v6 = vsel %vm2750_vm5, %v13080_v28, %v6782_v9  ;;  %v10018_v9 = vld [vmem:[%s13909_s5 + $0x254] ss:$8 sps:$4 sm:$0xff]   ;;  %v10112_v49 = vld [vmem:[%s13909_s5 + $0x450] ss:$8 sps:$4 sm:$0xff]  }
 0x32f   : > { %v13116_v13 = vsel %vm6065_vm2, %v6049_v61, %v6081_v42  ;;  %v6052_v2 = vadd.f32 %v12614_v31, %v6029_v18  ;;  %v6027_v7 = vadd.f32 %v5976_v45, %v5850_v22 }
 0x330   : > { %v13121_v37 = vsel %vm2750_vm5, %v13080_v28, %v6779_v24  ;;  %v6200_v11 = vrot.slane %v13116_v13, 7  ;;  %vm6063_vm4 = vcmp.ge.f32.partialorder %v6047_v8, 0.0  ;;  %v6079_v59 = vmul.f32 0.2, %v6047_v8  ;;  %v9769_v33 = vpop.f32.mrf.mxu1 }
 0x331   : > { %v6810_v30 = vpack.c.bf16 %v13114_v6, %v13121_v37  ;;  %vm6068_vm6 = vcmp.ge.f32.partialorder %v6052_v2, 0.0  ;;  %v6084_v50 = vmul.f32 0.2, %v6052_v2  ;;  %v6050_v5 = vadd.f32 %v12614_v31, %v6027_v7  ;;  %v10021_v7 = vld [vmem:[%s13909_s5 + $0x1d4] ss:$8 sps:$4 sm:$0xff]  }
 0x332   : > { %v13127_v35 = vsel %vm6063_vm4, %v6047_v8, %v6079_v59  ;;  %v6030_v17 = vadd.f32 %v9769_v33, %v5853_v44  ;;  %v5979_v21 = vpop.f32.mrf.mxu1  ;;  %v13150_v38 = vsel %vm2750_vm5, %v13080_v28, %v6200_v11  ;;  %v5682_v59 = vadd.f32 %v13068_v1, %v13086_v56  ;;  %v10064_v6 = vld [vmem:[%s13909_s5 + $0x350] ss:$8 sps:$4 sm:$0xff]   ;;  %v10072_v37 = vld [vmem:[%s13909_s5 + $0x344] ss:$8 sps:$4 sm:$0xff]  }
 0x333   : > { %v6197_v51 = vrot.slane %v13127_v35, 7  ;;  %v6572_v34 = vpack.c.bf16 %v13127_v35, %v14103_v39  ;;  %v7766_v36 = vpack.c.bf16 %v13116_v13, %v13127_v35  ;;  %v13142_v19 = vsel %vm6068_vm6, %v6052_v2, %v6084_v50  ;;  %v10016_v2 = vld [vmem:[%s13909_s5 + $0x250] ss:$8 sps:$4 sm:$0xff]   ;;  %v10024_v50 = vld [vmem:[%s13909_s5 + $0x244] ss:$8 sps:$4 sm:$0xff]  }
 0x334   : > { %vm6066_vm7 = vcmp.ge.f32.partialorder %v6050_v5, 0.0  ;;  %v6082_v12 = vmul.f32 0.2, %v6050_v5  ;;  %v6053_v62 = vadd.f32 %v12614_v31, %v6030_v17  ;;  %v9772_v41 = vpop.f32.mrf.mxu1  ;;  %v6788_v16 = vrot.slane %v13142_v19, 7  ;;  %v14157_v35 = vld [vmem:[#allocation27_spill] sm:$0xff] }
 0x335   : > { %v13154_v39 = vsel %vm2750_vm5, %v13080_v28, %v6197_v51  ;;  %v6028_v26 = vadd.f32 %v5979_v21, %v5851_v0  ;;  %v6033_v22 = vadd.f32 %v9772_v41, %v5856_v47  ;;  %6706 = vmatmul.mubr.bf16.vlgmr.msra.gmra.mxu0 %v6572_v34  ;;  %v10015_v0 = vld [vmem:[%s13909_s5 + $0x1e4] ss:$8 sps:$4 sm:$0xff]  }
 0x336   : > { %v6225_v14 = vpack.c.bf16 %v13154_v39, %v13080_v28  ;;  %v13165_v3 = vsel %vm6066_vm7, %v6050_v5, %v6082_v12  ;;  %vm6069_vm8 = vcmp.ge.f32.partialorder %v6053_v62, 0.0  ;;  %v6085_v15 = vmul.f32 0.2, %v6053_v62  ;;  %7102 = vmatpush1.bf16.msra.mxu0 %v10004_v48  ;;  %v5992_v44 = vpop.f32.mrf.mxu1  ;;  %6715 = vmatprep.mubr.bf16.mxu0 %v14137_v53 }
 0x337   : > { %v6785_v47 = vrot.slane %v13165_v3, 7  ;;  %v6051_v43 = vadd.f32 %v12614_v31, %v6028_v26  ;;  %v6056_v61 = vadd.f32 %v12614_v31, %v6033_v22  ;;  %v6031_v40 = vadd.f32 %v5992_v44, %v5854_v54  ;;  %7103 = vmatprep.subr.bf16.mxu0 %v10012_v57  ;;  %v10013_v54 = vld [vmem:[%s13909_s5 + $0x1e0] ss:$8 sps:$4 sm:$0xff]   ;;  %v10019_v57 = vld [vmem:[%s13909_s5 + $0x1d0] ss:$8 sps:$4 sm:$0xff]  }
 0x338   : > { %v13177_v55 = vsel %vm6069_vm8, %v6053_v62, %v6085_v15  ;;  %6532 = vmatmul.mubr.bf16.vlgmr.msra.gmra.mxu1 %v6225_v14  ;;  %v9773_v20 = vpop.f32.mrf.mxu1  ;;  %v7386_v42 = vpack.c.bf16 %v13150_v38, %v13154_v39  ;;  %v7191_v18 = vpack.c.bf16 %v13142_v19, %v13165_v3  ;;  %v13191_v24 = vsel %vm2750_vm5, %v13080_v28, %v6788_v16  ;;  %v10027_v26 = vld [vmem:[%s13909_s5 + $0x1c4] ss:$8 sps:$4 sm:$0xff]   ;;  %v10030_v22 = vld [vmem:[%s13909_s5 + $0x234] ss:$8 sps:$4 sm:$0xff]   ;;  %v5834_v15 = vpop.f32.mrf.mxu0  ;;  %v10109_v39 = vld [vmem:[%s13909_s5 + $0x3e0] ss:$8 sps:$4 sm:$0xff]  }
 0x339   : > { %vm6067_vm9 = vcmp.ge.f32.partialorder %v6051_v43, 0.0  ;;  %v6083_v31 = vmul.f32 0.2, %v6051_v43  ;;  %vm6072_vm10 = vcmp.ge.f32.partialorder %v6056_v61, 0.0  ;;  %6912 = vmatpush1.bf16.msra.mxu1 %v10007_v29  ;;  %6541 = vmatprep.mubr.bf16.mxu1 %v14137_v53  ;;  %v6088_v27 = vmul.f32 0.2, %v6056_v61 }
 0x33a   : > { %v6054_v8 = vadd.f32 %v13196_v52, %v6031_v40  ;;  %v6034_v45 = vadd.f32 %v9773_v20, %v13110_v10  ;;  %7104 = vmatpush1.bf16.msra.mxu0 %v10010_v25  ;;  %v5995_v60 = vpop.f32.mrf.mxu1  ;;  %6913 = vmatprep.subr.bf16.mxu1 %v10015_v0  ;;  %v13208_v11 = vsel %vm2750_vm5, %v13080_v28, %v6785_v47  ;;  %v6206_v56 = vrot.slane %v13177_v55, 7  ;;  %v10025_v20 = vld [vmem:[%s13909_s5 + $0x1c0] ss:$8 sps:$4 sm:$0xff]   ;;  %v10124_v19 = vld [vmem:[%s13909_s5 + $0x430] ss:$8 sps:$4 sm:$0xff]  }
 0x33b   : > { %v13213_v10 = vsel %vm6067_vm9, %v6051_v43, %v6083_v31  ;;  %v6032_v33 = vadd.f32 %v5995_v60, %v5855_v63  ;;  %7105 = vmatprep.subr.bf16.mxu0 %v10018_v9  ;;  %v6811_v5 = vpack.c.bf16 %v13191_v24, %v13208_v11  ;;  %v13222_v21 = vsel %vm6072_vm10, %v6056_v61, %v6088_v27  ;;  %v10028_v31 = vld [vmem:[%s13909_s5 + $0x230] ss:$8 sps:$4 sm:$0xff]   ;;  %v10084_v11 = vld [vmem:[%s13909_s5 + $0x324] ss:$8 sps:$4 sm:$0xff]  }
 0x33c   : > { %v6203_v17 = vrot.slane %v13213_v10, 7  ;;  %vm6070_vm11 = vcmp.ge.f32.partialorder %v6054_v8, 0.0  ;;  %v6086_v48 = vmul.f32 0.2, %v6054_v8  ;;  %v9776_v1 = vpop.f32.mrf.mxu1  ;;  %v6057_v63 = vadd.f32 %v13196_v52, %v6034_v45  ;;  %v10076_v24 = vld [vmem:[%s13909_s5 + $0x330] ss:$8 sps:$4 sm:$0xff]  }
 0x33d   : > { %v6055_v51 = vadd.f32 %v13196_v52, %v6032_v33  ;;  %6914 = vmatpush1.bf16.msra.mxu1 %v10013_v54  ;;  %v6037_v34 = vadd.f32 %v9776_v1, %v13135_v46  ;;  %v6573_v62 = vpack.c.bf16 %v13213_v10, %v13116_v13  ;;  %v10022_v46 = vld [vmem:[%s13909_s5 + $0x240] ss:$8 sps:$4 sm:$0xff]   ;;  %v6794_v29 = vrot.slane %v13222_v21, 7  ;;  %v10036_v33 = vld [vmem:[%s13909_s5 + $0x224] ss:$8 sps:$4 sm:$0xff]  }
 0x33e   : > { %v13231_v12 = vsel %vm6070_vm11, %v6054_v8, %v6086_v48  ;;  %7106 = vmatpush1.bf16.msra.mxu0 %v10016_v2  ;;  %v6008_v41 = vpop.f32.mrf.mxu1  ;;  %6915 = vmatprep.subr.bf16.mxu1 %v10021_v7  ;;  %v13237_v16 = vsel %vm2750_vm5, %v13080_v28, %v6203_v17  ;;  %v6089_v14 = vmul.f32 0.2, %v6057_v63  ;;  %vm6073_vm13 = vcmp.ge.f32.partialorder %v6057_v63, 0.0  ;;  %v10033_v8 = vld [vmem:[%s13909_s5 + $0x1b4] ss:$8 sps:$4 sm:$0xff]  }
 0x33f   : > { %v6791_v25 = vrot.slane %v13231_v12, 7  ;;  %vm6071_vm12 = vcmp.ge.f32.partialorder %v6055_v51, 0.0  ;;  %7107 = vmatprep.subr.bf16.mxu0 %v10024_v50  ;;  %v6087_v44 = vmul.f32 0.2, %v6055_v51  ;;  %v6060_v0 = vadd.f32 %v13196_v52, %v6037_v34  ;;  %6716 = vmatmul.mubr.bf16.gmra.mxu0 %v6573_v62  ;;  %v10031_v1 = vld [vmem:[%s13909_s5 + $0x1b0] ss:$8 sps:$4 sm:$0xff]  }
 0x340   : > { %v6035_v47 = vadd.f32 %v6008_v41, %v5858_v23  ;;  %v6226_v43 = vpack.c.bf16 %v13237_v16, %v13150_v38  ;;  %v9777_v61 = vpop.f32.mrf.mxu1  ;;  %v5859_v9 = vadd.f32 %v5834_v15, %v5682_v59  ;;  %6725 = vmatprep.mubr.bf16.mxu0 %v14137_v53  ;;  %v13263_v23 = vsel %vm2750_vm5, %v13080_v28, %v6206_v56  ;;  %v10034_v41 = vld [vmem:[%s13909_s5 + $0x220] ss:$8 sps:$4 sm:$0xff]   ;;  %v10114_v38 = vld [vmem:[%s13909_s5 + $0x454] ss:$8 sps:$4 sm:$0xff]  }
 0x341   : > { %6916 = vmatpush1.bf16.msra.mxu1 %v10019_v57  ;;  %v6038_v40 = vadd.f32 %v9777_v61, %v13071_v32  ;;  %v13266_v54 = vsel %vm6071_vm12, %v6055_v51, %v6087_v44  ;;  %vm6076_vm14 = vcmp.ge.f32.partialorder %v6060_v0, 0.0  ;;  %v6092_v32 = vmul.f32 0.2, %v6060_v0  ;;  %v14156_v13 = vld [vmem:[#allocation28_spill] sm:$0xff] }
 0x342   : > { %6542 = vmatmul.mubr.bf16.gmra.mxu1 %v6226_v43  ;;  %7108 = vmatpush1.bf16.msra.mxu0 %v10022_v46  ;;  %v6011_v27 = vpop.f32.mrf.mxu1  ;;  %v13273_v45 = vsel %vm2750_vm5, %v13080_v28, %v6791_v25  ;;  %v6209_v60 = vrot.slane %v13266_v54, 7  ;;  %v6058_v2 = vadd.f32 %v13196_v52, %v6035_v47  ;;  %v13282_v50 = vsel %vm6073_vm13, %v6057_v63, %v6089_v14  ;;  %v10042_v25 = vld [vmem:[%s13909_s5 + $0x214] ss:$8 sps:$4 sm:$0xff]   ;;  %v10037_v47 = vld [vmem:[%s13909_s5 + $0x1a0] ss:$8 sps:$4 sm:$0xff]  }
 0x343   : > { %v6061_v7 = vadd.f32 %v13196_v52, %v6038_v40  ;;  %v6036_v59 = vadd.f32 %v6011_v27, %v5859_v9  ;;  %6917 = vmatprep.subr.bf16.mxu1 %v10027_v26  ;;  %7109 = vmatprep.subr.bf16.mxu0 %v10030_v22  ;;  %v13284_v17 = vsel %vm6076_vm14, %v6060_v0, %v6092_v32  ;;  %v6212_v26 = vrot.slane %v13282_v50, 7 }
 0x344   : > { %v6574_v48 = vpack.c.bf16 %v13266_v54, %v13177_v55  ;;  %6551 = vmatprep.mubr.bf16.mxu1 %v14137_v53  ;;  %v13294_v56 = vsel %vm2750_vm5, %v13080_v28, %v6794_v29  ;;  %v6800_v51 = vrot.slane %v13284_v17, 7  ;;  %vm6074_vm15 = vcmp.ge.f32.partialorder %v6058_v2, 0.0  ;;  %v10039_v29 = vld [vmem:[%s13909_s5 + $0x1a4] ss:$8 sps:$4 sm:$0xff]  }
 0x345   : > { %v6090_v63 = vmul.f32 0.2, %v6058_v2  ;;  %vm6077_vm3 = vcmp.ge.f32.partialorder %v6061_v7, 0.0  ;;  %6918 = vmatpush1.bf16.msra.mxu1 %v10025_v20  ;;  %v6093_v34 = vmul.f32 0.2, %v6061_v7  ;;  %v6059_v57 = vadd.f32 %v13196_v52, %v6036_v59 }
 0x346   : > { %7110 = vmatpush1.bf16.msra.mxu0 %v10028_v31  ;;  %6919 = vmatprep.subr.bf16.mxu1 %v10033_v8  ;;  %v13300_v62 = vsel %vm2750_vm5, %v13080_v28, %v6209_v60  ;;  %v6812_v46 = vpack.c.bf16 %v13294_v56, %v13273_v45  ;;  %v13329_v43 = vsel %vm2750_vm5, %v13080_v28, %v6800_v51  ;;  %v10040_v20 = vld [vmem:[%s13909_s5 + $0x210] ss:$8 sps:$4 sm:$0xff]   ;;  %v10045_v31 = vld [vmem:[%s13909_s5 + $0x194] ss:$8 sps:$4 sm:$0xff]   ;;  %v10048_v60 = vld [vmem:[%s13909_s5 + $0x204] ss:$8 sps:$4 sm:$0xff]  }
 0x347   : > { %v13308_v22 = vsel %vm6074_vm15, %v6058_v2, %v6090_v63  ;;  %v6227_v52 = vpack.c.bf16 %v13300_v62, %v13263_v23  ;;  %7111 = vmatprep.subr.bf16.mxu0 %v10036_v33  ;;  %v13320_v15 = vsel %vm6077_vm3, %v6061_v7, %v6093_v34  ;;  %vm6075_vm0 = vcmp.ge.f32.partialorder %v6059_v57, 0.0  ;;  %6726 = vmatmul.mubr.bf16.gmra.mxu0 %v6574_v48  ;;  %v10088_v45 = vld [vmem:[%s13909_s5 + $0x310] ss:$8 sps:$4 sm:$0xff]   ;;  %v10096_v56 = vld [vmem:[%s13909_s5 + $0x304] ss:$8 sps:$4 sm:$0xff]  }
 0x348   : > { %v6797_v14 = vrot.slane %v13308_v22, 7  ;;  %v6091_v44 = vmul.f32 0.2, %v6059_v57  ;;  %v7383_v0 = vrot.slane %v13320_v15, 7  ;;  %6735 = vmatprep.mubr.bf16.mxu0 %v14137_v53  ;;  %v7192_v61 = vpack.c.bf16 %v13222_v21, %v13231_v12  ;;  %v10136_v21 = vld [vmem:[%s13909_s5 + $0x410] ss:$8 sps:$4 sm:$0xff]  }
 0x349   : > { %6920 = vmatpush1.bf16.msra.mxu1 %v10031_v1  ;;  %v7193_v40 = vpack.c.bf16 %v13284_v17, %v13308_v22  ;;  %v7767_v27 = vpack.c.bf16 %v13177_v55, %v13213_v10  ;;  %v7768_v33 = vpack.c.bf16 %v13282_v50, %v13266_v54  ;;  %v10043_v1 = vld [vmem:[%s13909_s5 + $0x190] ss:$8 sps:$4 sm:$0xff]   ;;  %v13371_v51 = vsel %vm2750_vm5, %v13080_v28, %v6212_v26  ;;  %v10054_v26 = vld [vmem:[%s13909_s5 + $0x374] ss:$8 sps:$4 sm:$0xff]   ;;  %v14151_v17 = vld [vmem:[#allocation17_spill] sm:$0xff] }
 0x34a   : > { %v13335_v9 = vsel %vm6075_vm0, %v6059_v57, %v6091_v44  ;;  %6552 = vmatmul.mubr.bf16.gmra.mxu1 %v6227_v52  ;;  %7112 = vmatpush1.bf16.msra.mxu0 %v10034_v41  ;;  %v13345_v32 = vsel %vm2750_vm5, %v13080_v28, %v6797_v14  ;;  %v13357_v7 = vsel %vm2750_vm5, %v13080_v28, %v7383_v0  ;;  %v10046_v57 = vld [vmem:[%s13909_s5 + $0x200] ss:$8 sps:$4 sm:$0xff]   ;;  %v10051_v41 = vld [vmem:[%s13909_s5 + $0x184] ss:$8 sps:$4 sm:$0xff]   ;;  %v10057_v52 = vld [vmem:[%s13909_s5 + $0x2f4] ss:$8 sps:$4 sm:$0xff]  }
 0x34b   : > { %v6215_v8 = vrot.slane %v13335_v9, 7  ;;  %6921 = vmatprep.subr.bf16.mxu1 %v10039_v29  ;;  %7113 = vmatprep.subr.bf16.mxu0 %v10042_v25  ;;  %v6813_v2 = vpack.c.bf16 %v13329_v43, %v13345_v32  ;;  %v6575_v59 = vpack.c.bf16 %v13335_v9, %v13282_v50  ;;  %v7769_v48 = vpack.c.bf16 %v13320_v15, %v13335_v9  ;;  %v10052_v29 = vld [vmem:[%s13909_s5 + $0x370] ss:$8 sps:$4 sm:$0xff]   ;;  %v10060_v25 = vld [vmem:[%s13909_s5 + $0x364] ss:$8 sps:$4 sm:$0xff]  }
 0x34c   : > { %6561 = vmatprep.mubr.bf16.mxu1 %v14137_v53  ;;  %v10055_v14 = vld [vmem:[%s13909_s5 + $0x2f0] ss:$8 sps:$4 sm:$0xff]   ;;  %v14138_v44 = vld [vmem:[#allocation29_spill] sm:$0xff]  ;;  %v7387_v58 = vpack.c.bf16 %v13263_v23, %v13237_v16  ;;  %v10126_v23 = vld [vmem:[%s13909_s5 + $0x434] ss:$8 sps:$4 sm:$0xff]   ;;  %v7388_v3 = vpack.c.bf16 %v13371_v51, %v13300_v62 }
 0x34d   : > { %6922 = vmatpush1.bf16.msra.mxu1 %v10037_v47  ;;  %v13375_v63 = vsel %vm2750_vm5, %v13080_v28, %v6215_v8  ;;  %v10049_v28 = vld [vmem:[%s13909_s5 + $0x180] ss:$8 sps:$4 sm:$0xff]   ;;  %v10066_v8 = vld [vmem:[%s13909_s5 + $0x354] ss:$8 sps:$4 sm:$0xff]   ;;  %v10100_v43 = vld [vmem:[%s13909_s5 + $0x470] ss:$8 sps:$4 sm:$0xff]  }
 0x34e   : > { %7114 = vmatpush1.bf16.msra.mxu0 %v10040_v20  ;;  %6923 = vmatprep.subr.bf16.mxu1 %v10045_v31  ;;  %v6228_v34 = vpack.c.bf16 %v13375_v63, %v13371_v51  ;;  %v14139_v0 = vld [vmem:[#allocation16_spill] sm:$0xff]  ;;  %v10063_v20 = vld [vmem:[%s13909_s5 + $0x2e4] ss:$8 sps:$4 sm:$0xff]   ;;  %v7389_v12 = vpack.c.bf16 %v13357_v7, %v13375_v63 }
 0x34f   : > { %7115 = vmatprep.subr.bf16.mxu0 %v10048_v60  ;;  %6736 = vmatmul.mubr.bf16.gmra.mxu0 %v6575_v59  ;;  %v14140_v47 = vpack.c.bf16 %v14138_v44, %v14139_v0  ;;  %v10058_v31 = vld [vmem:[%s13909_s5 + $0x360] ss:$8 sps:$4 sm:$0xff]   ;;  %v10069_v59 = vld [vmem:[%s13909_s5 + $0x2d4] ss:$8 sps:$4 sm:$0xff]   ;;  %v10087_v0 = vld [vmem:[%s13909_s5 + $0x2a4] ss:$8 sps:$4 sm:$0xff]  }
 0x350   : > { %7133 = vmatprep.mubr.bf16.mxu0 %v14137_v53  ;;  %v10061_v60 = vld [vmem:[%s13909_s5 + $0x2e0] ss:$8 sps:$4 sm:$0xff]   ;;  %v10108_v32 = vld [vmem:[%s13909_s5 + $0x464] ss:$8 sps:$4 sm:$0xff]   ;;  %v10138_v51 = vld [vmem:[%s13909_s5 + $0x414] ss:$8 sps:$4 sm:$0xff]  }
 0x351   : > { %6924 = vmatpush1.bf16.msra.mxu1 %v10043_v1  ;;  %v14141_v1 = vld [vmem:[#allocation23_spill] sm:$0xff]  ;;  %v10118_v16 = vld [vmem:[%s13909_s5 + $0x440] ss:$8 sps:$4 sm:$0xff]  }
 0x352   : > { %6562 = vmatmul.mubr.bf16.gmra.mxu1 %v6228_v34  ;;  %7116 = vmatpush1.bf16.msra.mxu0 %v10046_v57  ;;  %v14142_v34 = vld [vmem:[#allocation22_spill] sm:$0xff]  ;;  %v14159_v55 = vld [vmem:[#allocation24_spill] sm:$0xff] }
 0x353   : > { %6925 = vmatprep.subr.bf16.mxu1 %v10051_v41  ;;  %7487 = vmatprep.subr.bf16.mxu0 %v10054_v26  ;;  %v14143_v57 = vpack.c.bf16 %v14141_v1, %v14142_v34  ;;  %v10075_v41 = vld [vmem:[%s13909_s5 + $0x2c4] ss:$8 sps:$4 sm:$0xff]   ;;  %v10070_v26 = vld [vmem:[%s13909_s5 + $0x340] ss:$8 sps:$4 sm:$0xff]   ;;  %v10102_v1 = vld [vmem:[%s13909_s5 + $0x474] ss:$8 sps:$4 sm:$0xff]  }
 0x354   : > { %6943 = vmatprep.mubr.bf16.mxu1 %v14137_v53  ;;  %v10097_v34 = vld [vmem:[%s13909_s5 + $0x280] ss:$8 sps:$4 sm:$0xff]  }
 0x355   : > { %6926 = vmatpush1.bf16.msra.mxu1 %v10049_v28  ;;  %v10078_v28 = vld [vmem:[%s13909_s5 + $0x334] ss:$8 sps:$4 sm:$0xff]   ;;  %v10130_v62 = vld [vmem:[%s13909_s5 + $0x420] ss:$8 sps:$4 sm:$0xff]  }
 0x356   : > { %7291 = vmatprep.subr.bf16.mxu1 %v10057_v52  ;;  %v10073_v52 = vld [vmem:[%s13909_s5 + $0x2c0] ss:$8 sps:$4 sm:$0xff]  }
 0x357   : > { %7134 = vmatmul.mubr.bf16.vlgmr.msra.gmra.mxu0 %v14140_v47  ;;  %v10082_v47 = vld [vmem:[%s13909_s5 + $0x320] ss:$8 sps:$4 sm:$0xff]  }
 0x358   : > { %7488 = vmatpush1.bf16.msra.mxu0 %v10052_v29  ;;  %7143 = vmatprep.mubr.bf16.mxu0 %v14137_v53  ;;  %v10081_v29 = vld [vmem:[%s13909_s5 + $0x2b4] ss:$8 sps:$4 sm:$0xff]   ;;  %v10142_v7 = vld [vmem:[%s13909_s5 + $0x400] ss:$8 sps:$4 sm:$0xff]  }
 0x359   : > { %7489 = vmatprep.subr.bf16.mxu0 %v10060_v25  ;;  %v14144_v25 = vld [vmem:[#allocation10_spill] sm:$0xff] }
 0x35a   : > { %6944 = vmatmul.mubr.bf16.vlgmr.msra.gmra.mxu1 %v6810_v30  ;;  %v10067_v30 = vld [vmem:[%s13909_s5 + $0x2d0] ss:$8 sps:$4 sm:$0xff]   ;;  %v10145_v63 = vld [vmem:[%s13909_s5 + $0x380] ss:$8 sps:$4 sm:$0xff]  }
 0x35b   : > { %7292 = vmatpush1.bf16.msra.mxu1 %v10055_v14  ;;  %6953 = vmatprep.mubr.bf16.mxu1 %v14137_v53  ;;  %v14145_v14 = vld [vmem:[#allocation11_spill] sm:$0xff]  ;;  %v14160_v10 = vld [vmem:[#allocation6_spill] sm:$0xff] }
 0x35c   : > { %7293 = vmatprep.subr.bf16.mxu1 %v10063_v20  ;;  %7490 = vmatpush1.bf16.msra.mxu0 %v10058_v31  ;;  %v14146_v44 = vpack.c.bf16 %v14144_v25, %v14145_v14  ;;  %v10090_v20 = vld [vmem:[%s13909_s5 + $0x314] ss:$8 sps:$4 sm:$0xff]   ;;  %v10085_v31 = vld [vmem:[%s13909_s5 + $0x2a0] ss:$8 sps:$4 sm:$0xff]  }
 0x35d   : > { %7491 = vmatprep.subr.bf16.mxu0 %v10066_v8  ;;  %v10093_v8 = vld [vmem:[%s13909_s5 + $0x294] ss:$8 sps:$4 sm:$0xff]   ;;  %v10133_v25 = vld [vmem:[%s13909_s5 + $0x3a0] ss:$8 sps:$4 sm:$0xff]  }
 0x35e   : > { %v10141_v14 = vld [vmem:[%s13909_s5 + $0x394] ss:$8 sps:$4 sm:$0xff]  }
 0x35f   : > { %7294 = vmatpush1.bf16.msra.mxu1 %v10061_v60  ;;  %7144 = vmatmul.mubr.bf16.gmra.mxu0 %v14143_v57  ;;  %v14147_v60 = vld [vmem:[#allocation13_spill] sm:$0xff]  ;;  %v10105_v57 = vld [vmem:[%s13909_s5 + $0x3f4] ss:$8 sps:$4 sm:$0xff]  }
 0x360   : > { %7295 = vmatprep.subr.bf16.mxu1 %v10069_v59  ;;  %7492 = vmatpush1.bf16.msra.mxu0 %v10064_v6  ;;  %v14148_v59 = vld [vmem:[#allocation26_spill] sm:$0xff] }
 0x361   : > { %7153 = vmatprep.mubr.bf16.mxu0 %v14137_v53  ;;  %7493 = vmatprep.subr.bf16.mxu0 %v10072_v37  ;;  %v14149_v6 = vpack.c.bf16 %v14147_v60, %v14148_v59  ;;  %v10099_v37 = vld [vmem:[%s13909_s5 + $0x284] ss:$8 sps:$4 sm:$0xff]  }
 0x362   : > { %6954 = vmatmul.mubr.bf16.gmra.mxu1 %v6811_v5  ;;  %v10079_v5 = vld [vmem:[%s13909_s5 + $0x2b0] ss:$8 sps:$4 sm:$0xff]  }
 0x363   : > { %7296 = vmatpush1.bf16.msra.mxu1 %v10067_v30  ;;  %6963 = vmatprep.mubr.bf16.mxu1 %v14137_v53  ;;  %v10094_v30 = vld [vmem:[%s13909_s5 + $0x300] ss:$8 sps:$4 sm:$0xff]  }
 0x364   : > { %7297 = vmatprep.subr.bf16.mxu1 %v10075_v41  ;;  %7494 = vmatpush1.bf16.msra.mxu0 %v10070_v26  ;;  %v10111_v41 = vld [vmem:[%s13909_s5 + $0x3e4] ss:$8 sps:$4 sm:$0xff]   ;;  %v10106_v26 = vld [vmem:[%s13909_s5 + $0x460] ss:$8 sps:$4 sm:$0xff]  }
 0x365   : > { %7495 = vmatprep.subr.bf16.mxu0 %v10078_v28  ;;  %v10115_v28 = vld [vmem:[%s13909_s5 + $0x3d0] ss:$8 sps:$4 sm:$0xff]  }
 0x367   : > { %7298 = vmatpush1.bf16.msra.mxu1 %v10073_v52  ;;  %7154 = vmatmul.mubr.bf16.gmra.mxu0 %v14146_v44  ;;  %v10123_v52 = vld [vmem:[%s13909_s5 + $0x3c4] ss:$8 sps:$4 sm:$0xff]   ;;  %v10139_v44 = vld [vmem:[%s13909_s5 + $0x390] ss:$8 sps:$4 sm:$0xff]  }
 0x368   : > { %7299 = vmatprep.subr.bf16.mxu1 %v10081_v29  ;;  %7496 = vmatpush1.bf16.msra.mxu0 %v10076_v24  ;;  %v10121_v29 = vld [vmem:[%s13909_s5 + $0x3c0] ss:$8 sps:$4 sm:$0xff]   ;;  %v10129_v24 = vld [vmem:[%s13909_s5 + $0x3b4] ss:$8 sps:$4 sm:$0xff]  }
 0x369   : > { %7163 = vmatprep.mubr.bf16.mxu0 %v14137_v53  ;;  %7497 = vmatprep.subr.bf16.mxu0 %v10084_v11  ;;  %v10127_v11 = vld [vmem:[%s13909_s5 + $0x3b0] ss:$8 sps:$4 sm:$0xff]  }
 0x36a   : > { %6964 = vmatmul.mubr.bf16.gmra.mxu1 %v6812_v46  ;;  %v10091_v46 = vld [vmem:[%s13909_s5 + $0x290] ss:$8 sps:$4 sm:$0xff]  }
 0x36b   : > { %7300 = vmatpush1.bf16.msra.mxu1 %v10079_v5  ;;  %6973 = vmatprep.mubr.bf16.mxu1 %v14137_v53  ;;  %v10135_v5 = vld [vmem:[%s13909_s5 + $0x3a4] ss:$8 sps:$4 sm:$0xff]  }
 0x36c   : > { %7301 = vmatprep.subr.bf16.mxu1 %v10087_v0  ;;  %7498 = vmatpush1.bf16.msra.mxu0 %v10082_v47  ;;  %v10147_v0 = vld [vmem:[%s13909_s5 + $0x384] ss:$8 sps:$4 sm:$0xff]  }
 0x36d   : > { %7499 = vmatprep.subr.bf16.mxu0 %v10090_v20  ;;  %v14150_v47 = vld [vmem:[#allocation18_spill] sm:$0xff]  ;;  %v14154_v20 = vld [vmem:[#allocation20_spill] sm:$0xff] }
 0x36e   : > { %v14152_v22 = vpack.c.bf16 %v14150_v47, %v14151_v17 }
 0x36f   : > { %7302 = vmatpush1.bf16.msra.mxu1 %v10085_v31  ;;  %7164 = vmatmul.mubr.bf16.gmra.mxu0 %v14149_v6 }
 0x370   : > { %7303 = vmatprep.subr.bf16.mxu1 %v10093_v8  ;;  %7500 = vmatpush1.bf16.msra.mxu0 %v10088_v45  ;;  %v6380_v8 = vpop.f32.mrf.mxu0 }
 0x371   : > { %7519 = vmatprep.mubr.bf16.mxu0 %v14137_v53  ;;  %7501 = vmatprep.subr.bf16.mxu0 %v10096_v56 }
 0x372   : > { %6974 = vmatmul.mubr.bf16.gmra.mxu1 %v6813_v2  ;;  %v10103_v2 = vld [vmem:[%s13909_s5 + $0x3f0] ss:$8 sps:$4 sm:$0xff]   ;;  %v6382_v45 = vpop.f32.mrf.mxu0 }
 0x373   : > { %7304 = vmatpush1.bf16.msra.mxu1 %v10091_v46  ;;  %7323 = vmatprep.mubr.bf16.mxu1 %v14137_v53 }
 0x374   : > { %7305 = vmatprep.subr.bf16.mxu1 %v10099_v37  ;;  %7502 = vmatpush1.bf16.msra.mxu0 %v10094_v30  ;;  %v6384_v54 = vpop.f32.mrf.mxu0 }
 0x375   : > { %7867 = vmatprep.subr.bf16.mxu0 %v10102_v1 }
 0x376   : > { %v6386_v50 = vpop.f32.mrf.mxu0 }
 0x377   : > { %7306 = vmatpush1.bf16.msra.mxu1 %v10097_v34  ;;  %7520 = vmatmul.mubr.bf16.vlgmr.msra.gmra.mxu0 %v7386_v42  ;;  %v10117_v42 = vld [vmem:[%s13909_s5 + $0x3d4] ss:$8 sps:$4 sm:$0xff]  }
 0x378   : > { %7677 = vmatprep.subr.bf16.mxu1 %v10105_v57  ;;  %7868 = vmatpush1.bf16.msra.mxu0 %v10100_v43 }
 0x379   : > { %7529 = vmatprep.mubr.bf16.mxu0 %v14137_v53  ;;  %7869 = vmatprep.subr.bf16.mxu0 %v10108_v32 }
 0x37a   : > { %7324 = vmatmul.mubr.bf16.vlgmr.msra.gmra.mxu1 %v7190_v4  ;;  %v10120_v4 = vld [vmem:[%s13909_s5 + $0x444] ss:$8 sps:$4 sm:$0xff]  }
 0x37b   : > { %7678 = vmatpush1.bf16.msra.mxu1 %v10103_v2  ;;  %7333 = vmatprep.mubr.bf16.mxu1 %v14137_v53 }
 0x37c   : > { %7679 = vmatprep.subr.bf16.mxu1 %v10111_v41  ;;  %7870 = vmatpush1.bf16.msra.mxu0 %v10106_v26 }
 0x37d   : > { %7871 = vmatprep.subr.bf16.mxu0 %v10114_v38 }
 0x37f   : > { %7680 = vmatpush1.bf16.msra.mxu1 %v10109_v39  ;;  %7530 = vmatmul.mubr.bf16.gmra.mxu0 %v7387_v58 }
 0x380   : > { %7681 = vmatprep.subr.bf16.mxu1 %v10117_v42  ;;  %7872 = vmatpush1.bf16.msra.mxu0 %v10112_v49 }
 0x381   : > { %7539 = vmatprep.mubr.bf16.mxu0 %v14137_v53  ;;  %7873 = vmatprep.subr.bf16.mxu0 %v10120_v4 }
 0x382   : > { %7334 = vmatmul.mubr.bf16.gmra.mxu1 %v7191_v18  ;;  %v10132_v18 = vld [vmem:[%s13909_s5 + $0x424] ss:$8 sps:$4 sm:$0xff]  }
 0x383   : > { %7682 = vmatpush1.bf16.msra.mxu1 %v10115_v28  ;;  %7343 = vmatprep.mubr.bf16.mxu1 %v14137_v53 }
 0x384   : > { %7683 = vmatprep.subr.bf16.mxu1 %v10123_v52  ;;  %7874 = vmatpush1.bf16.msra.mxu0 %v10118_v16 }
 0x385   : > { %7875 = vmatprep.subr.bf16.mxu0 %v10126_v23 }
 0x387   : > { %7684 = vmatpush1.bf16.msra.mxu1 %v10121_v29  ;;  %7540 = vmatmul.mubr.bf16.gmra.mxu0 %v7388_v3 }
 0x388   : > { %7685 = vmatprep.subr.bf16.mxu1 %v10129_v24  ;;  %7876 = vmatpush1.bf16.msra.mxu0 %v10124_v19 }
 0x389   : > { %7549 = vmatprep.mubr.bf16.mxu0 %v14137_v53  ;;  %7877 = vmatprep.subr.bf16.mxu0 %v10132_v18 }
 0x38a   : > { %7344 = vmatmul.mubr.bf16.gmra.mxu1 %v7192_v61  ;;  %v10144_v61 = vld [vmem:[%s13909_s5 + $0x404] ss:$8 sps:$4 sm:$0xff]  }
 0x38b   : > { %7686 = vmatpush1.bf16.msra.mxu1 %v10127_v11  ;;  %7353 = vmatprep.mubr.bf16.mxu1 %v14137_v53 }
 0x38c   : > { %7687 = vmatprep.subr.bf16.mxu1 %v10135_v5  ;;  %7878 = vmatpush1.bf16.msra.mxu0 %v10130_v62 }
 0x38d   : > { %7879 = vmatprep.subr.bf16.mxu0 %v10138_v51 }
 0x38f   : > { %7688 = vmatpush1.bf16.msra.mxu1 %v10133_v25  ;;  %7550 = vmatmul.mubr.bf16.gmra.mxu0 %v7389_v12 }
 0x390   : > { %7689 = vmatprep.subr.bf16.mxu1 %v10141_v14  ;;  %7880 = vmatpush1.bf16.msra.mxu0 %v10136_v21 }
 0x391   : > { %7899 = vmatprep.mubr.bf16.mxu0 %v14137_v53  ;;  %7881 = vmatprep.subr.bf16.mxu0 %v10144_v61 }
 0x392   : > { %7354 = vmatmul.mubr.bf16.gmra.mxu1 %v7193_v40  ;;  %v14153_v40 = vld [vmem:[#allocation25_spill] sm:$0xff] }
 0x393   : > { %7690 = vmatpush1.bf16.msra.mxu1 %v10139_v44  ;;  %7709 = vmatprep.mubr.bf16.mxu1 %v14137_v53  ;;  %v14155_v31 = vpack.c.bf16 %v14153_v40, %v14154_v20 }
 0x394   : > { %7691 = vmatprep.subr.bf16.mxu1 %v10147_v0  ;;  %7882 = vmatpush1.bf16.msra.mxu0 %v10142_v7 }
 0x397   : > { %7692 = vmatpush1.bf16.msra.mxu1 %v10145_v63  ;;  %7900 = vmatmul.mubr.bf16.vlgmr.msra.gmra.mxu0 %v7766_v36  ;;  %v14158_v36 = vpack.c.bf16 %v14156_v13, %v14157_v35 }
 0x398   : > { %7909 = vmatprep.mubr.bf16.mxu0 %v14137_v53 }
 0x39a   : > { %7710 = vmatmul.mubr.bf16.vlgmr.msra.gmra.mxu1 %v14152_v22 }
 0x39b   : > { %7719 = vmatprep.mubr.bf16.mxu1 %v14137_v53 }
 0x39f   : > { %7910 = vmatmul.mubr.bf16.gmra.mxu0 %v7767_v27  ;;  %v14161_v27 = vpack.c.bf16 %v14159_v55, %v14160_v10 }
 0x3a0   : > { %7919 = vmatprep.mubr.bf16.mxu0 %v14137_v53 }
 0x3a2   : > { %7720 = vmatmul.mubr.bf16.gmra.mxu1 %v14155_v31 }
 0x3a3   : > { %7729 = vmatprep.mubr.bf16.mxu1 %v14137_v53 }
 0x3a7   : > { %7920 = vmatmul.mubr.bf16.gmra.mxu0 %v7768_v33  ;;  %v6390_v33 = vpop.f32.mrf.mxu0 }
 0x3a8   : > { %7929 = vmatprep.mubr.bf16.mxu0 %v14137_v53 }
 0x3a9   : > { %v6392_v56 = vpop.f32.mrf.mxu0 }
 0x3aa   : > { %7730 = vmatmul.mubr.bf16.gmra.mxu1 %v14158_v36 }
 0x3ab   : > { %7739 = vmatprep.mubr.bf16.mxu1 %v14137_v53  ;;  %v6394_v46 = vpop.f32.mrf.mxu0 }
 0x3ad   : > { %v6396_v60 = vpop.f32.mrf.mxu0 }
 0x3af   : > { %7930 = vmatmul.mubr.bf16.gmra.mxu0 %v7769_v48  ;;  %v6400_v59 = vpop.f32.mrf.mxu0 }
 0x3b1   : > { %v6402_v6 = vpop.f32.mrf.mxu0 }
 0x3b2   : > { %7740 = vmatmul.mubr.bf16.gmra.mxu1 %v14161_v27 }
 0x3b3   : > { %v6404_v37 = vpop.f32.mrf.mxu0 }
 0x3b5   : > { %v6406_v53 = vpop.f32.mrf.mxu0 }
 0x3b7   : > { %v6410_v30 = vpop.f32.mrf.mxu0 }
 0x3b9   : > { %v6412_v1 = vpop.f32.mrf.mxu0 }
 0x3bb   : > { %v6414_v15 = vpop.f32.mrf.mxu0 }
 0x3bd   : > { %v13673_v9 = vpop.f32.mrf.mxu0 }
 0x3f5   : > { %v6707_v48 = vpop.f32.mrf.mxu0 }
 0x3f7   : > { %v6709_v34 = vpop.f32.mrf.mxu0 }
 0x3f8   : > { %v6533_v57 = vpop.f32.mrf.mxu1 }
 0x3f9   : > { %v6534_v43 = vadd.f32 %v6533_v57, %v6380_v8  ;;  %v6711_v32 = vpop.f32.mrf.mxu0 }
 0x3fa   : > { %v6535_v2 = vpop.f32.mrf.mxu1 }
 0x3fb   : > { %v6536_v41 = vadd.f32 %v6535_v2, %v6382_v45  ;;  %v6746_v26 = vadd.f32 %v6707_v48, %v6534_v43  ;;  %v6713_v38 = vpop.f32.mrf.mxu0 }
 0x3fc   : > { %v6537_v39 = vpop.f32.mrf.mxu1 }
 0x3fd   : > { %v6538_v42 = vadd.f32 %v6537_v39, %v6384_v54  ;;  %v6747_v49 = vadd.f32 %v6709_v34, %v6536_v41 }
 0x3fe   : > { %v6539_v58 = vpop.f32.mrf.mxu1 }
 0x3ff   : > { %v6540_v4 = vadd.f32 %v6539_v58, %v6386_v50  ;;  %v6748_v28 = vadd.f32 %v6711_v32, %v6538_v42  ;;  %v6717_v52 = vpop.f32.mrf.mxu0 }
 0x401   : > { %v6749_v16 = vadd.f32 %v6713_v38, %v6540_v4  ;;  %v6719_v23 = vpop.f32.mrf.mxu0 }
 0x402   : > { %v6543_v29 = vpop.f32.mrf.mxu1 }
 0x403   : > { %v6544_v24 = vadd.f32 %v6543_v29, %v6390_v33  ;;  %v6721_v19 = vpop.f32.mrf.mxu0 }
 0x404   : > { %v6545_v3 = vpop.f32.mrf.mxu1 }
 0x405   : > { %v6546_v18 = vadd.f32 %v6545_v3, %v6392_v56  ;;  %v6750_v11 = vadd.f32 %v6717_v52, %v6544_v24  ;;  %v6723_v5 = vpop.f32.mrf.mxu0 }
 0x406   : > { %v6547_v62 = vpop.f32.mrf.mxu1 }
 0x407   : > { %v6548_v51 = vadd.f32 %v6547_v62, %v6394_v46  ;;  %v6751_v25 = vadd.f32 %v6719_v23, %v6546_v18  ;;  %v6727_v14 = vpop.f32.mrf.mxu0 }
 0x408   : > { %v6549_v21 = vpop.f32.mrf.mxu1 }
 0x409   : > { %v6550_v12 = vadd.f32 %v6549_v21, %v6396_v60  ;;  %v6752_v61 = vadd.f32 %v6721_v19, %v6548_v51  ;;  %v6729_v44 = vpop.f32.mrf.mxu0 }
 0x40a   : > { %v6553_v0 = vpop.f32.mrf.mxu1 }
 0x40b   : > { %v6554_v7 = vadd.f32 %v6553_v0, %v6400_v59  ;;  %v6753_v63 = vadd.f32 %v6723_v5, %v6550_v12  ;;  %v6731_v47 = vpop.f32.mrf.mxu0 }
 0x40c   : > { %v6555_v17 = vpop.f32.mrf.mxu1 }
 0x40d   : > { %v6556_v22 = vadd.f32 %v6555_v17, %v6402_v6  ;;  %v6754_v40 = vadd.f32 %v6727_v14, %v6554_v7  ;;  %v6733_v20 = vpop.f32.mrf.mxu0 }
 0x40e   : > { %v6557_v31 = vpop.f32.mrf.mxu1 }
 0x40f   : > { %v6558_v13 = vadd.f32 %v6557_v31, %v6404_v37  ;;  %v13675_v35 = vadd.f32 %v6729_v44, %v6556_v22  ;;  %v6737_v36 = vpop.f32.mrf.mxu0 }
 0x410   : > { %v6559_v55 = vpop.f32.mrf.mxu1 }
 0x411   : > { %v6560_v10 = vadd.f32 %v6559_v55, %v6406_v53  ;;  %v13677_v27 = vadd.f32 %v6731_v47, %v6558_v13  ;;  %v6739_v8 = vpop.f32.mrf.mxu0 }
 0x412   : > { %v6563_v45 = vpop.f32.mrf.mxu1 }
 0x413   : > { %v6564_v54 = vadd.f32 %v6563_v45, %v6410_v30  ;;  %v13679_v50 = vadd.f32 %v6733_v20, %v6560_v10  ;;  %v6741_v33 = vpop.f32.mrf.mxu0 }
 0x414   : > { %v6565_v56 = vpop.f32.mrf.mxu1 }
 0x415   : > { %v6566_v46 = vadd.f32 %v6565_v56, %v6412_v1  ;;  %v13681_v60 = vadd.f32 %v6737_v36, %v6564_v54  ;;  %v6743_v59 = vpop.f32.mrf.mxu0 }
 0x416   : > { %v6567_v6 = vpop.f32.mrf.mxu1 }
 0x417   : > { %v6568_v37 = vadd.f32 %v6567_v6, %v6414_v15  ;;  %v13683_v48 = vadd.f32 %v6739_v8, %v6566_v46  ;;  %v7135_v34 = vpop.f32.mrf.mxu0 }
 0x418   : > { %v6569_v57 = vpop.f32.mrf.mxu1 }
 0x419   : > { %v6570_v53 = vadd.f32 %v6569_v57, %v13673_v9  ;;  %v13686_v43 = vadd.f32 %v6741_v33, %v6568_v37  ;;  %v7137_v32 = vpop.f32.mrf.mxu0 }
 0x41a   : > { %v6945_v30 = vpop.f32.mrf.mxu1 }
 0x41b   : > { %v6984_v2 = vadd.f32 %v6945_v30, %v6746_v26  ;;  %v13688_v41 = vadd.f32 %v6743_v59, %v6570_v53  ;;  %v7139_v38 = vpop.f32.mrf.mxu0 }
 0x41c   : > { %v6947_v1 = vpop.f32.mrf.mxu1 }
 0x41d   : > { %v6985_v39 = vadd.f32 %v6947_v1, %v6747_v49  ;;  %v13690_v42 = vadd.f32 %v7135_v34, %v6984_v2  ;;  %v7141_v58 = vpop.f32.mrf.mxu0 }
 0x41e   : > { %v6949_v15 = vpop.f32.mrf.mxu1 }
 0x41f   : > { %v6986_v4 = vadd.f32 %v6949_v15, %v6748_v28  ;;  %v13692_v52 = vadd.f32 %v7137_v32, %v6985_v39  ;;  %v7145_v23 = vpop.f32.mrf.mxu0 }
 0x420   : > { %v6951_v29 = vpop.f32.mrf.mxu1 }
 0x421   : > { %v6987_v9 = vadd.f32 %v6951_v29, %v6749_v16  ;;  %v13694_v24 = vadd.f32 %v7139_v38, %v6986_v4  ;;  %v7147_v19 = vpop.f32.mrf.mxu0 }
 0x422   : > { %v6955_v3 = vpop.f32.mrf.mxu1 }
 0x423   : > { %v6988_v26 = vadd.f32 %v6955_v3, %v6750_v11  ;;  %v13696_v18 = vadd.f32 %v7141_v58, %v6987_v9  ;;  %v7149_v5 = vpop.f32.mrf.mxu0  ;;  %v7958_v3 = vlaneseq }
 0x424   : > { %v6957_v62 = vpop.f32.mrf.mxu1 }
 0x425   : > { %v6989_v49 = vadd.f32 %v6957_v62, %v6751_v25  ;;  %v13698_v51 = vadd.f32 %v7145_v23, %v6988_v26  ;;  %v7151_v14 = vpop.f32.mrf.mxu0 }
 0x426   : > { %v6959_v21 = vpop.f32.mrf.mxu1 }
 0x427   : > { %v6990_v28 = vadd.f32 %v6959_v21, %v6752_v61  ;;  %v13700_v12 = vadd.f32 %v7147_v19, %v6989_v49  ;;  %v7155_v44 = vpop.f32.mrf.mxu0 }
 0x428   : > { %v6961_v0 = vpop.f32.mrf.mxu1 }
 0x429   : > { %v6991_v16 = vadd.f32 %v6961_v0, %v6753_v63  ;;  %v13702_v7 = vadd.f32 %v7149_v5, %v6990_v28  ;;  %v13704_v47 = vpop.f32.mrf.mxu0 }
 0x42a   : > { %v6965_v11 = vpop.f32.mrf.mxu1 }
 0x42b   : > { %v6992_v17 = vadd.f32 %v6965_v11, %v6754_v40  ;;  %v13706_v22 = vadd.f32 %v7151_v14, %v6991_v16  ;;  %v13708_v20 = vpop.f32.mrf.mxu0  ;;  %v13744_v14 = vshrl.u32 %v7958_v3, 7 }
 0x42c   : > { %v6967_v25 = vpop.f32.mrf.mxu1 }
 0x42d   : > { %v13710_v31 = vadd.f32 %v7155_v44, %v6992_v17  ;;  %v13712_v13 = vpop.f32.mrf.mxu0  ;;  %v7956_v17 = vld [vmem:[%s13910_s6] sm:$0x3]  ;;  %v6993_v3 = vadd.f32 %v6967_v25, %v13675_v35  ;;  %v14170_v35 = vsub.s32 0, %v13744_v14 }
 0x42e   : > { %v6969_v61 = vpop.f32.mrf.mxu1 }
 0x42f   : > { %v13714_v36 = vpop.f32.mrf.mxu0 }
 0x430   : > { %v6971_v55 = vpop.f32.mrf.mxu1 }
 0x431   : > { %v13716_v63 = vpop.f32.mrf.mxu0 }
 0x432   : > { %v6975_v10 = vpop.f32.mrf.mxu1 }
 0x433   : > { %v13718_v8 = vpop.f32.mrf.mxu0  ;;  %v6996_v16 = vadd.f32 %v6975_v10, %v13681_v60 }
 0x434   : > { %v6977_v45 = vpop.f32.mrf.mxu1 }
 0x435   : > { %v13720_v40 = vpop.f32.mrf.mxu0 }
 0x436   : > { %v6979_v54 = vpop.f32.mrf.mxu1 }
 0x437   : > { %v7521_v33 = vpop.f32.mrf.mxu0 }
 0x438   : > { %v6981_v56 = vpop.f32.mrf.mxu1 }
 0x439   : > { %v7523_v46 = vpop.f32.mrf.mxu0 }
 0x43a   : > { %v7325_v59 = vpop.f32.mrf.mxu1 }
 0x43b   : > { %v13722_v6 = vpop.f32.mrf.mxu0  ;;  %v7364_v11 = vadd.f32 %v7325_v59, %v13690_v42  ;;  %v6997_v42 = vadd.f32 %v6977_v45, %v13683_v48  ;;  %v7183_v48 = vadd.f32 %v13704_v47, %v6993_v3 }
 0x43c   : > { %v7327_v37 = vpop.f32.mrf.mxu1 }
 0x43d   : > { %v13724_v34 = vpop.f32.mrf.mxu0  ;;  %v7365_v59 = vadd.f32 %v7327_v37, %v13692_v52  ;;  %v7187_v37 = vadd.f32 %v13716_v63, %v6997_v42 }
 0x43e   : > { %v7329_v57 = vpop.f32.mrf.mxu1 }
 0x43f   : > { %v13726_v53 = vpop.f32.mrf.mxu0  ;;  %v7366_v25 = vadd.f32 %v7329_v57, %v13694_v24 }
 0x440   : > { %v7331_v32 = vpop.f32.mrf.mxu1 }
 0x441   : > { %v13728_v30 = vpop.f32.mrf.mxu0  ;;  %v7367_v60 = vadd.f32 %v7331_v32, %v13696_v18  ;;  %v7562_v63 = vadd.f32 %v13722_v6, %v7366_v25 }
 0x442   : > { %v7335_v2 = vpop.f32.mrf.mxu1 }
 0x443   : > { %v13730_v38 = vpop.f32.mrf.mxu0  ;;  %v7368_v24 = vadd.f32 %v7335_v2, %v13698_v51 }
 0x444   : > { %v7337_v1 = vpop.f32.mrf.mxu1 }
 0x445   : > { %v13732_v39 = vpop.f32.mrf.mxu0 }
 0x446   : > { %v7339_v58 = vpop.f32.mrf.mxu1 }
 0x447   : > { %v13734_v15 = vpop.f32.mrf.mxu0  ;;  %v7370_v18 = vadd.f32 %v7339_v58, %v13702_v7  ;;  %v7563_v7 = vadd.f32 %v13724_v34, %v7367_v60 }
 0x448   : > { %v7341_v4 = vpop.f32.mrf.mxu1 }
 0x449   : > { %v13736_v23 = vpop.f32.mrf.mxu0 }
 0x44a   : > { %14162 = vst [vmem:[#allocation9_spill] sm:$0xff] %v13736_v23  ;;  %v7345_v29 = vpop.f32.mrf.mxu1 }
 0x44b   : > { %v13738_v9 = vpop.f32.mrf.mxu0  ;;  %v7372_v51 = vadd.f32 %v7345_v29, %v13710_v31 }
 0x44c   : > { %14163 = vst [vmem:[#allocation14_spill] sm:$0xff] %v13738_v9  ;;  %v7347_v19 = vpop.f32.mrf.mxu1 }
 0x44d   : > { %v13740_v26 = vpop.f32.mrf.mxu0  ;;  %v7373_v2 = vadd.f32 %v7347_v19, %v7183_v48  ;;  %v8034_v48 = vld [vmem:[%s13911_s7 + $0x10] sm:$0xff] }
 0x44e   : > { %14164 = vst [vmem:[#allocation21_spill] sm:$0xff] %v13740_v26  ;;  %v7349_v5 = vpop.f32.mrf.mxu1  ;;  %v6995_v26 = vadd.f32 %v6971_v55, %v13679_v50  ;;  %v6999_v50 = vadd.f32 %v6981_v56, %v13688_v41  ;;  %v7561_v56 = vadd.f32 %v7523_v46, %v7365_v59  ;;  %v7371_v46 = vadd.f32 %v7341_v4, %v13706_v22 }
 0x44f   : > { %v13742_v62 = vpop.f32.mrf.mxu0  ;;  %v7566_v22 = vadd.f32 %v13730_v38, %v7370_v18 }
 0x450   : > { %14165 = vst [vmem:[#allocation12_spill] sm:$0xff] %v13742_v62  ;;  %v7351_v49 = vpop.f32.mrf.mxu1  ;;  %v7964_v62 = vsub.s32 1, %v13744_v14  ;;  %v7185_v52 = vadd.f32 %v13712_v13, %v6995_v26  ;;  %v13794_v13 = vadd.f32 %v13720_v40, %v6999_v50  ;;  %v8032_v50 = vld [vmem:[%s13911_s7] sm:$0xff] }
 0x451   : > { %v13746_v21 = vpop.f32.mrf.mxu0 }
 0x452   : > { %14166 = vst [vmem:[#allocation19_spill] sm:$0xff] %v13746_v21  ;;  %v13748_v28 = vpop.f32.mrf.mxu1  ;;  %v6994_v21 = vadd.f32 %v6969_v61, %v13677_v27  ;;  %v13775_v27 = vrot.slane %v7956_v17, %v14170_v35  ;;  %v7560_v61 = vadd.f32 %v7521_v33, %v7364_v11  ;;  %v13779_v55 = vrot.slane %v7956_v17, %v7964_v62  ;;  %v14171_v11 = vld [vmem:[#allocation9_spill] sm:$0xff] }
 0x453   : > { %14167 = vst [vmem:[#allocation15_spill] sm:$0xff] %v13748_v28  ;;  %v13750_v44 = vpop.f32.mrf.mxu0  ;;  %v7369_v33 = vadd.f32 %v7337_v1, %v13700_v12  ;;  %v7375_v40 = vadd.f32 %v7351_v49, %v7185_v52  ;;  %v7568_v49 = vadd.f32 %v13734_v15, %v7372_v51  ;;  %v13808_v17 = vadd.f32 %v14171_v11, %v7373_v2  ;;  %v14172_v38 = vld [vmem:[#allocation14_spill] sm:$0xff] }
 0x454   : > { %14168 = vst [vmem:[#allocation8_spill] sm:$0xff] %v13750_v44  ;;  %v13752_v0 = vpop.f32.mrf.mxu1 }
 0x455   : > { %14169 = vst [vmem:[#allocation5_spill] sm:$0xff] %v13752_v0  ;;  %v13763_v28 = vpop.f32.mrf.mxu0  ;;  %v6998_v0 = vadd.f32 %v6979_v54, %v13686_v43  ;;  %v7184_v43 = vadd.f32 %v13708_v20, %v6994_v21  ;;  %v7186_v54 = vadd.f32 %v13714_v36, %v6996_v16  ;;  %v7565_v6 = vadd.f32 %v13728_v30, %v7369_v33  ;;  %v14174_v52 = vld [vmem:[#allocation21_spill] sm:$0xff] }
 0x456   : > { %v13765_v44 = vpop.f32.mrf.mxu1  ;;  %v7567_v16 = vadd.f32 %v13732_v39, %v7371_v46 }
 0x457   : > { %v7901_v9 = vpop.f32.mrf.mxu0  ;;  %v13791_v47 = vadd.f32 %v13718_v8, %v6998_v0  ;;  %v7374_v8 = vadd.f32 %v7349_v5, %v7184_v43  ;;  %v7564_v0 = vadd.f32 %v13726_v53, %v7368_v24 }
 0x458   : > { %v13771_v23 = vpop.f32.mrf.mxu1 }
 0x459   : > { %v7903_v10 = vpop.f32.mrf.mxu0  ;;  %v13812_v3 = vadd.f32 %v14172_v38, %v7374_v8 }
 0x45a   : > { %v7711_v45 = vpop.f32.mrf.mxu1  ;;  %v14173_v42 = vld [vmem:[#allocation15_spill] sm:$0xff] }
 0x45b   : > { %v7750_v41 = vadd.f32 %v7711_v45, %v7560_v61  ;;  %v7905_v20 = vpop.f32.mrf.mxu0  ;;  %v7376_v59 = vadd.f32 %v14173_v42, %v7186_v54 }
 0x45c   : > { %v7713_v57 = vpop.f32.mrf.mxu1  ;;  %v14175_v45 = vld [vmem:[#allocation5_spill] sm:$0xff] }
 0x45d   : > { %v7940_v32 = vadd.f32 %v7901_v9, %v7750_v41  ;;  %v7751_v36 = vadd.f32 %v7713_v57, %v7561_v56  ;;  %v7907_v12 = vpop.f32.mrf.mxu0  ;;  %v13825_v54 = vadd.f32 %v14175_v45, %v7187_v37  ;;  %v8033_v56 = vld [vmem:[%s13911_s7 + $0x8] sm:$0xff]  ;;  %v8035_v37 = vld [vmem:[%s13911_s7 + $0x18] sm:$0xff] }
 0x45e   : > { %v7715_v1 = vpop.f32.mrf.mxu1 }
 0x45f   : > { %v7968_v58 = vadd.f32 %v13775_v27, %v7940_v32  ;;  %v7941_v26 = vadd.f32 %v7903_v10, %v7751_v36  ;;  %v7752_v62 = vadd.f32 %v7715_v1, %v7562_v63  ;;  %v7911_v21 = vpop.f32.mrf.mxu0  ;;  %v13822_v10 = vadd.f32 %v14174_v52, %v7375_v40 }
 0x460   : > { %v7717_v9 = vpop.f32.mrf.mxu1 }
 0x461   : > { %vm7984_vm5 = vcmp.ge.f32.partialorder %v7968_v58, 0.0  ;;  %v8000_v31 = vmul.f32 0.2, %v7968_v58  ;;  %v7969_v4 = vadd.f32 %v13779_v55, %v7941_v26  ;;  %v7942_v29 = vadd.f32 %v7905_v20, %v7752_v62  ;;  %v7913_v19 = vpop.f32.mrf.mxu0 }
 0x462   : > { %v7753_v34 = vadd.f32 %v7717_v9, %v7563_v7  ;;  %v7721_v5 = vpop.f32.mrf.mxu1  ;;  %v8036_v9 = vld [vmem:[%s13911_s7 + $0x20] sm:$0xff] }
 0x463   : > { %vm7985_vm1 = vcmp.ge.f32.partialorder %v7969_v4, 0.0  ;;  %v8001_v53 = vmul.f32 0.2, %v7969_v4  ;;  %v7970_v30 = vadd.f32 %v13775_v27, %v7942_v29  ;;  %v8016_v35 = vsel %vm7984_vm5, %v7968_v58, %v8000_v31  ;;  %v7915_v15 = vpop.f32.mrf.mxu0 }
 0x464   : > { %v7943_v39 = vadd.f32 %v7907_v12, %v7753_v34  ;;  %v7754_v25 = vadd.f32 %v7721_v5, %v7564_v0  ;;  %v7723_v61 = vpop.f32.mrf.mxu1  ;;  %v8048_v57 = vmul.f32 %v8032_v50, %v8016_v35 }
 0x465   : > { %vm7986_vm2 = vcmp.ge.f32.partialorder %v7970_v30, 0.0  ;;  %v8002_v60 = vmul.f32 0.2, %v7970_v30  ;;  %v7755_v43 = vadd.f32 %v7723_v61, %v7565_v6  ;;  %v8017_v41 = vsel %vm7985_vm1, %v7969_v4, %v8001_v53  ;;  %v7917_v18 = vpop.f32.mrf.mxu0  ;;  %v8037_v4 = vld [vmem:[%s13911_s7 + $0x28] sm:$0xff]  ;;  %v14176_v53 = vld [vmem:[#allocation12_spill] sm:$0xff] }
 0x466   : > { %v7971_v24 = vadd.f32 %v13779_v55, %v7943_v39  ;;  %v7944_v33 = vadd.f32 %v7911_v21, %v7754_v25  ;;  %v7725_v20 = vpop.f32.mrf.mxu1  ;;  %v8049_v7 = vmul.f32 %v8033_v56, %v8017_v41  ;;  %v8038_v25 = vld [vmem:[%s13911_s7 + $0x30] sm:$0xff] }
 0x467   : > { %v8018_v32 = vsel %vm7986_vm2, %v7970_v30, %v8002_v60  ;;  %v7945_v36 = vadd.f32 %v7913_v19, %v7755_v43  ;;  %v7756_v63 = vadd.f32 %v7725_v20, %v7566_v22  ;;  %v7921_v12 = vpop.f32.mrf.mxu0  ;;  %v7572_v30 = vadd.f32 %v14176_v53, %v7376_v59 }
 0x468   : > { %v8050_v46 = vmul.f32 %v8034_v48, %v8018_v32  ;;  %vm7987_vm4 = vcmp.ge.f32.partialorder %v7971_v24, 0.0  ;;  %v8003_v51 = vmul.f32 0.2, %v7971_v24  ;;  %v7972_v2 = vadd.f32 %v13775_v27, %v7944_v33  ;;  %v7727_v1 = vpop.f32.mrf.mxu1 }
 0x469   : > { %v7973_v8 = vadd.f32 %v13779_v55, %v7945_v36  ;;  %v7946_v58 = vadd.f32 %v7915_v15, %v7756_v63  ;;  %v7757_v26 = vadd.f32 %v7727_v1, %v7567_v16  ;;  %v7923_v0 = vpop.f32.mrf.mxu0  ;;  %v14177_v63 = vld [vmem:[#allocation19_spill] sm:$0xff] }
 0x46a   : > { %v8064_v62 = vadd.f32 %v8050_v46, %v8048_v57  ;;  %v8019_v40 = vsel %vm7987_vm4, %v7971_v24, %v8003_v51  ;;  %vm7988_vm6 = vcmp.ge.f32.partialorder %v7972_v2, 0.0  ;;  %v8004_v21 = vmul.f32 0.2, %v7972_v2  ;;  %v7731_v6 = vpop.f32.mrf.mxu1  ;;  %v8039_v24 = vld [vmem:[%s13911_s7 + $0x38] sm:$0xff] }
 0x46b   : > { %v8051_v22 = vmul.f32 %v8035_v37, %v8019_v40  ;;  %vm7989_vm7 = vcmp.ge.f32.partialorder %v7973_v8, 0.0  ;;  %v8005_v31 = vmul.f32 0.2, %v7973_v8  ;;  %v7974_v29 = vadd.f32 %v13775_v27, %v7946_v58  ;;  %v7925_v16 = vpop.f32.mrf.mxu0 }
 0x46c   : > { %v8020_v34 = vsel %vm7988_vm6, %v7972_v2, %v8004_v21  ;;  %v7947_v19 = vadd.f32 %v7917_v18, %v7757_v26  ;;  %v7758_v5 = vadd.f32 %v7731_v6, %v7568_v49  ;;  %v7733_v11 = vpop.f32.mrf.mxu1  ;;  %v7378_v49 = vadd.f32 %v13765_v44, %v13791_v47 }
 0x46d   : > { %v8077_v38 = vadd.f32 %v8051_v22, %v8049_v7  ;;  %v8052_v42 = vmul.f32 %v8036_v9, %v8020_v34  ;;  %v8021_v35 = vsel %vm7989_vm7, %v7973_v8, %v8005_v31  ;;  %vm7990_vm8 = vcmp.ge.f32.partialorder %v7974_v29, 0.0  ;;  %v7927_v60 = vpop.f32.mrf.mxu0  ;;  %v8042_v31 = vld [vmem:[%s13911_s7 + $0x50] sm:$0xff] }
 0x46e   : > { %v8053_v50 = vmul.f32 %v8037_v4, %v8021_v35  ;;  %v8006_v39 = vmul.f32 0.2, %v7974_v29  ;;  %v7975_v15 = vadd.f32 %v13779_v55, %v7947_v19  ;;  %v7948_v61 = vadd.f32 %v7921_v12, %v7758_v5  ;;  %v7735_v48 = vpop.f32.mrf.mxu1  ;;  %v8040_v12 = vld [vmem:[%s13911_s7 + $0x40] sm:$0xff] }
 0x46f   : > { %v8065_v43 = vadd.f32 %v8064_v62, %v8052_v42  ;;  %v7759_v59 = vadd.f32 %v7733_v11, %v13808_v17  ;;  %v7760_v52 = vadd.f32 %v7735_v48, %v13812_v3  ;;  %v7931_v33 = vpop.f32.mrf.mxu0  ;;  %v7379_v47 = vadd.f32 %v13771_v23, %v13794_v13 }
 0x470   : > { %v8078_v45 = vadd.f32 %v8077_v38, %v8053_v50  ;;  %v8022_v41 = vsel %vm7990_vm8, %v7974_v29, %v8006_v39  ;;  %vm7991_vm9 = vcmp.ge.f32.partialorder %v7975_v15, 0.0  ;;  %v8007_v56 = vmul.f32 0.2, %v7975_v15  ;;  %v7737_v18 = vpop.f32.mrf.mxu1  ;;  %v8043_v50 = vld [vmem:[%s13911_s7 + $0x58] sm:$0xff] }
 0x471   : > { %v8054_v20 = vmul.f32 %v8038_v25, %v8022_v41  ;;  %v7976_v57 = vadd.f32 %v13775_v27, %v7948_v61  ;;  %v7949_v32 = vadd.f32 %v7923_v0, %v7759_v59  ;;  %v7950_v44 = vadd.f32 %v7925_v16, %v7760_v52  ;;  %v7933_v13 = vpop.f32.mrf.mxu0  ;;  %v8041_v0 = vld [vmem:[%s13911_s7 + $0x48] sm:$0xff]  ;;  %v8044_v59 = vld [vmem:[%s13911_s7 + $0x60] sm:$0xff] }
 0x472   : > { %v8023_v17 = vsel %vm7991_vm9, %v7975_v15, %v8007_v56  ;;  %v7761_v3 = vadd.f32 %v7737_v18, %v13822_v10  ;;  %v7741_v36 = vpop.f32.mrf.mxu1  ;;  %v7573_v46 = vadd.f32 %v14177_v63, %v13825_v54  ;;  %v14178_v54 = vld [vmem:[#allocation8_spill] sm:$0xff]  ;;  %v7575_v53 = vadd.f32 %v13763_v28, %v7379_v47  ;;  %v8045_v41 = vld [vmem:[%s13911_s7 + $0x68] sm:$0xff]  ;;  %v8046_v47 = vld [vmem:[%s13911_s7 + $0x70] sm:$0xff] }
 0x473   : > { %v8066_v51 = vadd.f32 %v8065_v43, %v8054_v20  ;;  %v8055_v37 = vmul.f32 %v8039_v24, %v8023_v17  ;;  %vm7992_vm10 = vcmp.ge.f32.partialorder %v7976_v57, 0.0  ;;  %v8008_v2 = vmul.f32 0.2, %v7976_v57  ;;  %v7935_v16 = vpop.f32.mrf.mxu0 }
 0x474   : > { %v7977_v1 = vadd.f32 %v13779_v55, %v7949_v32  ;;  %v7978_v7 = vadd.f32 %v13775_v27, %v7950_v44  ;;  %v7951_v23 = vadd.f32 %v7927_v60, %v7761_v3  ;;  %v7762_v8 = vadd.f32 %v7741_v36, %v7572_v30  ;;  %v7743_v10 = vpop.f32.mrf.mxu1 }
 0x475   : > { %v8079_v58 = vadd.f32 %v8078_v45, %v8055_v37  ;;  %v8024_v26 = vsel %vm7992_vm10, %v7976_v57, %v8008_v2  ;;  %v7763_v62 = vadd.f32 %v7743_v10, %v7573_v46  ;;  %v7574_v40 = vadd.f32 %v14178_v54, %v7378_v49  ;;  %v7937_v52 = vpop.f32.mrf.mxu0 }
 0x476   : > { %v8056_v21 = vmul.f32 %v8040_v12, %v8024_v26  ;;  %vm7993_vm11 = vcmp.ge.f32.partialorder %v7977_v1, 0.0  ;;  %v8009_v9 = vmul.f32 0.2, %v7977_v1  ;;  %vm7994_vm12 = vcmp.ge.f32.partialorder %v7978_v7, 0.0  ;;  %v7745_v6 = vpop.f32.mrf.mxu1 }
 0x477   : > { %v8010_v22 = vmul.f32 0.2, %v7978_v7  ;;  %v7979_v4 = vadd.f32 %v13779_v55, %v7951_v23  ;;  %v7952_v29 = vadd.f32 %v7931_v33, %v7762_v8  ;;  %v7953_v34 = vadd.f32 %v7933_v13, %v7763_v62 }
 0x478   : > { %v8067_v19 = vadd.f32 %v8066_v51, %v8056_v21  ;;  %v8025_v5 = vsel %vm7993_vm11, %v7977_v1, %v8009_v9  ;;  %v7764_v11 = vadd.f32 %v7745_v6, %v7574_v40  ;;  %v7747_v30 = vpop.f32.mrf.mxu1  ;;  %v8093_v6 = vld [vmem:[#allocation4] sm:$0x1] }
 0x479   : > { %v8057_v38 = vmul.f32 %v8041_v0, %v8025_v5  ;;  %v8026_v42 = vsel %vm7994_vm12, %v7978_v7, %v8010_v22  ;;  %vm7995_vm13 = vcmp.ge.f32.partialorder %v7979_v4, 0.0  ;;  %v8011_v35 = vmul.f32 0.2, %v7979_v4 }
 0x47a   : > { %v8058_v39 = vmul.f32 %v8042_v31, %v8026_v42  ;;  %v7980_v25 = vadd.f32 %v13775_v27, %v7952_v29  ;;  %v7981_v15 = vadd.f32 %v13779_v55, %v7953_v34  ;;  %v7954_v61 = vadd.f32 %v7935_v16, %v7764_v11 }
 0x47b   : > { %v8080_v60 = vadd.f32 %v8079_v58, %v8057_v38  ;;  %v8027_v48 = vsel %vm7995_vm13, %v7979_v4, %v8011_v35  ;;  %v7765_v49 = vadd.f32 %v7747_v30, %v7575_v53  ;;  %v14179_v38 = vsub.s32 0, %v13744_v14 }
 0x47c   : > { %v8059_v43 = vmul.f32 %v8043_v50, %v8027_v48  ;;  %vm7996_vm14 = vcmp.ge.f32.partialorder %v7980_v25, 0.0  ;;  %v8012_v28 = vmul.f32 0.2, %v7980_v25  ;;  %vm7997_vm15 = vcmp.ge.f32.partialorder %v7981_v15, 0.0 }
 0x47d   : > { %v8013_v45 = vmul.f32 0.2, %v7981_v15  ;;  %v7982_v56 = vadd.f32 %v13775_v27, %v7954_v61  ;;  %v7955_v24 = vadd.f32 %v7937_v52, %v7765_v49  ;;  %v8068_v33 = vadd.f32 %v8067_v19, %v8058_v39  ;;  %v8047_v27 = vld [vmem:[%s13911_s7 + $0x78] sm:$0xff] }
 0x47e   : > { %v8028_v18 = vsel %vm7996_vm14, %v7980_v25, %v8012_v28  ;;  %v8081_v20 = vadd.f32 %v8080_v60, %v8059_v43 }
 0x47f   : > { %v8060_v57 = vmul.f32 %v8044_v59, %v8028_v18  ;;  %v8029_v32 = vsel %vm7997_vm15, %v7981_v15, %v8013_v45  ;;  %vm7998_vm3 = vcmp.ge.f32.partialorder %v7982_v56, 0.0  ;;  %v8014_v44 = vmul.f32 0.2, %v7982_v56 }
 0x480   : > { %v8061_v17 = vmul.f32 %v8045_v41, %v8029_v32  ;;  %v7983_v3 = vadd.f32 %v13779_v55, %v7955_v24 }
 0x481   : > { %v8030_v36 = vsel %vm7998_vm3, %v7982_v56, %v8014_v44  ;;  %v8069_v63 = vadd.f32 %v8068_v33, %v8060_v57 }
 0x482   : > { %vm7999_vm0 = vcmp.ge.f32.partialorder %v7983_v3, 0.0  ;;  %v8015_v46 = vmul.f32 0.2, %v7983_v3  ;;  %v8062_v51 = vmul.f32 %v8046_v47, %v8030_v36  ;;  %v8082_v37 = vadd.f32 %v8081_v20, %v8061_v17 }
 0x484   : > { %v8031_v2 = vsel %vm7999_vm0, %v7983_v3, %v8015_v46  ;;  %v8070_v12 = vadd.f32 %v8069_v63, %v8062_v51 }
 0x485   : > { %v8063_v1 = vmul.f32 %v8047_v27, %v8031_v2 }
 0x486   : > { %v8071_v7 = vrot.slane %v8070_v12, 4 }
 0x487   : > { %v8083_v23 = vadd.f32 %v8082_v37, %v8063_v1 }
 0x488   : > { %v8072_v13 = vadd.f32 %v8071_v7, %v8070_v12 }
 0x489   : > { %v8084_v8 = vrot.slane %v8083_v23, 4 }
 0x48a   : > { %v8073_v10 = vrot.slane %v8072_v13, 2 }
 0x48b   : > { %v8085_v58 = vadd.f32 %v8084_v8, %v8083_v23 }
 0x48c   : > { %v8074_v55 = vadd.f32 %v8073_v10, %v8072_v13 }
 0x48d   : > { %v8086_v26 = vrot.slane %v8085_v58, 2 }
 0x48e   : > { %v8075_v62 = vrot.slane %v8074_v55, 1 }
 0x48f   : > { %v8087_v54 = vadd.f32 %v8086_v26, %v8085_v58 }
 0x490   : > { %v8076_v21 = vadd.f32 %v8075_v62, %v8074_v55 }
 0x491   : > { %v8088_v40 = vrot.slane %v8087_v54, 1 }
 0x493   : > { %v8089_v9 = vadd.f32 %v8088_v40, %v8087_v54 }
 0x495   : > { %v8090_v0 = vadd.f32 %v8089_v9, %v8076_v21 }
 0x497   : > { %8091 = vadd.xlane.f32.xlu0 %v8090_v0 }
 0x520   : > { %v8092_v22 = vpop.xlane.xlu0 %8091 }
 0x521   : > { %v8094_v31 = vadd.f32 %v8093_v6, %v8092_v22 }
 0x523   : > { %v8095_v4 = vand.u32 2147483647, %v8094_v31  ;;  %vm8099_vm5 = vcmp.ge.f32.partialorder %v8094_v31, 0.0 }
 0x525   : > { %v8096_v29 = vsub.f32 0.0, %v8095_v4 }
 0x527   : > { %v8097_v34 = vmul.f32 1.442695, %v8096_v29 }
 0x529   : > { %10148 = vpow2.f32 %v8097_v34 }
 0x536   : > { %v10149_v19 = vpop.eup %10148 }
 0x537   : > { %v8100_v5 = vadd.f32 1.0, %v10149_v19 }
 0x539   : > { %10150 = vrcp.f32 %v8100_v5 }
 0x546   : > { %v10151_v16 = vpop.eup %10150 }
 0x547   : > { %v8103_v11 = vmul.f32 %v10151_v16, %v10149_v19 }
 0x549   : > { %v8104_v53 = vsel %vm8099_vm5, %v10151_v16, %v8103_v11 }
 0x54a   : > { %8107 = vperm.xlu0 %9791, %v8104_v53  }
 0x5c5   : > { %v8108_v30 = vpop.permute.xlu0 %8107 }
 0x5c6   : > { %v8113_v42 = vrot.slane %v8108_v30, %v14179_v38 }
 0x5c8   : > { %8114 = vst [vmem:[%s330_s24] sm:$0x1] %v8113_v42 }
 0x5c9 PF: > { %s21_s11 = sadd.s32 1, %s10179_s11  }
 0x5ca   : > { %p18_p4 = scmp.ge.s32.totalorder %s21_s11, 4  }
 0x5cc   :  { %20 = sbr.rel (!%p18_p4) target bundleno = 3 (0x3), region = 110 }

</bundles_post_ra>
